<compile_context>
chip_gen: v7x
topology: tpu7x:2x2x1
jax: 0.10.0
libtpu: 0.0.40
codegen_flags: <defaults>
</compile_context>

<pallas_src>
import functools

import jax
import jax.numpy as jnp
from jax.experimental import pallas as pl
from jax.experimental.pallas import tpu as pltpu

F32 = jnp.float32
BF16 = jnp.bfloat16


# ----------------------------------------------------------------------------
# In-kernel helper: 3x3 "same" conv + bias + ReLU from a zero-halo scratch.
# ----------------------------------------------------------------------------
def _conv3x3_relu(pad_ref, w_ref, b_ref, bsz, h, w, cin):
    """pad_ref: (bsz, h+2, w+2, cin) bf16 scratch ref (1-px halo already zero).
       w_ref:   (9, cin, cout) bf16 ref, tap index k = dy*3 + dx.
       b_ref:   (1, cout) f32 ref.
       returns  (bsz*h*w, cout) f32.

    Each tap slices the window and one weight tap straight off the refs, so
    the live vreg set is ~ acc + one patch + one tap (no whole-scratch /
    whole-weight materialization -> no spills).  bf16 MXU dots, f32 accum.
    """
    m = bsz * h * w
    acc = None
    for k in range(9):
        dy, dx = divmod(k, 3)
        patch = pad_ref[:, dy:dy + h, dx:dx + w, :].reshape(m, cin)   # bf16
        d = jnp.dot(patch, w_ref[k], preferred_element_type=F32)
        acc = d if acc is None else acc + d
    return jnp.maximum(acc + b_ref[...], 0.0)                         # f32 epilogue


# ----------------------------------------------------------------------------
# Fused UNet forward kernel (one grid step == B_TILE batch elements).
# ----------------------------------------------------------------------------
def _unet_kernel(x_ref,
                 w1_ref, b1_ref, w2_ref, b2_ref,
                 w3_ref, b3_ref, w4_ref, b4_ref,
                 up_w_ref, up_b_ref,
                 o_ref,
                 pad_e2, pad_d,
                 *, B, H, W, Cin, Cmid, Cout):
    Ho, Wo = H // 2, W // 2
    M1 = B * H * W
    M2 = B * Ho * Wo

    # ---- zero only the 1-px halo strips (interiors are fully rewritten). ----
    pad_e2[:, 0, :, :] = jnp.zeros((B, W + 2, Cmid), BF16)
    pad_e2[:, H + 1, :, :] = jnp.zeros((B, W + 2, Cmid), BF16)
    pad_e2[:, :, 0, :] = jnp.zeros((B, H + 2, Cmid), BF16)
    pad_e2[:, :, W + 1, :] = jnp.zeros((B, H + 2, Cmid), BF16)
    pad_d[:, 0, :, :] = jnp.zeros((B, Wo + 2, Cmid), BF16)
    pad_d[:, Ho + 1, :, :] = jnp.zeros((B, Wo + 2, Cmid), BF16)
    pad_d[:, :, 0, :] = jnp.zeros((B, Ho + 2, Cmid), BF16)
    pad_d[:, :, Wo + 1, :] = jnp.zeros((B, Ho + 2, Cmid), BF16)

    # ---- encoder conv1: input arrives pre-im2col'd -> one K=9*Cin dot. ------
    xcol = x_ref[...].reshape(M1, 9 * Cin)                         # bf16
    e1 = jnp.dot(xcol, w1_ref[...], preferred_element_type=F32)
    e1 = jnp.maximum(e1 + b1_ref[...], 0.0)                        # (M1, Cmid) f32

    # ---- encoder conv2 on the padded scratch (9 per-tap bf16 dots). ---------
    pad_e2[:, 1:H + 1, 1:W + 1, :] = e1.astype(BF16).reshape(B, H, W, Cmid)
    e2 = _conv3x3_relu(pad_e2, w2_ref, b2_ref, B, H, W, Cmid)      # (M1, Cmid) f32

    # ---- fused MaxPool2d(2,2): h-pairs via one vectorized max (leading-dim
    #      split, layout-preserving), w-pairs as Wo static column maxes whose
    #      results land directly in the decoder scratch interior.  No extra
    #      scratch, no strided reads.
    e2v = e2.reshape(B, Ho, 2, W, Cmid)
    hm = jnp.maximum(e2v[:, :, 0], e2v[:, :, 1])                   # (B, Ho, W, Cmid) f32
    for wo in range(Wo):
        col = jnp.maximum(hm[:, :, 2 * wo, :], hm[:, :, 2 * wo + 1, :])
        pad_d[:, 1:Ho + 1, 1 + wo, :] = col.astype(BF16)           # (B, Ho, Cmid)

    # ---- decoder convs. ------------------------------------------------------
    d1 = _conv3x3_relu(pad_d, w3_ref, b3_ref, B, Ho, Wo, Cmid)     # (M2, Cmid) f32
    pad_d[:, 1:Ho + 1, 1:Wo + 1, :] = d1.astype(BF16).reshape(B, Ho, Wo, Cmid)
    d2 = _conv3x3_relu(pad_d, w4_ref, b4_ref, B, Ho, Wo, Cmid)     # (M2, Cmid) f32

    # ---- ConvTranspose2d(k=2, s=2): one dot emitting all 4 sub-pixels,
    #      columns ordered (dy, dx, cout). -------------------------------------
    y4 = jnp.dot(d2.astype(BF16), up_w_ref[...],
                 preferred_element_type=F32) + up_b_ref[...]       # (M2, 4*Cout)
    o_ref[...] = y4.reshape(B, Ho * Wo, 4 * Cout)


# ----------------------------------------------------------------------------
# Batch-tile picker: amortize per-step overhead but keep >=2 grid steps so
# v7x's two TensorCores both get work.
# ----------------------------------------------------------------------------
def _pick_batch_tile(n):
    for bt in (8, 4, 2, 1):
        if n % bt == 0 and n // bt >= 2:
            return bt
    return 1


# ----------------------------------------------------------------------------
# Public forward pass (NCHW in / NCHW out, matching the PyTorch UNet.forward).
# ----------------------------------------------------------------------------
def unet_forward(x_nchw, params):
    N, Cin, H, W = x_nchw.shape
    assert H % 2 == 0 and W % 2 == 0, "MaxPool2d(2,2) requires even H and W"
    Cmid = params["enc2_w"].shape[-1]          # 64
    Cout = params["up_w"].shape[1]
    Ho, Wo = H // 2, W // 2
    B = _pick_batch_tile(N)
    steps = N // B

    # NCHW -> NHWC, pad, and im2col the (tiny) network input so enc1 is a
    # single K=9*Cin dot in-kernel.  ~72 KiB of XLA-side layout plumbing.
    x = jnp.transpose(x_nchw, (0, 2, 3, 1))
    xp = jnp.pad(x, ((0, 0), (1, 1), (1, 1), (0, 0)))
    x_i2c = jnp.concatenate(
        [xp[:, dy:dy + H, dx:dx + W, :] for dy in range(3) for dx in range(3)],
        axis=-1).astype(BF16)                                    # (N, H, W, 9*Cin)

    def cw9(wt):   # (3, 3, cin, cout) -> (9, cin, cout), bf16 for the MXU
        return wt.reshape(9, wt.shape[2], wt.shape[3]).astype(BF16)

    def cb(bv):    # bias stays f32 (epilogue runs in f32)
        return bv.reshape(1, -1).astype(F32)

    w1 = params["enc1_w"].reshape(9 * Cin, Cmid).astype(BF16)    # im2col order (dy,dx,ci)
    b1 = cb(params["enc1_b"])
    w2, b2 = cw9(params["enc2_w"]), cb(params["enc2_b"])
    w3, b3 = cw9(params["dec1_w"]), cb(params["dec1_b"])
    w4, b4 = cw9(params["dec2_w"]), cb(params["dec2_b"])
    # ConvTranspose2d weight (Cin, Cout, 2, 2) -> (Cin, 4*Cout), cols (dy,dx,cout)
    up_w = jnp.transpose(params["up_w"], (0, 2, 3, 1)).reshape(
        Cmid, 4 * Cout).astype(BF16)
    up_b = jnp.tile(params["up_b"], 4).reshape(1, 4 * Cout).astype(F32)

    kern = functools.partial(_unet_kernel, B=B, H=H, W=W, Cin=Cin, Cmid=Cmid,
                             Cout=Cout)

    flops = N * (2 * H * W * (9 * Cin) * Cmid           # enc1
                 + 2 * H * W * 9 * Cmid * Cmid          # enc2
                 + 2 * 2 * Ho * Wo * 9 * Cmid * Cmid    # dec1 + dec2
                 + 2 * Ho * Wo * Cmid * 4 * Cout)       # up-conv
    bytes_accessed = (N * H * W * 9 * Cin * 2            # im2col input (bf16)
                      + N * Ho * Wo * 4 * Cout * 4       # output (f32)
                      + (9 * Cin * Cmid + 3 * 9 * Cmid * Cmid
                         + Cmid * 4 * Cout) * 2)         # weights (bf16)

    y = pl.pallas_call(
        kern,
        out_shape=jax.ShapeDtypeStruct((N, Ho * Wo, 4 * Cout), F32),
        grid=(steps,),
        in_specs=[
            pl.BlockSpec((B, H, W, 9 * Cin), lambda n: (n, 0, 0, 0)),
            pl.BlockSpec((9 * Cin, Cmid), lambda n: (0, 0)),
            pl.BlockSpec((1, Cmid), lambda n: (0, 0)),
            pl.BlockSpec((9, Cmid, Cmid), lambda n: (0, 0, 0)),
            pl.BlockSpec((1, Cmid), lambda n: (0, 0)),
            pl.BlockSpec((9, Cmid, Cmid), lambda n: (0, 0, 0)),
            pl.BlockSpec((1, Cmid), lambda n: (0, 0)),
            pl.BlockSpec((9, Cmid, Cmid), lambda n: (0, 0, 0)),
            pl.BlockSpec((1, Cmid), lambda n: (0, 0)),
            pl.BlockSpec((Cmid, 4 * Cout), lambda n: (0, 0)),
            pl.BlockSpec((1, 4 * Cout), lambda n: (0, 0)),
        ],
        out_specs=pl.BlockSpec((B, Ho * Wo, 4 * Cout), lambda n: (n, 0, 0)),
        scratch_shapes=[
            pltpu.VMEM((B, H + 2, W + 2, Cmid), BF16),     # enc2 padded input
            pltpu.VMEM((B, Ho + 2, Wo + 2, Cmid), BF16),   # dec1/dec2 padded input
        ],
        compiler_params=pltpu.CompilerParams(
            dimension_semantics=("parallel",)),            # batch across TCs
        cost_estimate=pl.CostEstimate(flops=flops, transcendentals=0,
                                      bytes_accessed=bytes_accessed),
    )(x_i2c, w1, b1, w2, b2, w3, b3, w4, b4, up_w, up_b)

    # Pixel-shuffle + channels-first on the tiny (N, Ho*Wo, 4*Cout) result:
    # (n, hi*Wo+wi, (dy,dx,c)) -> (n, c, 2*hi+dy, 2*wi+dx).
    # TODO(synk): make the writeback lane-dense / in-kernel if Cout or H grow.
    y = y.reshape(N, Ho, Wo, 2, 2, Cout)
    y = jnp.transpose(y, (0, 5, 1, 3, 2, 4)).reshape(N, Cout, H, W)
    return y


# ----------------------------------------------------------------------------
# Parameters.  Conv weights kept as (kh, kw, Cin, Cout); ConvTranspose as the
# PyTorch (Cin, Cout, kh, kw) layout.  (Porting a real PyTorch state_dict —
# Conv2d stores (Cout, Cin, kh, kw) — requires a transpose.)
# ----------------------------------------------------------------------------
def init_params(key, in_ch, out_ch):
    ks = jax.random.split(key, 10)

    def w(k, shape, fan_in):
        return jax.random.normal(k, shape, F32) / jnp.sqrt(float(fan_in))

    def bvec(k, n, fan_in):
        return 0.01 * jax.random.normal(k, (n,), F32) / jnp.sqrt(float(fan_in))

    return {
        "enc1_w": w(ks[0], (3, 3, in_ch, 64), 9 * in_ch),
        "enc1_b": bvec(ks[1], 64, 9 * in_ch),
        "enc2_w": w(ks[2], (3, 3, 64, 64), 9 * 64),
        "enc2_b": bvec(ks[3], 64, 9 * 64),
        "dec1_w": w(ks[4], (3, 3, 64, 64), 9 * 64),
        "dec1_b": bvec(ks[5], 64, 9 * 64),
        "dec2_w": w(ks[6], (3, 3, 64, 64), 9 * 64),
        "dec2_b": bvec(ks[7], 64, 9 * 64),
        "up_w": w(ks[8], (64, out_ch, 2, 2), 4 * 64),
        "up_b": bvec(ks[9], out_ch, 4 * 64),
    }


# ----------------------------------------------------------------------------
# Pure-JAX reference (f32, HIGHEST precision) for a correctness cross-check.
# ----------------------------------------------------------------------------
def unet_reference(x, params):
    dn = ("NCHW", "HWIO", "NCHW")
    prec = jax.lax.Precision.HIGHEST

    def conv(h, wt, bv):
        y = jax.lax.conv_general_dilated(h, wt, (1, 1), ((1, 1), (1, 1)),
                                         dimension_numbers=dn, precision=prec)
        return jax.nn.relu(y + bv[None, :, None, None])

    h = conv(x, params["enc1_w"], params["enc1_b"])
    h = conv(h, params["enc2_w"], params["enc2_b"])
    h = jnp.maximum(jnp.maximum(h[:, :, 0::2, 0::2], h[:, :, 0::2, 1::2]),
                    jnp.maximum(h[:, :, 1::2, 0::2], h[:, :, 1::2, 1::2]))
    h = conv(h, params["dec1_w"], params["dec1_b"])
    h = conv(h, params["dec2_w"], params["dec2_b"])
    # ConvTranspose2d(k=2, s=2) is non-overlapping: einsum + interleave.
    t = jnp.einsum("nihw,iode->nohdwe", h, params["up_w"], precision=prec)
    N, Co, Ho, _, Wo, _ = t.shape
    return t.reshape(N, Co, 2 * Ho, 2 * Wo) + params["up_b"][None, :, None, None]


if __name__ == "__main__":
    key = jax.random.PRNGKey(0)
    kx, kp = jax.random.split(key)

    in_ch, out_ch = 4, 3
    x = jax.random.normal(kx, (2, in_ch, 16, 16), F32)   # NCHW like PyTorch
    params = init_params(kp, in_ch, out_ch)

    fwd = jax.jit(unet_forward)
    y = fwd(x, params)
    jax.block_until_ready(y)

    assert y.shape == (2, out_ch, 16, 16), y.shape
    assert y.dtype == F32

    # bf16 matmuls / bf16 scratch activations (f32 accumulate) vs f32 reference.
    y_ref = unet_reference(x, params)
    err = float(jnp.max(jnp.abs(y - y_ref)))
    assert err < 1e-1, f"max |kernel - reference| = {err}"

    print("KERNEL_OK")
</pallas_src>

<mosaic_0001>
module attributes {stable_mosaic.version = 11 : i64} {
  func.func @_unet_kernel(%arg0: i32, %arg1: memref<1x16x16x36xbf16, #tpu.memory_space<vmem>>, %arg2: memref<36x64xbf16, #tpu.memory_space<vmem>>, %arg3: memref<1x64xf32, #tpu.memory_space<vmem>>, %arg4: memref<9x64x64xbf16, #tpu.memory_space<vmem>>, %arg5: memref<1x64xf32, #tpu.memory_space<vmem>>, %arg6: memref<9x64x64xbf16, #tpu.memory_space<vmem>>, %arg7: memref<1x64xf32, #tpu.memory_space<vmem>>, %arg8: memref<9x64x64xbf16, #tpu.memory_space<vmem>>, %arg9: memref<1x64xf32, #tpu.memory_space<vmem>>, %arg10: memref<64x12xbf16, #tpu.memory_space<vmem>>, %arg11: memref<1x12xf32, #tpu.memory_space<vmem>>, %arg12: memref<1x64x12xf32, #tpu.memory_space<vmem>>, %arg13: memref<1x18x18x64xbf16, #tpu.memory_space<vmem>>, %arg14: memref<1x10x10x64xbf16, #tpu.memory_space<vmem>>) attributes {dimension_semantics = [#tpu.dimension_semantics<parallel>], iteration_bounds = array<i64: 2>, scalar_prefetch = 0 : i64, scratch_operands = 2 : i64, tpu.core_type = #tpu.core_type<tc>, window_params = [{transform_indices = @transform_0, window_bounds = array<i64: 1, 16, 16, 36>}, {pipeline_mode = #tpu.pipeline_mode<synchronous>, transform_indices = @transform_1, window_bounds = array<i64: 36, 64>}, {pipeline_mode = #tpu.pipeline_mode<synchronous>, transform_indices = @transform_2, window_bounds = array<i64: 1, 64>}, {pipeline_mode = #tpu.pipeline_mode<synchronous>, transform_indices = @transform_3, window_bounds = array<i64: 9, 64, 64>}, {pipeline_mode = #tpu.pipeline_mode<synchronous>, transform_indices = @transform_4, window_bounds = array<i64: 1, 64>}, {pipeline_mode = #tpu.pipeline_mode<synchronous>, transform_indices = @transform_5, window_bounds = array<i64: 9, 64, 64>}, {pipeline_mode = #tpu.pipeline_mode<synchronous>, transform_indices = @transform_6, window_bounds = array<i64: 1, 64>}, {pipeline_mode = #tpu.pipeline_mode<synchronous>, transform_indices = @transform_7, window_bounds = array<i64: 9, 64, 64>}, {pipeline_mode = #tpu.pipeline_mode<synchronous>, transform_indices = @transform_8, window_bounds = array<i64: 1, 64>}, {pipeline_mode = #tpu.pipeline_mode<synchronous>, transform_indices = @transform_9, window_bounds = array<i64: 64, 12>}, {pipeline_mode = #tpu.pipeline_mode<synchronous>, transform_indices = @transform_10, window_bounds = array<i64: 1, 12>}, {transform_indices = @transform_11, window_bounds = array<i64: 1, 64, 12>}]} {
    %cst = arith.constant 0.000000e+00 : bf16
    %0 = vector.broadcast %cst : bf16 to vector<1x18x64xbf16>
    %c0 = arith.constant 0 : index
    %c0_0 = arith.constant 0 : index
    %c0_1 = arith.constant 0 : index
    %c0_2 = arith.constant 0 : index
    %1 = vector.load %arg13[%c0, %c0_0, %c0_1, %c0_2] : memref<1x18x18x64xbf16, #tpu.memory_space<vmem>>, vector<1x1x18x64xbf16>
    %2 = vector.shape_cast %1 : vector<1x1x18x64xbf16> to vector<1x18x64xbf16>
    %3 = vector.shape_cast %0 : vector<1x18x64xbf16> to vector<1x1x18x64xbf16>
    tpu.vector_store %arg13[%c0, %c0_0, %c0_1, %c0_2], %3 {strides = array<i32>} : memref<1x18x18x64xbf16, #tpu.memory_space<vmem>>, vector<1x1x18x64xbf16>,
    %cst_3 = arith.constant 0.000000e+00 : bf16
    %4 = vector.broadcast %cst_3 : bf16 to vector<1x18x64xbf16>
    %c0_4 = arith.constant 0 : index
    %c17 = arith.constant 17 : index
    %c0_5 = arith.constant 0 : index
    %c0_6 = arith.constant 0 : index
    %5 = vector.load %arg13[%c0_4, %c17, %c0_5, %c0_6] : memref<1x18x18x64xbf16, #tpu.memory_space<vmem>>, vector<1x1x18x64xbf16>
    %6 = vector.shape_cast %5 : vector<1x1x18x64xbf16> to vector<1x18x64xbf16>
    %7 = vector.shape_cast %4 : vector<1x18x64xbf16> to vector<1x1x18x64xbf16>
    tpu.vector_store %arg13[%c0_4, %c17, %c0_5, %c0_6], %7 {strides = array<i32>} : memref<1x18x18x64xbf16, #tpu.memory_space<vmem>>, vector<1x1x18x64xbf16>,
    %cst_7 = arith.constant 0.000000e+00 : bf16
    %8 = vector.broadcast %cst_7 : bf16 to vector<1x18x64xbf16>
    %c0_8 = arith.constant 0 : index
    %c0_9 = arith.constant 0 : index
    %c0_10 = arith.constant 0 : index
    %c0_11 = arith.constant 0 : index
    %9 = vector.load %arg13[%c0_8, %c0_9, %c0_10, %c0_11] : memref<1x18x18x64xbf16, #tpu.memory_space<vmem>>, vector<1x18x1x64xbf16>
    %10 = vector.shape_cast %9 : vector<1x18x1x64xbf16> to vector<1x18x64xbf16>
    %11 = vector.shape_cast %8 : vector<1x18x64xbf16> to vector<1x18x1x64xbf16>
    tpu.vector_store %arg13[%c0_8, %c0_9, %c0_10, %c0_11], %11 {strides = array<i32>} : memref<1x18x18x64xbf16, #tpu.memory_space<vmem>>, vector<1x18x1x64xbf16>,
    %cst_12 = arith.constant 0.000000e+00 : bf16
    %12 = vector.broadcast %cst_12 : bf16 to vector<1x18x64xbf16>
    %c0_13 = arith.constant 0 : index
    %c0_14 = arith.constant 0 : index
    %c17_15 = arith.constant 17 : index
    %c0_16 = arith.constant 0 : index
    %13 = vector.load %arg13[%c0_13, %c0_14, %c17_15, %c0_16] : memref<1x18x18x64xbf16, #tpu.memory_space<vmem>>, vector<1x18x1x64xbf16>
    %14 = vector.shape_cast %13 : vector<1x18x1x64xbf16> to vector<1x18x64xbf16>
    %15 = vector.shape_cast %12 : vector<1x18x64xbf16> to vector<1x18x1x64xbf16>
    tpu.vector_store %arg13[%c0_13, %c0_14, %c17_15, %c0_16], %15 {strides = array<i32>} : memref<1x18x18x64xbf16, #tpu.memory_space<vmem>>, vector<1x18x1x64xbf16>,
    %cst_17 = arith.constant 0.000000e+00 : bf16
    %16 = vector.broadcast %cst_17 : bf16 to vector<1x10x64xbf16>
    %c0_18 = arith.constant 0 : index
    %c0_19 = arith.constant 0 : index
    %c0_20 = arith.constant 0 : index
    %c0_21 = arith.constant 0 : index
    %17 = vector.load %arg14[%c0_18, %c0_19, %c0_20, %c0_21] : memref<1x10x10x64xbf16, #tpu.memory_space<vmem>>, vector<1x1x10x64xbf16>
    %18 = vector.shape_cast %17 : vector<1x1x10x64xbf16> to vector<1x10x64xbf16>
    %19 = vector.shape_cast %16 : vector<1x10x64xbf16> to vector<1x1x10x64xbf16>
    tpu.vector_store %arg14[%c0_18, %c0_19, %c0_20, %c0_21], %19 {strides = array<i32>} : memref<1x10x10x64xbf16, #tpu.memory_space<vmem>>, vector<1x1x10x64xbf16>,
    %cst_22 = arith.constant 0.000000e+00 : bf16
    %20 = vector.broadcast %cst_22 : bf16 to vector<1x10x64xbf16>
    %c0_23 = arith.constant 0 : index
    %c9 = arith.constant 9 : index
    %c0_24 = arith.constant 0 : index
    %c0_25 = arith.constant 0 : index
    %21 = vector.load %arg14[%c0_23, %c9, %c0_24, %c0_25] : memref<1x10x10x64xbf16, #tpu.memory_space<vmem>>, vector<1x1x10x64xbf16>
    %22 = vector.shape_cast %21 : vector<1x1x10x64xbf16> to vector<1x10x64xbf16>
    %23 = vector.shape_cast %20 : vector<1x10x64xbf16> to vector<1x1x10x64xbf16>
    tpu.vector_store %arg14[%c0_23, %c9, %c0_24, %c0_25], %23 {strides = array<i32>} : memref<1x10x10x64xbf16, #tpu.memory_space<vmem>>, vector<1x1x10x64xbf16>,
    %cst_26 = arith.constant 0.000000e+00 : bf16
    %24 = vector.broadcast %cst_26 : bf16 to vector<1x10x64xbf16>
    %c0_27 = arith.constant 0 : index
    %c0_28 = arith.constant 0 : index
    %c0_29 = arith.constant 0 : index
    %c0_30 = arith.constant 0 : index
    %25 = vector.load %arg14[%c0_27, %c0_28, %c0_29, %c0_30] : memref<1x10x10x64xbf16, #tpu.memory_space<vmem>>, vector<1x10x1x64xbf16>
    %26 = vector.shape_cast %25 : vector<1x10x1x64xbf16> to vector<1x10x64xbf16>
    %27 = vector.shape_cast %24 : vector<1x10x64xbf16> to vector<1x10x1x64xbf16>
    tpu.vector_store %arg14[%c0_27, %c0_28, %c0_29, %c0_30], %27 {strides = array<i32>} : memref<1x10x10x64xbf16, #tpu.memory_space<vmem>>, vector<1x10x1x64xbf16>,
    %cst_31 = arith.constant 0.000000e+00 : bf16
    %28 = vector.broadcast %cst_31 : bf16 to vector<1x10x64xbf16>
    %c0_32 = arith.constant 0 : index
    %c0_33 = arith.constant 0 : index
    %c9_34 = arith.constant 9 : index
    %c0_35 = arith.constant 0 : index
    %29 = vector.load %arg14[%c0_32, %c0_33, %c9_34, %c0_35] : memref<1x10x10x64xbf16, #tpu.memory_space<vmem>>, vector<1x10x1x64xbf16>
    %30 = vector.shape_cast %29 : vector<1x10x1x64xbf16> to vector<1x10x64xbf16>
    %31 = vector.shape_cast %28 : vector<1x10x64xbf16> to vector<1x10x1x64xbf16>
    tpu.vector_store %arg14[%c0_32, %c0_33, %c9_34, %c0_35], %31 {strides = array<i32>} : memref<1x10x10x64xbf16, #tpu.memory_space<vmem>>, vector<1x10x1x64xbf16>,
    %c0_36 = arith.constant 0 : index
    %c0_37 = arith.constant 0 : index
    %c0_38 = arith.constant 0 : index
    %c0_39 = arith.constant 0 : index
    %32 = vector.load %arg1[%c0_36, %c0_37, %c0_38, %c0_39] : memref<1x16x16x36xbf16, #tpu.memory_space<vmem>>, vector<1x16x16x36xbf16>
    %33 = vector.shape_cast %32 : vector<1x16x16x36xbf16> to vector<256x36xbf16>
    %c0_40 = arith.constant 0 : index
    %c0_41 = arith.constant 0 : index
    %34 = vector.load %arg2[%c0_40, %c0_41] : memref<36x64xbf16, #tpu.memory_space<vmem>>, vector<36x64xbf16>
    %cst_42 = arith.constant dense<0.000000e+00> : vector<256x64xf32>
    %35 = tpu.matmul %33, %34, %cst_42 {dimension_numbers = #tpu.dot_dimension_numbers<[1], [0], [0], [1], [0, 0, 1, 1], [], []>} : vector<256x36xbf16>, vector<36x64xbf16>, vector<256x64xf32> -> vector<256x64xf32>
    %c0_43 = arith.constant 0 : index
    %c0_44 = arith.constant 0 : index
    %36 = vector.load %arg3[%c0_43, %c0_44] : memref<1x64xf32, #tpu.memory_space<vmem>>, vector<1x64xf32>
    %37 = vector.broadcast %36 : vector<1x64xf32> to vector<256x64xf32>
    %38 = arith.addf %35, %37 : vector<256x64xf32>
    %cst_45 = arith.constant 0.000000e+00 : f32
    %39 = vector.broadcast %cst_45 : f32 to vector<256x64xf32>
    %40 = arith.maximumf %38, %39 : vector<256x64xf32>
    %41 = arith.truncf %40 : vector<256x64xf32> to vector<256x64xbf16>
    %42 = vector.shape_cast %41 : vector<256x64xbf16> to vector<1x16x16x64xbf16>
    %c0_46 = arith.constant 0 : index
    %c1 = arith.constant 1 : index
    %c1_47 = arith.constant 1 : index
    %c0_48 = arith.constant 0 : index
    %43 = vector.load %arg13[%c0_46, %c1, %c1_47, %c0_48] : memref<1x18x18x64xbf16, #tpu.memory_space<vmem>>, vector<1x16x16x64xbf16>
    tpu.vector_store %arg13[%c0_46, %c1, %c1_47, %c0_48], %42 {strides = array<i32>} : memref<1x18x18x64xbf16, #tpu.memory_space<vmem>>, vector<1x16x16x64xbf16>,
    %c0_49 = arith.constant 0 : index
    %c0_50 = arith.constant 0 : index
    %c0_51 = arith.constant 0 : index
    %c0_52 = arith.constant 0 : index
    %44 = vector.load %arg13[%c0_49, %c0_50, %c0_51, %c0_52] : memref<1x18x18x64xbf16, #tpu.memory_space<vmem>>, vector<1x16x16x64xbf16>
    %45 = vector.shape_cast %44 : vector<1x16x16x64xbf16> to vector<256x64xbf16>
    %c0_53 = arith.constant 0 : index
    %c0_54 = arith.constant 0 : index
    %c0_55 = arith.constant 0 : index
    %46 = vector.load %arg4[%c0_53, %c0_54, %c0_55] : memref<9x64x64xbf16, #tpu.memory_space<vmem>>, vector<1x64x64xbf16>
    %47 = vector.shape_cast %46 : vector<1x64x64xbf16> to vector<64x64xbf16>
    %cst_56 = arith.constant dense<0.000000e+00> : vector<256x64xf32>
    %48 = tpu.matmul %45, %47, %cst_56 {dimension_numbers = #tpu.dot_dimension_numbers<[1], [0], [0], [1], [0, 0, 1, 1], [], []>} : vector<256x64xbf16>, vector<64x64xbf16>, vector<256x64xf32> -> vector<256x64xf32>
    %c0_57 = arith.constant 0 : index
    %c0_58 = arith.constant 0 : index
    %c1_59 = arith.constant 1 : index
    %c0_60 = arith.constant 0 : index
    %49 = vector.load %arg13[%c0_57, %c0_58, %c1_59, %c0_60] : memref<1x18x18x64xbf16, #tpu.memory_space<vmem>>, vector<1x16x16x64xbf16>
    %50 = vector.shape_cast %49 : vector<1x16x16x64xbf16> to vector<256x64xbf16>
    %c1_61 = arith.constant 1 : index
    %c0_62 = arith.constant 0 : index
    %c0_63 = arith.constant 0 : index
    %51 = vector.load %arg4[%c1_61, %c0_62, %c0_63] : memref<9x64x64xbf16, #tpu.memory_space<vmem>>, vector<1x64x64xbf16>
    %52 = vector.shape_cast %51 : vector<1x64x64xbf16> to vector<64x64xbf16>
    %cst_64 = arith.constant dense<0.000000e+00> : vector<256x64xf32>
    %53 = tpu.matmul %50, %52, %cst_64 {dimension_numbers = #tpu.dot_dimension_numbers<[1], [0], [0], [1], [0, 0, 1, 1], [], []>} : vector<256x64xbf16>, vector<64x64xbf16>, vector<256x64xf32> -> vector<256x64xf32>
    %54 = arith.addf %48, %53 : vector<256x64xf32>
    %c0_65 = arith.constant 0 : index
    %c0_66 = arith.constant 0 : index
    %c2 = arith.constant 2 : index
    %c0_67 = arith.constant 0 : index
    %55 = vector.load %arg13[%c0_65, %c0_66, %c2, %c0_67] : memref<1x18x18x64xbf16, #tpu.memory_space<vmem>>, vector<1x16x16x64xbf16>
    %56 = vector.shape_cast %55 : vector<1x16x16x64xbf16> to vector<256x64xbf16>
    %c2_68 = arith.constant 2 : index
    %c0_69 = arith.constant 0 : index
    %c0_70 = arith.constant 0 : index
    %57 = vector.load %arg4[%c2_68, %c0_69, %c0_70] : memref<9x64x64xbf16, #tpu.memory_space<vmem>>, vector<1x64x64xbf16>
    %58 = vector.shape_cast %57 : vector<1x64x64xbf16> to vector<64x64xbf16>
    %cst_71 = arith.constant dense<0.000000e+00> : vector<256x64xf32>
    %59 = tpu.matmul %56, %58, %cst_71 {dimension_numbers = #tpu.dot_dimension_numbers<[1], [0], [0], [1], [0, 0, 1, 1], [], []>} : vector<256x64xbf16>, vector<64x64xbf16>, vector<256x64xf32> -> vector<256x64xf32>
    %60 = arith.addf %54, %59 : vector<256x64xf32>
    %c0_72 = arith.constant 0 : index
    %c1_73 = arith.constant 1 : index
    %c0_74 = arith.constant 0 : index
    %c0_75 = arith.constant 0 : index
    %61 = vector.load %arg13[%c0_72, %c1_73, %c0_74, %c0_75] : memref<1x18x18x64xbf16, #tpu.memory_space<vmem>>, vector<1x16x16x64xbf16>
    %62 = vector.shape_cast %61 : vector<1x16x16x64xbf16> to vector<256x64xbf16>
    %c3 = arith.constant 3 : index
    %c0_76 = arith.constant 0 : index
    %c0_77 = arith.constant 0 : index
    %63 = vector.load %arg4[%c3, %c0_76, %c0_77] : memref<9x64x64xbf16, #tpu.memory_space<vmem>>, vector<1x64x64xbf16>
    %64 = vector.shape_cast %63 : vector<1x64x64xbf16> to vector<64x64xbf16>
    %cst_78 = arith.constant dense<0.000000e+00> : vector<256x64xf32>
    %65 = tpu.matmul %62, %64, %cst_78 {dimension_numbers = #tpu.dot_dimension_numbers<[1], [0], [0], [1], [0, 0, 1, 1], [], []>} : vector<256x64xbf16>, vector<64x64xbf16>, vector<256x64xf32> -> vector<256x64xf32>
    %66 = arith.addf %60, %65 : vector<256x64xf32>
    %c0_79 = arith.constant 0 : index
    %c1_80 = arith.constant 1 : index
    %c1_81 = arith.constant 1 : index
    %c0_82 = arith.constant 0 : index
    %67 = vector.load %arg13[%c0_79, %c1_80, %c1_81, %c0_82] : memref<1x18x18x64xbf16, #tpu.memory_space<vmem>>, vector<1x16x16x64xbf16>
    %68 = vector.shape_cast %67 : vector<1x16x16x64xbf16> to vector<256x64xbf16>
    %c4 = arith.constant 4 : index
    %c0_83 = arith.constant 0 : index
    %c0_84 = arith.constant 0 : index
    %69 = vector.load %arg4[%c4, %c0_83, %c0_84] : memref<9x64x64xbf16, #tpu.memory_space<vmem>>, vector<1x64x64xbf16>
    %70 = vector.shape_cast %69 : vector<1x64x64xbf16> to vector<64x64xbf16>
    %cst_85 = arith.constant dense<0.000000e+00> : vector<256x64xf32>
    %71 = tpu.matmul %68, %70, %cst_85 {dimension_numbers = #tpu.dot_dimension_numbers<[1], [0], [0], [1], [0, 0, 1, 1], [], []>} : vector<256x64xbf16>, vector<64x64xbf16>, vector<256x64xf32> -> vector<256x64xf32>
    %72 = arith.addf %66, %71 : vector<256x64xf32>
    %c0_86 = arith.constant 0 : index
    %c1_87 = arith.constant 1 : index
    %c2_88 = arith.constant 2 : index
    %c0_89 = arith.constant 0 : index
    %73 = vector.load %arg13[%c0_86, %c1_87, %c2_88, %c0_89] : memref<1x18x18x64xbf16, #tpu.memory_space<vmem>>, vector<1x16x16x64xbf16>
    %74 = vector.shape_cast %73 : vector<1x16x16x64xbf16> to vector<256x64xbf16>
    %c5 = arith.constant 5 : index
    %c0_90 = arith.constant 0 : index
    %c0_91 = arith.constant 0 : index
    %75 = vector.load %arg4[%c5, %c0_90, %c0_91] : memref<9x64x64xbf16, #tpu.memory_space<vmem>>, vector<1x64x64xbf16>
    %76 = vector.shape_cast %75 : vector<1x64x64xbf16> to vector<64x64xbf16>
    %cst_92 = arith.constant dense<0.000000e+00> : vector<256x64xf32>
    %77 = tpu.matmul %74, %76, %cst_92 {dimension_numbers = #tpu.dot_dimension_numbers<[1], [0], [0], [1], [0, 0, 1, 1], [], []>} : vector<256x64xbf16>, vector<64x64xbf16>, vector<256x64xf32> -> vector<256x64xf32>
    %78 = arith.addf %72, %77 : vector<256x64xf32>
    %c0_93 = arith.constant 0 : index
    %c2_94 = arith.constant 2 : index
    %c0_95 = arith.constant 0 : index
    %c0_96 = arith.constant 0 : index
    %79 = vector.load %arg13[%c0_93, %c2_94, %c0_95, %c0_96] : memref<1x18x18x64xbf16, #tpu.memory_space<vmem>>, vector<1x16x16x64xbf16>
    %80 = vector.shape_cast %79 : vector<1x16x16x64xbf16> to vector<256x64xbf16>
    %c6 = arith.constant 6 : index
    %c0_97 = arith.constant 0 : index
    %c0_98 = arith.constant 0 : index
    %81 = vector.load %arg4[%c6, %c0_97, %c0_98] : memref<9x64x64xbf16, #tpu.memory_space<vmem>>, vector<1x64x64xbf16>
    %82 = vector.shape_cast %81 : vector<1x64x64xbf16> to vector<64x64xbf16>
    %cst_99 = arith.constant dense<0.000000e+00> : vector<256x64xf32>
    %83 = tpu.matmul %80, %82, %cst_99 {dimension_numbers = #tpu.dot_dimension_numbers<[1], [0], [0], [1], [0, 0, 1, 1], [], []>} : vector<256x64xbf16>, vector<64x64xbf16>, vector<256x64xf32> -> vector<256x64xf32>
    %84 = arith.addf %78, %83 : vector<256x64xf32>
    %c0_100 = arith.constant 0 : index
    %c2_101 = arith.constant 2 : index
    %c1_102 = arith.constant 1 : index
    %c0_103 = arith.constant 0 : index
    %85 = vector.load %arg13[%c0_100, %c2_101, %c1_102, %c0_103] : memref<1x18x18x64xbf16, #tpu.memory_space<vmem>>, vector<1x16x16x64xbf16>
    %86 = vector.shape_cast %85 : vector<1x16x16x64xbf16> to vector<256x64xbf16>
    %c7 = arith.constant 7 : index
    %c0_104 = arith.constant 0 : index
    %c0_105 = arith.constant 0 : index
    %87 = vector.load %arg4[%c7, %c0_104, %c0_105] : memref<9x64x64xbf16, #tpu.memory_space<vmem>>, vector<1x64x64xbf16>
    %88 = vector.shape_cast %87 : vector<1x64x64xbf16> to vector<64x64xbf16>
    %cst_106 = arith.constant dense<0.000000e+00> : vector<256x64xf32>
    %89 = tpu.matmul %86, %88, %cst_106 {dimension_numbers = #tpu.dot_dimension_numbers<[1], [0], [0], [1], [0, 0, 1, 1], [], []>} : vector<256x64xbf16>, vector<64x64xbf16>, vector<256x64xf32> -> vector<256x64xf32>
    %90 = arith.addf %84, %89 : vector<256x64xf32>
    %c0_107 = arith.constant 0 : index
    %c2_108 = arith.constant 2 : index
    %c2_109 = arith.constant 2 : index
    %c0_110 = arith.constant 0 : index
    %91 = vector.load %arg13[%c0_107, %c2_108, %c2_109, %c0_110] : memref<1x18x18x64xbf16, #tpu.memory_space<vmem>>, vector<1x16x16x64xbf16>
    %92 = vector.shape_cast %91 : vector<1x16x16x64xbf16> to vector<256x64xbf16>
    %c8 = arith.constant 8 : index
    %c0_111 = arith.constant 0 : index
    %c0_112 = arith.constant 0 : index
    %93 = vector.load %arg4[%c8, %c0_111, %c0_112] : memref<9x64x64xbf16, #tpu.memory_space<vmem>>, vector<1x64x64xbf16>
    %94 = vector.shape_cast %93 : vector<1x64x64xbf16> to vector<64x64xbf16>
    %cst_113 = arith.constant dense<0.000000e+00> : vector<256x64xf32>
    %95 = tpu.matmul %92, %94, %cst_113 {dimension_numbers = #tpu.dot_dimension_numbers<[1], [0], [0], [1], [0, 0, 1, 1], [], []>} : vector<256x64xbf16>, vector<64x64xbf16>, vector<256x64xf32> -> vector<256x64xf32>
    %96 = arith.addf %90, %95 : vector<256x64xf32>
    %c0_114 = arith.constant 0 : index
    %c0_115 = arith.constant 0 : index
    %97 = vector.load %arg5[%c0_114, %c0_115] : memref<1x64xf32, #tpu.memory_space<vmem>>, vector<1x64xf32>
    %98 = vector.broadcast %97 : vector<1x64xf32> to vector<256x64xf32>
    %99 = arith.addf %96, %98 : vector<256x64xf32>
    %cst_116 = arith.constant 0.000000e+00 : f32
    %100 = vector.broadcast %cst_116 : f32 to vector<256x64xf32>
    %101 = arith.maximumf %99, %100 : vector<256x64xf32>
    %102 = vector.shape_cast %101 : vector<256x64xf32> to vector<1x8x2x16x64xf32>
    %103 = vector.extract_strided_slice %102 {offsets = [0, 0, 0, 0, 0], sizes = [1, 8, 1, 16, 64], strides = [1, 1, 1, 1, 1]} : vector<1x8x2x16x64xf32> to vector<1x8x1x16x64xf32>
    %104 = vector.shape_cast %103 : vector<1x8x1x16x64xf32> to vector<1x8x16x64xf32>
    %105 = vector.extract_strided_slice %102 {offsets = [0, 0, 1, 0, 0], sizes = [1, 8, 1, 16, 64], strides = [1, 1, 1, 1, 1]} : vector<1x8x2x16x64xf32> to vector<1x8x1x16x64xf32>
    %106 = vector.shape_cast %105 : vector<1x8x1x16x64xf32> to vector<1x8x16x64xf32>
    %107 = arith.maximumf %104, %106 : vector<1x8x16x64xf32>
    %108 = vector.extract_strided_slice %107 {offsets = [0, 0, 0, 0], sizes = [1, 8, 1, 64], strides = [1, 1, 1, 1]} : vector<1x8x16x64xf32> to vector<1x8x1x64xf32>
    %109 = vector.shape_cast %108 : vector<1x8x1x64xf32> to vector<1x8x64xf32>
    %110 = vector.extract_strided_slice %107 {offsets = [0, 0, 1, 0], sizes = [1, 8, 1, 64], strides = [1, 1, 1, 1]} : vector<1x8x16x64xf32> to vector<1x8x1x64xf32>
    %111 = vector.shape_cast %110 : vector<1x8x1x64xf32> to vector<1x8x64xf32>
    %112 = arith.maximumf %109, %111 : vector<1x8x64xf32>
    %113 = arith.truncf %112 : vector<1x8x64xf32> to vector<1x8x64xbf16>
    %c0_117 = arith.constant 0 : index
    %c1_118 = arith.constant 1 : index
    %c1_119 = arith.constant 1 : index
    %c0_120 = arith.constant 0 : index
    %114 = vector.load %arg14[%c0_117, %c1_118, %c1_119, %c0_120] : memref<1x10x10x64xbf16, #tpu.memory_space<vmem>>, vector<1x8x1x64xbf16>
    %115 = vector.shape_cast %114 : vector<1x8x1x64xbf16> to vector<1x8x64xbf16>
    %116 = vector.shape_cast %113 : vector<1x8x64xbf16> to vector<1x8x1x64xbf16>
    tpu.vector_store %arg14[%c0_117, %c1_118, %c1_119, %c0_120], %116 {strides = array<i32>} : memref<1x10x10x64xbf16, #tpu.memory_space<vmem>>, vector<1x8x1x64xbf16>,
    %117 = vector.extract_strided_slice %107 {offsets = [0, 0, 2, 0], sizes = [1, 8, 1, 64], strides = [1, 1, 1, 1]} : vector<1x8x16x64xf32> to vector<1x8x1x64xf32>
    %118 = vector.shape_cast %117 : vector<1x8x1x64xf32> to vector<1x8x64xf32>
    %119 = vector.extract_strided_slice %107 {offsets = [0, 0, 3, 0], sizes = [1, 8, 1, 64], strides = [1, 1, 1, 1]} : vector<1x8x16x64xf32> to vector<1x8x1x64xf32>
    %120 = vector.shape_cast %119 : vector<1x8x1x64xf32> to vector<1x8x64xf32>
    %121 = arith.maximumf %118, %120 : vector<1x8x64xf32>
    %122 = arith.truncf %121 : vector<1x8x64xf32> to vector<1x8x64xbf16>
    %c0_121 = arith.constant 0 : index
    %c1_122 = arith.constant 1 : index
    %c2_123 = arith.constant 2 : index
    %c0_124 = arith.constant 0 : index
    %123 = vector.load %arg14[%c0_121, %c1_122, %c2_123, %c0_124] : memref<1x10x10x64xbf16, #tpu.memory_space<vmem>>, vector<1x8x1x64xbf16>
    %124 = vector.shape_cast %123 : vector<1x8x1x64xbf16> to vector<1x8x64xbf16>
    %125 = vector.shape_cast %122 : vector<1x8x64xbf16> to vector<1x8x1x64xbf16>
    tpu.vector_store %arg14[%c0_121, %c1_122, %c2_123, %c0_124], %125 {strides = array<i32>} : memref<1x10x10x64xbf16, #tpu.memory_space<vmem>>, vector<1x8x1x64xbf16>,
    %126 = vector.extract_strided_slice %107 {offsets = [0, 0, 4, 0], sizes = [1, 8, 1, 64], strides = [1, 1, 1, 1]} : vector<1x8x16x64xf32> to vector<1x8x1x64xf32>
    %127 = vector.shape_cast %126 : vector<1x8x1x64xf32> to vector<1x8x64xf32>
    %128 = vector.extract_strided_slice %107 {offsets = [0, 0, 5, 0], sizes = [1, 8, 1, 64], strides = [1, 1, 1, 1]} : vector<1x8x16x64xf32> to vector<1x8x1x64xf32>
    %129 = vector.shape_cast %128 : vector<1x8x1x64xf32> to vector<1x8x64xf32>
    %130 = arith.maximumf %127, %129 : vector<1x8x64xf32>
    %131 = arith.truncf %130 : vector<1x8x64xf32> to vector<1x8x64xbf16>
    %c0_125 = arith.constant 0 : index
    %c1_126 = arith.constant 1 : index
    %c3_127 = arith.constant 3 : index
    %c0_128 = arith.constant 0 : index
    %132 = vector.load %arg14[%c0_125, %c1_126, %c3_127, %c0_128] : memref<1x10x10x64xbf16, #tpu.memory_space<vmem>>, vector<1x8x1x64xbf16>
    %133 = vector.shape_cast %132 : vector<1x8x1x64xbf16> to vector<1x8x64xbf16>
    %134 = vector.shape_cast %131 : vector<1x8x64xbf16> to vector<1x8x1x64xbf16>
    tpu.vector_store %arg14[%c0_125, %c1_126, %c3_127, %c0_128], %134 {strides = array<i32>} : memref<1x10x10x64xbf16, #tpu.memory_space<vmem>>, vector<1x8x1x64xbf16>,
    %135 = vector.extract_strided_slice %107 {offsets = [0, 0, 6, 0], sizes = [1, 8, 1, 64], strides = [1, 1, 1, 1]} : vector<1x8x16x64xf32> to vector<1x8x1x64xf32>
    %136 = vector.shape_cast %135 : vector<1x8x1x64xf32> to vector<1x8x64xf32>
    %137 = vector.extract_strided_slice %107 {offsets = [0, 0, 7, 0], sizes = [1, 8, 1, 64], strides = [1, 1, 1, 1]} : vector<1x8x16x64xf32> to vector<1x8x1x64xf32>
    %138 = vector.shape_cast %137 : vector<1x8x1x64xf32> to vector<1x8x64xf32>
    %139 = arith.maximumf %136, %138 : vector<1x8x64xf32>
    %140 = arith.truncf %139 : vector<1x8x64xf32> to vector<1x8x64xbf16>
    %c0_129 = arith.constant 0 : index
    %c1_130 = arith.constant 1 : index
    %c4_131 = arith.constant 4 : index
    %c0_132 = arith.constant 0 : index
    %141 = vector.load %arg14[%c0_129, %c1_130, %c4_131, %c0_132] : memref<1x10x10x64xbf16, #tpu.memory_space<vmem>>, vector<1x8x1x64xbf16>
    %142 = vector.shape_cast %141 : vector<1x8x1x64xbf16> to vector<1x8x64xbf16>
    %143 = vector.shape_cast %140 : vector<1x8x64xbf16> to vector<1x8x1x64xbf16>
    tpu.vector_store %arg14[%c0_129, %c1_130, %c4_131, %c0_132], %143 {strides = array<i32>} : memref<1x10x10x64xbf16, #tpu.memory_space<vmem>>, vector<1x8x1x64xbf16>,
    %144 = vector.extract_strided_slice %107 {offsets = [0, 0, 8, 0], sizes = [1, 8, 1, 64], strides = [1, 1, 1, 1]} : vector<1x8x16x64xf32> to vector<1x8x1x64xf32>
    %145 = vector.shape_cast %144 : vector<1x8x1x64xf32> to vector<1x8x64xf32>
    %146 = vector.extract_strided_slice %107 {offsets = [0, 0, 9, 0], sizes = [1, 8, 1, 64], strides = [1, 1, 1, 1]} : vector<1x8x16x64xf32> to vector<1x8x1x64xf32>
    %147 = vector.shape_cast %146 : vector<1x8x1x64xf32> to vector<1x8x64xf32>
    %148 = arith.maximumf %145, %147 : vector<1x8x64xf32>
    %149 = arith.truncf %148 : vector<1x8x64xf32> to vector<1x8x64xbf16>
    %c0_133 = arith.constant 0 : index
    %c1_134 = arith.constant 1 : index
    %c5_135 = arith.constant 5 : index
    %c0_136 = arith.constant 0 : index
    %150 = vector.load %arg14[%c0_133, %c1_134, %c5_135, %c0_136] : memref<1x10x10x64xbf16, #tpu.memory_space<vmem>>, vector<1x8x1x64xbf16>
    %151 = vector.shape_cast %150 : vector<1x8x1x64xbf16> to vector<1x8x64xbf16>
    %152 = vector.shape_cast %149 : vector<1x8x64xbf16> to vector<1x8x1x64xbf16>
    tpu.vector_store %arg14[%c0_133, %c1_134, %c5_135, %c0_136], %152 {strides = array<i32>} : memref<1x10x10x64xbf16, #tpu.memory_space<vmem>>, vector<1x8x1x64xbf16>,
    %153 = vector.extract_strided_slice %107 {offsets = [0, 0, 10, 0], sizes = [1, 8, 1, 64], strides = [1, 1, 1, 1]} : vector<1x8x16x64xf32> to vector<1x8x1x64xf32>
    %154 = vector.shape_cast %153 : vector<1x8x1x64xf32> to vector<1x8x64xf32>
    %155 = vector.extract_strided_slice %107 {offsets = [0, 0, 11, 0], sizes = [1, 8, 1, 64], strides = [1, 1, 1, 1]} : vector<1x8x16x64xf32> to vector<1x8x1x64xf32>
    %156 = vector.shape_cast %155 : vector<1x8x1x64xf32> to vector<1x8x64xf32>
    %157 = arith.maximumf %154, %156 : vector<1x8x64xf32>
    %158 = arith.truncf %157 : vector<1x8x64xf32> to vector<1x8x64xbf16>
    %c0_137 = arith.constant 0 : index
    %c1_138 = arith.constant 1 : index
    %c6_139 = arith.constant 6 : index
    %c0_140 = arith.constant 0 : index
    %159 = vector.load %arg14[%c0_137, %c1_138, %c6_139, %c0_140] : memref<1x10x10x64xbf16, #tpu.memory_space<vmem>>, vector<1x8x1x64xbf16>
    %160 = vector.shape_cast %159 : vector<1x8x1x64xbf16> to vector<1x8x64xbf16>
    %161 = vector.shape_cast %158 : vector<1x8x64xbf16> to vector<1x8x1x64xbf16>
    tpu.vector_store %arg14[%c0_137, %c1_138, %c6_139, %c0_140], %161 {strides = array<i32>} : memref<1x10x10x64xbf16, #tpu.memory_space<vmem>>, vector<1x8x1x64xbf16>,
    %162 = vector.extract_strided_slice %107 {offsets = [0, 0, 12, 0], sizes = [1, 8, 1, 64], strides = [1, 1, 1, 1]} : vector<1x8x16x64xf32> to vector<1x8x1x64xf32>
    %163 = vector.shape_cast %162 : vector<1x8x1x64xf32> to vector<1x8x64xf32>
    %164 = vector.extract_strided_slice %107 {offsets = [0, 0, 13, 0], sizes = [1, 8, 1, 64], strides = [1, 1, 1, 1]} : vector<1x8x16x64xf32> to vector<1x8x1x64xf32>
    %165 = vector.shape_cast %164 : vector<1x8x1x64xf32> to vector<1x8x64xf32>
    %166 = arith.maximumf %163, %165 : vector<1x8x64xf32>
    %167 = arith.truncf %166 : vector<1x8x64xf32> to vector<1x8x64xbf16>
    %c0_141 = arith.constant 0 : index
    %c1_142 = arith.constant 1 : index
    %c7_143 = arith.constant 7 : index
    %c0_144 = arith.constant 0 : index
    %168 = vector.load %arg14[%c0_141, %c1_142, %c7_143, %c0_144] : memref<1x10x10x64xbf16, #tpu.memory_space<vmem>>, vector<1x8x1x64xbf16>
    %169 = vector.shape_cast %168 : vector<1x8x1x64xbf16> to vector<1x8x64xbf16>
    %170 = vector.shape_cast %167 : vector<1x8x64xbf16> to vector<1x8x1x64xbf16>
    tpu.vector_store %arg14[%c0_141, %c1_142, %c7_143, %c0_144], %170 {strides = array<i32>} : memref<1x10x10x64xbf16, #tpu.memory_space<vmem>>, vector<1x8x1x64xbf16>,
    %171 = vector.extract_strided_slice %107 {offsets = [0, 0, 14, 0], sizes = [1, 8, 1, 64], strides = [1, 1, 1, 1]} : vector<1x8x16x64xf32> to vector<1x8x1x64xf32>
    %172 = vector.shape_cast %171 : vector<1x8x1x64xf32> to vector<1x8x64xf32>
    %173 = vector.extract_strided_slice %107 {offsets = [0, 0, 15, 0], sizes = [1, 8, 1, 64], strides = [1, 1, 1, 1]} : vector<1x8x16x64xf32> to vector<1x8x1x64xf32>
    %174 = vector.shape_cast %173 : vector<1x8x1x64xf32> to vector<1x8x64xf32>
    %175 = arith.maximumf %172, %174 : vector<1x8x64xf32>
    %176 = arith.truncf %175 : vector<1x8x64xf32> to vector<1x8x64xbf16>
    %c0_145 = arith.constant 0 : index
    %c1_146 = arith.constant 1 : index
    %c8_147 = arith.constant 8 : index
    %c0_148 = arith.constant 0 : index
    %177 = vector.load %arg14[%c0_145, %c1_146, %c8_147, %c0_148] : memref<1x10x10x64xbf16, #tpu.memory_space<vmem>>, vector<1x8x1x64xbf16>
    %178 = vector.shape_cast %177 : vector<1x8x1x64xbf16> to vector<1x8x64xbf16>
    %179 = vector.shape_cast %176 : vector<1x8x64xbf16> to vector<1x8x1x64xbf16>
    tpu.vector_store %arg14[%c0_145, %c1_146, %c8_147, %c0_148], %179 {strides = array<i32>} : memref<1x10x10x64xbf16, #tpu.memory_space<vmem>>, vector<1x8x1x64xbf16>,
    %c0_149 = arith.constant 0 : index
    %c0_150 = arith.constant 0 : index
    %c0_151 = arith.constant 0 : index
    %c0_152 = arith.constant 0 : index
    %180 = vector.load %arg14[%c0_149, %c0_150, %c0_151, %c0_152] : memref<1x10x10x64xbf16, #tpu.memory_space<vmem>>, vector<1x8x8x64xbf16>
    %181 = vector.shape_cast %180 : vector<1x8x8x64xbf16> to vector<64x64xbf16>
    %c0_153 = arith.constant 0 : index
    %c0_154 = arith.constant 0 : index
    %c0_155 = arith.constant 0 : index
    %182 = vector.load %arg6[%c0_153, %c0_154, %c0_155] : memref<9x64x64xbf16, #tpu.memory_space<vmem>>, vector<1x64x64xbf16>
    %183 = vector.shape_cast %182 : vector<1x64x64xbf16> to vector<64x64xbf16>
    %cst_156 = arith.constant dense<0.000000e+00> : vector<64x64xf32>
    %184 = tpu.matmul %181, %183, %cst_156 {dimension_numbers = #tpu.dot_dimension_numbers<[1], [0], [0], [1], [0, 0, 1, 1], [], []>} : vector<64x64xbf16>, vector<64x64xbf16>, vector<64x64xf32> -> vector<64x64xf32>
    %c0_157 = arith.constant 0 : index
    %c0_158 = arith.constant 0 : index
    %c1_159 = arith.constant 1 : index
    %c0_160 = arith.constant 0 : index
    %185 = vector.load %arg14[%c0_157, %c0_158, %c1_159, %c0_160] : memref<1x10x10x64xbf16, #tpu.memory_space<vmem>>, vector<1x8x8x64xbf16>
    %186 = vector.shape_cast %185 : vector<1x8x8x64xbf16> to vector<64x64xbf16>
    %c1_161 = arith.constant 1 : index
    %c0_162 = arith.constant 0 : index
    %c0_163 = arith.constant 0 : index
    %187 = vector.load %arg6[%c1_161, %c0_162, %c0_163] : memref<9x64x64xbf16, #tpu.memory_space<vmem>>, vector<1x64x64xbf16>
    %188 = vector.shape_cast %187 : vector<1x64x64xbf16> to vector<64x64xbf16>
    %cst_164 = arith.constant dense<0.000000e+00> : vector<64x64xf32>
    %189 = tpu.matmul %186, %188, %cst_164 {dimension_numbers = #tpu.dot_dimension_numbers<[1], [0], [0], [1], [0, 0, 1, 1], [], []>} : vector<64x64xbf16>, vector<64x64xbf16>, vector<64x64xf32> -> vector<64x64xf32>
    %190 = arith.addf %184, %189 : vector<64x64xf32>
    %c0_165 = arith.constant 0 : index
    %c0_166 = arith.constant 0 : index
    %c2_167 = arith.constant 2 : index
    %c0_168 = arith.constant 0 : index
    %191 = vector.load %arg14[%c0_165, %c0_166, %c2_167, %c0_168] : memref<1x10x10x64xbf16, #tpu.memory_space<vmem>>, vector<1x8x8x64xbf16>
    %192 = vector.shape_cast %191 : vector<1x8x8x64xbf16> to vector<64x64xbf16>
    %c2_169 = arith.constant 2 : index
    %c0_170 = arith.constant 0 : index
    %c0_171 = arith.constant 0 : index
    %193 = vector.load %arg6[%c2_169, %c0_170, %c0_171] : memref<9x64x64xbf16, #tpu.memory_space<vmem>>, vector<1x64x64xbf16>
    %194 = vector.shape_cast %193 : vector<1x64x64xbf16> to vector<64x64xbf16>
    %cst_172 = arith.constant dense<0.000000e+00> : vector<64x64xf32>
    %195 = tpu.matmul %192, %194, %cst_172 {dimension_numbers = #tpu.dot_dimension_numbers<[1], [0], [0], [1], [0, 0, 1, 1], [], []>} : vector<64x64xbf16>, vector<64x64xbf16>, vector<64x64xf32> -> vector<64x64xf32>
    %196 = arith.addf %190, %195 : vector<64x64xf32>
    %c0_173 = arith.constant 0 : index
    %c1_174 = arith.constant 1 : index
    %c0_175 = arith.constant 0 : index
    %c0_176 = arith.constant 0 : index
    %197 = vector.load %arg14[%c0_173, %c1_174, %c0_175, %c0_176] : memref<1x10x10x64xbf16, #tpu.memory_space<vmem>>, vector<1x8x8x64xbf16>
    %198 = vector.shape_cast %197 : vector<1x8x8x64xbf16> to vector<64x64xbf16>
    %c3_177 = arith.constant 3 : index
    %c0_178 = arith.constant 0 : index
    %c0_179 = arith.constant 0 : index
    %199 = vector.load %arg6[%c3_177, %c0_178, %c0_179] : memref<9x64x64xbf16, #tpu.memory_space<vmem>>, vector<1x64x64xbf16>
    %200 = vector.shape_cast %199 : vector<1x64x64xbf16> to vector<64x64xbf16>
    %cst_180 = arith.constant dense<0.000000e+00> : vector<64x64xf32>
    %201 = tpu.matmul %198, %200, %cst_180 {dimension_numbers = #tpu.dot_dimension_numbers<[1], [0], [0], [1], [0, 0, 1, 1], [], []>} : vector<64x64xbf16>, vector<64x64xbf16>, vector<64x64xf32> -> vector<64x64xf32>
    %202 = arith.addf %196, %201 : vector<64x64xf32>
    %c0_181 = arith.constant 0 : index
    %c1_182 = arith.constant 1 : index
    %c1_183 = arith.constant 1 : index
    %c0_184 = arith.constant 0 : index
    %203 = vector.load %arg14[%c0_181, %c1_182, %c1_183, %c0_184] : memref<1x10x10x64xbf16, #tpu.memory_space<vmem>>, vector<1x8x8x64xbf16>
    %204 = vector.shape_cast %203 : vector<1x8x8x64xbf16> to vector<64x64xbf16>
    %c4_185 = arith.constant 4 : index
    %c0_186 = arith.constant 0 : index
    %c0_187 = arith.constant 0 : index
    %205 = vector.load %arg6[%c4_185, %c0_186, %c0_187] : memref<9x64x64xbf16, #tpu.memory_space<vmem>>, vector<1x64x64xbf16>
    %206 = vector.shape_cast %205 : vector<1x64x64xbf16> to vector<64x64xbf16>
    %cst_188 = arith.constant dense<0.000000e+00> : vector<64x64xf32>
    %207 = tpu.matmul %204, %206, %cst_188 {dimension_numbers = #tpu.dot_dimension_numbers<[1], [0], [0], [1], [0, 0, 1, 1], [], []>} : vector<64x64xbf16>, vector<64x64xbf16>, vector<64x64xf32> -> vector<64x64xf32>
    %208 = arith.addf %202, %207 : vector<64x64xf32>
    %c0_189 = arith.constant 0 : index
    %c1_190 = arith.constant 1 : index
    %c2_191 = arith.constant 2 : index
    %c0_192 = arith.constant 0 : index
    %209 = vector.load %arg14[%c0_189, %c1_190, %c2_191, %c0_192] : memref<1x10x10x64xbf16, #tpu.memory_space<vmem>>, vector<1x8x8x64xbf16>
    %210 = vector.shape_cast %209 : vector<1x8x8x64xbf16> to vector<64x64xbf16>
    %c5_193 = arith.constant 5 : index
    %c0_194 = arith.constant 0 : index
    %c0_195 = arith.constant 0 : index
    %211 = vector.load %arg6[%c5_193, %c0_194, %c0_195] : memref<9x64x64xbf16, #tpu.memory_space<vmem>>, vector<1x64x64xbf16>
    %212 = vector.shape_cast %211 : vector<1x64x64xbf16> to vector<64x64xbf16>
    %cst_196 = arith.constant dense<0.000000e+00> : vector<64x64xf32>
    %213 = tpu.matmul %210, %212, %cst_196 {dimension_numbers = #tpu.dot_dimension_numbers<[1], [0], [0], [1], [0, 0, 1, 1], [], []>} : vector<64x64xbf16>, vector<64x64xbf16>, vector<64x64xf32> -> vector<64x64xf32>
    %214 = arith.addf %208, %213 : vector<64x64xf32>
    %c0_197 = arith.constant 0 : index
    %c2_198 = arith.constant 2 : index
    %c0_199 = arith.constant 0 : index
    %c0_200 = arith.constant 0 : index
    %215 = vector.load %arg14[%c0_197, %c2_198, %c0_199, %c0_200] : memref<1x10x10x64xbf16, #tpu.memory_space<vmem>>, vector<1x8x8x64xbf16>
    %216 = vector.shape_cast %215 : vector<1x8x8x64xbf16> to vector<64x64xbf16>
    %c6_201 = arith.constant 6 : index
    %c0_202 = arith.constant 0 : index
    %c0_203 = arith.constant 0 : index
    %217 = vector.load %arg6[%c6_201, %c0_202, %c0_203] : memref<9x64x64xbf16, #tpu.memory_space<vmem>>, vector<1x64x64xbf16>
    %218 = vector.shape_cast %217 : vector<1x64x64xbf16> to vector<64x64xbf16>
    %cst_204 = arith.constant dense<0.000000e+00> : vector<64x64xf32>
    %219 = tpu.matmul %216, %218, %cst_204 {dimension_numbers = #tpu.dot_dimension_numbers<[1], [0], [0], [1], [0, 0, 1, 1], [], []>} : vector<64x64xbf16>, vector<64x64xbf16>, vector<64x64xf32> -> vector<64x64xf32>
    %220 = arith.addf %214, %219 : vector<64x64xf32>
    %c0_205 = arith.constant 0 : index
    %c2_206 = arith.constant 2 : index
    %c1_207 = arith.constant 1 : index
    %c0_208 = arith.constant 0 : index
    %221 = vector.load %arg14[%c0_205, %c2_206, %c1_207, %c0_208] : memref<1x10x10x64xbf16, #tpu.memory_space<vmem>>, vector<1x8x8x64xbf16>
    %222 = vector.shape_cast %221 : vector<1x8x8x64xbf16> to vector<64x64xbf16>
    %c7_209 = arith.constant 7 : index
    %c0_210 = arith.constant 0 : index
    %c0_211 = arith.constant 0 : index
    %223 = vector.load %arg6[%c7_209, %c0_210, %c0_211] : memref<9x64x64xbf16, #tpu.memory_space<vmem>>, vector<1x64x64xbf16>
    %224 = vector.shape_cast %223 : vector<1x64x64xbf16> to vector<64x64xbf16>
    %cst_212 = arith.constant dense<0.000000e+00> : vector<64x64xf32>
    %225 = tpu.matmul %222, %224, %cst_212 {dimension_numbers = #tpu.dot_dimension_numbers<[1], [0], [0], [1], [0, 0, 1, 1], [], []>} : vector<64x64xbf16>, vector<64x64xbf16>, vector<64x64xf32> -> vector<64x64xf32>
    %226 = arith.addf %220, %225 : vector<64x64xf32>
    %c0_213 = arith.constant 0 : index
    %c2_214 = arith.constant 2 : index
    %c2_215 = arith.constant 2 : index
    %c0_216 = arith.constant 0 : index
    %227 = vector.load %arg14[%c0_213, %c2_214, %c2_215, %c0_216] : memref<1x10x10x64xbf16, #tpu.memory_space<vmem>>, vector<1x8x8x64xbf16>
    %228 = vector.shape_cast %227 : vector<1x8x8x64xbf16> to vector<64x64xbf16>
    %c8_217 = arith.constant 8 : index
    %c0_218 = arith.constant 0 : index
    %c0_219 = arith.constant 0 : index
    %229 = vector.load %arg6[%c8_217, %c0_218, %c0_219] : memref<9x64x64xbf16, #tpu.memory_space<vmem>>, vector<1x64x64xbf16>
    %230 = vector.shape_cast %229 : vector<1x64x64xbf16> to vector<64x64xbf16>
    %cst_220 = arith.constant dense<0.000000e+00> : vector<64x64xf32>
    %231 = tpu.matmul %228, %230, %cst_220 {dimension_numbers = #tpu.dot_dimension_numbers<[1], [0], [0], [1], [0, 0, 1, 1], [], []>} : vector<64x64xbf16>, vector<64x64xbf16>, vector<64x64xf32> -> vector<64x64xf32>
    %232 = arith.addf %226, %231 : vector<64x64xf32>
    %c0_221 = arith.constant 0 : index
    %c0_222 = arith.constant 0 : index
    %233 = vector.load %arg7[%c0_221, %c0_222] : memref<1x64xf32, #tpu.memory_space<vmem>>, vector<1x64xf32>
    %234 = vector.broadcast %233 : vector<1x64xf32> to vector<64x64xf32>
    %235 = arith.addf %232, %234 : vector<64x64xf32>
    %cst_223 = arith.constant 0.000000e+00 : f32
    %236 = vector.broadcast %cst_223 : f32 to vector<64x64xf32>
    %237 = arith.maximumf %235, %236 : vector<64x64xf32>
    %238 = arith.truncf %237 : vector<64x64xf32> to vector<64x64xbf16>
    %239 = vector.shape_cast %238 : vector<64x64xbf16> to vector<1x8x8x64xbf16>
    %c0_224 = arith.constant 0 : index
    %c1_225 = arith.constant 1 : index
    %c1_226 = arith.constant 1 : index
    %c0_227 = arith.constant 0 : index
    %240 = vector.load %arg14[%c0_224, %c1_225, %c1_226, %c0_227] : memref<1x10x10x64xbf16, #tpu.memory_space<vmem>>, vector<1x8x8x64xbf16>
    tpu.vector_store %arg14[%c0_224, %c1_225, %c1_226, %c0_227], %239 {strides = array<i32>} : memref<1x10x10x64xbf16, #tpu.memory_space<vmem>>, vector<1x8x8x64xbf16>,
    %c0_228 = arith.constant 0 : index
    %c0_229 = arith.constant 0 : index
    %c0_230 = arith.constant 0 : index
    %c0_231 = arith.constant 0 : index
    %241 = vector.load %arg14[%c0_228, %c0_229, %c0_230, %c0_231] : memref<1x10x10x64xbf16, #tpu.memory_space<vmem>>, vector<1x8x8x64xbf16>
    %242 = vector.shape_cast %241 : vector<1x8x8x64xbf16> to vector<64x64xbf16>
    %c0_232 = arith.constant 0 : index
    %c0_233 = arith.constant 0 : index
    %c0_234 = arith.constant 0 : index
    %243 = vector.load %arg8[%c0_232, %c0_233, %c0_234] : memref<9x64x64xbf16, #tpu.memory_space<vmem>>, vector<1x64x64xbf16>
    %244 = vector.shape_cast %243 : vector<1x64x64xbf16> to vector<64x64xbf16>
    %cst_235 = arith.constant dense<0.000000e+00> : vector<64x64xf32>
    %245 = tpu.matmul %242, %244, %cst_235 {dimension_numbers = #tpu.dot_dimension_numbers<[1], [0], [0], [1], [0, 0, 1, 1], [], []>} : vector<64x64xbf16>, vector<64x64xbf16>, vector<64x64xf32> -> vector<64x64xf32>
    %c0_236 = arith.constant 0 : index
    %c0_237 = arith.constant 0 : index
    %c1_238 = arith.constant 1 : index
    %c0_239 = arith.constant 0 : index
    %246 = vector.load %arg14[%c0_236, %c0_237, %c1_238, %c0_239] : memref<1x10x10x64xbf16, #tpu.memory_space<vmem>>, vector<1x8x8x64xbf16>
    %247 = vector.shape_cast %246 : vector<1x8x8x64xbf16> to vector<64x64xbf16>
    %c1_240 = arith.constant 1 : index
    %c0_241 = arith.constant 0 : index
    %c0_242 = arith.constant 0 : index
    %248 = vector.load %arg8[%c1_240, %c0_241, %c0_242] : memref<9x64x64xbf16, #tpu.memory_space<vmem>>, vector<1x64x64xbf16>
    %249 = vector.shape_cast %248 : vector<1x64x64xbf16> to vector<64x64xbf16>
    %cst_243 = arith.constant dense<0.000000e+00> : vector<64x64xf32>
    %250 = tpu.matmul %247, %249, %cst_243 {dimension_numbers = #tpu.dot_dimension_numbers<[1], [0], [0], [1], [0, 0, 1, 1], [], []>} : vector<64x64xbf16>, vector<64x64xbf16>, vector<64x64xf32> -> vector<64x64xf32>
    %251 = arith.addf %245, %250 : vector<64x64xf32>
    %c0_244 = arith.constant 0 : index
    %c0_245 = arith.constant 0 : index
    %c2_246 = arith.constant 2 : index
    %c0_247 = arith.constant 0 : index
    %252 = vector.load %arg14[%c0_244, %c0_245, %c2_246, %c0_247] : memref<1x10x10x64xbf16, #tpu.memory_space<vmem>>, vector<1x8x8x64xbf16>
    %253 = vector.shape_cast %252 : vector<1x8x8x64xbf16> to vector<64x64xbf16>
    %c2_248 = arith.constant 2 : index
    %c0_249 = arith.constant 0 : index
    %c0_250 = arith.constant 0 : index
    %254 = vector.load %arg8[%c2_248, %c0_249, %c0_250] : memref<9x64x64xbf16, #tpu.memory_space<vmem>>, vector<1x64x64xbf16>
    %255 = vector.shape_cast %254 : vector<1x64x64xbf16> to vector<64x64xbf16>
    %cst_251 = arith.constant dense<0.000000e+00> : vector<64x64xf32>
    %256 = tpu.matmul %253, %255, %cst_251 {dimension_numbers = #tpu.dot_dimension_numbers<[1], [0], [0], [1], [0, 0, 1, 1], [], []>} : vector<64x64xbf16>, vector<64x64xbf16>, vector<64x64xf32> -> vector<64x64xf32>
    %257 = arith.addf %251, %256 : vector<64x64xf32>
    %c0_252 = arith.constant 0 : index
    %c1_253 = arith.constant 1 : index
    %c0_254 = arith.constant 0 : index
    %c0_255 = arith.constant 0 : index
    %258 = vector.load %arg14[%c0_252, %c1_253, %c0_254, %c0_255] : memref<1x10x10x64xbf16, #tpu.memory_space<vmem>>, vector<1x8x8x64xbf16>
    %259 = vector.shape_cast %258 : vector<1x8x8x64xbf16> to vector<64x64xbf16>
    %c3_256 = arith.constant 3 : index
    %c0_257 = arith.constant 0 : index
    %c0_258 = arith.constant 0 : index
    %260 = vector.load %arg8[%c3_256, %c0_257, %c0_258] : memref<9x64x64xbf16, #tpu.memory_space<vmem>>, vector<1x64x64xbf16>
    %261 = vector.shape_cast %260 : vector<1x64x64xbf16> to vector<64x64xbf16>
    %cst_259 = arith.constant dense<0.000000e+00> : vector<64x64xf32>
    %262 = tpu.matmul %259, %261, %cst_259 {dimension_numbers = #tpu.dot_dimension_numbers<[1], [0], [0], [1], [0, 0, 1, 1], [], []>} : vector<64x64xbf16>, vector<64x64xbf16>, vector<64x64xf32> -> vector<64x64xf32>
    %263 = arith.addf %257, %262 : vector<64x64xf32>
    %c0_260 = arith.constant 0 : index
    %c1_261 = arith.constant 1 : index
    %c1_262 = arith.constant 1 : index
    %c0_263 = arith.constant 0 : index
    %264 = vector.load %arg14[%c0_260, %c1_261, %c1_262, %c0_263] : memref<1x10x10x64xbf16, #tpu.memory_space<vmem>>, vector<1x8x8x64xbf16>
    %265 = vector.shape_cast %264 : vector<1x8x8x64xbf16> to vector<64x64xbf16>
    %c4_264 = arith.constant 4 : index
    %c0_265 = arith.constant 0 : index
    %c0_266 = arith.constant 0 : index
    %266 = vector.load %arg8[%c4_264, %c0_265, %c0_266] : memref<9x64x64xbf16, #tpu.memory_space<vmem>>, vector<1x64x64xbf16>
    %267 = vector.shape_cast %266 : vector<1x64x64xbf16> to vector<64x64xbf16>
    %cst_267 = arith.constant dense<0.000000e+00> : vector<64x64xf32>
    %268 = tpu.matmul %265, %267, %cst_267 {dimension_numbers = #tpu.dot_dimension_numbers<[1], [0], [0], [1], [0, 0, 1, 1], [], []>} : vector<64x64xbf16>, vector<64x64xbf16>, vector<64x64xf32> -> vector<64x64xf32>
    %269 = arith.addf %263, %268 : vector<64x64xf32>
    %c0_268 = arith.constant 0 : index
    %c1_269 = arith.constant 1 : index
    %c2_270 = arith.constant 2 : index
    %c0_271 = arith.constant 0 : index
    %270 = vector.load %arg14[%c0_268, %c1_269, %c2_270, %c0_271] : memref<1x10x10x64xbf16, #tpu.memory_space<vmem>>, vector<1x8x8x64xbf16>
    %271 = vector.shape_cast %270 : vector<1x8x8x64xbf16> to vector<64x64xbf16>
    %c5_272 = arith.constant 5 : index
    %c0_273 = arith.constant 0 : index
    %c0_274 = arith.constant 0 : index
    %272 = vector.load %arg8[%c5_272, %c0_273, %c0_274] : memref<9x64x64xbf16, #tpu.memory_space<vmem>>, vector<1x64x64xbf16>
    %273 = vector.shape_cast %272 : vector<1x64x64xbf16> to vector<64x64xbf16>
    %cst_275 = arith.constant dense<0.000000e+00> : vector<64x64xf32>
    %274 = tpu.matmul %271, %273, %cst_275 {dimension_numbers = #tpu.dot_dimension_numbers<[1], [0], [0], [1], [0, 0, 1, 1], [], []>} : vector<64x64xbf16>, vector<64x64xbf16>, vector<64x64xf32> -> vector<64x64xf32>
    %275 = arith.addf %269, %274 : vector<64x64xf32>
    %c0_276 = arith.constant 0 : index
    %c2_277 = arith.constant 2 : index
    %c0_278 = arith.constant 0 : index
    %c0_279 = arith.constant 0 : index
    %276 = vector.load %arg14[%c0_276, %c2_277, %c0_278, %c0_279] : memref<1x10x10x64xbf16, #tpu.memory_space<vmem>>, vector<1x8x8x64xbf16>
    %277 = vector.shape_cast %276 : vector<1x8x8x64xbf16> to vector<64x64xbf16>
    %c6_280 = arith.constant 6 : index
    %c0_281 = arith.constant 0 : index
    %c0_282 = arith.constant 0 : index
    %278 = vector.load %arg8[%c6_280, %c0_281, %c0_282] : memref<9x64x64xbf16, #tpu.memory_space<vmem>>, vector<1x64x64xbf16>
    %279 = vector.shape_cast %278 : vector<1x64x64xbf16> to vector<64x64xbf16>
    %cst_283 = arith.constant dense<0.000000e+00> : vector<64x64xf32>
    %280 = tpu.matmul %277, %279, %cst_283 {dimension_numbers = #tpu.dot_dimension_numbers<[1], [0], [0], [1], [0, 0, 1, 1], [], []>} : vector<64x64xbf16>, vector<64x64xbf16>, vector<64x64xf32> -> vector<64x64xf32>
    %281 = arith.addf %275, %280 : vector<64x64xf32>
    %c0_284 = arith.constant 0 : index
    %c2_285 = arith.constant 2 : index
    %c1_286 = arith.constant 1 : index
    %c0_287 = arith.constant 0 : index
    %282 = vector.load %arg14[%c0_284, %c2_285, %c1_286, %c0_287] : memref<1x10x10x64xbf16, #tpu.memory_space<vmem>>, vector<1x8x8x64xbf16>
    %283 = vector.shape_cast %282 : vector<1x8x8x64xbf16> to vector<64x64xbf16>
    %c7_288 = arith.constant 7 : index
    %c0_289 = arith.constant 0 : index
    %c0_290 = arith.constant 0 : index
    %284 = vector.load %arg8[%c7_288, %c0_289, %c0_290] : memref<9x64x64xbf16, #tpu.memory_space<vmem>>, vector<1x64x64xbf16>
    %285 = vector.shape_cast %284 : vector<1x64x64xbf16> to vector<64x64xbf16>
    %cst_291 = arith.constant dense<0.000000e+00> : vector<64x64xf32>
    %286 = tpu.matmul %283, %285, %cst_291 {dimension_numbers = #tpu.dot_dimension_numbers<[1], [0], [0], [1], [0, 0, 1, 1], [], []>} : vector<64x64xbf16>, vector<64x64xbf16>, vector<64x64xf32> -> vector<64x64xf32>
    %287 = arith.addf %281, %286 : vector<64x64xf32>
    %c0_292 = arith.constant 0 : index
    %c2_293 = arith.constant 2 : index
    %c2_294 = arith.constant 2 : index
    %c0_295 = arith.constant 0 : index
    %288 = vector.load %arg14[%c0_292, %c2_293, %c2_294, %c0_295] : memref<1x10x10x64xbf16, #tpu.memory_space<vmem>>, vector<1x8x8x64xbf16>
    %289 = vector.shape_cast %288 : vector<1x8x8x64xbf16> to vector<64x64xbf16>
    %c8_296 = arith.constant 8 : index
    %c0_297 = arith.constant 0 : index
    %c0_298 = arith.constant 0 : index
    %290 = vector.load %arg8[%c8_296, %c0_297, %c0_298] : memref<9x64x64xbf16, #tpu.memory_space<vmem>>, vector<1x64x64xbf16>
    %291 = vector.shape_cast %290 : vector<1x64x64xbf16> to vector<64x64xbf16>
    %cst_299 = arith.constant dense<0.000000e+00> : vector<64x64xf32>
    %292 = tpu.matmul %289, %291, %cst_299 {dimension_numbers = #tpu.dot_dimension_numbers<[1], [0], [0], [1], [0, 0, 1, 1], [], []>} : vector<64x64xbf16>, vector<64x64xbf16>, vector<64x64xf32> -> vector<64x64xf32>
    %293 = arith.addf %287, %292 : vector<64x64xf32>
    %c0_300 = arith.constant 0 : index
    %c0_301 = arith.constant 0 : index
    %294 = vector.load %arg9[%c0_300, %c0_301] : memref<1x64xf32, #tpu.memory_space<vmem>>, vector<1x64xf32>
    %295 = vector.broadcast %294 : vector<1x64xf32> to vector<64x64xf32>
    %296 = arith.addf %293, %295 : vector<64x64xf32>
    %cst_302 = arith.constant 0.000000e+00 : f32
    %297 = vector.broadcast %cst_302 : f32 to vector<64x64xf32>
    %298 = arith.maximumf %296, %297 : vector<64x64xf32>
    %299 = arith.truncf %298 : vector<64x64xf32> to vector<64x64xbf16>
    %c0_303 = arith.constant 0 : index
    %c0_304 = arith.constant 0 : index
    %300 = vector.load %arg10[%c0_303, %c0_304] : memref<64x12xbf16, #tpu.memory_space<vmem>>, vector<64x12xbf16>
    %cst_305 = arith.constant dense<0.000000e+00> : vector<64x12xf32>
    %301 = tpu.matmul %299, %300, %cst_305 {dimension_numbers = #tpu.dot_dimension_numbers<[1], [0], [0], [1], [0, 0, 1, 1], [], []>} : vector<64x64xbf16>, vector<64x12xbf16>, vector<64x12xf32> -> vector<64x12xf32>
    %c0_306 = arith.constant 0 : index
    %c0_307 = arith.constant 0 : index
    %302 = vector.load %arg11[%c0_306, %c0_307] : memref<1x12xf32, #tpu.memory_space<vmem>>, vector<1x12xf32>
    %303 = vector.broadcast %302 : vector<1x12xf32> to vector<64x12xf32>
    %304 = arith.addf %301, %303 : vector<64x12xf32>
    %305 = vector.shape_cast %304 : vector<64x12xf32> to vector<1x64x12xf32>
    %c0_308 = arith.constant 0 : index
    %c0_309 = arith.constant 0 : index
    %c0_310 = arith.constant 0 : index
    %306 = vector.load %arg12[%c0_308, %c0_309, %c0_310] : memref<1x64x12xf32, #tpu.memory_space<vmem>>, vector<1x64x12xf32>
    tpu.vector_store %arg12[%c0_308, %c0_309, %c0_310], %305 {strides = array<i32>} : memref<1x64x12xf32, #tpu.memory_space<vmem>>, vector<1x64x12xf32>,
    return
  }
  func.func @transform_0(%arg0: i32) -> (i32, i32, i32, i32) {
    %c0_i32 = arith.constant 0 : i32
    %c0_i32_0 = arith.constant 0 : i32
    %c0_i32_1 = arith.constant 0 : i32
    %c0_i32_2 = arith.constant 0 : i32
    return %arg0, %c0_i32, %c0_i32_0, %c0_i32_1 : i32, i32, i32, i32
  }
  func.func @transform_1(%arg0: i32) -> (i32, i32) {
    %c0_i32 = arith.constant 0 : i32
    %c0_i32_0 = arith.constant 0 : i32
    %c0_i32_1 = arith.constant 0 : i32
    return %c0_i32, %c0_i32_0 : i32, i32
  }
  func.func @transform_2(%arg0: i32) -> (i32, i32) {
    %c0_i32 = arith.constant 0 : i32
    %c0_i32_0 = arith.constant 0 : i32
    %c0_i32_1 = arith.constant 0 : i32
    return %c0_i32, %c0_i32_0 : i32, i32
  }
  func.func @transform_3(%arg0: i32) -> (i32, i32, i32) {
    %c0_i32 = arith.constant 0 : i32
    %c0_i32_0 = arith.constant 0 : i32
    %c0_i32_1 = arith.constant 0 : i32
    %c0_i32_2 = arith.constant 0 : i32
    return %c0_i32, %c0_i32_0, %c0_i32_1 : i32, i32, i32
  }
  func.func @transform_4(%arg0: i32) -> (i32, i32) {
    %c0_i32 = arith.constant 0 : i32
    %c0_i32_0 = arith.constant 0 : i32
    %c0_i32_1 = arith.constant 0 : i32
    return %c0_i32, %c0_i32_0 : i32, i32
  }
  func.func @transform_5(%arg0: i32) -> (i32, i32, i32) {
    %c0_i32 = arith.constant 0 : i32
    %c0_i32_0 = arith.constant 0 : i32
    %c0_i32_1 = arith.constant 0 : i32
    %c0_i32_2 = arith.constant 0 : i32
    return %c0_i32, %c0_i32_0, %c0_i32_1 : i32, i32, i32
  }
  func.func @transform_6(%arg0: i32) -> (i32, i32) {
    %c0_i32 = arith.constant 0 : i32
    %c0_i32_0 = arith.constant 0 : i32
    %c0_i32_1 = arith.constant 0 : i32
    return %c0_i32, %c0_i32_0 : i32, i32
  }
  func.func @transform_7(%arg0: i32) -> (i32, i32, i32) {
    %c0_i32 = arith.constant 0 : i32
    %c0_i32_0 = arith.constant 0 : i32
    %c0_i32_1 = arith.constant 0 : i32
    %c0_i32_2 = arith.constant 0 : i32
    return %c0_i32, %c0_i32_0, %c0_i32_1 : i32, i32, i32
  }
  func.func @transform_8(%arg0: i32) -> (i32, i32) {
    %c0_i32 = arith.constant 0 : i32
    %c0_i32_0 = arith.constant 0 : i32
    %c0_i32_1 = arith.constant 0 : i32
    return %c0_i32, %c0_i32_0 : i32, i32
  }
  func.func @transform_9(%arg0: i32) -> (i32, i32) {
    %c0_i32 = arith.constant 0 : i32
    %c0_i32_0 = arith.constant 0 : i32
    %c0_i32_1 = arith.constant 0 : i32
    return %c0_i32, %c0_i32_0 : i32, i32
  }
  func.func @transform_10(%arg0: i32) -> (i32, i32) {
    %c0_i32 = arith.constant 0 : i32
    %c0_i32_0 = arith.constant 0 : i32
    %c0_i32_1 = arith.constant 0 : i32
    return %c0_i32, %c0_i32_0 : i32, i32
  }
  func.func @transform_11(%arg0: i32) -> (i32, i32, i32) {
    %c0_i32 = arith.constant 0 : i32
    %c0_i32_0 = arith.constant 0 : i32
    %c0_i32_1 = arith.constant 0 : i32
    return %arg0, %c0_i32, %c0_i32_0 : i32, i32, i32
  }
}

</mosaic_0001>

<bundles_post_ra>
// kernel: tile.8
= control target key start
LH: loop header
LB: loop body
LE: loop exit
PB: predicated region body
PF: predicated region fallthrough
CT: control target
= control target key end

     0   :  { %s22_s0 = inlined_call_operand.vmem [shape: f32[3], index: 0, kind: input, shape index: {}]   ;;  %s23_s1 = inlined_call_operand.vmem [shape: f32[4,3], index: 1, kind: output, shape index: {}]  }
   0x1   :  { %v4_v0 = vld [vmem:[%s22_s0] ss:$0 sm:$0xff] }
   0x2   :  { %5 = vst [vmem:[%s23_s1] sm:$0xf] %v4_v0 }

// kernel: tile.9
= control target key start
LH: loop header
LB: loop body
LE: loop exit
PB: predicated region body
PF: predicated region fallthrough
CT: control target
= control target key end

     0   :  { %vm7_vm0 = vcmask 23552   ;;  %s37_s8 = smov 3   ;;  %s38_s9 = smov 6   ;;  %vm13_vm1 = vcmask 97352   ;;  %vm19_vm2 = vcmask 72752   ;;  %vm25_vm3 = vcmask 48152   ;;  %s55_s0 = inlined_call_operand.vmem [shape: f32[4,3], index: 0, kind: input, shape index: {}]   ;;  %s56_s1 = inlined_call_operand.vmem [shape: f32[1,12], index: 1, kind: output, shape index: {}]  }
   0x1   :  { %v4_v0 = vld [vmem:[%s55_s0] sm:$0xf]  ;;  %s36_s0 = smov 9  }
   0x2   :  { %5 = vst [vmem:[#allocation1] sm:$0xf] %v4_v0 }
   0x9   :  { %v10_v1 = vld [vmem:[#allocation1 + $0x3] sm:$0x1]   ;;  %v22_v2 = vld [vmem:[#allocation1 + $0x1] sm:$0x1]   ;;  %v6_v3 = vld [vmem:[#allocation1] sm:$0x1]  }
   0xa   :  { %11 = vrot.lane.b32.xlu0 %v10_v1, %s36_s0  ;;  %23 = vrot.lane.b32.xlu1 %v22_v2, %s37_s8  ;;  %v16_v4 = vld [vmem:[#allocation1 + $0x2] sm:$0x1]   ;;  %8 = vst.msk [vmem:[#allocation0] sm:$0x1] %vm7_vm0, %v6_v3  }
   0xe   :  { %17 = vrot.lane.b32.xlu0 %v16_v4, %s38_s9 }
  0x7c   :  { %v12_v5 = vpop.permute.xlu0 %11   ;;  %v24_v6 = vpop.permute.xlu1 %23  }
  0x7d   :  { %14 = vst.msk [vmem:[#allocation0] sm:$0x1] %vm13_vm1, %v12_v5  }
  0x80   :  { %v18_v7 = vpop.permute.xlu0 %17  }
  0x81   :  { %20 = vst.msk [vmem:[#allocation0] sm:$0x1] %vm19_vm2, %v18_v7  }
  0x82   :  { %26 = vst.msk [vmem:[#allocation0] sm:$0x1] %vm25_vm3, %v24_v6  }
  0x89   :  { %v30_v8 = vld [vmem:[#allocation0] sm:$0x1] }
  0x8a   :  { %32 = vst [vmem:[%s56_s1] sm:$0x1] %v30_v8 }

// kernel: unet_forward.1
= control target key start
LH: loop header
LB: loop body
LE: loop exit
PB: predicated region body
PF: predicated region fallthrough
CT: control target
= control target key end

     0   :  { %s13536_s17 = smov 0   ;;  %s16704_s0 = inlined_call_operand.vmem [shape: bf16[2,16,16,36], index: 0, kind: input, shape index: {}]   ;;  %s16705_s1 = inlined_call_operand.vmem [shape: bf16[36,64], index: 1, kind: input, shape index: {}]   ;;  %s16706_s2 = inlined_call_operand.vmem [shape: f32[1,64], index: 2, kind: input, shape index: {}]   ;;  %s16707_s3 = inlined_call_operand.vmem [shape: bf16[9,64,64], index: 3, kind: input, shape index: {}]   ;;  %s16708_s4 = inlined_call_operand.vmem [shape: f32[1,64], index: 4, kind: input, shape index: {}]   ;;  %s16709_s5 = inlined_call_operand.vmem [shape: bf16[9,64,64], index: 5, kind: input, shape index: {}]   ;;  %s16710_s6 = inlined_call_operand.vmem [shape: f32[1,64], index: 6, kind: input, shape index: {}]   ;;  %s16711_s7 = inlined_call_operand.vmem [shape: bf16[9,64,64], index: 7, kind: input, shape index: {}]   ;;  %s16712_s8 = inlined_call_operand.vmem [shape: f32[1,64], index: 8, kind: input, shape index: {}]   ;;  %s16713_s9 = inlined_call_operand.vmem [shape: bf16[64,12], index: 9, kind: input, shape index: {}]   ;;  %s16714_s10 = inlined_call_operand.vmem [shape: f32[1,12], index: 10, kind: input, shape index: {}]   ;;  %s16715_s11 = inlined_call_operand.vmem [shape: f32[2,64,12], index: 11, kind: output, shape index: {}]  }
   0x1 LB: > { %s10772_s18 = sadd.s32 4294967295, %s13473_s17   ;;  %p10776_p0 = scmp.ge.s32.totalorder %s13473_s17, 1  ;;  %s13473_s17 = sphi %s13536_s17, %s21_s17  }
   0x2   : > { %p337_p1 = scmp.lt.s32.totalorder %s13473_s17, 3 }
   0x4   : > { %p338_p2 = pnand %p10776_p0, %p337_p1 }
   0x6   : > { %341 = sbr.rel (%p338_p2) target bundleno = 2045 (0x7fd), region = 64 }
   0xd   : > { %v13252_v0 = vld [vmem:[%s16705_s1] sm:$0xff]   ;;  %v13253_v1 = vld [vmem:[%s16705_s1 + $0x8] sm:$0xff]   ;;  %p377_p3 = scmp.lt.s32.totalorder %s10772_s18, 1  ;;  %vm763_vm0 = vcmask 1041408   ;;  %vm391_vm1 = vcmask 516096   ;;  %vm714_vm3 = vcmask 293888  }
   0xe   : > { %12148 = vmatprep.subr.bf16.mxu0 %v13252_v0  ;;  %vm398_vm2 = vsmask.f32 256  ;;  %v13254_v2 = vld [vmem:[%s16705_s1 + $0x10] ss:$0 sps:$4 sm:$0x33]   ;;  %v16773_v3 = vmov 0 }
   0xf   : > { %12149 = vmatpush3.bf16.msra.mxu0 %v13252_v0  ;;  %s17004_s18 = smov (!%p377_p3, %s10772_s18), 1  ;;  %vm13557_vm4 = vmand %vm391_vm1, %vm398_vm2  ;;  %v406_v4 = vld [vmem:[#allocation2 + $0x18] sm:$0x1]  ;;  %v765_v7 = vsel %vm763_vm0, %v13254_v2, 0  ;;  %vm454_vm5 = vsmask.f32 7938 }
  0x10   : > { %12150 = vmatprep.subr.bf16.mxu0 %v13253_v1  ;;  %v16774_v3 = vsel %vm13557_vm4, 4294967295, %v16773_v3  ;;  %s11739_s25 = sshll.u32 %s17004_s18, 7  ;;  %v407_v5 = vsel %vm13557_vm4, 0, %v406_v4  ;;  %v403_v23 = vld [vmem:[#allocation2 + $0xc] sm:$0x1]  ;;  %vm13607_vm6 = vmand %vm391_vm1, %vm454_vm5  ;;  %v16776_v25 = vmov 0 }
  0x11   : > { %16775 = vst [vmem:[#allocation4_spill] sm:$0xff] %v16774_v3  ;;  %s13567_s28 = scalar_lea.vmem %s16704_s0, %s11739_s25  ;;  %408 = vst [vmem:[#allocation2 + $0x18] sm:$0x1] %v407_v5  ;;  %v404_v24 = vsel %vm13557_vm4, 0, %v403_v23  ;;  %v16777_v25 = vsel %vm13607_vm6, 4294967295, %v16776_v25  ;;  %vm388_vm7 = vcmask 519168  }
  0x12   : > { %v13255_v6 = vld [vmem:[%s13567_s28] sm:$0xff]   ;;  %v13256_v8 = vld [vmem:[%s13567_s28 + $0x8] sm:$0xff]   ;;  %v13257_v9 = vld [vmem:[%s13567_s28 + $0x10] sm:$0xff]   ;;  %16778 = vst [vmem:[#allocation5_spill] sm:$0xff] %v16777_v25  ;;  %v13475_v36 = vmov 0   ;;  %vm2017_vm11 = vcmask 523264  }
  0x13   : > { %12151 = vmatpush3.bf16.msra.mxu0 %v13253_v1  ;;  %12154 = vmatprep.mubr.msk.bf16.mxu0 %vm714_vm3, %v13255_v6  ;;  %v13258_v10 = vld [vmem:[%s13567_s28 + $0x18] sm:$0xff]   ;;  %v13259_v11 = vld [vmem:[%s13567_s28 + $0x20] sm:$0xff]   ;;  %v13260_v12 = vld [vmem:[%s13567_s28 + $0x28] sm:$0xff]   ;;  %405 = vst [vmem:[#allocation2 + $0xc] sm:$0x1] %v404_v24  ;;  %vm2588_vm15 = vcmask 1042432  }
  0x14   : > { %13242 = vmatprep.subr.msk.bf16.mxu0 %vm763_vm0, %v13254_v2  ;;  %v13261_v13 = vld [vmem:[%s13567_s28 + $0x30] sm:$0xff]   ;;  %v13262_v14 = vld [vmem:[%s13567_s28 + $0x38] sm:$0xff]   ;;  %v13263_v15 = vld [vmem:[%s13567_s28 + $0x40] sm:$0xff]   ;;  %389 = vst.msk [vmem:[#allocation2] sm:$0xf] %vm388_vm7, %v13475_v36  ;;  %vm2589_vm0 = vcmask 1046532  }
  0x15   : > { %v13264_v16 = vld [vmem:[%s13567_s28 + $0x48] sm:$0xff]   ;;  %v13265_v17 = vld [vmem:[%s13567_s28 + $0x50] sm:$0xff]   ;;  %v13266_v18 = vld [vmem:[%s13567_s28 + $0x58] sm:$0xff]   ;;  %390 = vst.msk [vmem:[#allocation2 + $0x4] sm:$0xf] %vm388_vm7, %v13475_v36  ;;  %s11740_s29 = sshll.u32 %s17004_s18, 6 }
  0x16   : > { %v13267_v19 = vld [vmem:[%s13567_s28 + $0x60] sm:$0xff]   ;;  %v13268_v20 = vld [vmem:[%s13567_s28 + $0x68] sm:$0xff]   ;;  %v13269_v21 = vld [vmem:[%s13567_s28 + $0x70] sm:$0xff]   ;;  %392 = vst.msk [vmem:[#allocation2 + $0x8] sm:$0x1] %vm391_vm1, %v13475_v36  ;;  %s386_s15 = scalar_lea.vmem %s16715_s11, %s11740_s29 }
  0x17   : > { %12153 = vmatpush3.bf16.msra.mxu0 %v765_v7  ;;  %v13270_v22 = vld [vmem:[%s13567_s28 + $0x78] sm:$0xff]   ;;  %v462_v26 = vld [vmem:[#allocation2 + $0x20] sm:$0x1]  ;;  %v459_v28 = vld [vmem:[#allocation2 + $0x14] sm:$0x1] }
  0x18   : > { %v463_v27 = vsel %vm13607_vm6, 0, %v462_v26  ;;  %v460_v29 = vsel %vm13607_vm6, 0, %v459_v28  ;;  %v412_v30 = vld [vmem:[#allocation2 + $0x30] sm:$0x1]  ;;  %v409_v32 = vld [vmem:[#allocation2 + $0x24] sm:$0x1]  ;;  %vm13751_vm13 = vmand %vm388_vm7, %vm454_vm5 }
  0x19   : > { %464 = vst [vmem:[#allocation2 + $0x20] sm:$0x1] %v463_v27  ;;  %461 = vst [vmem:[#allocation2 + $0x14] sm:$0x1] %v460_v29  ;;  %v413_v31 = vsel %vm13557_vm4, 0, %v412_v30  ;;  %v410_v33 = vsel %vm13557_vm4, 0, %v409_v32 }
  0x1a   : > { %12155 = vmatmul.mubr.msk.bf16.vlgmr.msra.gmra.mrb[0].mxu0 %vm714_vm3, %v13256_v8  ;;  %414 = vst [vmem:[#allocation2 + $0x30] sm:$0x1] %v413_v31  ;;  %411 = vst [vmem:[#allocation2 + $0x24] sm:$0x1] %v410_v33  ;;  %v468_v34 = vld [vmem:[#allocation2 + $0x38] sm:$0x1] }
  0x1b   : > { %12158 = vmatprep.mubr.msk.bf16.mxu0 %vm714_vm3, %v13257_v9  ;;  %v469_v35 = vsel %vm13607_vm6, 0, %v468_v34  ;;  %394 = vst.msk [vmem:[#allocation2 + $0xcc] sm:$0xf] %vm388_vm7, %v13475_v36  ;;  %395 = vst.msk [vmem:[#allocation2 + $0xd0] sm:$0xf] %vm388_vm7, %v13475_v36  ;;  %v13271_v40 = vld [vmem:[%s16707_s3 + $0x20] sm:$0xff]  }
  0x1c   : > { %470 = vst [vmem:[#allocation2 + $0x38] sm:$0x1] %v469_v35  ;;  %396 = vst.msk [vmem:[#allocation2 + $0xd4] sm:$0x1] %vm391_vm1, %v13475_v36  ;;  %v465_v37 = vld [vmem:[#allocation2 + $0x2c] sm:$0x1]  ;;  %12186 = vmatprep.subr.bf16.mxu0 %v13271_v40 }
  0x1d   : > { %510 = vst.msk [vmem:[#allocation3] sm:$0xf] %vm388_vm7, %v13475_v36  ;;  %513 = vst.msk [vmem:[#allocation3 + $0x48] sm:$0xf] %vm388_vm7, %v13475_v36  ;;  %v466_v38 = vsel %vm13607_vm6, 0, %v465_v37  ;;  %12187 = vmatpush3.bf16.msra.mxu0 %v13271_v40  ;;  %v13272_v49 = vld [vmem:[%s16707_s3 + $0x28] sm:$0xff]  }
  0x1e   : > { %511 = vst.msk [vmem:[#allocation3 + $0x4] sm:$0x1] %vm391_vm1, %v13475_v36  ;;  %514 = vst.msk [vmem:[#allocation3 + $0x4c] sm:$0x1] %vm391_vm1, %v13475_v36  ;;  %v418_v39 = vld [vmem:[#allocation2 + $0x48] sm:$0x1]  ;;  %12188 = vmatprep.subr.bf16.mxu0 %v13272_v49 }
  0x1f   : > { %467 = vst [vmem:[#allocation2 + $0x2c] sm:$0x1] %v466_v38  ;;  %v400_v41 = vld [vmem:[#allocation2] sm:$0x1]  ;;  %v419_v42 = vsel %vm13557_vm4, 0, %v418_v39  ;;  %v13273_v53 = vld [vmem:[%s16707_s3 + $0x30] sm:$0xff]   ;;  %vm14184_vm1 = vmor %vm2588_vm15, %vm2589_vm0 }
  0x20   : > { %v415_v43 = vld [vmem:[#allocation2 + $0x3c] sm:$0x1]  ;;  %v401_v44 = vsel %vm13557_vm4, 0, %v400_v41  ;;  %420 = vst [vmem:[#allocation2 + $0x48] sm:$0x1] %v419_v42  ;;  %vm6611_vm5 = vcmask 518146  }
  0x21   : > { %v416_v45 = vsel %vm13557_vm4, 0, %v415_v43  ;;  %v474_v46 = vld [vmem:[#allocation2 + $0x50] sm:$0x1]  ;;  %402 = vst [vmem:[#allocation2] sm:$0x1] %v401_v44  ;;  %12189 = vmatpush3.bf16.msra.mxu0 %v13272_v49  ;;  %v13274_v1 = vld [vmem:[%s16707_s3 + $0x38] sm:$0xff]  }
  0x22   : > { %12159 = vmatmul.mubr.msk.bf16.gmra.mrb[4].mxu0 %vm714_vm3, %v13258_v10  ;;  %417 = vst [vmem:[#allocation2 + $0x3c] sm:$0x1] %v416_v45  ;;  %v475_v47 = vsel %vm13607_vm6, 0, %v474_v46  ;;  %v471_v48 = vld [vmem:[#allocation2 + $0x44] sm:$0x1]  ;;  %12190 = vmatprep.subr.bf16.mxu0 %v13273_v53  ;;  %vm6784_vm15 = vcmask 519171  }
  0x23   : > { %12162 = vmatprep.mubr.msk.bf16.mxu0 %vm714_vm3, %v13259_v11  ;;  %476 = vst [vmem:[#allocation2 + $0x50] sm:$0x1] %v475_v47  ;;  %v472_v50 = vsel %vm13607_vm6, 0, %v471_v48  ;;  %v456_v51 = vld [vmem:[#allocation2 + $0x8] sm:$0x1]  ;;  %v13700_v44 = vld [vmem:[%s16707_s3] sm:$0xff]  }
  0x24   : > { %473 = vst [vmem:[#allocation2 + $0x44] sm:$0x1] %v472_v50  ;;  %v457_v52 = vsel %vm13607_vm6, 0, %v456_v51  ;;  %v424_v54 = vld [vmem:[#allocation2 + $0x60] sm:$0x1]  ;;  %12850 = vmatprep.subr.bf16.mxu1 %v13700_v44  ;;  %v13710_v47 = vld [vmem:[%s16707_s3 + $0x8] sm:$0xff]  }
  0x25   : > { %458 = vst [vmem:[#allocation2 + $0x8] sm:$0x1] %v457_v52  ;;  %v425_v56 = vsel %vm13557_vm4, 0, %v424_v54  ;;  %v421_v57 = vld [vmem:[#allocation2 + $0x54] sm:$0x1]  ;;  %12191 = vmatpush3.bf16.msra.mxu0 %v13273_v53  ;;  %12854 = vmatpush3.bf16.msra.mxu1 %v13700_v44 }
  0x26   : > { %426 = vst [vmem:[#allocation2 + $0x60] sm:$0x1] %v425_v56  ;;  %v422_v59 = vsel %vm13557_vm4, 0, %v421_v57  ;;  %v480_v60 = vld [vmem:[#allocation2 + $0x68] sm:$0x1]  ;;  %12192 = vmatprep.subr.bf16.mxu0 %v13274_v1  ;;  %12851 = vmatprep.subr.bf16.mxu1 %v13710_v47  ;;  %v13723_v54 = vld [vmem:[%s16707_s3 + $0x10] sm:$0xff]  }
  0x27   : > { %v1494_v61 = vld [vmem:[#allocation2 + $0x4] sm:$0xf]  ;;  %423 = vst [vmem:[#allocation2 + $0x54] sm:$0x1] %v422_v59  ;;  %v481_v63 = vsel %vm13607_vm6, 0, %v480_v60  ;;  %v13732_v57 = vld [vmem:[%s16707_s3 + $0x18] sm:$0xff]  }
  0x28   : > { %v1493_v55 = vld [vmem:[#allocation2] sm:$0xf]  ;;  %v477_v0 = vld [vmem:[#allocation2 + $0x5c] sm:$0x1]  ;;  %482 = vst [vmem:[#allocation2 + $0x68] sm:$0x1] %v481_v63 }
  0x29   : > { %v1553_v58 = vshrl.u32 %v1493_v55, 16  ;;  %v1556_v62 = vshll.u32 %v1493_v55, 16  ;;  %v478_v2 = vsel %vm13607_vm6, 0, %v477_v0  ;;  %v1562_v6 = vshll.u32 %v1494_v61, 16  ;;  %12193 = vmatpush3.bf16.msra.mxu0 %v13274_v1  ;;  %v483_v27 = vld [vmem:[#allocation2 + $0x74] sm:$0x1]  ;;  %12855 = vmatpush3.bf16.msra.mxu1 %v13710_v47 }
  0x2a   : > { %12163 = vmatmul.mubr.msk.bf16.gmra.mrb[8].mxu0 %vm714_vm3, %v13260_v12  ;;  %479 = vst [vmem:[#allocation2 + $0x5c] sm:$0x1] %v478_v2  ;;  %v1566_v10 = vshrl.u32 %v1494_v61, 16  ;;  %vm1549_vm8 = vsmask.f32 3328  ;;  %v484_v29 = vsel %vm13607_vm6, 0, %v483_v27  ;;  %12226 = vmatprep.subr.bf16.mxu0 %v13700_v44 }
  0x2b   : > { %12166 = vmatprep.mubr.msk.bf16.mxu0 %vm714_vm3, %v13261_v13  ;;  %v1555_v4 = vrot.slane %v1553_v58, 4  ;;  %v1558_v5 = vrot.slane %v1556_v62, 5  ;;  %v1564_v9 = vrot.slane %v1562_v6, 5  ;;  %v430_v12 = vld [vmem:[#allocation2 + $0x78] sm:$0x1]  ;;  %12852 = vmatprep.subr.bf16.mxu1 %v13723_v54  ;;  %v13280_v58 = vld [vmem:[%s16707_s3 + $0x40] sm:$0xff]  }
  0x2c   : > { %v1533_v7 = vld [vmem:[#allocation2 + $0x8] sm:$0x1]  ;;  %vm1550_vm9 = vsmask.f32 7440  ;;  %485 = vst [vmem:[#allocation2 + $0x74] sm:$0x1] %v484_v29 }
  0x2d   : > { %v1559_v8 = vor.u32 %v1558_v5, %v1555_v4  ;;  %v1572_v11 = vshll.u32 %v1533_v7, 16  ;;  %vm13672_vm10 = vmor %vm1549_vm8, %vm1550_vm9  ;;  %v436_v30 = vld [vmem:[#allocation2 + $0x90] sm:$0x1]  ;;  %v433_v32 = vld [vmem:[#allocation2 + $0x84] sm:$0x1]  ;;  %12856 = vmatpush3.bf16.msra.mxu1 %v13723_v54 }
  0x2e   : > { %v437_v31 = vsel %vm13557_vm4, 0, %v436_v30  ;;  %v492_v33 = vld [vmem:[#allocation2 + $0x98] sm:$0x1]  ;;  %v434_v34 = vsel %vm13557_vm4, 0, %v433_v32  ;;  %v489_v36 = vld [vmem:[#allocation2 + $0x8c] sm:$0x1]  ;;  %12853 = vmatprep.subr.bf16.mxu1 %v13732_v57 }
  0x2f   : > { %v1560_v13 = vrot.slane %v1559_v8, 4  ;;  %438 = vst [vmem:[#allocation2 + $0x90] sm:$0x1] %v437_v31  ;;  %v493_v35 = vsel %vm13607_vm6, 0, %v492_v33  ;;  %435 = vst [vmem:[#allocation2 + $0x84] sm:$0x1] %v434_v34 }
  0x30   : > { %494 = vst [vmem:[#allocation2 + $0x98] sm:$0x1] %v493_v35  ;;  %v490_v37 = vsel %vm13607_vm6, 0, %v489_v36  ;;  %v442_v38 = vld [vmem:[#allocation2 + $0xa8] sm:$0x1] }
  0x31   : > { %v1565_v23 = vsel %vm13672_vm10, %v1560_v13, %v1564_v9  ;;  %491 = vst [vmem:[#allocation2 + $0x8c] sm:$0x1] %v490_v37  ;;  %v443_v39 = vsel %vm13557_vm4, 0, %v442_v38  ;;  %v439_v40 = vld [vmem:[#allocation2 + $0x9c] sm:$0x1]  ;;  %12857 = vmatpush3.bf16.msra.mxu1 %v13732_v57 }
  0x32   : > { %12167 = vmatmul.mubr.msk.bf16.gmra.mrb[12].mxu0 %vm714_vm3, %v13262_v14  ;;  %v1568_v14 = vrot.slane %v1566_v10, 4  ;;  %444 = vst [vmem:[#allocation2 + $0xa8] sm:$0x1] %v443_v39  ;;  %v498_v41 = vld [vmem:[#allocation2 + $0xb0] sm:$0x1]  ;;  %v440_v42 = vsel %vm13557_vm4, 0, %v439_v40  ;;  %12266 = vmatprep.subr.bf16.mxu1 %v13280_v58 }
  0x33   : > { %12170 = vmatprep.mubr.msk.bf16.mxu0 %vm714_vm3, %v13263_v15  ;;  %v431_v15 = vsel %vm13557_vm4, 0, %v430_v12  ;;  %v499_v43 = vsel %vm13607_vm6, 0, %v498_v41  ;;  %441 = vst [vmem:[#allocation2 + $0x9c] sm:$0x1] %v440_v42  ;;  %v495_v45 = vld [vmem:[#allocation2 + $0xa4] sm:$0x1] }
  0x34   : > { %432 = vst [vmem:[#allocation2 + $0x78] sm:$0x1] %v431_v15  ;;  %500 = vst [vmem:[#allocation2 + $0xb0] sm:$0x1] %v499_v43  ;;  %v496_v46 = vsel %vm13607_vm6, 0, %v495_v45 }
  0x35   : > { %497 = vst [vmem:[#allocation2 + $0xa4] sm:$0x1] %v496_v46  ;;  %v448_v48 = vld [vmem:[#allocation2 + $0xc0] sm:$0x1]  ;;  %v445_v50 = vld [vmem:[#allocation2 + $0xb4] sm:$0x1] }
  0x36   : > { %v449_v49 = vsel %vm13557_vm4, 0, %v448_v48  ;;  %v446_v51 = vsel %vm13557_vm4, 0, %v445_v50  ;;  %v504_v52 = vld [vmem:[#allocation2 + $0xc8] sm:$0x1]  ;;  %v501_v55 = vld [vmem:[#allocation2 + $0xbc] sm:$0x1] }
  0x37   : > { %450 = vst [vmem:[#allocation2 + $0xc0] sm:$0x1] %v449_v49  ;;  %447 = vst [vmem:[#allocation2 + $0xb4] sm:$0x1] %v446_v51  ;;  %v505_v53 = vsel %vm13607_vm6, 0, %v504_v52  ;;  %v502_v56 = vsel %vm13607_vm6, 0, %v501_v55 }
  0x38   : > { %506 = vst [vmem:[#allocation2 + $0xc8] sm:$0x1] %v505_v53  ;;  %503 = vst [vmem:[#allocation2 + $0xbc] sm:$0x1] %v502_v56  ;;  %v13741_v59 = vld [vmem:[%s16706_s2] ss:$0 sm:$0xff] }
  0x39   : > { %vm1056_vm12 = vsmask.f32 4368  ;;  %v1381_v34 = vld [vmem:[#allocation2 + $0xc] sm:$0xf]  ;;  %v1392_v41 = vld [vmem:[#allocation2 + $0x20] sm:$0x1] }
  0x3a   : > { %12171 = vmatmul.mubr.msk.bf16.gmra.mrb[16].mxu0 %vm714_vm3, %v13264_v16  ;;  %v427_v16 = vld [vmem:[#allocation2 + $0x6c] sm:$0x1]  ;;  %vm13758_vm14 = vmor %vm398_vm2, %vm1056_vm12  ;;  %v1385_v49 = vld [vmem:[#allocation2 + $0x14] sm:$0x1]  ;;  %vm6510_vm2 = vcmask 517121  }
  0x3b   : > { %12174 = vmatprep.mubr.msk.bf16.mxu0 %vm714_vm3, %v13265_v17  ;;  %v428_v17 = vsel %vm13557_vm4, 0, %v427_v16  ;;  %vm6561_vm12 = vsmask.f32 7942  ;;  %vm6742_vm0 = vsmask.f32 7946 }
  0x3c   : > { %429 = vst [vmem:[#allocation2 + $0x6c] sm:$0x1] %v428_v17 }
  0x42   : > { %12175 = vmatmul.mubr.msk.bf16.gmra.mrb[20].mxu0 %vm714_vm3, %v13266_v18  ;;  %v486_v18 = vld [vmem:[#allocation2 + $0x80] sm:$0x1] }
  0x43   : > { %12178 = vmatprep.mubr.msk.bf16.mxu0 %vm714_vm3, %v13267_v19  ;;  %v1569_v19 = vor.u32 %v1568_v14, %v1564_v9 }
  0x45   : > { %v1570_v24 = vrot.slane %v1569_v19, 4 }
  0x4a   : > { %12179 = vmatmul.mubr.msk.bf16.gmra.mrb[24].mxu0 %vm714_vm3, %v13268_v20  ;;  %v1574_v20 = vrot.slane %v1572_v11, 5 }
  0x4b   : > { %12182 = vmatprep.mubr.msk.bf16.mxu0 %vm714_vm3, %v13269_v21  ;;  %v487_v21 = vsel %vm13607_vm6, 0, %v486_v18 }
  0x4c   : > { %488 = vst [vmem:[#allocation2 + $0x80] sm:$0x1] %v487_v21  ;;  %v1575_v26 = vsel %vm13672_vm10, %v1570_v24, %v1574_v20  ;;  %v16781_v24 = vmov 0 }
  0x4d   : > { %v10857_v28 = vcombine.low %v1565_v23, %v1575_v26  ;;  %v16782_v24 = vsel %vm13751_vm13, 4294967295, %v16781_v24  ;;  %v1388_v26 = vld [vmem:[#allocation2 + $0x18] sm:$0xf] }
  0x4e   : > { %16783 = vst [vmem:[#allocation6_spill] sm:$0xff] %v16782_v24 }
  0x52   : > { %12183 = vmatmul.mubr.msk.bf16.gmra.mrb[28].mxu0 %vm714_vm3, %v13270_v22  ;;  %vm6511_vm3 = vsmask.f32 1280 }
  0x53   : > { %12194 = vmatprep.mubr.msk.bf16.mxu0 %vm2017_vm11, %v10857_v28  ;;  %vm15616_vm9 = vmand %vm6510_vm2, %vm6511_vm3 }
  0x54   : > { %vm15639_vm3 = vmand %vm6784_vm15, %vm1549_vm8  ;;  %vm6826_vm8 = vsmask.f32 7950 }
  0xed   : > { %v12156_v60 = vpop.f32.mrb[0].mxu0 }
  0xee   : > { %v810_v61 = vadd.f32 %v12156_v60, %v13741_v59  ;;  %v801_v62 = vpop.f32.mrb[1].mxu0 }
  0xef   : > { %v802_v63 = vadd.f32 %v13741_v59, %v801_v62  ;;  %v12157_v0 = vpop.f32.mrb[2].mxu0 }
  0xf0   : > { %v930_v1 = vmax.f32 %v810_v61, 0.0  ;;  %v813_v2 = vadd.f32 %v12157_v0, %v13741_v59  ;;  %v804_v4 = vpop.f32.mrb[3].mxu0 }
  0xf1   : > { %v928_v5 = vmax.f32 %v802_v63, 0.0  ;;  %v805_v6 = vadd.f32 %v13741_v59, %v804_v4 }
  0xf2   : > { %v11743_v7 = vpack.c.bf16 %v930_v1, %v930_v1  ;;  %v931_v8 = vmax.f32 %v813_v2, 0.0 }
  0xf3   : > { %v11741_v9 = vpack.c.bf16 %v928_v5, %v928_v5  ;;  %v929_v10 = vmax.f32 %v805_v6, 0.0 }
  0xf4   : > { %v1076_v11 = vshrl.u32 %v11743_v7, 16  ;;  %v11744_v12 = vpack.c.bf16 %v931_v8, %v931_v8  ;;  %v1079_v13 = vshll.u32 %v11743_v7, 16  ;;  %v1402_v8 = vld [vmem:[#allocation2 + $0x30] sm:$0xf] }
  0xf5   : > { %v1059_v14 = vshrl.u32 %v11741_v9, 16  ;;  %v1062_v15 = vshll.u32 %v11741_v9, 16  ;;  %v11742_v16 = vpack.c.bf16 %v929_v10, %v929_v10  ;;  %v12160_v17 = vpop.f32.mrb[4].mxu0 }
  0xf6   : > { %v1078_v18 = vrot.slane %v1076_v11, 7  ;;  %v1084_v19 = vshrl.u32 %v11744_v12, 16  ;;  %v1087_v20 = vshll.u32 %v11744_v12, 16  ;;  %v826_v21 = vadd.f32 %v12160_v17, %v13741_v59  ;;  %v817_v23 = vpop.f32.mrb[5].mxu0 }
  0xf7   : > { %v1061_v27 = vrot.slane %v1059_v14, 7  ;;  %v1067_v28 = vshrl.u32 %v11742_v16, 16  ;;  %v1070_v29 = vshll.u32 %v11742_v16, 16  ;;  %v818_v30 = vadd.f32 %v13741_v59, %v817_v23  ;;  %v12161_v31 = vpop.f32.mrb[6].mxu0 }
  0xf8   : > { %v1081_v32 = vor.u32 %v1079_v13, %v1078_v18  ;;  %v1082_v33 = vrot.slane %v1078_v18, 4  ;;  %v1086_v35 = vrot.slane %v1084_v19, 7  ;;  %v934_v36 = vmax.f32 %v826_v21, 0.0  ;;  %v820_v37 = vpop.f32.mrb[7].mxu0 }
  0xf9   : > { %v1064_v38 = vor.u32 %v1062_v15, %v1061_v27  ;;  %v1065_v39 = vrot.slane %v1061_v27, 4  ;;  %v1069_v42 = vrot.slane %v1067_v28, 7  ;;  %v932_v43 = vmax.f32 %v818_v30, 0.0  ;;  %v1395_v15 = vld [vmem:[#allocation2 + $0x24] sm:$0xf] }
  0xfa   : > { %v1389_v45 = vsel %vm13751_vm13, %v1081_v32, %v1388_v26  ;;  %v1089_v46 = vor.u32 %v1087_v20, %v1086_v35  ;;  %v1091_v48 = vrot.slane %v1086_v35, 4  ;;  %v11747_v50 = vpack.c.bf16 %v934_v36, %v934_v36 }
  0xfb   : > { %1390 = vst [vmem:[#allocation2 + $0x18] sm:$0xf] %v1389_v45  ;;  %v1382_v51 = vsel %vm13751_vm13, %v1064_v38, %v1381_v34  ;;  %v1072_v52 = vor.u32 %v1070_v29, %v1069_v42  ;;  %v1074_v53 = vrot.slane %v1069_v42, 4  ;;  %v11745_v55 = vpack.c.bf16 %v932_v43, %v932_v43  ;;  %v1406_v38 = vld [vmem:[#allocation2 + $0x38] sm:$0x1] }
  0xfc   : > { %1383 = vst [vmem:[#allocation2 + $0xc] sm:$0xf] %v1382_v51  ;;  %v1090_v56 = vsel %vm13758_vm14, %v1082_v33, %v1089_v46  ;;  %v1393_v58 = vsel %vm13557_vm4, %v1091_v48, %v1392_v41  ;;  %v1110_v60 = vshrl.u32 %v11747_v50, 16  ;;  %v1113_v63 = vshll.u32 %v11747_v50, 16 }
  0xfd   : > { %1391 = vst.msk [vmem:[#allocation2 + $0x1c] sm:$0xf] %vm388_vm7, %v1090_v56  ;;  %1394 = vst [vmem:[#allocation2 + $0x20] sm:$0x1] %v1393_v58  ;;  %v1073_v61 = vsel %vm13758_vm14, %v1065_v39, %v1072_v52  ;;  %v1386_v62 = vsel %vm13557_vm4, %v1074_v53, %v1385_v49  ;;  %v1093_v0 = vshrl.u32 %v11745_v55, 16  ;;  %v12164_v1 = vpop.f32.mrb[8].mxu0  ;;  %v829_v4 = vadd.f32 %v12161_v31, %v13741_v59 }
  0xfe   : > { %1384 = vst.msk [vmem:[#allocation2 + $0x10] sm:$0xf] %vm388_vm7, %v1073_v61  ;;  %1387 = vst [vmem:[#allocation2 + $0x14] sm:$0x1] %v1386_v62  ;;  %v13776_v2 = vrot.slane %v1110_v60, 7  ;;  %v821_v5 = vadd.f32 %v13741_v59, %v820_v37  ;;  %v842_v6 = vadd.f32 %v12164_v1, %v13741_v59  ;;  %v833_v7 = vpop.f32.mrb[9].mxu0 }
  0xff   : > { %v1095_v9 = vrot.slane %v1093_v0, 7  ;;  %v1096_v10 = vshll.u32 %v11745_v55, 16  ;;  %v834_v11 = vadd.f32 %v13741_v59, %v833_v7  ;;  %v12165_v12 = vpop.f32.mrb[10].mxu0  ;;  %v935_v16 = vmax.f32 %v829_v4, 0.0  ;;  %v1399_v39 = vld [vmem:[#allocation2 + $0x2c] sm:$0x1] }
 0x100   : > { %v1115_v13 = vor.u32 %v1113_v63, %v13776_v2  ;;  %v1116_v14 = vrot.slane %v13776_v2, 4  ;;  %v933_v17 = vmax.f32 %v821_v5, 0.0  ;;  %v836_v18 = vpop.f32.mrb[11].mxu0  ;;  %v938_v21 = vmax.f32 %v842_v6, 0.0  ;;  %v1416_v55 = vld [vmem:[#allocation2 + $0x48] sm:$0xf] }
 0x101   : > { %v1098_v19 = vor.u32 %v1096_v10, %v1095_v9  ;;  %v1099_v20 = vrot.slane %v1095_v9, 4  ;;  %v936_v23 = vmax.f32 %v834_v11, 0.0  ;;  %v11748_v27 = vpack.c.bf16 %v935_v16, %v935_v16  ;;  %v1409_v2 = vld [vmem:[#allocation2 + $0x3c] sm:$0xf] }
 0x102   : > { %v1403_v26 = vsel %vm13751_vm13, %v1115_v13, %v1402_v8  ;;  %v11746_v28 = vpack.c.bf16 %v933_v17, %v933_v17  ;;  %v845_v29 = vadd.f32 %v12165_v12, %v13741_v59  ;;  %v11751_v31 = vpack.c.bf16 %v938_v21, %v938_v21 }
 0x103   : > { %1404 = vst [vmem:[#allocation2 + $0x30] sm:$0xf] %v1403_v26  ;;  %v1396_v30 = vsel %vm13751_vm13, %v1098_v19, %v1395_v15  ;;  %v11749_v32 = vpack.c.bf16 %v936_v23, %v936_v23  ;;  %v837_v33 = vadd.f32 %v13741_v59, %v836_v18  ;;  %v1118_v34 = vshrl.u32 %v11748_v27, 16 }
 0x104   : > { %1397 = vst [vmem:[#allocation2 + $0x24] sm:$0xf] %v1396_v30  ;;  %v1121_v35 = vshll.u32 %v11748_v27, 16  ;;  %v1101_v36 = vshrl.u32 %v11746_v28, 16  ;;  %v1104_v37 = vshll.u32 %v11746_v28, 16  ;;  %v1144_v41 = vshrl.u32 %v11751_v31, 16 }
 0x105   : > { %v1147_v42 = vshll.u32 %v11751_v31, 16  ;;  %v1127_v43 = vshrl.u32 %v11749_v32, 16  ;;  %v1130_v45 = vshll.u32 %v11749_v32, 16  ;;  %v12168_v46 = vpop.f32.mrb[12].mxu0  ;;  %v1120_v48 = vrot.slane %v1118_v34, 7 }
 0x106   : > { %v1103_v49 = vrot.slane %v1101_v36, 7  ;;  %v939_v50 = vmax.f32 %v845_v29, 0.0  ;;  %v937_v51 = vmax.f32 %v837_v33, 0.0  ;;  %v849_v52 = vpop.f32.mrb[13].mxu0  ;;  %v13790_v53 = vrot.slane %v1144_v41, 7 }
 0x107   : > { %v13792_v56 = vrot.slane %v1127_v43, 7  ;;  %v858_v58 = vadd.f32 %v12168_v46, %v13741_v59  ;;  %v850_v60 = vadd.f32 %v13741_v59, %v849_v52  ;;  %v12169_v61 = vpop.f32.mrb[14].mxu0  ;;  %v1123_v62 = vor.u32 %v1121_v35, %v1120_v48  ;;  %v1420_v29 = vld [vmem:[#allocation2 + $0x50] sm:$0x1] }
 0x108   : > { %v1125_v63 = vrot.slane %v1120_v48, 4  ;;  %v1106_v0 = vor.u32 %v1104_v37, %v1103_v49  ;;  %v1108_v1 = vrot.slane %v1103_v49, 4  ;;  %v852_v4 = vpop.f32.mrb[15].mxu0  ;;  %v1149_v5 = vor.u32 %v1147_v42, %v13790_v53  ;;  %v1413_v37 = vld [vmem:[#allocation2 + $0x44] sm:$0x1] }
 0x109   : > { %v1150_v6 = vrot.slane %v13790_v53, 4  ;;  %v1132_v7 = vor.u32 %v1130_v45, %v13792_v56  ;;  %v1133_v8 = vrot.slane %v13792_v56, 4  ;;  %v1124_v9 = vsel %vm13758_vm14, %v1116_v14, %v1123_v62 }
 0x10a   : > { %v1407_v10 = vsel %vm13557_vm4, %v1125_v63, %v1406_v38  ;;  %v1107_v11 = vsel %vm13758_vm14, %v1099_v20, %v1106_v0  ;;  %v1400_v12 = vsel %vm13557_vm4, %v1108_v1, %v1399_v39  ;;  %1405 = vst.msk [vmem:[#allocation2 + $0x34] sm:$0xf] %vm388_vm7, %v1124_v9  ;;  %v1417_v13 = vsel %vm13751_vm13, %v1149_v5, %v1416_v55  ;;  %v1430_v0 = vld [vmem:[#allocation2 + $0x60] sm:$0xf]  ;;  %v1423_v1 = vld [vmem:[#allocation2 + $0x54] sm:$0xf] }
 0x10b   : > { %1408 = vst [vmem:[#allocation2 + $0x38] sm:$0x1] %v1407_v10  ;;  %1398 = vst.msk [vmem:[#allocation2 + $0x28] sm:$0xf] %vm388_vm7, %v1107_v11  ;;  %v1410_v14 = vsel %vm13751_vm13, %v1132_v7, %v1409_v2  ;;  %v11752_v15 = vpack.c.bf16 %v939_v50, %v939_v50  ;;  %v11750_v16 = vpack.c.bf16 %v937_v51, %v937_v51  ;;  %v942_v17 = vmax.f32 %v858_v58, 0.0 }
 0x10c   : > { %1401 = vst [vmem:[#allocation2 + $0x2c] sm:$0x1] %v1400_v12  ;;  %1418 = vst [vmem:[#allocation2 + $0x48] sm:$0xf] %v1417_v13  ;;  %v940_v18 = vmax.f32 %v850_v60, 0.0  ;;  %v861_v19 = vadd.f32 %v12169_v61, %v13741_v59  ;;  %v853_v20 = vadd.f32 %v13741_v59, %v852_v4 }
 0x10d   : > { %1411 = vst [vmem:[#allocation2 + $0x3c] sm:$0xf] %v1410_v14  ;;  %v1152_v21 = vshrl.u32 %v11752_v15, 16  ;;  %v1155_v23 = vshll.u32 %v11752_v15, 16  ;;  %v1135_v26 = vshrl.u32 %v11750_v16, 16  ;;  %v1138_v27 = vshll.u32 %v11750_v16, 16 }
 0x10e   : > { %v12172_v28 = vpop.f32.mrb[16].mxu0  ;;  %v11755_v30 = vpack.c.bf16 %v942_v17, %v942_v17  ;;  %v11753_v31 = vpack.c.bf16 %v940_v18, %v940_v18  ;;  %v943_v32 = vmax.f32 %v861_v19, 0.0  ;;  %v941_v33 = vmax.f32 %v853_v20, 0.0  ;;  %v1495_v7 = vld [vmem:[#allocation2 + $0xc] sm:$0xf] }
 0x10f   : > { %v865_v34 = vpop.f32.mrb[17].mxu0  ;;  %v1154_v35 = vrot.slane %v1152_v21, 7  ;;  %v1137_v36 = vrot.slane %v1135_v26, 7  ;;  %v874_v38 = vadd.f32 %v12172_v28, %v13741_v59  ;;  %v1434_v15 = vld [vmem:[#allocation2 + $0x68] sm:$0x1] }
 0x110   : > { %v866_v39 = vadd.f32 %v13741_v59, %v865_v34  ;;  %v12173_v41 = vpop.f32.mrb[18].mxu0  ;;  %v1178_v42 = vshrl.u32 %v11755_v30, 16  ;;  %v1181_v43 = vshll.u32 %v11755_v30, 16  ;;  %v1161_v45 = vshrl.u32 %v11753_v31, 16  ;;  %v1427_v21 = vld [vmem:[#allocation2 + $0x5c] sm:$0x1] }
 0x111   : > { %v1164_v46 = vshll.u32 %v11753_v31, 16  ;;  %v868_v48 = vpop.f32.mrb[19].mxu0  ;;  %v1157_v49 = vor.u32 %v1155_v23, %v1154_v35  ;;  %v1159_v50 = vrot.slane %v1154_v35, 4  ;;  %v1140_v51 = vor.u32 %v1138_v27, %v1137_v36  ;;  %v1496_v30 = vld [vmem:[#allocation2 + $0x10] sm:$0xf] }
 0x112   : > { %v1142_v52 = vrot.slane %v1137_v36, 4  ;;  %v1180_v53 = vrot.slane %v1178_v42, 7  ;;  %v1163_v55 = vrot.slane %v1161_v45, 7  ;;  %v11756_v56 = vpack.c.bf16 %v943_v32, %v943_v32 }
 0x113   : > { %v11754_v58 = vpack.c.bf16 %v941_v33, %v941_v33  ;;  %v1158_v60 = vsel %vm13758_vm14, %v1150_v6, %v1157_v49  ;;  %v1421_v61 = vsel %vm13557_vm4, %v1159_v50, %v1420_v29  ;;  %v1141_v62 = vsel %vm13758_vm14, %v1133_v8, %v1140_v51  ;;  %v1444_v49 = vld [vmem:[#allocation2 + $0x78] sm:$0xf]  ;;  %v1437_v50 = vld [vmem:[#allocation2 + $0x6c] sm:$0xf] }
 0x114   : > { %v1414_v63 = vsel %vm13557_vm4, %v1142_v52, %v1413_v37  ;;  %1419 = vst.msk [vmem:[#allocation2 + $0x4c] sm:$0xf] %vm388_vm7, %v1158_v60  ;;  %1422 = vst [vmem:[#allocation2 + $0x50] sm:$0x1] %v1421_v61  ;;  %v1183_v2 = vor.u32 %v1181_v43, %v1180_v53  ;;  %v1184_v4 = vrot.slane %v1180_v53, 4  ;;  %v1166_v5 = vor.u32 %v1164_v46, %v1163_v55 }
 0x115   : > { %1412 = vst.msk [vmem:[#allocation2 + $0x40] sm:$0xf] %vm388_vm7, %v1141_v62  ;;  %1415 = vst [vmem:[#allocation2 + $0x44] sm:$0x1] %v1414_v63  ;;  %v1167_v6 = vrot.slane %v1163_v55, 4  ;;  %v1186_v9 = vshrl.u32 %v11756_v56, 16  ;;  %v877_v23 = vadd.f32 %v12173_v41, %v13741_v59  ;;  %v869_v26 = vadd.f32 %v13741_v59, %v868_v48 }
 0x116   : > { %v1189_v10 = vshll.u32 %v11756_v56, 16  ;;  %v1169_v11 = vshrl.u32 %v11754_v58, 16  ;;  %v1172_v8 = vshll.u32 %v11754_v58, 16  ;;  %v13828_v12 = vpop.f32.mrb[20].mxu0  ;;  %v1431_v13 = vsel %vm13751_vm13, %v1183_v2, %v1430_v0  ;;  %v1534_v56 = vld [vmem:[#allocation2 + $0x14] sm:$0x1] }
 0x117   : > { %v1424_v14 = vsel %vm13751_vm13, %v1166_v5, %v1423_v1  ;;  %v946_v16 = vmax.f32 %v874_v38, 0.0  ;;  %v944_v17 = vmax.f32 %v866_v39, 0.0  ;;  %v13834_v18 = vpop.f32.mrb[21].mxu0  ;;  %1432 = vst [vmem:[#allocation2 + $0x60] sm:$0xf] %v1431_v13  ;;  %v1188_v19 = vrot.slane %v1186_v9, 7 }
 0x118   : > { %1425 = vst [vmem:[#allocation2 + $0x54] sm:$0xf] %v1424_v14  ;;  %v1171_v20 = vrot.slane %v1169_v11, 7  ;;  %v13838_v27 = vpop.f32.mrb[22].mxu0  ;;  %v1577_v31 = vshrl.u32 %v1495_v7, 16  ;;  %v1580_v32 = vshll.u32 %v1495_v7, 16 }
 0x119   : > { %v11759_v28 = vpack.c.bf16 %v946_v16, %v946_v16  ;;  %v11757_v29 = vpack.c.bf16 %v944_v17, %v944_v17  ;;  %v13840_v33 = vpop.f32.mrb[23].mxu0  ;;  %v1191_v34 = vor.u32 %v1189_v10, %v1188_v19  ;;  %v1193_v35 = vrot.slane %v1188_v19, 4  ;;  %v1497_v11 = vld [vmem:[#allocation2 + $0x18] sm:$0xf]  ;;  %v1498_v17 = vld [vmem:[#allocation2 + $0x1c] sm:$0xf] }
 0x11a   : > { %v1174_v36 = vor.u32 %v1172_v8, %v1171_v20  ;;  %v1176_v37 = vrot.slane %v1171_v20, 4  ;;  %v947_v53 = vmax.f32 %v877_v23, 0.0  ;;  %v945_v55 = vmax.f32 %v869_v26, 0.0 }
 0x11b   : > { %v1212_v38 = vshrl.u32 %v11759_v28, 16  ;;  %v1215_v39 = vshll.u32 %v11759_v28, 16  ;;  %v1195_v42 = vshrl.u32 %v11757_v29, 16  ;;  %v1198_v43 = vshll.u32 %v11757_v29, 16 }
 0x11c   : > { %v1192_v41 = vsel %vm13758_vm14, %v1184_v4, %v1191_v34  ;;  %v1435_v45 = vsel %vm13557_vm4, %v1193_v35, %v1434_v15  ;;  %v1175_v46 = vsel %vm13758_vm14, %v1167_v6, %v1174_v36  ;;  %v1428_v48 = vsel %vm13557_vm4, %v1176_v37, %v1427_v21  ;;  %v1448_v34 = vld [vmem:[#allocation2 + $0x80] sm:$0x1] }
 0x11d   : > { %1433 = vst.msk [vmem:[#allocation2 + $0x64] sm:$0xf] %vm388_vm7, %v1192_v41  ;;  %1436 = vst [vmem:[#allocation2 + $0x68] sm:$0x1] %v1435_v45  ;;  %v1214_v51 = vrot.slane %v1212_v38, 7  ;;  %v1197_v52 = vrot.slane %v1195_v42, 7  ;;  %v11760_v6 = vpack.c.bf16 %v947_v53, %v947_v53  ;;  %v11758_v7 = vpack.c.bf16 %v945_v55, %v945_v55 }
 0x11e   : > { %1426 = vst.msk [vmem:[#allocation2 + $0x58] sm:$0xf] %vm388_vm7, %v1175_v46  ;;  %1429 = vst [vmem:[#allocation2 + $0x5c] sm:$0x1] %v1428_v48  ;;  %v1579_v58 = vrot.slane %v1577_v31, 4  ;;  %v1582_v60 = vrot.slane %v1580_v32, 5 }
 0x11f   : > { %v1586_v61 = vshll.u32 %v1496_v30, 16  ;;  %v1590_v62 = vshrl.u32 %v1496_v30, 16  ;;  %v13852_v63 = vpop.f32.mrb[24].mxu0  ;;  %v1217_v0 = vor.u32 %v1215_v39, %v1214_v51  ;;  %v1218_v1 = vrot.slane %v1214_v51, 4  ;;  %v1441_v38 = vld [vmem:[#allocation2 + $0x74] sm:$0x1] }
 0x120   : > { %v1200_v2 = vor.u32 %v1198_v43, %v1197_v52  ;;  %v1201_v4 = vrot.slane %v1197_v52, 4  ;;  %v13854_v5 = vpop.f32.mrb[25].mxu0  ;;  %v1583_v9 = vor.u32 %v1582_v60, %v1579_v58  ;;  %v1596_v16 = vshll.u32 %v1534_v56, 16  ;;  %v1499_v58 = vld [vmem:[#allocation2 + $0x24] sm:$0xf] }
 0x121   : > { %v1588_v10 = vrot.slane %v1586_v61, 5  ;;  %v13856_v8 = vpop.f32.mrb[26].mxu0  ;;  %v1445_v13 = vsel %vm13751_vm13, %v1217_v0, %v1444_v49  ;;  %v1592_v15 = vrot.slane %v1590_v62, 4  ;;  %v1220_v20 = vshrl.u32 %v11760_v6, 16 }
 0x122   : > { %v1438_v14 = vsel %vm13751_vm13, %v1200_v2, %v1437_v50  ;;  %v13862_v19 = vpop.f32.mrb[27].mxu0  ;;  %1446 = vst [vmem:[#allocation2 + $0x78] sm:$0xf] %v1445_v13  ;;  %v1223_v21 = vshll.u32 %v11760_v6, 16  ;;  %v1203_v23 = vshrl.u32 %v11758_v7, 16  ;;  %v1206_v26 = vshll.u32 %v11758_v7, 16 }
 0x123   : > { %1439 = vst [vmem:[#allocation2 + $0x6c] sm:$0xf] %v1438_v14  ;;  %v1584_v28 = vrot.slane %v1583_v9, 4  ;;  %v1593_v29 = vor.u32 %v1592_v15, %v1588_v10  ;;  %v1598_v30 = vrot.slane %v1596_v16, 5  ;;  %v1601_v31 = vshrl.u32 %v1497_v11, 16 }
 0x124   : > { %v1222_v32 = vrot.slane %v1220_v20, 7  ;;  %v1205_v35 = vrot.slane %v1203_v23, 7  ;;  %v1604_v36 = vshll.u32 %v1497_v11, 16  ;;  %v1610_v37 = vshll.u32 %v1498_v17, 16  ;;  %v1535_v50 = vld [vmem:[#allocation2 + $0x20] sm:$0x1] }
 0x125   : > { %v1589_v39 = vsel %vm13672_vm10, %v1584_v28, %v1588_v10  ;;  %v1594_v42 = vrot.slane %v1593_v29, 4  ;;  %v1603_v43 = vrot.slane %v1601_v31, 4  ;;  %v1614_v41 = vshrl.u32 %v1498_v17, 16  ;;  %v13866_v51 = vpop.f32.mrb[28].mxu0  ;;  %v1500_v16 = vld [vmem:[#allocation2 + $0x28] sm:$0xf] }
 0x126   : > { %v1225_v45 = vor.u32 %v1223_v21, %v1222_v32  ;;  %v1227_v46 = vrot.slane %v1222_v32, 4  ;;  %v1208_v48 = vor.u32 %v1206_v26, %v1205_v35  ;;  %v1210_v49 = vrot.slane %v1205_v35, 4  ;;  %v13870_v60 = vpop.f32.mrb[29].mxu0 }
 0x127   : > { %v1599_v52 = vsel %vm13672_vm10, %v1594_v42, %v1598_v30  ;;  %v1606_v53 = vrot.slane %v1604_v36, 5  ;;  %v1612_v55 = vrot.slane %v1610_v37, 5  ;;  %v1616_v56 = vrot.slane %v1614_v41, 4  ;;  %v13880_v6 = vpop.f32.mrb[30].mxu0 }
 0x128   : > { %v1226_v61 = vsel %vm13758_vm14, %v1218_v1, %v1225_v45  ;;  %v1449_v62 = vsel %vm13557_vm4, %v1227_v46, %v1448_v34  ;;  %v1209_v0 = vsel %vm13758_vm14, %v1201_v4, %v1208_v48  ;;  %v1442_v2 = vsel %vm13557_vm4, %v1210_v49, %v1441_v38  ;;  %v13884_v11 = vpop.f32.mrb[31].mxu0  ;;  %v13902_v45 = vld [vmem:[#allocation2 + $0x2c] sm:$0x1]  ;;  %v1458_v46 = vld [vmem:[#allocation2 + $0x90] sm:$0xf] }
 0x129   : > { %1447 = vst.msk [vmem:[#allocation2 + $0x7c] sm:$0xf] %vm388_vm7, %v1226_v61  ;;  %1450 = vst [vmem:[#allocation2 + $0x80] sm:$0x1] %v1449_v62  ;;  %v10858_v7 = vcombine.low %v1589_v39, %v1599_v52  ;;  %v1607_v9 = vor.u32 %v1606_v53, %v1603_v43  ;;  %v1617_v1 = vor.u32 %v1616_v56, %v1612_v55  ;;  %v1620_v10 = vshll.u32 %v1535_v50, 16 }
 0x12a   : > { %1440 = vst.msk [vmem:[#allocation2 + $0x70] sm:$0xf] %vm388_vm7, %v1209_v0  ;;  %1443 = vst [vmem:[#allocation2 + $0x74] sm:$0x1] %v1442_v2  ;;  %v890_v4 = vadd.f32 %v13828_v12, %v13741_v59  ;;  %v882_v13 = vadd.f32 %v13741_v59, %v13834_v18  ;;  %v893_v14 = vadd.f32 %v13838_v27, %v13741_v59  ;;  %v1625_v23 = vshrl.u32 %v1499_v58, 16 }
 0x12b   : > { %v885_v15 = vadd.f32 %v13741_v59, %v13840_v33  ;;  %12195 = vmatmul.mubr.msk.bf16.vlgmr.msra.gmra.mrb[32].mxu0 %vm2017_vm11, %v10858_v7  ;;  %v1608_v17 = vrot.slane %v1607_v9, 4  ;;  %v1618_v20 = vrot.slane %v1617_v1, 4  ;;  %v1622_v21 = vrot.slane %v1620_v10, 5  ;;  %v1451_v56 = vld [vmem:[#allocation2 + $0x84] sm:$0xf] }
 0x12c   : > { %v950_v26 = vmax.f32 %v890_v4, 0.0  ;;  %v948_v28 = vmax.f32 %v882_v13, 0.0  ;;  %v951_v29 = vmax.f32 %v893_v14, 0.0  ;;  %12227 = vmatpush3.bf16.msra.mxu0 %v13700_v44  ;;  %v1627_v33 = vrot.slane %v1625_v23, 4  ;;  %v1462_v0 = vld [vmem:[#allocation2 + $0x98] sm:$0x1] }
 0x12d   : > { %v949_v12 = vmax.f32 %v885_v15, 0.0  ;;  %v1613_v18 = vsel %vm13672_vm10, %v1608_v17, %v1612_v55  ;;  %v1623_v27 = vsel %vm13672_vm10, %v1618_v20, %v1622_v21  ;;  %v1628_v30 = vshll.u32 %v1499_v58, 16  ;;  %12228 = vmatprep.subr.bf16.mxu0 %v13710_v47  ;;  %v1455_v13 = vld [vmem:[#allocation2 + $0x8c] sm:$0x1]  ;;  %v1501_v20 = vld [vmem:[#allocation2 + $0x30] sm:$0xf] }
 0x12e   : > { %v10859_v31 = vcombine.low %v1613_v18, %v1623_v27  ;;  %v11763_v32 = vpack.c.bf16 %v950_v26, %v950_v26  ;;  %v11761_v34 = vpack.c.bf16 %v948_v28, %v948_v28  ;;  %v11764_v35 = vpack.c.bf16 %v951_v29, %v951_v29  ;;  %v13913_v29 = vld [vmem:[#allocation2 + $0x34] sm:$0xf] }
 0x12f   : > { %v11762_v36 = vpack.c.bf16 %v949_v12, %v949_v12  ;;  %v1630_v37 = vrot.slane %v1628_v30, 5  ;;  %v1634_v38 = vshll.u32 %v1500_v16, 16  ;;  %v1638_v39 = vshrl.u32 %v1500_v16, 16  ;;  %v13915_v12 = vld [vmem:[#allocation2 + $0x38] sm:$0x1] }
 0x130   : > { %12198 = vmatprep.mubr.msk.bf16.mxu0 %vm2017_vm11, %v10859_v31  ;;  %v1246_v44 = vshrl.u32 %v11763_v32, 16  ;;  %v1249_v42 = vshll.u32 %v11763_v32, 16  ;;  %v1229_v43 = vshrl.u32 %v11761_v34, 16  ;;  %v1232_v41 = vshll.u32 %v11761_v34, 16  ;;  %12229 = vmatpush3.bf16.msra.mxu0 %v13710_v47 }
 0x131   : > { %v1254_v48 = vshrl.u32 %v11764_v35, 16  ;;  %v1257_v49 = vshll.u32 %v11764_v35, 16  ;;  %v1237_v50 = vshrl.u32 %v11762_v36, 16  ;;  %v1240_v52 = vshll.u32 %v11762_v36, 16  ;;  %12230 = vmatprep.subr.bf16.mxu0 %v13723_v54 }
 0x132   : > { %v1248_v53 = vrot.slane %v1246_v44, 7  ;;  %v1231_v55 = vrot.slane %v1229_v43, 7  ;;  %v1631_v58 = vor.u32 %v1630_v37, %v1627_v33  ;;  %v1636_v61 = vrot.slane %v1634_v38, 5 }
 0x133   : > { %v1256_v62 = vrot.slane %v1254_v48, 7  ;;  %v1239_v2 = vrot.slane %v1237_v50, 7  ;;  %v1640_v7 = vrot.slane %v1638_v39, 4  ;;  %v1644_v9 = vshll.u32 %v13902_v45, 16 }
 0x134   : > { %v1251_v1 = vor.u32 %v1249_v42, %v1248_v53  ;;  %v1252_v47 = vrot.slane %v1248_v53, 4  ;;  %v1234_v10 = vor.u32 %v1232_v41, %v1231_v55  ;;  %v1235_v4 = vrot.slane %v1231_v55, 4  ;;  %12231 = vmatpush3.bf16.msra.mxu0 %v13723_v54  ;;  %v1503_v41 = vld [vmem:[#allocation2 + $0x3c] sm:$0xf] }
 0x135   : > { %v1259_v14 = vor.u32 %v1257_v49, %v1256_v62  ;;  %v1261_v15 = vrot.slane %v1256_v62, 4  ;;  %v1242_v16 = vor.u32 %v1240_v52, %v1239_v2  ;;  %v1244_v17 = vrot.slane %v1239_v2, 4  ;;  %12232 = vmatprep.subr.bf16.mxu0 %v13732_v57 }
 0x136   : > { %v1459_v21 = vsel %vm13751_vm13, %v1251_v1, %v1458_v46  ;;  %v1452_v23 = vsel %vm13751_vm13, %v1234_v10, %v1451_v56  ;;  %v1632_v26 = vrot.slane %v1631_v58, 4  ;;  %v1641_v28 = vor.u32 %v1640_v7, %v1636_v61 }
 0x137   : > { %1460 = vst [vmem:[#allocation2 + $0x90] sm:$0xf] %v1459_v21  ;;  %1453 = vst [vmem:[#allocation2 + $0x84] sm:$0xf] %v1452_v23  ;;  %v1260_v54 = vsel %vm13758_vm14, %v1252_v47, %v1259_v14  ;;  %v1463_v18 = vsel %vm13557_vm4, %v1261_v15, %v1462_v0  ;;  %v1243_v27 = vsel %vm13758_vm14, %v1235_v4, %v1242_v16  ;;  %v1646_v32 = vrot.slane %v1644_v9, 5 }
 0x138   : > { %v1456_v33 = vsel %vm13557_vm4, %v1244_v17, %v1455_v13  ;;  %1461 = vst.msk [vmem:[#allocation2 + $0x94] sm:$0xf] %vm388_vm7, %v1260_v54  ;;  %1464 = vst [vmem:[#allocation2 + $0x98] sm:$0x1] %v1463_v18  ;;  %v1637_v30 = vsel %vm13672_vm10, %v1632_v26, %v1636_v61  ;;  %v1642_v31 = vrot.slane %v1641_v28, 4  ;;  %v1649_v34 = vshrl.u32 %v1501_v20, 16  ;;  %12233 = vmatpush3.bf16.msra.mxu0 %v13732_v57 }
 0x139   : > { %1454 = vst.msk [vmem:[#allocation2 + $0x88] sm:$0xf] %vm388_vm7, %v1243_v27  ;;  %1457 = vst [vmem:[#allocation2 + $0x8c] sm:$0x1] %v1456_v33  ;;  %v1652_v35 = vshll.u32 %v1501_v20, 16  ;;  %v1658_v36 = vshll.u32 %v13913_v29, 16  ;;  %v906_v42 = vadd.f32 %v13852_v63, %v13741_v59  ;;  %v898_v43 = vadd.f32 %v13741_v59, %v13854_v5 }
 0x13a   : > { %v1662_v37 = vshrl.u32 %v13913_v29, 16  ;;  %v1668_v38 = vshll.u32 %v13915_v12, 16  ;;  %v1647_v39 = vsel %vm13672_vm10, %v1642_v31, %v1646_v32  ;;  %v1651_v44 = vrot.slane %v1649_v34, 4  ;;  %v13948_v20 = vld [vmem:[#allocation2 + $0x40] sm:$0xf] }
 0x13b   : > { %v10860_v46 = vcombine.low %v1637_v30, %v1647_v39  ;;  %v1654_v57 = vrot.slane %v1652_v35, 5  ;;  %v1660_v48 = vrot.slane %v1658_v36, 5  ;;  %v954_v52 = vmax.f32 %v906_v42, 0.0  ;;  %v13950_v28 = vld [vmem:[#allocation2 + $0x44] sm:$0x1] }
 0x13c   : > { %v1664_v49 = vrot.slane %v1662_v37, 4  ;;  %v1670_v50 = vrot.slane %v1668_v38, 5  ;;  %v952_v53 = vmax.f32 %v898_v43, 0.0  ;;  %v909_v55 = vadd.f32 %v13856_v8, %v13741_v59  ;;  %v1476_v36 = vld [vmem:[#allocation2 + $0xb0] sm:$0x1] }
 0x13d   : > { %12199 = vmatmul.mubr.msk.bf16.gmra.mrb[36].mxu0 %vm2017_vm11, %v10860_v46  ;;  %v1655_v56 = vor.u32 %v1654_v57, %v1651_v44  ;;  %v901_v63 = vadd.f32 %v13741_v59, %v13862_v19  ;;  %v1673_v61 = vshrl.u32 %v1503_v41, 16  ;;  %v11767_v5 = vpack.c.bf16 %v954_v52, %v954_v52  ;;  %v1472_v59 = vld [vmem:[#allocation2 + $0xa8] sm:$0xf]  ;;  %v1465_v19 = vld [vmem:[#allocation2 + $0x9c] sm:$0xf] }
 0x13e   : > { %v1665_v58 = vor.u32 %v1664_v49, %v1660_v48  ;;  %v11765_v62 = vpack.c.bf16 %v952_v53, %v952_v53  ;;  %v955_v0 = vmax.f32 %v909_v55, 0.0  ;;  %v1676_v2 = vshll.u32 %v1503_v41, 16  ;;  %v1469_v41 = vld [vmem:[#allocation2 + $0xa4] sm:$0x1]  ;;  %v13960_v53 = vld [vmem:[#allocation2 + $0x48] sm:$0xf] }
 0x13f   : > { %v1656_v7 = vrot.slane %v1655_v56, 4  ;;  %v953_v1 = vmax.f32 %v901_v63, 0.0  ;;  %v1675_v47 = vrot.slane %v1673_v61, 4  ;;  %v1280_v10 = vshrl.u32 %v11767_v5, 16  ;;  %v13962_v63 = vld [vmem:[#allocation2 + $0x4c] sm:$0xf] }
 0x140   : > { %v1666_v9 = vrot.slane %v1665_v58, 4  ;;  %v1283_v4 = vshll.u32 %v11767_v5, 16  ;;  %v1263_v13 = vshrl.u32 %v11765_v62, 16  ;;  %v1266_v8 = vshll.u32 %v11765_v62, 16 }
 0x141   : > { %v1661_v14 = vsel %vm13672_vm10, %v1656_v7, %v1660_v48  ;;  %v11768_v16 = vpack.c.bf16 %v955_v0, %v955_v0  ;;  %v11766_v17 = vpack.c.bf16 %v953_v1, %v953_v1  ;;  %v1282_v23 = vrot.slane %v1280_v10, 7 }
 0x142   : > { %v1671_v15 = vsel %vm13672_vm10, %v1666_v9, %v1670_v50  ;;  %v1265_v26 = vrot.slane %v1263_v13, 7  ;;  %v1678_v54 = vrot.slane %v1676_v2, 5  ;;  %v1682_v44 = vshll.u32 %v13948_v20, 16  ;;  %v13974_v9 = vld [vmem:[#allocation2 + $0x50] sm:$0x1] }
 0x143   : > { %v10861_v21 = vcombine.low %v1661_v14, %v1671_v15  ;;  %v1288_v18 = vshrl.u32 %v11768_v16, 16  ;;  %v1291_v27 = vshll.u32 %v11768_v16, 16  ;;  %v1271_v33 = vshrl.u32 %v11766_v17, 16 }
 0x144   : > { %v1274_v30 = vshll.u32 %v11766_v17, 16  ;;  %v1285_v31 = vor.u32 %v1283_v4, %v1282_v23  ;;  %v1286_v32 = vrot.slane %v1282_v23, 4  ;;  %v1268_v34 = vor.u32 %v1266_v8, %v1265_v26  ;;  %v13985_v8 = vld [vmem:[%s16706_s2] ss:$0 sm:$0xff]  ;;  %v1513_v17 = vld [vmem:[#allocation2 + $0x78] sm:$0xf] }
 0x145   : > { %12202 = vmatprep.mubr.msk.bf16.mxu0 %vm2017_vm11, %v10861_v21  ;;  %v1269_v35 = vrot.slane %v1265_v26, 4  ;;  %v1290_v37 = vrot.slane %v1288_v18, 7  ;;  %v1273_v38 = vrot.slane %v1271_v33, 7  ;;  %v1679_v39 = vor.u32 %v1678_v54, %v1675_v47 }
 0x146   : > { %v1473_v42 = vsel %vm13751_vm13, %v1285_v31, %v1472_v59  ;;  %v1466_v43 = vsel %vm13751_vm13, %v1268_v34, %v1465_v19  ;;  %v1686_v46 = vshrl.u32 %v13948_v20, 16  ;;  %v1692_v57 = vshll.u32 %v13950_v28, 16  ;;  %v13996_v34 = vld [vmem:[#allocation2 + $0x7c] sm:$0xf] }
 0x147   : > { %1474 = vst [vmem:[#allocation2 + $0xa8] sm:$0xf] %v1473_v42  ;;  %1467 = vst [vmem:[#allocation2 + $0x9c] sm:$0xf] %v1466_v43  ;;  %v1293_v48 = vor.u32 %v1291_v27, %v1290_v37  ;;  %v1295_v49 = vrot.slane %v1290_v37, 4  ;;  %v1276_v50 = vor.u32 %v1274_v30, %v1273_v38  ;;  %v1278_v52 = vrot.slane %v1273_v38, 4 }
 0x148   : > { %v1680_v55 = vrot.slane %v1679_v39, 4  ;;  %v1684_v56 = vrot.slane %v1682_v44, 5  ;;  %v1688_v58 = vrot.slane %v1686_v46, 4  ;;  %v1694_v7 = vrot.slane %v1692_v57, 5  ;;  %v1486_v46 = vld [vmem:[#allocation2 + $0xc0] sm:$0xf] }
 0x149   : > { %v1294_v61 = vsel %vm13758_vm14, %v1286_v32, %v1293_v48  ;;  %v1477_v5 = vsel %vm13557_vm4, %v1295_v49, %v1476_v36  ;;  %v1277_v62 = vsel %vm13758_vm14, %v1269_v35, %v1276_v50  ;;  %v1470_v0 = vsel %vm13557_vm4, %v1278_v52, %v1469_v41  ;;  %v1479_v52 = vld [vmem:[#allocation2 + $0xb4] sm:$0xf] }
 0x14a   : > { %1475 = vst.msk [vmem:[#allocation2 + $0xac] sm:$0xf] %vm388_vm7, %v1294_v61  ;;  %1478 = vst [vmem:[#allocation2 + $0xb0] sm:$0x1] %v1477_v5  ;;  %v1689_v2 = vor.u32 %v1688_v58, %v1684_v56  ;;  %v1697_v1 = vshrl.u32 %v13960_v53, 16  ;;  %v1700_v47 = vshll.u32 %v13960_v53, 16  ;;  %v1685_v10 = vsel %vm13672_vm10, %v1680_v55, %v1684_v56 }
 0x14b   : > { %1468 = vst.msk [vmem:[#allocation2 + $0xa0] sm:$0xf] %vm388_vm7, %v1277_v62  ;;  %1471 = vst [vmem:[#allocation2 + $0xa4] sm:$0x1] %v1470_v0  ;;  %v1706_v4 = vshll.u32 %v13962_v63, 16  ;;  %v1710_v13 = vshrl.u32 %v13962_v63, 16  ;;  %v922_v14 = vadd.f32 %v13985_v8, %v13866_v51  ;;  %v914_v16 = vadd.f32 %v13985_v8, %v13870_v60 }
 0x14c   : > { %v1690_v15 = vrot.slane %v1689_v2, 4  ;;  %v1699_v59 = vrot.slane %v1697_v1, 4  ;;  %v1702_v19 = vrot.slane %v1700_v47, 5  ;;  %v1716_v26 = vshll.u32 %v13974_v9, 16 }
 0x14d   : > { %v1708_v21 = vrot.slane %v1706_v4, 5  ;;  %v1712_v23 = vrot.slane %v1710_v13, 4  ;;  %v958_v54 = vmax.f32 %v922_v14, 0.0  ;;  %v956_v33 = vmax.f32 %v914_v16, 0.0  ;;  %v14011_v13 = vld [vmem:[#allocation2 + $0x54] sm:$0xf] }
 0x14e   : > { %v1695_v18 = vsel %vm13672_vm10, %v1690_v15, %v1694_v7  ;;  %v1703_v27 = vor.u32 %v1702_v19, %v1699_v59  ;;  %v925_v51 = vadd.f32 %v13985_v8, %v13880_v6  ;;  %v1793_v60 = vshrl.u32 %v1513_v17, 16  ;;  %v1490_v19 = vld [vmem:[#allocation2 + $0xc8] sm:$0x1]  ;;  %v5815_v3 = vld [vmem:[#allocation2 + $0x9c] sm:$0xe] }
 0x14f   : > { %v10862_v30 = vcombine.low %v1685_v10, %v1695_v18  ;;  %v1713_v31 = vor.u32 %v1712_v23, %v1708_v21  ;;  %v11771_v32 = vpack.c.bf16 %v958_v54, %v958_v54  ;;  %v11769_v36 = vpack.c.bf16 %v956_v33, %v956_v33 }
 0x150   : > { %v1704_v35 = vrot.slane %v1703_v27, 4  ;;  %v959_v37 = vmax.f32 %v925_v51, 0.0  ;;  %v1796_v38 = vshll.u32 %v1513_v17, 16  ;;  %v1718_v44 = vrot.slane %v1716_v26, 5  ;;  %v14021_v27 = vld [vmem:[#allocation2 + $0x60] sm:$0xf] }
 0x151   : > { %12203 = vmatmul.mubr.msk.bf16.gmra.mrb[40].mxu0 %vm2017_vm11, %v10862_v30  ;;  %v1714_v39 = vrot.slane %v1713_v31, 4  ;;  %v1314_v42 = vshrl.u32 %v11771_v32, 16  ;;  %v1795_v43 = vrot.slane %v1793_v60, 4  ;;  %v1317_v6 = vshll.u32 %v11771_v32, 16 }
 0x152   : > { %v1709_v41 = vsel %vm13672_vm10, %v1704_v35, %v1708_v21  ;;  %v1297_v57 = vshrl.u32 %v11769_v36, 16  ;;  %v11772_v48 = vpack.c.bf16 %v959_v37, %v959_v37  ;;  %v1798_v55 = vrot.slane %v1796_v38, 5  ;;  %v14017_v21 = vld [vmem:[#allocation2 + $0x58] sm:$0xf]  ;;  %v14038_v37 = vld [vmem:[#allocation2 + $0x64] sm:$0xf] }
 0x153   : > { %v1719_v49 = vsel %vm13672_vm10, %v1714_v39, %v1718_v44  ;;  %v1316_v50 = vrot.slane %v1314_v42, 7  ;;  %v1802_v56 = vshll.u32 %v13996_v34, 16  ;;  %v1300_v5 = vshll.u32 %v11769_v36, 16  ;;  %v14042_v44 = vld [vmem:[#allocation2 + $0x68] sm:$0x1] }
 0x154   : > { %v10863_v58 = vcombine.low %v1709_v41, %v1719_v49  ;;  %v14004_v61 = vrot.slane %v1297_v57, 7  ;;  %v1322_v62 = vshrl.u32 %v11772_v48, 16  ;;  %v1325_v2 = vshll.u32 %v11772_v48, 16 }
 0x155   : > { %v1319_v0 = vor.u32 %v1317_v6, %v1316_v50  ;;  %v1799_v7 = vor.u32 %v1798_v55, %v1795_v43  ;;  %v14008_v10 = vrot.slane %v1802_v56, 5  ;;  %v1806_v4 = vshrl.u32 %v13996_v34, 16 }
 0x156   : > { %12206 = vmatprep.mubr.msk.bf16.mxu0 %vm2017_vm11, %v10863_v58  ;;  %v1302_v1 = vor.u32 %v1300_v5, %v14004_v61  ;;  %v1324_v47 = vrot.slane %v1322_v62, 7  ;;  %v1320_v14 = vrot.slane %v1316_v50, 4  ;;  %v1303_v59 = vrot.slane %v14004_v61, 4  ;;  %v1515_v58 = vld [vmem:[#allocation2 + $0x84] sm:$0xf] }
 0x157   : > { %v1487_v15 = vsel %vm13751_vm13, %v1319_v0, %v1486_v46  ;;  %v10903_v16 = vcombine.low %v1513_v17, %v13996_v34  ;;  %v1808_v18 = vrot.slane %v1806_v4, 4  ;;  %v14023_v33 = vrot.slane %v1799_v7, 4  ;;  %v14028_v17 = vld [vmem:[#allocation2 + $0x5c] sm:$0x1] }
 0x158   : > { %1488 = vst [vmem:[#allocation2 + $0xc0] sm:$0xf] %v1487_v15  ;;  %v1480_v23 = vsel %vm13751_vm13, %v1302_v1, %v1479_v52  ;;  %v1327_v26 = vor.u32 %v1325_v2, %v1324_v47  ;;  %v1329_v54 = vrot.slane %v1324_v47, 4  ;;  %v917_v51 = vadd.f32 %v13985_v8, %v13884_v11  ;;  %v1483_v7 = vld [vmem:[#allocation2 + $0xbc] sm:$0x1] }
 0x159   : > { %1481 = vst [vmem:[#allocation2 + $0xb4] sm:$0xf] %v1480_v23  ;;  %12254 = vmatprep.mubr.msk.bf16.mxu1 %vm2017_vm11, %v10903_v16  ;;  %v1721_v30 = vshrl.u32 %v14011_v13, 16  ;;  %v1724_v31 = vshll.u32 %v14011_v13, 16  ;;  %v1809_v35 = vor.u32 %v1808_v18, %v14008_v10  ;;  %v1730_v36 = vshll.u32 %v14017_v21, 16 }
 0x15a   : > { %v1328_v32 = vsel %vm13758_vm14, %v1320_v14, %v1327_v26  ;;  %v1491_v60 = vsel %vm13557_vm4, %v1329_v54, %v1490_v19  ;;  %v957_v11 = vmax.f32 %v917_v51, 0.0  ;;  %v1734_v39 = vshrl.u32 %v14017_v21, 16  ;;  %v14054_v23 = vld [vmem:[#allocation2 + $0x88] sm:$0xf] }
 0x15b   : > { %1489 = vst.msk [vmem:[#allocation2 + $0xc4] sm:$0xf] %vm388_vm7, %v1328_v32  ;;  %1492 = vst [vmem:[#allocation2 + $0xc8] sm:$0x1] %v1491_v60  ;;  %v1723_v8 = vrot.slane %v1721_v30, 4  ;;  %v1726_v38 = vrot.slane %v1724_v31, 5 }
 0x15c   : > { %v14044_v42 = vrot.slane %v1809_v35, 4  ;;  %v1732_v43 = vrot.slane %v1730_v36, 5  ;;  %v1740_v41 = vshll.u32 %v14028_v17, 16  ;;  %v1745_v6 = vshrl.u32 %v14021_v27, 16  ;;  %v14060_v36 = vld [vmem:[#allocation2 + $0x6c] sm:$0xf] }
 0x15d   : > { %v11770_v46 = vpack.c.bf16 %v957_v11, %v957_v11  ;;  %v1727_v57 = vor.u32 %v1726_v38, %v1723_v8  ;;  %v1736_v48 = vrot.slane %v1734_v39, 4  ;;  %v1748_v49 = vshll.u32 %v14021_v27, 16  ;;  %v14062_v11 = vld [vmem:[#allocation2 + $0x70] sm:$0xf] }
 0x15e   : > { %v1742_v50 = vrot.slane %v1740_v41, 5  ;;  %v1747_v52 = vrot.slane %v1745_v6, 4  ;;  %v1754_v55 = vshll.u32 %v14038_v37, 16  ;;  %v1758_v56 = vshrl.u32 %v14038_v37, 16  ;;  %v14066_v41 = vld [vmem:[#allocation2 + $0x74] sm:$0x1] }
 0x15f   : > { %v1305_v5 = vshrl.u32 %v11770_v46, 16  ;;  %v1308_v62 = vshll.u32 %v11770_v46, 16  ;;  %v1728_v0 = vrot.slane %v1727_v57, 4  ;;  %v1737_v2 = vor.u32 %v1736_v48, %v1732_v43 }
 0x160   : > { %v1750_v1 = vrot.slane %v1748_v49, 5  ;;  %v1756_v47 = vrot.slane %v1754_v55, 5  ;;  %v1760_v4 = vrot.slane %v1758_v56, 4  ;;  %v1764_v14 = vshll.u32 %v14042_v44, 16  ;;  %v1517_v49 = vld [vmem:[#allocation2 + $0x90] sm:$0xf] }
 0x161   : > { %v1307_v15 = vrot.slane %v1305_v5, 7  ;;  %v1733_v19 = vsel %vm13672_vm10, %v1728_v0, %v1732_v43  ;;  %v1738_v16 = vrot.slane %v1737_v2, 4  ;;  %v1817_v26 = vshrl.u32 %v1515_v58, 16  ;;  %v14089_v56 = vld [vmem:[#allocation2 + $0x80] sm:$0x1] }
 0x162   : > { %v1751_v54 = vor.u32 %v1750_v1, %v1747_v52  ;;  %v1761_v18 = vor.u32 %v1760_v4, %v1756_v47  ;;  %v1766_v51 = vrot.slane %v1764_v14, 5  ;;  %v1820_v30 = vshll.u32 %v1515_v58, 16  ;;  %v13283_v52 = vld [vmem:[%s16707_s3 + $0x48] sm:$0xff]   ;;  %v13286_v1 = vld [vmem:[%s16707_s3 + $0x50] sm:$0xff]  }
 0x163   : > { %v1310_v31 = vor.u32 %v1308_v62, %v1307_v15  ;;  %v1312_v32 = vrot.slane %v1307_v15, 4  ;;  %v1743_v60 = vsel %vm13672_vm10, %v1738_v16, %v1742_v50  ;;  %v14058_v35 = vrot.slane %v1817_v26, 4  ;;  %v14076_v50 = vld [vmem:[#allocation2 + $0x94] sm:$0xf] }
 0x164   : > { %v10864_v8 = vcombine.low %v1733_v19, %v1743_v60  ;;  %v1752_v38 = vrot.slane %v1751_v54, 4  ;;  %v1762_v39 = vrot.slane %v1761_v18, 4  ;;  %v14064_v43 = vrot.slane %v1820_v30, 5 }
 0x165   : > { %v1311_v6 = vsel %vm13758_vm14, %v1303_v59, %v1310_v31  ;;  %v1484_v46 = vsel %vm13557_vm4, %v1312_v32, %v1483_v7  ;;  %v1830_v57 = vshrl.u32 %v14054_v23, 16  ;;  %v10904_v48 = vcombine.low %v1515_v58, %v14054_v23  ;;  %v1519_v58 = vld [vmem:[#allocation2 + $0x9c] sm:$0xf]  ;;  %v14095_v7 = vld [vmem:[#allocation2 + $0xa0] sm:$0xf] }
 0x166   : > { %1482 = vst.msk [vmem:[#allocation2 + $0xb8] sm:$0xf] %vm388_vm7, %v1311_v6  ;;  %1485 = vst [vmem:[#allocation2 + $0xbc] sm:$0x1] %v1484_v46  ;;  %12207 = vmatmul.mubr.msk.bf16.gmra.mrb[44].mxu0 %vm2017_vm11, %v10864_v8  ;;  %v1757_v40 = vsel %vm13672_vm10, %v1752_v38, %v1756_v47  ;;  %v1767_v61 = vsel %vm13672_vm10, %v1762_v39, %v1766_v51  ;;  %v1769_v59 = vshrl.u32 %v14060_v36, 16  ;;  %v1772_v55 = vshll.u32 %v14060_v36, 16 }
 0x167   : > { %v10865_v5 = vcombine.low %v1757_v40, %v1767_v61  ;;  %12255 = vmatmul.mubr.msk.bf16.vlgmr.msra.gmra.mrb[0].mxu1 %vm2017_vm11, %v10904_v48  ;;  %v1778_v62 = vshll.u32 %v14062_v11, 16  ;;  %v1782_v0 = vshrl.u32 %v14062_v11, 16  ;;  %v1788_v2 = vshll.u32 %v14066_v41, 16  ;;  %v13449_v47 = vld [vmem:[%s16707_s3 + $0x40] sm:$0xff]   ;;  %v14111_v6 = vld [vmem:[#allocation2 + $0x8c] sm:$0x1] }
 0x168   : > { %12267 = vmatpush3.bf16.msra.mxu1 %v13449_v47  ;;  %v1771_v4 = vrot.slane %v1769_v59, 4  ;;  %v1774_v14 = vrot.slane %v1772_v55, 5  ;;  %v1841_v15 = vshrl.u32 %v1517_v49, 16  ;;  %v1844_v19 = vshll.u32 %v1517_v49, 16 }
 0x169   : > { %12210 = vmatprep.mubr.msk.bf16.mxu0 %vm2017_vm11, %v10865_v5  ;;  %v1780_v16 = vrot.slane %v1778_v62, 5  ;;  %v1784_v26 = vrot.slane %v1782_v0, 4  ;;  %v1790_v54 = vrot.slane %v1788_v2, 5  ;;  %v1854_v18 = vshrl.u32 %v14076_v50, 16  ;;  %12268 = vmatprep.subr.bf16.mxu1 %v13283_v52  ;;  %v13288_v5 = vld [vmem:[%s16707_s3 + $0x58] sm:$0xff]  }
 0x16a   : > { %v1775_v51 = vor.u32 %v1774_v14, %v1771_v4  ;;  %v1843_v30 = vrot.slane %v1841_v15, 4  ;;  %v1846_v31 = vrot.slane %v1844_v19, 5  ;;  %v10905_v32 = vcombine.low %v1517_v49, %v14076_v50  ;;  %v14126_v2 = vld [vmem:[#allocation2 + $0xac] sm:$0xf] }
 0x16b   : > { %v1785_v60 = vor.u32 %v1784_v26, %v1780_v16  ;;  %v1805_v8 = vsel %vm13672_vm10, %v14023_v33, %v14008_v10  ;;  %v1812_v38 = vshll.u32 %v14089_v56, 16  ;;  %v1865_v39 = vshrl.u32 %v1519_v58, 16  ;;  %v1521_v33 = vld [vmem:[#allocation2 + $0xa8] sm:$0xf]  ;;  %v14135_v26 = vld [vmem:[#allocation2 + $0x98] sm:$0x1] }
 0x16c   : > { %v1776_v46 = vrot.slane %v1775_v51, 4  ;;  %12258 = vmatprep.mubr.msk.bf16.mxu1 %vm2017_vm11, %v10905_v32  ;;  %12269 = vmatpush3.bf16.msra.mxu1 %v13283_v52  ;;  %v1868_v48 = vshll.u32 %v1519_v58, 16  ;;  %v1878_v40 = vshrl.u32 %v14095_v7, 16  ;;  %v10906_v49 = vcombine.low %v1519_v58, %v14095_v7 }
 0x16d   : > { %v1786_v61 = vrot.slane %v1785_v60, 4  ;;  %v1814_v59 = vrot.slane %v1812_v38, 5  ;;  %v14116_v55 = vrot.slane %v1865_v39, 4  ;;  %v1823_v10 = vor.u32 %v14064_v43, %v14058_v35  ;;  %12270 = vmatprep.subr.bf16.mxu1 %v13286_v1 }
 0x16e   : > { %v1781_v52 = vsel %vm13672_vm10, %v1776_v46, %v1780_v16  ;;  %v1870_v62 = vrot.slane %v1868_v48, 5  ;;  %v1826_v0 = vshll.u32 %v14054_v23, 16  ;;  %v1832_v58 = vrot.slane %v1830_v57, 4  ;;  %v1523_v57 = vld [vmem:[#allocation2 + $0xb4] sm:$0xf] }
 0x16f   : > { %v1791_v47 = vsel %vm13672_vm10, %v1786_v61, %v1790_v54  ;;  %v1815_v35 = vsel %vm13672_vm10, %v14044_v42, %v1814_v59  ;;  %12259 = vmatmul.mubr.msk.bf16.gmra.mrb[4].mxu1 %vm2017_vm11, %v10906_v49  ;;  %v1824_v43 = vrot.slane %v1823_v10, 4  ;;  %v1836_v4 = vshll.u32 %v14111_v6, 16  ;;  %v14142_v42 = vld [vmem:[%s16707_s3 + $0x60] sm:$0xff]   ;;  %v14147_v46 = vld [vmem:[#allocation2 + $0xb8] sm:$0xf] }
 0x170   : > { %v10866_v14 = vcombine.low %v1781_v52, %v1791_v47  ;;  %v10867_v15 = vcombine.low %v1805_v8, %v1815_v35  ;;  %v1828_v19 = vrot.slane %v1826_v0, 5  ;;  %v1889_v16 = vshrl.u32 %v1521_v33, 16  ;;  %12271 = vmatpush3.bf16.msra.mxu1 %v13286_v1 }
 0x171   : > { %v1838_v51 = vrot.slane %v1836_v4, 5  ;;  %v1892_v32 = vshll.u32 %v1521_v33, 16  ;;  %v1902_v54 = vshrl.u32 %v14126_v2, 16  ;;  %v10907_v60 = vcombine.low %v1521_v33, %v14126_v2  ;;  %12272 = vmatprep.subr.bf16.mxu1 %v13288_v5  ;;  %v2540_v4 = vld [vmem:[#allocation2] sm:$0xe] }
 0x172   : > { %12211 = vmatmul.mubr.msk.bf16.gmra.mrb[48].mxu0 %vm2017_vm11, %v10866_v14  ;;  %v1829_v8 = vsel %vm13672_vm10, %v1824_v43, %v1828_v19  ;;  %v1833_v38 = vor.u32 %v1832_v58, %v1828_v19  ;;  %v1891_v1 = vrot.slane %v1889_v16, 4  ;;  %v1847_v39 = vor.u32 %v1846_v31, %v1843_v30  ;;  %v14153_v58 = vld [vmem:[#allocation2 + $0xa4] sm:$0x1]  ;;  %v14157_v43 = vld [vmem:[#allocation2 + $0xb0] sm:$0x1] }
 0x173   : > { %12214 = vmatprep.mubr.msk.bf16.mxu0 %vm2017_vm11, %v10867_v15  ;;  %v1894_v48 = vrot.slane %v1892_v32, 5  ;;  %12262 = vmatprep.mubr.msk.bf16.mxu1 %vm2017_vm11, %v10907_v60  ;;  %v1850_v49 = vshll.u32 %v14076_v50, 16  ;;  %v1856_v61 = vrot.slane %v1854_v18, 4  ;;  %v1860_v59 = vshll.u32 %v14135_v26, 16 }
 0x174   : > { %v1834_v10 = vrot.slane %v1833_v38, 4  ;;  %v1848_v33 = vrot.slane %v1847_v39, 4  ;;  %v1913_v52 = vshrl.u32 %v1523_v57, 16  ;;  %v1916_v0 = vshll.u32 %v1523_v57, 16  ;;  %12273 = vmatpush3.bf16.msra.mxu1 %v13288_v5 }
 0x175   : > { %v1852_v30 = vrot.slane %v1850_v49, 5  ;;  %v1862_v31 = vrot.slane %v1860_v59, 5  ;;  %v10908_v35 = vcombine.low %v1523_v57, %v14147_v46  ;;  %12306 = vmatprep.subr.bf16.mxu1 %v14142_v42  ;;  %v1871_v19 = vor.u32 %v1870_v62, %v14116_v55 }
 0x176   : > { %v1839_v18 = vsel %vm13672_vm10, %v1834_v10, %v1838_v51  ;;  %v1915_v14 = vrot.slane %v1913_v52, 4  ;;  %v1918_v15 = vrot.slane %v1916_v0, 5  ;;  %v1874_v57 = vshll.u32 %v14095_v7, 16  ;;  %v2541_v52 = vld [vmem:[#allocation2 + $0xc] sm:$0xe] }
 0x177   : > { %v10868_v16 = vcombine.low %v1829_v8, %v1839_v18  ;;  %v1853_v5 = vsel %vm13672_vm10, %v1848_v33, %v1852_v30  ;;  %v1857_v32 = vor.u32 %v1856_v61, %v1852_v30  ;;  %12263 = vmatmul.mubr.msk.bf16.gmra.mrb[8].mxu1 %vm2017_vm11, %v10908_v35  ;;  %v1872_v60 = vrot.slane %v1871_v19, 4  ;;  %v14177_v18 = vld [vmem:[#allocation2 + $0x4] sm:$0xf]  ;;  %v13451_v19 = vld [vmem:[#allocation2 + $0x8] sm:$0x1] }
 0x178   : > { %v1880_v38 = vrot.slane %v1878_v40, 4  ;;  %v1884_v39 = vshll.u32 %v14153_v58, 16  ;;  %v1895_v51 = vor.u32 %v1894_v48, %v1891_v1  ;;  %v1876_v59 = vrot.slane %v1874_v57, 5 }
 0x179   : > { %v1858_v49 = vrot.slane %v1857_v32, 4  ;;  %v1898_v55 = vshll.u32 %v14126_v2, 16  ;;  %v1904_v62 = vrot.slane %v1902_v54, 4  ;;  %v1908_v10 = vshll.u32 %v14157_v43, 16 }
 0x17a   : > { %12215 = vmatmul.mubr.msk.bf16.gmra.mrb[52].mxu0 %vm2017_vm11, %v10868_v16  ;;  %v1886_v8 = vrot.slane %v1884_v39, 5  ;;  %v1896_v61 = vrot.slane %v1895_v51, 4  ;;  %v10929_v33 = vrot.slane %v2540_v4, 9  ;;  %v1877_v40 = vsel %vm13672_vm10, %v1872_v60, %v1876_v59  ;;  %v14193_v51 = vld [vmem:[#allocation2 + $0x10] sm:$0xf] }
 0x17b   : > { %v1863_v0 = vsel %vm13672_vm10, %v1858_v49, %v1862_v31  ;;  %v1881_v1 = vor.u32 %v1880_v38, %v1876_v59  ;;  %v1900_v48 = vrot.slane %v1898_v55, 5  ;;  %v1910_v35 = vrot.slane %v1908_v10, 5  ;;  %v13453_v59 = vld [vmem:[#allocation2 + $0x14] sm:$0x1]  ;;  %v11727_v31 = vld [vmem:[%s16712_s8] ss:$0 sm:$0xff] }
 0x17c   : > { %v10869_v30 = vcombine.low %v1853_v5, %v1863_v0  ;;  %v2593_v54 = vrot.slane %v14177_v18, 5  ;;  %v2596_v16 = vrot.slane %v13451_v19, 5  ;;  %v10930_v60 = vrot.slane %v2541_v52, 9  ;;  %v14188_v5 = vld [vmem:[#allocation2 + $0xbc] sm:$0x1] }
 0x17d   : > { %v1882_v32 = vrot.slane %v1881_v1, 4  ;;  %v1901_v4 = vsel %vm13672_vm10, %v1896_v61, %v1900_v48  ;;  %v1905_v57 = vor.u32 %v1904_v62, %v1900_v48  ;;  %v2600_v49 = vrot.slane %v14193_v51, 5  ;;  %v2542_v0 = vld [vmem:[#allocation2 + $0x18] sm:$0xe] }
 0x17e   : > { %12218 = vmatprep.mubr.msk.bf16.mxu0 %vm2017_vm11, %v10869_v30  ;;  %v2594_v38 = vsel %vm14184_vm1, %v10929_v33, %v2593_v54  ;;  %v2595_v39 = vrot.slane %v2593_v54, 4  ;;  %v2603_v55 = vrot.slane %v13453_v59, 5  ;;  %v1919_v10 = vor.u32 %v1918_v15, %v1915_v14 }
 0x17f   : > { %v1887_v62 = vsel %vm13672_vm10, %v1882_v32, %v1886_v8  ;;  %v1906_v61 = vrot.slane %v1905_v57, 4  ;;  %v1922_v52 = vshll.u32 %v14147_v46, 16  ;;  %v2601_v33 = vsel %vm14184_vm1, %v10930_v60, %v2600_v49  ;;  %v14212_v57 = vld [vmem:[#allocation2 + $0x1c] sm:$0xf]  ;;  %v13290_v60 = vld [vmem:[%s16707_s3 + $0x68] sm:$0xff]  }
 0x180   : > { %v10870_v1 = vcombine.low %v1877_v40, %v1887_v62  ;;  %v2597_v48 = vsel %vm14184_vm1, %v2595_v39, %v2596_v16  ;;  %v2602_v30 = vrot.slane %v2600_v49, 4  ;;  %v1920_v59 = vrot.slane %v1919_v10, 4  ;;  %v2544_v39 = vld [vmem:[#allocation2 + $0x30] sm:$0xe]  ;;  %v13455_v62 = vld [vmem:[#allocation2 + $0x20] sm:$0x1] }
 0x181   : > { %v1911_v54 = vsel %vm13672_vm10, %v1906_v61, %v1910_v35  ;;  %v10953_v19 = vcombine.low %v2594_v38, %v2597_v48  ;;  %v1924_v47 = vrot.slane %v1922_v52, 5  ;;  %v16788_v8 = vshrl.u32 %v14147_v46, 16  ;;  %v2543_v10 = vld [vmem:[#allocation2 + $0x24] sm:$0xe]  ;;  %v14222_v52 = vld [vmem:[#allocation2 + $0x28] sm:$0xf] }
 0x182   : > { %12219 = vmatmul.mubr.msk.bf16.gmra.mrb[56].mxu0 %vm2017_vm11, %v10870_v1  ;;  %v10871_v14 = vcombine.low %v1901_v4, %v1911_v54  ;;  %v2604_v15 = vsel %vm14184_vm1, %v2602_v30, %v2603_v55  ;;  %v1932_v16 = vshll.u32 %v14188_v5, 16  ;;  %v2607_v35 = vrot.slane %v14212_v57, 5  ;;  %v13457_v30 = vld [vmem:[#allocation2] sm:$0xf] }
 0x183   : > { %v1928_v40 = vrot.slane %v16788_v8, 4  ;;  %12274 = vmatprep.mubr.msk.bf16.mxu1 %vm2017_vm11, %v10953_v19  ;;  %v10954_v32 = vcombine.low %v2601_v33, %v2604_v15  ;;  %v10931_v38 = vrot.slane %v2542_v0, 9  ;;  %v1925_v49 = vsel %vm13672_vm10, %v1920_v59, %v1924_v47 }
 0x184   : > { %12222 = vmatprep.mubr.msk.bf16.mxu0 %vm2017_vm11, %v10871_v14  ;;  %v2609_v55 = vrot.slane %v2607_v35, 4  ;;  %v2610_v61 = vrot.slane %v13455_v62, 5  ;;  %v2614_v1 = vrot.slane %v14222_v52, 5  ;;  %v1934_v33 = vrot.slane %v1932_v16, 5 }
 0x185   : > { %v1929_v4 = vor.u32 %v1928_v40, %v1924_v47  ;;  %12275 = vmatmul.mubr.msk.bf16.vlgmr.msra.gmra.mrb[12].mxu1 %vm2017_vm11, %v10954_v32  ;;  %v2608_v0 = vsel %vm14184_vm1, %v10931_v38, %v2607_v35  ;;  %v10893_v54 = vcombine.low %v13457_v30, %v14177_v18  ;;  %v2617_v59 = vrot.slane %v13902_v45, 5 }
 0x186   : > { %12307 = vmatpush3.bf16.msra.mxu1 %v14142_v42  ;;  %v2611_v47 = vsel %vm14184_vm1, %v2609_v55, %v2610_v61  ;;  %v2616_v19 = vrot.slane %v2614_v1, 4  ;;  %v2621_v14 = vrot.slane %v13913_v29, 5  ;;  %v13291_v42 = vld [vmem:[%s16707_s3 + $0x70] sm:$0xff]   ;;  %v10932_v40 = vrot.slane %v2543_v10, 9  ;;  %v2545_v61 = vld [vmem:[#allocation2 + $0x3c] sm:$0xe] }
 0x187   : > { %v1930_v48 = vrot.slane %v1929_v4, 4  ;;  %12308 = vmatprep.subr.bf16.mxu1 %v13290_v60  ;;  %v10955_v8 = vcombine.low %v2608_v0, %v2611_v47  ;;  %v10933_v16 = vrot.slane %v2544_v39, 9  ;;  %v2624_v45 = vrot.slane %v13915_v12, 5  ;;  %v13295_v12 = vld [vmem:[%s16707_s3 + $0x78] sm:$0xff]   ;;  %v14262_v0 = vld [vmem:[%s16707_s3 + $0x80] sm:$0xff]  }
 0x188   : > { %v2618_v32 = vsel %vm14184_vm1, %v2616_v19, %v2617_v59  ;;  %v2623_v35 = vrot.slane %v2621_v14, 4  ;;  %v2615_v29 = vsel %vm14184_vm1, %v10932_v40, %v2614_v1  ;;  %v2628_v4 = vrot.slane %v13948_v20, 5  ;;  %v13458_v19 = vld [vmem:[#allocation2 + $0xc] sm:$0xf] }
 0x189   : > { %v1935_v15 = vsel %vm13672_vm10, %v1930_v48, %v1934_v33  ;;  %12278 = vmatprep.mubr.msk.bf16.mxu1 %vm2017_vm11, %v10955_v8  ;;  %v10956_v38 = vcombine.low %v2615_v29, %v2618_v32  ;;  %v2622_v39 = vsel %vm14184_vm1, %v10933_v16, %v2621_v14  ;;  %v2635_v55 = vrot.slane %v13962_v63, 5  ;;  %v2546_v48 = vld [vmem:[#allocation2 + $0x48] sm:$0xe] }
 0x18a   : > { %v10872_v18 = vcombine.low %v1925_v49, %v1935_v15  ;;  %12309 = vmatpush3.bf16.msra.mxu1 %v13290_v60  ;;  %v2625_v49 = vsel %vm14184_vm1, %v2623_v35, %v2624_v45  ;;  %v2630_v60 = vrot.slane %v2628_v4, 4  ;;  %v2631_v1 = vrot.slane %v13950_v28, 5  ;;  %v2547_v35 = vld [vmem:[#allocation2 + $0x54] sm:$0xe] }
 0x18b   : > { %12310 = vmatprep.subr.bf16.mxu1 %v13291_v42  ;;  %v10957_v62 = vcombine.low %v2622_v39, %v2625_v49  ;;  %v2637_v10 = vrot.slane %v2635_v55, 4  ;;  %v2638_v33 = vrot.slane %v13974_v9, 5  ;;  %v10934_v30 = vrot.slane %v2545_v61, 9 }
 0x18c   : > { %12223 = vmatmul.mubr.msk.bf16.gmra.mrb[60].mxu0 %vm2017_vm11, %v10872_v18  ;;  %v2642_v47 = vrot.slane %v14017_v21, 5  ;;  %v10894_v59 = vcombine.low %v13458_v19, %v14193_v51  ;;  %v10935_v28 = vrot.slane %v2546_v48, 9  ;;  %v2649_v9 = vrot.slane %v14038_v37, 5  ;;  %v13462_v48 = vld [vmem:[#allocation2 + $0x34] sm:$0xf] }
 0x18d   : > { %12234 = vmatprep.mubr.msk.bf16.mxu0 %vm2017_vm11, %v10893_v54  ;;  %12279 = vmatmul.mubr.msk.bf16.gmra.mrb[16].mxu1 %vm2017_vm11, %v10956_v38  ;;  %v2632_v54 = vsel %vm14184_vm1, %v2630_v60, %v2631_v1  ;;  %v2639_v14 = vsel %vm14184_vm1, %v2637_v10, %v2638_v33  ;;  %v2629_v8 = vsel %vm14184_vm1, %v10934_v30, %v2628_v4  ;;  %v2645_v29 = vrot.slane %v14028_v17, 5  ;;  %v2548_v4 = vld [vmem:[#allocation2 + $0x60] sm:$0xe]  ;;  %v13460_v60 = vld [vmem:[#allocation2 + $0x24] sm:$0xf] }
 0x18e   : > { %12282 = vmatprep.mubr.msk.bf16.mxu1 %vm2017_vm11, %v10957_v62  ;;  %12311 = vmatpush3.bf16.msra.mxu1 %v13291_v42  ;;  %v13459_v42 = vld [vmem:[#allocation2 + $0x18] sm:$0xf]  ;;  %v10900_v40 = vcombine.low %v14011_v13, %v14017_v21  ;;  %v10958_v16 = vcombine.low %v2629_v8, %v2632_v54  ;;  %v2636_v51 = vsel %vm14184_vm1, %v10935_v28, %v2635_v55  ;;  %v2644_v32 = vrot.slane %v2642_v47, 4  ;;  %v13461_v1 = vld [vmem:[#allocation2 + $0x30] sm:$0xf] }
 0x18f   : > { %12312 = vmatprep.subr.bf16.mxu1 %v13295_v12  ;;  %v10895_v15 = vcombine.low %v13459_v42, %v14212_v57  ;;  %v10959_v18 = vcombine.low %v2636_v51, %v2639_v14  ;;  %v10901_v57 = vcombine.low %v14021_v27, %v14038_v37  ;;  %v2651_v45 = vrot.slane %v2649_v9, 4  ;;  %v2550_v14 = vld [vmem:[#allocation2 + $0x78] sm:$0xe]  ;;  %v13463_v8 = vld [vmem:[#allocation2 + $0x3c] sm:$0xf] }
 0x190   : > { %v10902_v38 = vcombine.low %v14060_v36, %v14062_v11  ;;  %v2652_v39 = vrot.slane %v14042_v44, 5  ;;  %v10936_v49 = vrot.slane %v2547_v35, 9  ;;  %v2646_v55 = vsel %vm14184_vm1, %v2644_v32, %v2645_v29  ;;  %v2551_v29 = vld [vmem:[#allocation2 + $0x84] sm:$0xe]  ;;  %v2554_v21 = vld [vmem:[#allocation2 + $0xa8] sm:$0xe] }
 0x191   : > { %v2663_v62 = vrot.slane %v13996_v34, 5  ;;  %v10896_v61 = vcombine.low %v13460_v60, %v14222_v52  ;;  %v10937_v10 = vrot.slane %v2548_v4, 9  ;;  %v10897_v33 = vcombine.low %v13461_v1, %v13462_v48 }
 0x192   : > { %12313 = vmatpush3.bf16.msra.mxu1 %v13295_v12  ;;  %v2656_v12 = vrot.slane %v14062_v11, 5  ;;  %v2653_v17 = vsel %vm14184_vm1, %v2651_v45, %v2652_v39  ;;  %v2643_v44 = vsel %vm14184_vm1, %v10936_v49, %v2642_v47  ;;  %v2659_v28 = vrot.slane %v14066_v41, 5 }
 0x193   : > { %12346 = vmatprep.subr.bf16.mxu1 %v14262_v0  ;;  %v10960_v30 = vcombine.low %v2643_v44, %v2646_v55  ;;  %v2650_v54 = vsel %vm14184_vm1, %v10937_v10, %v2649_v9  ;;  %v2665_v19 = vrot.slane %v2663_v62, 4  ;;  %v2666_v47 = vrot.slane %v14089_v56, 5 }
 0x194   : > { %12235 = vmatmul.mubr.msk.bf16.vlgmr.msra.gmra.mrb[32].mxu0 %vm2017_vm11, %v10894_v59  ;;  %v10961_v34 = vcombine.low %v2650_v54, %v2653_v17  ;;  %v2658_v52 = vrot.slane %v2656_v12, 4  ;;  %v2549_v59 = vld [vmem:[#allocation2 + $0x6c] sm:$0xe]  ;;  %v2670_v9 = vrot.slane %v14054_v23, 5  ;;  %v10939_v51 = vrot.slane %v2550_v14, 9  ;;  %v13300_v14 = vld [vmem:[#allocation2 + $0x30] sm:$0xff]  }
 0x195   : > { %12238 = vmatprep.mubr.msk.bf16.mxu0 %vm2017_vm11, %v10895_v15  ;;  %12283 = vmatmul.mubr.msk.bf16.gmra.mrb[20].mxu1 %vm2017_vm11, %v10958_v16  ;;  %v10938_v42 = vrot.slane %v2549_v59, 9  ;;  %v10898_v16 = vcombine.low %v13463_v8, %v13948_v20  ;;  %v2677_v32 = vrot.slane %v14076_v50, 5  ;;  %v10899_v41 = vcombine.low %v13960_v53, %v13962_v63  ;;  %v2552_v63 = vld [vmem:[#allocation2 + $0x90] sm:$0xe]  ;;  %v13302_v59 = vld [vmem:[%s16707_s3 + $0x88] sm:$0xff]  }
 0x196   : > { %12286 = vmatprep.mubr.msk.bf16.mxu1 %vm2017_vm11, %v10959_v18  ;;  %v2660_v15 = vsel %vm14184_vm1, %v2658_v52, %v2659_v28  ;;  %v2667_v18 = vsel %vm14184_vm1, %v2665_v19, %v2666_v47  ;;  %v2664_v23 = vsel %vm14184_vm1, %v10939_v51, %v2663_v62  ;;  %v2672_v45 = vrot.slane %v2670_v9, 4  ;;  %v13298_v19 = vld [vmem:[#allocation2 + $0x18] sm:$0xff]   ;;  %v13299_v28 = vld [vmem:[#allocation2 + $0x24] sm:$0xff]  }
 0x197   : > { %v2657_v56 = vsel %vm14184_vm1, %v10938_v42, %v2656_v12  ;;  %v10963_v20 = vcombine.low %v2664_v23, %v2667_v18  ;;  %v2679_v50 = vrot.slane %v2677_v32, 4  ;;  %v2673_v53 = vrot.slane %v14111_v6, 5  ;;  %v13312_v47 = vld [vmem:[%s16707_s3 + $0x98] sm:$0xff]   ;;  %v14392_v51 = vld [vmem:[%s16707_s3 + $0xa0] sm:$0xff]   ;;  %v14394_v18 = vld [vmem:[#allocation2 + $0x28] sm:$0xf] }
 0x198   : > { %v10962_v35 = vcombine.low %v2657_v56, %v2660_v15  ;;  %v2680_v4 = vrot.slane %v14135_v26, 5  ;;  %v10940_v39 = vrot.slane %v2551_v29, 9  ;;  %v2684_v55 = vrot.slane %v14095_v7, 5  ;;  %v13301_v42 = vld [vmem:[#allocation2 + $0x3c] sm:$0xff]   ;;  %v14381_v15 = vld [vmem:[#allocation2 + $0x10] sm:$0xf] }
 0x199   : > { %v2674_v49 = vsel %vm14184_vm1, %v2672_v45, %v2673_v53  ;;  %v10941_v12 = vrot.slane %v2552_v63, 9  ;;  %v2691_v60 = vrot.slane %v14126_v2, 5  ;;  %v2553_v2 = vld [vmem:[#allocation2 + $0x9c] sm:$0xe]  ;;  %v2687_v13 = vrot.slane %v14153_v58, 5 }
 0x19a   : > { %v2681_v62 = vsel %vm14184_vm1, %v2679_v50, %v2680_v4  ;;  %v2686_v10 = vrot.slane %v2684_v55, 4  ;;  %v10942_v1 = vrot.slane %v2553_v2, 9  ;;  %v2698_v27 = vrot.slane %v14147_v46, 5  ;;  %v2555_v46 = vld [vmem:[#allocation2 + $0xb4] sm:$0xe]  ;;  %v13303_v50 = vld [vmem:[#allocation2 + $0x48] sm:$0xff]  }
 0x19b   : > { %v2678_v26 = vsel %vm14184_vm1, %v10941_v12, %v2677_v32  ;;  %v2693_v17 = vrot.slane %v2691_v60, 4  ;;  %v10943_v37 = vrot.slane %v2554_v21, 9  ;;  %v2701_v54 = vrot.slane %v14188_v5, 5  ;;  %v13307_v5 = vld [vmem:[%s16707_s3 + $0x90] sm:$0xff]   ;;  %v3414_v32 = vld [vmem:[#allocation2 + $0x18] sm:$0xf] }
 0x19c   : > { %12239 = vmatmul.mubr.msk.bf16.gmra.mrb[36].mxu0 %vm2017_vm11, %v10896_v61  ;;  %v2671_v61 = vsel %vm14184_vm1, %v10940_v39, %v2670_v9  ;;  %v10965_v7 = vcombine.low %v2678_v26, %v2681_v62  ;;  %v2688_v48 = vsel %vm14184_vm1, %v2686_v10, %v2687_v13  ;;  %v14385_v9 = vld [vmem:[#allocation2 + $0x1c] sm:$0xf]  ;;  %v3469_v8 = vshll.u32 %v14381_v15, 16  ;;  %v14404_v62 = vld [vmem:[#allocation2 + $0x14] sm:$0x1] }
 0x19d   : > { %12242 = vmatprep.mubr.msk.bf16.mxu0 %vm2017_vm11, %v10897_v33  ;;  %12287 = vmatmul.mubr.msk.bf16.gmra.mrb[24].mxu1 %vm2017_vm11, %v10960_v30  ;;  %v10964_v6 = vcombine.low %v2671_v61, %v2674_v49  ;;  %v2685_v33 = vsel %vm14184_vm1, %v10942_v1, %v2684_v55  ;;  %v2700_v30 = vrot.slane %v2698_v27, 4  ;;  %v3497_v23 = vshrl.u32 %v14385_v9, 16  ;;  %v13304_v49 = vld [vmem:[#allocation2 + $0x54] sm:$0xff]   ;;  %v3420_v2 = vld [vmem:[#allocation2 + $0x30] sm:$0xf] }
 0x19e   : > { %12290 = vmatprep.mubr.msk.bf16.mxu1 %vm2017_vm11, %v10961_v34  ;;  %v10966_v58 = vcombine.low %v2685_v33, %v2688_v48  ;;  %v10944_v34 = vrot.slane %v2555_v46, 9  ;;  %v3517_v45 = vshll.u32 %v14394_v18, 16  ;;  %v3521_v29 = vshrl.u32 %v14394_v18, 16  ;;  %v14415_v48 = vld [vmem:[#allocation2 + $0x20] sm:$0x1] }
 0x19f   : > { %v2702_v52 = vsel %vm14184_vm1, %v2700_v30, %v2701_v54  ;;  %v14400_v53 = vrot.slane %v3469_v8, 5  ;;  %v3484_v4 = vshrl.u32 %v3414_v32, 16  ;;  %v3487_v39 = vshll.u32 %v3414_v32, 16  ;;  %v3423_v8 = vld [vmem:[#allocation2 + $0x3c] sm:$0xf] }
 0x1a0   : > { %v2699_v36 = vsel %vm14184_vm1, %v10944_v34, %v2698_v27  ;;  %v3499_v26 = vrot.slane %v3497_v23, 4  ;;  %v3523_v10 = vrot.slane %v3521_v29, 4  ;;  %v3479_v1 = vshll.u32 %v14404_v62, 16  ;;  %v13305_v34 = vld [vmem:[#allocation2 + $0x60] sm:$0xff]  }
 0x1a1   : > { %v10968_v11 = vcombine.low %v2699_v36, %v2702_v52  ;;  %v3486_v13 = vrot.slane %v3484_v4, 4  ;;  %v3489_v21 = vrot.slane %v3487_v39, 5  ;;  %vm6612_vm7 = vsmask.f32 2304 }
 0x1a2   : > { %vm15624_vm14 = vmand %vm6611_vm5, %vm6612_vm7 }
 0x1a3   : > { %v3490_v36 = vor.u32 %v3489_v21, %v3486_v13  ;;  %v4167_v13 = vld [vmem:[#allocation2 + $0x24] sm:$0xe]  ;;  %vm15658_vm7 = vmand %vm6510_vm2, %vm6561_vm12 }
 0x1a4   : > { %12243 = vmatmul.mubr.msk.bf16.gmra.mrb[40].mxu0 %vm2017_vm11, %v10898_v16  ;;  %v3473_v16 = vshrl.u32 %v14381_v15, 16  ;;  %v13309_v21 = vld [vmem:[#allocation2 + $0x84] sm:$0xff]   ;;  %vm15671_vm2 = vmand %vm6611_vm5, %vm6742_vm0 }
 0x1a5   : > { %12246 = vmatprep.mubr.msk.bf16.mxu0 %vm2017_vm11, %v10899_v41  ;;  %12291 = vmatmul.mubr.msk.bf16.gmra.mrb[28].mxu1 %vm2017_vm11, %v10962_v35  ;;  %v3493_v35 = vshll.u32 %v14385_v9, 16  ;;  %vm15685_vm5 = vmand %vm6784_vm15, %vm6826_vm8 }
 0x1a6   : > { %12294 = vmatprep.mubr.msk.bf16.mxu1 %vm2017_vm11, %v10963_v20  ;;  %v3417_v20 = vld [vmem:[#allocation2 + $0x24] sm:$0xf]  ;;  %v3475_v63 = vrot.slane %v3473_v16, 4 }
 0x1a7   : > { %v3508_v55 = vshrl.u32 %v3417_v20, 16  ;;  %v3511_v12 = vshll.u32 %v3417_v20, 16  ;;  %v14433_v20 = vld [vmem:[#allocation2 + $0x40] sm:$0xf] }
 0x1a9   : > { %v3510_v27 = vrot.slane %v3508_v55, 4  ;;  %v3559_v55 = vshll.u32 %v3423_v8, 16 }
 0x1ac   : > { %12247 = vmatmul.mubr.msk.bf16.gmra.mrb[44].mxu0 %vm2017_vm11, %v10900_v40  ;;  %v2694_v40 = vrot.slane %v14157_v43, 5  ;;  %v2692_v43 = vsel %vm14184_vm1, %v10943_v37, %v2691_v60  ;;  %v3513_v37 = vrot.slane %v3511_v12, 5 }
 0x1ad   : > { %12250 = vmatprep.mubr.msk.bf16.mxu0 %vm2017_vm11, %v10901_v57  ;;  %12295 = vmatmul.mubr.msk.bf16.gmra.mrb[0].mxu1 %vm2017_vm11, %v10964_v6  ;;  %v14406_v6 = vrot.slane %v3493_v35, 5  ;;  %v3491_v35 = vrot.slane %v3490_v36, 4  ;;  %v11079_v36 = vrot.slane %v4167_v13, 9  ;;  %v4172_v13 = vld [vmem:[#allocation2 + $0x60] sm:$0xe] }
 0x1ae   : > { %12298 = vmatprep.mubr.msk.bf16.mxu1 %vm2017_vm11, %v10965_v7  ;;  %v2695_v57 = vsel %vm14184_vm1, %v2693_v17, %v2694_v40  ;;  %v14409_v7 = vrot.slane %v3517_v45, 5  ;;  %v3476_v17 = vor.u32 %v3475_v63, %v14400_v53  ;;  %v14412_v40 = vld [vmem:[#allocation2 + $0x34] sm:$0xf]  ;;  %v3556_v63 = vshrl.u32 %v3423_v8, 16 }
 0x1af   : > { %v10967_v44 = vcombine.low %v2692_v43, %v2695_v57  ;;  %v3500_v33 = vor.u32 %v3499_v26, %v14406_v6  ;;  %v3532_v43 = vshrl.u32 %v3420_v2, 16  ;;  %v3541_v46 = vshll.u32 %v14412_v40, 16 }
 0x1b0   : > { %v3524_v30 = vor.u32 %v3523_v10, %v14409_v7  ;;  %v3545_v54 = vshrl.u32 %v14412_v40, 16  ;;  %v3477_v52 = vrot.slane %v3476_v17, 4  ;;  %v3569_v26 = vshrl.u32 %v14433_v20, 16  ;;  %v13308_v10 = vld [vmem:[#allocation2 + $0x78] sm:$0xff]   ;;  %v14451_v17 = vld [vmem:[#allocation2 + $0x44] sm:$0x1] }
 0x1b1   : > { %v14429_v32 = vrot.slane %v3541_v46, 5  ;;  %v4245_v46 = vrot.slane %v14394_v18, 5  ;;  %v4252_v8 = vrot.slane %v14412_v40, 5 }
 0x1b2   : > { %v3525_v16 = vrot.slane %v3524_v30, 4  ;;  %v14471_v30 = vld [vmem:[#allocation2 + $0x4c] sm:$0xf] }
 0x1b3   : > { %v4247_v18 = vrot.slane %v4245_v46, 4  ;;  %v4266_v40 = vrot.slane %v14471_v30, 5 }
 0x1b4   : > { %12251 = vmatmul.mubr.msk.bf16.gmra.mrb[48].mxu0 %vm2017_vm11, %v10902_v38  ;;  %v13296_v38 = vld [vmem:[#allocation2 + $0xc] sm:$0xff]  }
 0x1b5   : > { %12299 = vmatmul.mubr.msk.bf16.gmra.mrb[4].mxu1 %vm2017_vm11, %v10966_v58  ;;  %v14418_v58 = vld [vmem:[#allocation2 + $0x2c] sm:$0x1] }
 0x1b6   : > { %12302 = vmatprep.mubr.msk.bf16.mxu1 %vm2017_vm11, %v10967_v44  ;;  %v3535_v44 = vshll.u32 %v3420_v2, 16 }
 0x1bd   : > { %12303 = vmatmul.mubr.msk.bf16.gmra.mrb[8].mxu1 %vm2017_vm11, %v10968_v11  ;;  %v3503_v11 = vshll.u32 %v14415_v48, 16 }
 0x1be   : > { %12314 = vmatprep.mubr.msk.bf16.mxu1 %vm2017_vm11, %v13296_v38  ;;  %v13306_v38 = vld [vmem:[#allocation2 + $0x6c] sm:$0xff]  }
 0x1bf   : > { %v3505_v23 = vrot.slane %v3503_v11, 5  ;;  %v4169_v11 = vld [vmem:[#allocation2 + $0x3c] sm:$0xe] }
 0x1c5   : > { %12315 = vmatmul.mubr.msk.bf16.vlgmr.msra.gmra.mrb[12].mxu1 %vm2017_vm11, %v13298_v19  ;;  %v3481_v19 = vrot.slane %v3479_v1, 5 }
 0x1c6   : > { %12347 = vmatpush3.bf16.msra.mxu1 %v14262_v0  ;;  %12318 = vmatprep.mubr.msk.bf16.mxu1 %vm2017_vm11, %v13299_v28  ;;  %v3411_v0 = vld [vmem:[#allocation2 + $0xc] sm:$0xf]  ;;  %v3527_v28 = vshll.u32 %v14418_v58, 16 }
 0x1c7   : > { %12348 = vmatprep.subr.bf16.mxu1 %v13302_v59  ;;  %v3460_v41 = vshrl.u32 %v3411_v0, 16  ;;  %v3463_v56 = vshll.u32 %v3411_v0, 16  ;;  %v3537_v0 = vrot.slane %v3535_v44, 5  ;;  %v14469_v44 = vrot.slane %v3559_v55, 5 }
 0x1c8   : > { %v3529_v29 = vrot.slane %v3527_v28, 5  ;;  %v14485_v28 = vld [vmem:[#allocation2 + $0x58] sm:$0xf] }
 0x1c9   : > { %v3462_v60 = vrot.slane %v3460_v41, 4  ;;  %v3465_v61 = vrot.slane %v3463_v56, 5  ;;  %v3547_v41 = vrot.slane %v3545_v54, 4  ;;  %v3482_v56 = vsel %vm13672_vm10, %v3477_v52, %v3481_v19  ;;  %v4168_v54 = vld [vmem:[#allocation2 + $0x30] sm:$0xe] }
 0x1ca   : > { %12349 = vmatpush3.bf16.msra.mxu1 %v13302_v59  ;;  %v3514_v59 = vor.u32 %v3513_v37, %v3510_v27  ;;  %v3530_v12 = vsel %vm13672_vm10, %v3525_v16, %v3529_v29  ;;  %v14479_v52 = vrot.slane %v3569_v26, 4  ;;  %v14482_v19 = vld [vmem:[#allocation2 + $0x50] sm:$0x1]  ;;  %v4170_v16 = vld [vmem:[#allocation2 + $0x48] sm:$0xe]  ;;  %v4268_v26 = vrot.slane %v4266_v40, 4 }
 0x1cb   : > { %12350 = vmatprep.subr.bf16.mxu1 %v13307_v5  ;;  %v3466_v57 = vor.u32 %v3465_v61, %v3462_v60  ;;  %v3548_v60 = vor.u32 %v3547_v41, %v14429_v32  ;;  %v3565_v61 = vshll.u32 %v14433_v20, 16  ;;  %v14494_v41 = vld [vmem:[#allocation2 + $0x5c] sm:$0x1] }
 0x1cc   : > { %v3515_v45 = vrot.slane %v3514_v59, 4 }
 0x1cd   : > { %12319 = vmatmul.mubr.msk.bf16.gmra.mrb[16].mxu1 %vm2017_vm11, %v13300_v14  ;;  %v3467_v14 = vrot.slane %v3466_v57, 4  ;;  %v14460_v57 = vrot.slane %v3556_v63, 4  ;;  %v4262_v63 = vrot.slane %v14451_v17, 5 }
 0x1ce   : > { %12322 = vmatprep.mubr.msk.bf16.mxu1 %vm2017_vm11, %v13301_v42  ;;  %12351 = vmatpush3.bf16.msra.mxu1 %v13307_v5  ;;  %v14425_v5 = vld [vmem:[#allocation2 + $0x38] sm:$0x1]  ;;  %v3534_v42 = vrot.slane %v3532_v43, 4  ;;  %v3520_v27 = vsel %vm13672_vm10, %v3515_v45, %v14409_v7  ;;  %v14475_v7 = vrot.slane %v3548_v60, 4  ;;  %v13310_v45 = vld [vmem:[#allocation2 + $0x90] sm:$0xff]   ;;  %v13311_v60 = vld [vmem:[#allocation2 + $0x9c] sm:$0xff]  }
 0x1cf   : > { %12352 = vmatprep.subr.bf16.mxu1 %v13312_v47  ;;  %v3472_v4 = vsel %vm13672_vm10, %v3467_v14, %v14400_v53  ;;  %v3496_v53 = vsel %vm13672_vm10, %v3491_v35, %v14406_v6  ;;  %v14465_v43 = vcombine.low %v3520_v27, %v3530_v12  ;;  %v4248_v14 = vrot.slane %v14418_v58, 5  ;;  %v14572_v27 = vld [vmem:[#allocation2 + $0x8c] sm:$0x1] }
 0x1d0   : > { %v14446_v2 = vcombine.low %v3472_v4, %v3482_v56  ;;  %v4255_v35 = vrot.slane %v14425_v5, 5  ;;  %v4259_v58 = vrot.slane %v14433_v20, 5  ;;  %v4171_v4 = vld [vmem:[#allocation2 + $0x54] sm:$0xe]  ;;  %v11082_v12 = vrot.slane %v4170_v16, 9 }
 0x1d1   : > { %v14498_v56 = vsel %vm14184_vm1, %v4247_v18, %v4248_v14  ;;  %v14538_v18 = vld [vmem:[#allocation2 + $0x74] sm:$0x1]  ;;  %v14540_v14 = vld [vmem:[#allocation2 + $0x7c] sm:$0xf] }
 0x1d2   : > { %12353 = vmatpush3.bf16.msra.mxu1 %v13312_v47  ;;  %v3501_v47 = vrot.slane %v3500_v33, 4  ;;  %v14462_v33 = vld [vmem:[#allocation2 + $0x48] sm:$0xf]  ;;  %v4261_v55 = vrot.slane %v4259_v58, 4 }
 0x1d3   : > { %12386 = vmatprep.subr.bf16.mxu1 %v14392_v51 }
 0x1d4   : > { %v3506_v39 = vsel %vm13672_vm10, %v3501_v47, %v3505_v23  ;;  %v11081_v23 = vrot.slane %v4169_v11, 9  ;;  %v4173_v11 = vld [vmem:[#allocation2 + $0x6c] sm:$0xe] }
 0x1d5   : > { %12323 = vmatmul.mubr.msk.bf16.gmra.mrb[20].mxu1 %vm2017_vm11, %v13303_v50  ;;  %v3551_v50 = vshll.u32 %v14425_v5, 16  ;;  %v14453_v1 = vcombine.low %v3496_v53, %v3506_v39  ;;  %v14506_v39 = vld [vmem:[#allocation2 + $0x64] sm:$0xf]  ;;  %v4273_v53 = vrot.slane %v14485_v28, 5 }
 0x1d6   : > { %12326 = vmatprep.mubr.msk.bf16.mxu1 %vm2017_vm11, %v13304_v49  ;;  %v3538_v49 = vor.u32 %v3537_v0, %v3534_v42  ;;  %v14491_v42 = vsel %vm14184_vm1, %v11079_v36, %v4245_v46  ;;  %v11080_v0 = vrot.slane %v4168_v54, 9  ;;  %v14516_v20 = vsel %vm14184_vm1, %v11081_v23, %v4259_v58  ;;  %v14549_v23 = vld [vmem:[#allocation2 + $0x80] sm:$0x1] }
 0x1d7   : > { %v14458_v37 = vrot.slane %v3551_v50, 5  ;;  %v4254_v50 = vrot.slane %v4252_v8, 4  ;;  %16790 = vst [vmem:[#allocation8_spill] sm:$0xff] %v14516_v20  ;;  %v14531_v46 = vsel %vm14184_vm1, %v4261_v55, %v4262_v63  ;;  %v14535_v54 = vsel %vm14184_vm1, %v11082_v12, %v4266_v40  ;;  %v4174_v40 = vld [vmem:[#allocation2 + $0x78] sm:$0xe] }
 0x1d8   : > { %v14467_v6 = vrot.slane %v3538_v49, 4  ;;  %v14508_v49 = vld [vmem:[#allocation2 + $0x68] sm:$0x1]  ;;  %v14512_v5 = vsel %vm14184_vm1, %v11080_v0, %v4252_v8  ;;  %16792 = vst [vmem:[#allocation10_spill] sm:$0xff] %v14531_v46  ;;  %16793 = vst [vmem:[#allocation11_spill] sm:$0xff] %v14535_v54  ;;  %v11083_v36 = vrot.slane %v4171_v4, 9 }
 0x1d9   : > { %16789 = vst [vmem:[#allocation7_spill] sm:$0xff] %v14512_v5  ;;  %v4275_v16 = vrot.slane %v4273_v53, 4  ;;  %v4280_v63 = vrot.slane %v14506_v39, 5  ;;  %v14558_v4 = vld [vmem:[#allocation2 + $0x88] sm:$0xf]  ;;  %v4283_v12 = vrot.slane %v14508_v49, 5 }
 0x1da   : > { %v4294_v58 = vrot.slane %v14540_v14, 5  ;;  %v4175_v0 = vld [vmem:[#allocation2 + $0x84] sm:$0xe]  ;;  %v4297_v24 = vrot.slane %v14549_v23, 5  ;;  %v4301_v25 = vrot.slane %v14558_v4, 5 }
 0x1db   : > { %v14646_v46 = vld [vmem:[#allocation2 + $0xc4] sm:$0xf] }
 0x1dc   : > { %v4296_v59 = vrot.slane %v4294_v58, 4 }
 0x1dd   : > { %12327 = vmatmul.mubr.msk.bf16.gmra.mrb[24].mxu1 %vm2017_vm11, %v13305_v34  ;;  %v14477_v34 = vrot.slane %v3565_v61, 5  ;;  %v14520_v61 = vsel %vm14184_vm1, %v4254_v50, %v4255_v35  ;;  %v4276_v35 = vrot.slane %v14494_v41, 5  ;;  %v11084_v50 = vrot.slane %v4172_v13, 9 }
 0x1de   : > { %12330 = vmatprep.mubr.msk.bf16.mxu1 %vm2017_vm11, %v13306_v38  ;;  %16791 = vst [vmem:[#allocation9_spill] sm:$0xff] %v14520_v61  ;;  %v4282_v13 = vrot.slane %v4280_v63, 4  ;;  %v13313_v38 = vld [vmem:[#allocation2 + $0xa8] sm:$0xff]   ;;  %v13315_v61 = vld [vmem:[#allocation2 + $0xc0] sm:$0xff]  }
 0x1df   : > { %v14562_v55 = vsel %vm14184_vm1, %v4275_v16, %v4276_v35  ;;  %v14574_v16 = vld [vmem:[#allocation2 + $0x98] sm:$0x1] }
 0x1e0   : > { %16796 = vst [vmem:[#allocation14_spill] sm:$0xff] %v14562_v55  ;;  %v14586_v47 = vsel %vm14184_vm1, %v4282_v13, %v4283_v12  ;;  %v4176_v55 = vld [vmem:[#allocation2 + $0x90] sm:$0xe]  ;;  %v14603_v13 = vld [vmem:[#allocation2 + $0xa4] sm:$0x1] }
 0x1e1   : > { %16799 = vst [vmem:[#allocation17_spill] sm:$0xff] %v14586_v47 }
 0x1e5   : > { %12331 = vmatmul.mubr.msk.bf16.gmra.mrb[28].mxu1 %vm2017_vm11, %v13308_v10  ;;  %v4269_v10 = vrot.slane %v14482_v19, 5 }
 0x1e6   : > { %12334 = vmatprep.mubr.msk.bf16.mxu1 %vm2017_vm11, %v13309_v21  ;;  %v14525_v21 = vld [vmem:[#allocation2 + $0x70] sm:$0xf] }
 0x1e7   : > { %v14546_v8 = vsel %vm14184_vm1, %v4268_v26, %v4269_v10  ;;  %v4287_v26 = vrot.slane %v14525_v21, 5  ;;  %v14566_v10 = vld [vmem:[#allocation2 + $0x94] sm:$0xf] }
 0x1e8   : > { %16794 = vst [vmem:[#allocation12_spill] sm:$0xff] %v14546_v8  ;;  %v14605_v8 = vld [vmem:[#allocation2 + $0xac] sm:$0xf]  ;;  %v4308_v54 = vrot.slane %v14566_v10, 5 }
 0x1e9   : > { %v4289_v29 = vrot.slane %v4287_v26, 4 }
 0x1ed   : > { %12335 = vmatmul.mubr.msk.bf16.gmra.mrb[0].mxu1 %vm2017_vm11, %v13310_v45  ;;  %v14555_v45 = vsel %vm14184_vm1, %v11083_v36, %v4273_v53  ;;  %v4290_v36 = vrot.slane %v14538_v18, 5  ;;  %v11086_v53 = vrot.slane %v4174_v40, 9 }
 0x1ee   : > { %12338 = vmatprep.mubr.msk.bf16.mxu1 %vm2017_vm11, %v13311_v60  ;;  %16795 = vst [vmem:[#allocation13_spill] sm:$0xff] %v14555_v45  ;;  %v11085_v60 = vrot.slane %v4173_v11, 9  ;;  %v14578_v11 = vsel %vm14184_vm1, %v11084_v50, %v4280_v63  ;;  %v13314_v45 = vld [vmem:[#allocation2 + $0xb4] sm:$0xff]   ;;  %v14590_v50 = vld [vmem:[#allocation2 + $0xa0] sm:$0xf]  ;;  %v14611_v63 = vsel %vm14184_vm1, %v4296_v59, %v4297_v24 }
 0x1ef   : > { %16797 = vst [vmem:[#allocation15_spill] sm:$0xff] %v14578_v11  ;;  %v14596_v40 = vsel %vm14184_vm1, %v4289_v29, %v4290_v36  ;;  %v14600_v12 = vsel %vm14184_vm1, %v11086_v53, %v4294_v58  ;;  %16802 = vst [vmem:[#allocation20_spill] sm:$0xff] %v14611_v63  ;;  %v4303_v29 = vrot.slane %v4301_v25, 4  ;;  %v4304_v36 = vrot.slane %v14572_v27, 5  ;;  %v14624_v24 = vld [vmem:[#allocation2 + $0xb8] sm:$0xf] }
 0x1f0   : > { %v14582_v35 = vsel %vm14184_vm1, %v11085_v60, %v4287_v26  ;;  %16800 = vst [vmem:[#allocation18_spill] sm:$0xff] %v14596_v40  ;;  %16801 = vst [vmem:[#allocation19_spill] sm:$0xff] %v14600_v12  ;;  %v11087_v60 = vrot.slane %v4175_v0, 9  ;;  %v4177_v26 = vld [vmem:[#allocation2 + $0x9c] sm:$0xe]  ;;  %v11088_v53 = vrot.slane %v4176_v55, 9 }
 0x1f1   : > { %16798 = vst [vmem:[#allocation16_spill] sm:$0xff] %v14582_v35  ;;  %v14615_v0 = vld [vmem:[#allocation2 + $0xb0] sm:$0x1]  ;;  %v4178_v40 = vld [vmem:[#allocation2 + $0xa8] sm:$0xe]  ;;  %v14628_v59 = vsel %vm14184_vm1, %v4303_v29, %v4304_v36  ;;  %v11089_v35 = vrot.slane %v4177_v26, 9 }
 0x1f2   : > { %v14621_v58 = vsel %vm14184_vm1, %v11087_v60, %v4301_v25  ;;  %16804 = vst [vmem:[#allocation22_spill] sm:$0xff] %v14628_v59  ;;  %v4315_v47 = vrot.slane %v14590_v50, 5  ;;  %v4310_v25 = vrot.slane %v4308_v54, 4  ;;  %v4318_v55 = vrot.slane %v14603_v13, 5  ;;  %v4179_v63 = vld [vmem:[#allocation2 + $0xb4] sm:$0xe] }
 0x1f3   : > { %16803 = vst [vmem:[#allocation21_spill] sm:$0xff] %v14621_v58  ;;  %v4322_v60 = vrot.slane %v14605_v8, 5  ;;  %v14636_v12 = vld [vmem:[#allocation2 + $0xbc] sm:$0x1]  ;;  %v14640_v29 = vsel %vm14184_vm1, %v11088_v53, %v4308_v54  ;;  %v11090_v11 = vrot.slane %v4178_v40, 9  ;;  %v4325_v58 = vrot.slane %v14615_v0, 5 }
 0x1f4   : > { %v14644_v26 = vsel %vm14184_vm1, %v11089_v35, %v4315_v47  ;;  %v4317_v36 = vrot.slane %v4315_v47, 4  ;;  %v4329_v20 = vrot.slane %v14624_v24, 5  ;;  %v11091_v40 = vrot.slane %v4179_v63, 9  ;;  %v14664_v53 = vld [vmem:[#allocation2 + $0xc8] sm:$0x1] }
 0x1f5   : > { %12339 = vmatmul.mubr.msk.bf16.gmra.mrb[4].mxu1 %vm2017_vm11, %v13313_v38  ;;  %v4324_v59 = vrot.slane %v4322_v60, 4  ;;  %v14662_v47 = vsel %vm14184_vm1, %v11090_v11, %v4322_v60  ;;  %v4332_v54 = vrot.slane %v14636_v12, 5  ;;  %v3572_v11 = vor.u32 %v14479_v52, %v14477_v34 }
 0x1f6   : > { %12342 = vmatprep.mubr.msk.bf16.mxu1 %vm2017_vm11, %v13314_v45  ;;  %v4311_v45 = vrot.slane %v14574_v16, 5  ;;  %v14658_v35 = vsel %vm14184_vm1, %v4317_v36, %v4318_v55  ;;  %16806 = vst [vmem:[#allocation24_spill] sm:$0xff] %v14662_v47  ;;  %v4331_v5 = vrot.slane %v4329_v20, 4  ;;  %v3589_v63 = vshll.u32 %v14471_v30, 16  ;;  %v3429_v36 = vld [vmem:[#allocation2 + $0x54] sm:$0xf] }
 0x1f7   : > { %v4336_v60 = vrot.slane %v14646_v46, 5  ;;  %v3432_v47 = vld [vmem:[#allocation2 + $0x60] sm:$0xf]  ;;  %v16811_v55 = vshll.u32 %v14462_v33, 16 }
 0x1f8   : > { %v14650_v38 = vsel %vm14184_vm1, %v4310_v25, %v4311_v45  ;;  %v14670_v25 = vsel %vm14184_vm1, %v4324_v59, %v4325_v58  ;;  %v3593_v58 = vshrl.u32 %v14471_v30, 16  ;;  %v3613_v59 = vshll.u32 %v14485_v28, 16 }
 0x1f9   : > { %16805 = vst [vmem:[#allocation23_spill] sm:$0xff] %v14650_v38  ;;  %16807 = vst [vmem:[#allocation25_spill] sm:$0xff] %v14670_v25  ;;  %v4180_v38 = vld [vmem:[#allocation2 + $0xc0] sm:$0xe]  ;;  %v14690_v52 = vsel %vm14184_vm1, %v4331_v5, %v4332_v54  ;;  %v4338_v25 = vrot.slane %v4336_v60, 4  ;;  %v3554_v30 = vsel %vm13672_vm10, %v14475_v7, %v14458_v37  ;;  %v3617_v54 = vshrl.u32 %v14485_v28, 16 }
 0x1fa   : > { %16809 = vst [vmem:[#allocation27_spill] sm:$0xff] %v14690_v52  ;;  %v11092_v45 = vrot.slane %v4180_v38, 9  ;;  %v3585_v38 = vrot.slane %v16811_v55, 5  ;;  %v14706_v52 = vrot.slane %v3589_v63, 5  ;;  %v3607_v7 = vshll.u32 %v3429_v36, 16 }
 0x1fb   : > { %v3573_v63 = vrot.slane %v3572_v11, 4  ;;  %v14725_v55 = vrot.slane %v3613_v59, 5  ;;  %v3599_v59 = vshll.u32 %v14482_v19, 16 }
 0x1fd   : > { %12343 = vmatmul.mubr.msk.bf16.gmra.mrb[8].mxu1 %vm2017_vm11, %v13315_v61  ;;  %v14686_v61 = vsel %vm14184_vm1, %v11091_v40, %v4329_v20  ;;  %v3562_v20 = vor.u32 %v14469_v44, %v14460_v57  ;;  %v16810_v40 = vshrl.u32 %v14462_v33, 16  ;;  %v3595_v57 = vrot.slane %v3593_v58, 4 }
 0x1fe   : > { %12354 = vmatprep.mubr.msk.bf16.mxu1 %vm2017_vm11, %v14446_v2  ;;  %16808 = vst [vmem:[#allocation26_spill] sm:$0xff] %v14686_v61  ;;  %v4339_v2 = vrot.slane %v14664_v53, 5  ;;  %v14710_v61 = vsel %vm14184_vm1, %v11092_v45, %v4336_v60  ;;  %v3604_v44 = vshrl.u32 %v3429_v36, 16  ;;  %v3544_v33 = vsel %vm13672_vm10, %v14467_v6, %v14429_v32  ;;  %v13317_v45 = vld [vmem:[%s16707_s3 + $0xa8] sm:$0xff]  }
 0x1ff   : > { %v3582_v5 = vrot.slane %v16810_v40, 4  ;;  %16812 = vst [vmem:[#allocation28_spill] sm:$0xff] %v14710_v61  ;;  %v3619_v60 = vrot.slane %v3617_v54, 4  ;;  %v3631_v58 = vshll.u32 %v3432_v47, 16  ;;  %v3637_v36 = vshll.u32 %v14506_v39, 16 }
 0x200   : > { %v14714_v37 = vsel %vm14184_vm1, %v4338_v25, %v4339_v2  ;;  %v3628_v25 = vshrl.u32 %v3432_v47, 16  ;;  %v3641_v2 = vshrl.u32 %v14506_v39, 16  ;;  %v11044_v40 = vcombine.low %v3544_v33, %v3554_v30 }
 0x201   : > { %16813 = vst [vmem:[#allocation29_spill] sm:$0xff] %v14714_v37  ;;  %v3563_v28 = vrot.slane %v3562_v20, 4  ;;  %v16814_v32 = vshll.u32 %v14451_v17, 16  ;;  %v3586_v11 = vor.u32 %v3585_v38, %v3582_v5  ;;  %v3596_v47 = vor.u32 %v3595_v57, %v14706_v52  ;;  %v3435_v37 = vld [vmem:[#allocation2 + $0x6c] sm:$0xf] }
 0x202   : > { %v3606_v54 = vrot.slane %v3604_v44, 4  ;;  %v3609_v39 = vrot.slane %v3607_v7, 5  ;;  %v3630_v30 = vrot.slane %v3628_v25, 4  ;;  %v3661_v17 = vshll.u32 %v14525_v21, 16 }
 0x203   : > { %v3577_v6 = vrot.slane %v16814_v32, 5  ;;  %v3665_v20 = vshrl.u32 %v14525_v21, 16  ;;  %v3633_v5 = vrot.slane %v3631_v58, 5  ;;  %v14746_v19 = vrot.slane %v3637_v36, 5 }
 0x204   : > { %v3643_v38 = vrot.slane %v3641_v2, 4  ;;  %v3568_v57 = vsel %vm13672_vm10, %v3563_v28, %v14477_v34  ;;  %v3587_v44 = vrot.slane %v3586_v11, 4  ;;  %v3652_v7 = vshrl.u32 %v3435_v37, 16  ;;  %v13319_v34 = vld [vmem:[%s16707_s3 + $0xb8] sm:$0xff]  }
 0x205   : > { %12355 = vmatmul.mubr.msk.bf16.vlgmr.msra.gmra.mrb[12].mxu1 %vm2017_vm11, %v14453_v1  ;;  %v3578_v1 = vsel %vm13672_vm10, %v3573_v63, %v3577_v6  ;;  %v3655_v33 = vshll.u32 %v3435_v37, 16  ;;  %v3597_v25 = vrot.slane %v3596_v47, 4  ;;  %v3610_v21 = vor.u32 %v3609_v39, %v3606_v54  ;;  %v3438_v6 = vld [vmem:[#allocation2 + $0x78] sm:$0xf] }
 0x206   : > { %12387 = vmatpush3.bf16.msra.mxu1 %v14392_v51  ;;  %12358 = vmatprep.mubr.msk.bf16.mxu1 %vm2017_vm11, %v14465_v43  ;;  %v13318_v51 = vld [vmem:[%s16707_s3 + $0xb0] sm:$0xff]   ;;  %v3620_v43 = vor.u32 %v3619_v60, %v14725_v55  ;;  %v11045_v63 = vcombine.low %v3568_v57, %v3578_v1  ;;  %v3623_v32 = vshll.u32 %v14494_v41, 16  ;;  %v14752_v61 = vrot.slane %v3661_v17, 5 }
 0x207   : > { %12388 = vmatprep.subr.bf16.mxu1 %v13317_v45  ;;  %v3667_v60 = vrot.slane %v3665_v20, 4  ;;  %v3685_v58 = vshll.u32 %v14540_v14, 16  ;;  %v3689_v36 = vshrl.u32 %v14540_v14, 16  ;;  %v3634_v28 = vor.u32 %v3633_v5, %v3630_v30 }
 0x208   : > { %v3621_v37 = vrot.slane %v3620_v43, 4  ;;  %v3647_v2 = vshll.u32 %v14508_v49, 16  ;;  %v3592_v41 = vsel %vm13672_vm10, %v3587_v44, %v14706_v52  ;;  %v3601_v11 = vrot.slane %v3599_v59, 5  ;;  %v3441_v43 = vld [vmem:[#allocation2 + $0x84] sm:$0xf] }
 0x209   : > { %v3654_v47 = vrot.slane %v3652_v7, 4  ;;  %v3657_v54 = vrot.slane %v3655_v33, 5  ;;  %v3611_v14 = vrot.slane %v3610_v21, 4  ;;  %v3625_v39 = vrot.slane %v3623_v32, 5  ;;  %v14774_v52 = vld [vmem:[%s16707_s3 + $0xc0] sm:$0xff]  }
 0x20a   : > { %12389 = vmatpush3.bf16.msra.mxu1 %v13317_v45  ;;  %v3644_v45 = vor.u32 %v3643_v38, %v14746_v19  ;;  %v3676_v1 = vshrl.u32 %v3438_v6, 16  ;;  %v3679_v17 = vshll.u32 %v3438_v6, 16  ;;  %v3602_v30 = vsel %vm13672_vm10, %v3597_v25, %v3601_v11 }
 0x20b   : > { %12390 = vmatprep.subr.bf16.mxu1 %v13318_v51  ;;  %v3668_v49 = vor.u32 %v3667_v60, %v14752_v61  ;;  %v3691_v20 = vrot.slane %v3689_v36, 4  ;;  %v3626_v59 = vsel %vm13672_vm10, %v3621_v37, %v3625_v39  ;;  %v3635_v5 = vrot.slane %v3634_v28, 4 }
 0x20c   : > { %v3649_v38 = vrot.slane %v3647_v2, 5  ;;  %v3658_v57 = vor.u32 %v3657_v54, %v3654_v47  ;;  %v3671_v44 = vshll.u32 %v14538_v18, 16  ;;  %v3709_v7 = vshll.u32 %v14558_v4, 16  ;;  %v3444_v2 = vld [vmem:[#allocation2 + $0x90] sm:$0xf] }
 0x20d   : > { %12359 = vmatmul.mubr.msk.bf16.gmra.mrb[16].mxu1 %vm2017_vm11, %v11044_v40  ;;  %v14769_v40 = vrot.slane %v3685_v58, 5  ;;  %v3713_v33 = vshrl.u32 %v14558_v4, 16  ;;  %v3681_v25 = vrot.slane %v3679_v17, 5  ;;  %v3700_v21 = vshrl.u32 %v3441_v43, 16 }
 0x20e   : > { %12362 = vmatprep.mubr.msk.bf16.mxu1 %vm2017_vm11, %v11045_v63  ;;  %12391 = vmatpush3.bf16.msra.mxu1 %v13318_v51  ;;  %v3645_v51 = vrot.slane %v3644_v45, 4  ;;  %v3678_v63 = vrot.slane %v3676_v1, 4  ;;  %v3703_v32 = vshll.u32 %v3441_v43, 16  ;;  %v11046_v6 = vcombine.low %v3592_v41, %v3602_v30 }
 0x20f   : > { %12392 = vmatprep.subr.bf16.mxu1 %v13319_v34  ;;  %v3616_v60 = vsel %vm13672_vm10, %v3611_v14, %v14725_v55  ;;  %v3669_v58 = vrot.slane %v3668_v49, 4  ;;  %v3692_v36 = vor.u32 %v3691_v20, %v14769_v40  ;;  %v3640_v4 = vsel %vm13672_vm10, %v3635_v5, %v14746_v19  ;;  %v3447_v49 = vld [vmem:[#allocation2 + $0x9c] sm:$0xf] }
 0x210   : > { %v11047_v18 = vcombine.low %v3616_v60, %v3626_v59  ;;  %v3650_v37 = vsel %vm13672_vm10, %v3645_v51, %v3649_v38  ;;  %v3695_v28 = vshll.u32 %v14549_v23, 16  ;;  %v3711_v45 = vrot.slane %v3709_v7, 5 }
 0x211   : > { %v3715_v55 = vrot.slane %v3713_v33, 4  ;;  %v3659_v41 = vrot.slane %v3658_v57, 4  ;;  %v3682_v11 = vor.u32 %v3681_v25, %v3678_v63  ;;  %v3702_v47 = vrot.slane %v3700_v21, 4 }
 0x212   : > { %12393 = vmatpush3.bf16.msra.mxu1 %v13319_v34  ;;  %v3673_v34 = vrot.slane %v3671_v44, 5  ;;  %v3705_v54 = vrot.slane %v3703_v32, 5  ;;  %v11048_v14 = vcombine.low %v3640_v4, %v3650_v37  ;;  %v3693_v39 = vrot.slane %v3692_v36, 4 }
 0x213   : > { %12426 = vmatprep.subr.bf16.mxu1 %v14774_v52  ;;  %v3724_v1 = vshrl.u32 %v3444_v2, 16  ;;  %v3727_v17 = vshll.u32 %v3444_v2, 16  ;;  %v3733_v30 = vshll.u32 %v14566_v10, 16  ;;  %v3737_v23 = vshrl.u32 %v14566_v10, 16 }
 0x214   : > { %v3674_v19 = vsel %vm13672_vm10, %v3669_v58, %v3673_v34  ;;  %v3697_v20 = vrot.slane %v3695_v28, 5  ;;  %v3716_v43 = vor.u32 %v3715_v55, %v3711_v45  ;;  %v3757_v59 = vshll.u32 %v14590_v50, 16  ;;  %v3450_v34 = vld [vmem:[#allocation2 + $0xa8] sm:$0xf] }
 0x215   : > { %12363 = vmatmul.mubr.msk.bf16.gmra.mrb[20].mxu1 %vm2017_vm11, %v11046_v6  ;;  %v3761_v5 = vshrl.u32 %v14590_v50, 16  ;;  %v3664_v51 = vsel %vm13672_vm10, %v3659_v41, %v14752_v61  ;;  %v3683_v38 = vrot.slane %v3682_v11, 4  ;;  %v3706_v57 = vor.u32 %v3705_v54, %v3702_v47  ;;  %v3453_v11 = vld [vmem:[#allocation2 + $0xb4] sm:$0xf] }
 0x216   : > { %12366 = vmatprep.mubr.msk.bf16.mxu1 %vm2017_vm11, %v11047_v18  ;;  %v3719_v44 = vshll.u32 %v14572_v27, 16  ;;  %v11049_v7 = vcombine.low %v3664_v51, %v3674_v19  ;;  %v3698_v33 = vsel %vm13672_vm10, %v3693_v39, %v3697_v20  ;;  %v3748_v10 = vshrl.u32 %v3447_v49, 16 }
 0x217   : > { %v3751_v63 = vshll.u32 %v3447_v49, 16  ;;  %v3726_v25 = vrot.slane %v3724_v1, 4  ;;  %v3729_v21 = vrot.slane %v3727_v17, 5  ;;  %v3735_v32 = vrot.slane %v3733_v30, 5 }
 0x218   : > { %v3739_v6 = vrot.slane %v3737_v23, 4  ;;  %v3717_v50 = vrot.slane %v3716_v43, 4  ;;  %v3759_v60 = vrot.slane %v3757_v59, 5  ;;  %v3763_v58 = vrot.slane %v3761_v5, 4 }
 0x219   : > { %v3688_v27 = vsel %vm13672_vm10, %v3683_v38, %v14769_v40  ;;  %v3707_v61 = vrot.slane %v3706_v57, 4  ;;  %v3721_v18 = vrot.slane %v3719_v44, 5  ;;  %v3750_v4 = vrot.slane %v3748_v10, 4 }
 0x21a   : > { %v11050_v36 = vcombine.low %v3688_v27, %v3698_v33  ;;  %v3753_v37 = vrot.slane %v3751_v63, 5  ;;  %v3730_v28 = vor.u32 %v3729_v21, %v3726_v25  ;;  %v3740_v55 = vor.u32 %v3739_v6, %v3735_v32  ;;  %v3456_v63 = vld [vmem:[#allocation2 + $0xc0] sm:$0xf] }
 0x21b   : > { %v3781_v2 = vshll.u32 %v14605_v8, 16  ;;  %v3785_v41 = vshrl.u32 %v14605_v8, 16  ;;  %v3722_v47 = vsel %vm13672_vm10, %v3717_v50, %v3721_v18  ;;  %v3764_v54 = vor.u32 %v3763_v58, %v3759_v60 }
 0x21c   : > { %v3809_v40 = vshrl.u32 %v14624_v24, 16  ;;  %v3712_v19 = vsel %vm13672_vm10, %v3707_v61, %v3711_v45  ;;  %v3743_v39 = vshll.u32 %v14574_v16, 16  ;;  %v3772_v1 = vshrl.u32 %v3450_v34, 16 }
 0x21d   : > { %12367 = vmatmul.mubr.msk.bf16.gmra.mrb[24].mxu1 %vm2017_vm11, %v11048_v14  ;;  %v3805_v14 = vshll.u32 %v14624_v24, 16  ;;  %v3775_v17 = vshll.u32 %v3450_v34, 16  ;;  %v3754_v30 = vor.u32 %v3753_v37, %v3750_v4  ;;  %v3767_v23 = vshll.u32 %v14603_v13, 16 }
 0x21e   : > { %12370 = vmatprep.mubr.msk.bf16.mxu1 %vm2017_vm11, %v11049_v7  ;;  %v3796_v8 = vshrl.u32 %v3453_v11, 16  ;;  %v3799_v49 = vshll.u32 %v3453_v11, 16  ;;  %v11051_v20 = vcombine.low %v3712_v19, %v3722_v47  ;;  %v3741_v43 = vrot.slane %v3740_v55, 4 }
 0x21f   : > { %v3783_v59 = vrot.slane %v3781_v2, 5  ;;  %v3787_v5 = vrot.slane %v3785_v41, 4  ;;  %v3731_v51 = vrot.slane %v3730_v28, 4  ;;  %v3765_v24 = vrot.slane %v3764_v54, 4 }
 0x220   : > { %v3807_v38 = vrot.slane %v3805_v14, 5  ;;  %v3811_v57 = vrot.slane %v3809_v40, 4  ;;  %v3745_v16 = vrot.slane %v3743_v39, 5  ;;  %v3774_v45 = vrot.slane %v3772_v1, 4 }
 0x221   : > { %v3777_v44 = vrot.slane %v3775_v17, 5  ;;  %v3755_v7 = vrot.slane %v3754_v30, 4  ;;  %v3769_v33 = vrot.slane %v3767_v23, 5  ;;  %v3798_v13 = vrot.slane %v3796_v8, 4 }
 0x222   : > { %v3801_v10 = vrot.slane %v3799_v49, 5  ;;  %v3746_v25 = vsel %vm13672_vm10, %v3741_v43, %v3745_v16  ;;  %v3788_v21 = vor.u32 %v3787_v5, %v3783_v59  ;;  %v3829_v6 = vshll.u32 %v14646_v46, 16  ;;  %v451_v16 = vld [vmem:[#allocation2 + $0xcc] sm:$0x1] }
 0x223   : > { %v3833_v50 = vshrl.u32 %v14646_v46, 16  ;;  %v3736_v58 = vsel %vm13672_vm10, %v3731_v51, %v3735_v32  ;;  %v3770_v27 = vsel %vm13672_vm10, %v3765_v24, %v3769_v33  ;;  %v3812_v61 = vor.u32 %v3811_v57, %v3807_v38 }
 0x224   : > { %v3791_v18 = vshll.u32 %v14615_v0, 16  ;;  %v3820_v4 = vshrl.u32 %v3456_v63, 16  ;;  %v3823_v37 = vshll.u32 %v3456_v63, 16  ;;  %v11052_v34 = vcombine.low %v3736_v58, %v3746_v25  ;;  %v4166_v63 = vld [vmem:[#allocation2 + $0x18] sm:$0xe] }
 0x225   : > { %12371 = vmatmul.mubr.msk.bf16.gmra.mrb[28].mxu1 %vm2017_vm11, %v11050_v36  ;;  %v3778_v36 = vor.u32 %v3777_v44, %v3774_v45  ;;  %v3760_v28 = vsel %vm13672_vm10, %v3755_v7, %v3759_v60  ;;  %v3802_v55 = vor.u32 %v3801_v10, %v3798_v13  ;;  %v3815_v2 = vshll.u32 %v14636_v12, 16  ;;  %v14859_v13 = vld [vmem:[#allocation2 + $0x1c] sm:$0xf]  ;;  %v14863_v25 = vld [vmem:[#allocation2 + $0x20] sm:$0x1] }
 0x226   : > { %12374 = vmatprep.mubr.msk.bf16.mxu1 %vm2017_vm11, %v11051_v20  ;;  %v11053_v46 = vcombine.low %v3760_v28, %v3770_v27  ;;  %v3789_v41 = vrot.slane %v3788_v21, 4  ;;  %v3831_v11 = vrot.slane %v3829_v6, 5  ;;  %v3835_v32 = vrot.slane %v3833_v50, 4  ;;  %v14865_v21 = vld [vmem:[#allocation2 + $0x34] sm:$0xf] }
 0x227   : > { %v3813_v47 = vrot.slane %v3812_v61, 4  ;;  %v3779_v54 = vrot.slane %v3778_v36, 4  ;;  %v3793_v0 = vrot.slane %v3791_v18, 5  ;;  %v3822_v14 = vrot.slane %v3820_v4, 4  ;;  %v14867_v50 = vld [vmem:[#allocation2 + $0x28] sm:$0xf] }
 0x228   : > { %v3825_v40 = vrot.slane %v3823_v37, 5  ;;  %v3803_v19 = vrot.slane %v3802_v55, 4  ;;  %v3817_v39 = vrot.slane %v3815_v2, 5  ;;  %v3836_v1 = vor.u32 %v3835_v32, %v3831_v11  ;;  %v5804_v58 = vld [vmem:[#allocation2 + $0x18] sm:$0xe] }
 0x229   : > { %v3794_v60 = vsel %vm13672_vm10, %v3789_v41, %v3793_v0  ;;  %v4231_v17 = vrot.slane %v14381_v15, 5  ;;  %v3784_v30 = vsel %vm13672_vm10, %v3779_v54, %v3783_v59  ;;  %v3839_v8 = vshll.u32 %v14664_v53, 16  ;;  %v4165_v15 = vld [vmem:[#allocation2 + $0xc] sm:$0xe]  ;;  %v14870_v27 = vld [vmem:[#allocation2 + $0x2c] sm:$0x1] }
 0x22a   : > { %v3818_v12 = vsel %vm13672_vm10, %v3813_v47, %v3817_v39  ;;  %v3826_v23 = vor.u32 %v3825_v40, %v3822_v14  ;;  %v11054_v49 = vcombine.low %v3784_v30, %v3794_v60  ;;  %v3808_v20 = vsel %vm13672_vm10, %v3803_v19, %v3807_v38  ;;  %v5805_v36 = vld [vmem:[#allocation2 + $0x24] sm:$0xe]  ;;  %v14875_v4 = vld [vmem:[#allocation2 + $0x38] sm:$0x1]  ;;  %v5806_v37 = vld [vmem:[#allocation2 + $0x30] sm:$0xe] }
 0x22b   : > { %v11055_v43 = vcombine.low %v3808_v20, %v3818_v12  ;;  %v3837_v5 = vrot.slane %v3836_v1, 4  ;;  %v4233_v51 = vrot.slane %v4231_v17, 4  ;;  %v3841_v57 = vrot.slane %v3839_v8, 5  ;;  %v14884_v54 = vld [vmem:[#allocation2 + $0x40] sm:$0xf]  ;;  %v13321_v8 = vld [vmem:[%s16707_s3 + $0xc8] sm:$0xff]  }
 0x22c   : > { %v3827_v24 = vrot.slane %v3826_v23, 4  ;;  %v4234_v59 = vrot.slane %v14404_v62, 5  ;;  %v452_v53 = vsel %vm13557_vm4, 0, %v451_v16  ;;  %v4238_v38 = vrot.slane %v14385_v9, 5  ;;  %v5807_v19 = vld [vmem:[#allocation2 + $0x3c] sm:$0xe] }
 0x22d   : > { %12375 = vmatmul.mubr.msk.bf16.gmra.mrb[0].mxu1 %vm2017_vm11, %v11052_v34  ;;  %v3842_v45 = vsel %vm13672_vm10, %v3837_v5, %v3841_v57  ;;  %453 = vst [vmem:[#allocation2 + $0xcc] sm:$0x1] %v452_v53  ;;  %v11077_v44 = vrot.slane %v4165_v15, 9  ;;  %v5870_v61 = vrot.slane %v14859_v13, 5  ;;  %v4241_v18 = vrot.slane %v14415_v48, 5  ;;  %v16834_v57 = vld [vmem:[#allocation10_spill] sm:$0xff] }
 0x22e   : > { %12378 = vmatprep.mubr.msk.bf16.mxu1 %vm2017_vm11, %v11053_v46  ;;  %v4235_v7 = vsel %vm14184_vm1, %v4233_v51, %v4234_v59  ;;  %v3832_v33 = vsel %vm13672_vm10, %v3827_v24, %v3831_v11  ;;  %v4240_v6 = vrot.slane %v4238_v38, 4  ;;  %v11225_v34 = vrot.slane %v5804_v58, 9  ;;  %v14881_v11 = vld [vmem:[#allocation2 + $0x4c] sm:$0xf]  ;;  %v14897_v60 = vld [vmem:[#allocation2 + $0x44] sm:$0x1] }
 0x22f   : > { %v11056_v10 = vcombine.low %v3832_v33, %v3842_v45  ;;  %v4232_v62 = vsel %vm14184_vm1, %v11077_v44, %v4231_v17  ;;  %v5872_v28 = vrot.slane %v5870_v61, 4  ;;  %v5873_v55 = vrot.slane %v14863_v25, 5  ;;  %v5808_v30 = vld [vmem:[#allocation2 + $0x48] sm:$0xe]  ;;  %v14906_v20 = vld [vmem:[#allocation2 + $0x58] sm:$0xf] }
 0x230   : > { %v11101_v9 = vcombine.low %v4232_v62, %v4235_v7  ;;  %v5877_v2 = vrot.slane %v14867_v50, 5  ;;  %v11078_v46 = vrot.slane %v4166_v63, 9  ;;  %v4242_v41 = vsel %vm14184_vm1, %v4240_v6, %v4241_v18  ;;  %v14917_v24 = vld [vmem:[#allocation2 + $0x64] sm:$0xf]  ;;  %v5809_v53 = vld [vmem:[#allocation2 + $0x54] sm:$0xe] }
 0x231   : > { %v11226_v32 = vrot.slane %v5805_v36, 9  ;;  %v5884_v47 = vrot.slane %v14865_v21, 5  ;;  %v14888_v48 = vsel %vm14184_vm1, %v11225_v34, %v5870_v61  ;;  %v14892_v0 = vsel %vm14184_vm1, %v5872_v28, %v5873_v55  ;;  %v14927_v45 = vld [vmem:[#allocation2 + $0x5c] sm:$0x1]  ;;  %v14942_v63 = vld [vmem:[#allocation2 + $0x70] sm:$0xf] }
 0x232   : > { %v5879_v14 = vrot.slane %v5877_v2, 4  ;;  %v5880_v40 = vrot.slane %v14870_v27, 5  ;;  %v4239_v39 = vsel %vm14184_vm1, %v11078_v46, %v4238_v38  ;;  %v11227_v12 = vrot.slane %v5806_v37, 9  ;;  %v14929_v38 = vld [vmem:[#allocation2 + $0x68] sm:$0x1] }
 0x233   : > { %v5886_v17 = vrot.slane %v5884_v47, 4  ;;  %v11102_v23 = vcombine.low %v4239_v39, %v4242_v41  ;;  %v5887_v51 = vrot.slane %v14875_v4, 5  ;;  %v11228_v16 = vrot.slane %v5807_v19, 9  ;;  %v5810_v36 = vld [vmem:[#allocation2 + $0x60] sm:$0xe] }
 0x234   : > { %v14914_v5 = vsel %vm14184_vm1, %v5879_v14, %v5880_v40  ;;  %v14923_v15 = vsel %vm14184_vm1, %v11227_v12, %v5884_v47  ;;  %v5891_v59 = vrot.slane %v14884_v54, 5  ;;  %v5894_v7 = vrot.slane %v14897_v60, 5  ;;  %v14951_v18 = vld [vmem:[#allocation2 + $0x74] sm:$0x1]  ;;  %v14969_v47 = vld [vmem:[#allocation2 + $0x80] sm:$0x1] }
 0x235   : > { %12379 = vmatmul.mubr.msk.bf16.gmra.mrb[4].mxu1 %vm2017_vm11, %v11054_v49  ;;  %v14904_v49 = vld [vmem:[#allocation2 + $0x50] sm:$0x1]  ;;  %16816 = vst [vmem:[#allocation31_spill] sm:$0xff] %v14914_v5  ;;  %16817 = vst [vmem:[#allocation32_spill] sm:$0xff] %v14923_v15  ;;  %v14933_v44 = vsel %vm14184_vm1, %v5886_v17, %v5887_v51  ;;  %v11229_v33 = vrot.slane %v5808_v30, 9  ;;  %v16819_v62 = vcombine.low %v14491_v42, %v14498_v56  ;;  %v5905_v61 = vrot.slane %v14906_v20, 5 }
 0x236   : > { %12382 = vmatprep.mubr.msk.bf16.mxu1 %vm2017_vm11, %v11055_v43  ;;  %v14910_v43 = vsel %vm14184_vm1, %v11226_v32, %v5877_v2  ;;  %16818 = vst [vmem:[#allocation33_spill] sm:$0xff] %v14933_v44  ;;  %v5893_v6 = vrot.slane %v5891_v59, 4  ;;  %v5901_v58 = vrot.slane %v14904_v49, 5  ;;  %v14953_v42 = vld [vmem:[#allocation2 + $0x7c] sm:$0xf]  ;;  %v14957_v56 = vsel %vm14184_vm1, %v11228_v16, %v5891_v59 }
 0x237   : > { %16815 = vst [vmem:[#allocation30_spill] sm:$0xff] %v14910_v43  ;;  %16820 = vst [vmem:[#allocation34_spill] sm:$0xff] %v14957_v56  ;;  %v11230_v28 = vrot.slane %v5809_v53, 9  ;;  %v5907_v2 = vrot.slane %v5905_v61, 4  ;;  %v5908_v46 = vrot.slane %v14927_v45, 5  ;;  %v5912_v41 = vrot.slane %v14917_v24, 5 }
 0x238   : > { %v14965_v55 = vsel %vm14184_vm1, %v5893_v6, %v5894_v7  ;;  %v5811_v32 = vld [vmem:[#allocation2 + $0x6c] sm:$0xe]  ;;  %v11231_v39 = vrot.slane %v5810_v36, 9  ;;  %v5812_v12 = vld [vmem:[#allocation2 + $0x78] sm:$0xe]  ;;  %v5915_v59 = vrot.slane %v14929_v38, 5 }
 0x239   : > { %16822 = vst [vmem:[#allocation36_spill] sm:$0xff] %v14965_v55  ;;  %v14979_v19 = vsel %vm14184_vm1, %v11230_v28, %v5905_v61  ;;  %v14981_v17 = vld [vmem:[#allocation2 + $0x88] sm:$0xf]  ;;  %v14983_v30 = vld [vmem:[#allocation2 + $0x94] sm:$0xf]  ;;  %v14989_v51 = vsel %vm14184_vm1, %v5907_v2, %v5908_v46  ;;  %v5914_v16 = vrot.slane %v5912_v41, 4 }
 0x23a   : > { %16824 = vst [vmem:[#allocation38_spill] sm:$0xff] %v14979_v19  ;;  %16825 = vst [vmem:[#allocation39_spill] sm:$0xff] %v14989_v51  ;;  %v13323_v53 = vld [vmem:[%s16707_s3 + $0xd8] sm:$0xff]   ;;  %v14999_v7 = vsel %vm14184_vm1, %v11231_v39, %v5912_v41  ;;  %v15002_v6 = vld [vmem:[#allocation2 + $0x8c] sm:$0x1]  ;;  %v5922_v36 = vrot.slane %v14951_v18, 5 }
 0x23b   : > { %16826 = vst [vmem:[#allocation40_spill] sm:$0xff] %v14999_v7  ;;  %v15008_v61 = vsel %vm14184_vm1, %v5914_v16, %v5915_v59  ;;  %v5926_v28 = vrot.slane %v14953_v42, 5  ;;  %v16829_v46 = vld [vmem:[#allocation7_spill] sm:$0xff]  ;;  %v16830_v41 = vld [vmem:[#allocation9_spill] sm:$0xff]  ;;  %v5929_v16 = vrot.slane %v14969_v47, 5  ;;  %v5933_v59 = vrot.slane %v14981_v17, 5 }
 0x23c   : > { %16827 = vst [vmem:[#allocation41_spill] sm:$0xff] %v15008_v61  ;;  %v15018_v39 = vld [vmem:[#allocation2 + $0xa0] sm:$0xf]  ;;  %v15067_v61 = vld [vmem:[#allocation2 + $0xb0] sm:$0x1]  ;;  %v16848_v19 = vld [vmem:[#allocation12_spill] sm:$0xff] }
 0x23d   : > { %12383 = vmatmul.mubr.msk.bf16.gmra.mrb[8].mxu1 %vm2017_vm11, %v11056_v10  ;;  %v5898_v10 = vrot.slane %v14881_v11, 5  ;;  %v15069_v7 = vld [vmem:[#allocation2 + $0xb8] sm:$0xf]  ;;  %v16847_v51 = vld [vmem:[#allocation11_spill] sm:$0xff] }
 0x23e   : > { %12394 = vmatprep.mubr.msk.bf16.mxu1 %vm2017_vm11, %v11101_v9  ;;  %v16833_v9 = vld [vmem:[#allocation8_spill] sm:$0xff] }
 0x23f   : > { %v14961_v37 = vsel %vm14184_vm1, %v11229_v33, %v5898_v10  ;;  %v5900_v34 = vrot.slane %v5898_v10, 4  ;;  %v11232_v33 = vrot.slane %v5811_v32, 9  ;;  %v5919_v10 = vrot.slane %v14942_v63, 5 }
 0x240   : > { %16821 = vst [vmem:[#allocation35_spill] sm:$0xff] %v14961_v37  ;;  %v16831_v32 = vcombine.low %v16829_v46, %v16830_v41  ;;  %v16835_v1 = vcombine.low %v16833_v9, %v16834_v57  ;;  %v15030_v46 = vld [vmem:[#allocation2 + $0xac] sm:$0xf]  ;;  %v5935_v9 = vrot.slane %v5933_v59, 4  ;;  %v16854_v37 = vld [vmem:[#allocation14_spill] sm:$0xff] }
 0x241   : > { %v14975_v40 = vsel %vm14184_vm1, %v5900_v34, %v5901_v58  ;;  %v15004_v58 = vld [vmem:[#allocation2 + $0x98] sm:$0x1]  ;;  %v11233_v34 = vrot.slane %v5812_v12, 9  ;;  %v5814_v12 = vld [vmem:[#allocation2 + $0x90] sm:$0xe]  ;;  %v15034_v41 = vsel %vm14184_vm1, %v11232_v33, %v5919_v10  ;;  %v5940_v33 = vrot.slane %v14983_v30, 5 }
 0x242   : > { %16823 = vst [vmem:[#allocation37_spill] sm:$0xff] %v14975_v40  ;;  %16836 = vst [vmem:[#allocation9_spill] sm:$0xff] %v15034_v41 }
 0x245   : > { %12395 = vmatmul.mubr.msk.bf16.vlgmr.msra.gmra.mrb[12].mxu1 %vm2017_vm11, %v11102_v23  ;;  %v5921_v23 = vrot.slane %v5919_v10, 4 }
 0x246   : > { %12427 = vmatpush3.bf16.msra.mxu1 %v14774_v52  ;;  %12398 = vmatprep.mubr.msk.bf16.mxu1 %vm2017_vm11, %v16819_v62  ;;  %v13322_v52 = vld [vmem:[%s16707_s3 + $0xd0] sm:$0xff]   ;;  %v5813_v62 = vld [vmem:[#allocation2 + $0x84] sm:$0xe] }
 0x247   : > { %12428 = vmatprep.subr.bf16.mxu1 %v13321_v8  ;;  %v15049_v57 = vsel %vm14184_vm1, %v5921_v23, %v5922_v36  ;;  %v11235_v36 = vrot.slane %v5814_v12, 9  ;;  %v11236_v12 = vrot.slane %v5815_v3, 9 }
 0x248   : > { %16839 = vst [vmem:[#allocation43_spill] sm:$0xff] %v15049_v57  ;;  %v5942_v57 = vrot.slane %v5940_v33, 4 }
 0x24a   : > { %12429 = vmatpush3.bf16.msra.mxu1 %v13321_v8  ;;  %v5928_v8 = vrot.slane %v5926_v28, 4 }
 0x24b   : > { %12430 = vmatprep.subr.bf16.mxu1 %v13322_v52 }
 0x24d   : > { %v15012_v2 = vpop.f32.mrb[52].mxu0  ;;  %12399 = vmatmul.mubr.msk.bf16.gmra.mrb[16].mxu1 %vm2017_vm11, %v16831_v32  ;;  %v15038_v32 = vsel %vm14184_vm1, %v11233_v34, %v5926_v28  ;;  %v15061_v28 = vsel %vm14184_vm1, %v5928_v8, %v5929_v16  ;;  %v5943_v8 = vrot.slane %v15004_v58, 5  ;;  %v15078_v16 = vld [vmem:[#allocation2 + $0xc4] sm:$0xf] }
 0x24e   : > { %16828 = vst [vmem:[#allocation42_spill] sm:$0xff] %v15012_v2  ;;  %v15024_v14 = vpop.f32.mrb[53].mxu0  ;;  %12402 = vmatprep.mubr.msk.bf16.mxu1 %vm2017_vm11, %v16835_v1  ;;  %12431 = vmatpush3.bf16.msra.mxu1 %v13322_v52  ;;  %16837 = vst [vmem:[#allocation8_spill] sm:$0xff] %v15038_v32  ;;  %v11234_v2 = vrot.slane %v5813_v62, 9  ;;  %v15045_v1 = vld [vmem:[%s16707_s3 + $0xe0] sm:$0xff]   ;;  %v5936_v52 = vrot.slane %v15002_v6, 5 }
 0x24f   : > { %16832 = vst [vmem:[#allocation7_spill] sm:$0xff] %v15024_v14  ;;  %v15040_v14 = vpop.f32.mrb[54].mxu0  ;;  %12432 = vmatprep.subr.bf16.mxu1 %v13323_v53  ;;  %v15055_v62 = vld [vmem:[#allocation2 + $0xa4] sm:$0x1]  ;;  %16841 = vst [vmem:[#allocation45_spill] sm:$0xff] %v15061_v28 }
 0x250   : > { %16838 = vst [vmem:[#allocation10_spill] sm:$0xff] %v15040_v14  ;;  %v15053_v10 = vpop.f32.mrb[55].mxu0  ;;  %v15065_v23 = vsel %vm14184_vm1, %v11234_v2, %v5933_v59  ;;  %v5816_v14 = vld [vmem:[#allocation2 + $0xa8] sm:$0xe]  ;;  %v15075_v34 = vsel %vm14184_vm1, %v5935_v9, %v5936_v52  ;;  %v15084_v59 = vsel %vm14184_vm1, %v11235_v36, %v5940_v33  ;;  %v5817_v28 = vld [vmem:[#allocation2 + $0xb4] sm:$0xe] }
 0x251   : > { %16840 = vst [vmem:[#allocation44_spill] sm:$0xff] %v15053_v10  ;;  %16842 = vst [vmem:[#allocation46_spill] sm:$0xff] %v15065_v23  ;;  %v5947_v10 = vrot.slane %v15018_v39, 5  ;;  %v15088_v9 = vld [vmem:[#allocation2 + $0xbc] sm:$0x1]  ;;  %v5950_v52 = vrot.slane %v15055_v62, 5 }
 0x252   : > { %16843 = vst [vmem:[#allocation47_spill] sm:$0xff] %v15075_v34  ;;  %12433 = vmatpush3.bf16.msra.mxu1 %v13323_v53  ;;  %16844 = vst [vmem:[#allocation48_spill] sm:$0xff] %v15084_v59  ;;  %v15092_v53 = vsel %vm14184_vm1, %v5942_v57, %v5943_v8  ;;  %v11237_v32 = vrot.slane %v5816_v14, 9  ;;  %v5954_v2 = vrot.slane %v15030_v46, 5  ;;  %v5957_v36 = vrot.slane %v15067_v61, 5 }
 0x253   : > { %12466 = vmatprep.subr.bf16.mxu1 %v15045_v1  ;;  %16845 = vst [vmem:[#allocation49_spill] sm:$0xff] %v15092_v53  ;;  %v5949_v3 = vrot.slane %v5947_v10, 4  ;;  %v5961_v34 = vrot.slane %v15069_v7, 5  ;;  %v5818_v23 = vld [vmem:[#allocation2 + $0xc0] sm:$0xe]  ;;  %v16849_v57 = vcombine.low %v16847_v51, %v16848_v19  ;;  %v15110_v14 = vsel %vm14184_vm1, %v11236_v12, %v5947_v10 }
 0x254   : > { %v15106_v8 = vld [vmem:[#allocation2 + $0xc8] sm:$0x1]  ;;  %16850 = vst [vmem:[#allocation11_spill] sm:$0xff] %v15110_v14  ;;  %v15114_v33 = vsel %vm14184_vm1, %v11237_v32, %v5954_v2  ;;  %v5956_v53 = vrot.slane %v5954_v2, 4  ;;  %v11238_v59 = vrot.slane %v5817_v28, 9  ;;  %v5964_v10 = vrot.slane %v15088_v9, 5 }
 0x255   : > { %v15100_v41 = vpop.f32.mrb[56].mxu0  ;;  %12403 = vmatmul.mubr.msk.bf16.gmra.mrb[20].mxu1 %vm2017_vm11, %v16849_v57  ;;  %16851 = vst [vmem:[#allocation12_spill] sm:$0xff] %v15114_v33  ;;  %v15124_v19 = vsel %vm14184_vm1, %v5949_v3, %v5950_v52  ;;  %v5963_v51 = vrot.slane %v5961_v34, 4  ;;  %v5968_v12 = vrot.slane %v15078_v16, 5  ;;  %v5971_v28 = vrot.slane %v15106_v8, 5  ;;  %v13342_v14 = vld [vmem:[#allocation2 + $0xc0] sm:$0xff]  }
 0x256   : > { %16846 = vst [vmem:[#allocation50_spill] sm:$0xff] %v15100_v41  ;;  %v15116_v40 = vpop.f32.mrb[57].mxu0  ;;  %v16853_v41 = vld [vmem:[#allocation13_spill] sm:$0xff]  ;;  %v15134_v2 = vsel %vm14184_vm1, %v5956_v53, %v5957_v36  ;;  %v16864_v36 = vld [vmem:[#allocation15_spill] sm:$0xff]  ;;  %v16869_v53 = vld [vmem:[#allocation18_spill] sm:$0xff] }
 0x257   : > { %16852 = vst [vmem:[#allocation51_spill] sm:$0xff] %v15116_v40  ;;  %v16855_v55 = vcombine.low %v16853_v41, %v16854_v37  ;;  %16856 = vst [vmem:[#allocation13_spill] sm:$0xff] %v15124_v19  ;;  %v15128_v32 = vpop.f32.mrb[58].mxu0  ;;  %v15138_v37 = vsel %vm14184_vm1, %v11238_v59, %v5961_v34  ;;  %v15146_v3 = vsel %vm14184_vm1, %v5963_v51, %v5964_v10  ;;  %v5970_v57 = vrot.slane %v5968_v12, 4  ;;  %v16865_v51 = vld [vmem:[#allocation17_spill] sm:$0xff]  ;;  %v16875_v59 = vld [vmem:[#allocation20_spill] sm:$0xff] }
 0x258   : > { %16857 = vst [vmem:[#allocation14_spill] sm:$0xff] %v15128_v32  ;;  %16858 = vst [vmem:[#allocation52_spill] sm:$0xff] %v15134_v2  ;;  %v15140_v41 = vpop.f32.mrb[59].mxu0  ;;  %v16866_v10 = vcombine.low %v16864_v36, %v16865_v51  ;;  %v16878_v51 = vld [vmem:[#allocation21_spill] sm:$0xff]  ;;  %v5062_v19 = vld [vmem:[#allocation2 + $0x48] sm:$0xf] }
 0x259   : > { %12406 = vmatprep.mubr.msk.bf16.mxu1 %vm2017_vm11, %v16855_v55  ;;  %16859 = vst [vmem:[#allocation53_spill] sm:$0xff] %v15138_v37  ;;  %v11239_v55 = vrot.slane %v5818_v23, 9  ;;  %16860 = vst [vmem:[#allocation54_spill] sm:$0xff] %v15140_v41  ;;  %v15157_v23 = vsel %vm14184_vm1, %v5970_v57, %v5971_v28  ;;  %v16868_v41 = vld [vmem:[#allocation16_spill] sm:$0xff]  ;;  %v16874_v57 = vld [vmem:[#allocation19_spill] sm:$0xff] }
 0x25a   : > { %16861 = vst [vmem:[#allocation55_spill] sm:$0xff] %v15146_v3  ;;  %16863 = vst [vmem:[#allocation57_spill] sm:$0xff] %v15157_v23  ;;  %v16870_v32 = vcombine.low %v16868_v41, %v16869_v53  ;;  %v16876_v40 = vcombine.low %v16874_v57, %v16875_v59  ;;  %v5056_v23 = vld [vmem:[#allocation2 + $0x30] sm:$0xf]  ;;  %v13339_v3 = vld [vmem:[#allocation2 + $0xa8] sm:$0xff]  }
 0x25b   : > { %v15153_v34 = vsel %vm14184_vm1, %v11239_v55, %v5968_v12 }
 0x25c   : > { %16862 = vst [vmem:[#allocation56_spill] sm:$0xff] %v15153_v34  ;;  %v5118_v34 = vshll.u32 %v14863_v25, 16 }
 0x25d   : > { %12407 = vmatmul.mubr.msk.bf16.gmra.mrb[24].mxu1 %vm2017_vm11, %v16866_v10  ;;  %v16879_v10 = vld [vmem:[#allocation22_spill] sm:$0xff] }
 0x25e   : > { %12410 = vmatprep.mubr.msk.bf16.mxu1 %vm2017_vm11, %v16870_v32  ;;  %v5120_v25 = vrot.slane %v5118_v34, 5 }
 0x25f   : > { %v15165_v52 = vpop.f32.mrb[60].mxu0 }
 0x260   : > { %16867 = vst [vmem:[#allocation15_spill] sm:$0xff] %v15165_v52  ;;  %v15171_v12 = vpop.f32.mrb[61].mxu0  ;;  %v16880_v52 = vcombine.low %v16878_v51, %v16879_v10  ;;  %v16891_v10 = vld [vmem:[#allocation24_spill] sm:$0xff] }
 0x261   : > { %16871 = vst [vmem:[#allocation17_spill] sm:$0xff] %v15171_v12  ;;  %v15173_v55 = vpop.f32.mrb[62].mxu0  ;;  %v16892_v12 = vld [vmem:[#allocation25_spill] sm:$0xff] }
 0x262   : > { %16872 = vst [vmem:[#allocation16_spill] sm:$0xff] %v15173_v55  ;;  %v15175_v28 = vpop.f32.mrb[63].mxu0 }
 0x263   : > { %16873 = vst [vmem:[#allocation18_spill] sm:$0xff] %v15175_v28  ;;  %v16884_v28 = vld [vmem:[#allocation23_spill] sm:$0xff] }
 0x264   : > { %v16885_v55 = vcombine.low %v14640_v29, %v16884_v28  ;;  %v16896_v28 = vld [vmem:[#allocation27_spill] sm:$0xff] }
 0x265   : > { %12411 = vmatmul.mubr.msk.bf16.gmra.mrb[28].mxu1 %vm2017_vm11, %v16876_v40  ;;  %v16887_v40 = vcombine.low %v14644_v26, %v14658_v35  ;;  %v507_v26 = vld [vmem:[#allocation2 + $0xd4] sm:$0x1] }
 0x266   : > { %12414 = vmatprep.mubr.msk.bf16.mxu1 %vm2017_vm11, %v16880_v52 }
 0x267   : > { %v15181_v36 = vpop.f32.mrb[32].mxu0 }
 0x268   : > { %16877 = vst [vmem:[#allocation19_spill] sm:$0xff] %v15181_v36  ;;  %v15187_v41 = vpop.f32.mrb[33].mxu0 }
 0x269   : > { %16881 = vst [vmem:[#allocation20_spill] sm:$0xff] %v15187_v41  ;;  %v15189_v32 = vpop.f32.mrb[34].mxu0 }
 0x26a   : > { %16882 = vst [vmem:[#allocation21_spill] sm:$0xff] %v15189_v32  ;;  %v15191_v53 = vpop.f32.mrb[35].mxu0 }
 0x26b   : > { %16883 = vst [vmem:[#allocation22_spill] sm:$0xff] %v15191_v53  ;;  %v16893_v53 = vcombine.low %v16891_v10, %v16892_v12  ;;  %v13324_v12 = vld [vmem:[#allocation2 + $0x18] sm:$0xff]   ;;  %v16903_v10 = vld [vmem:[#allocation29_spill] sm:$0xff] }
 0x26d   : > { %12415 = vmatmul.mubr.msk.bf16.gmra.mrb[0].mxu1 %vm2017_vm11, %v16885_v55  ;;  %v16895_v55 = vld [vmem:[#allocation26_spill] sm:$0xff] }
 0x26e   : > { %12418 = vmatprep.mubr.msk.bf16.mxu1 %vm2017_vm11, %v16887_v40  ;;  %v5132_v40 = vshll.u32 %v14867_v50, 16 }
 0x26f   : > { %v15197_v59 = vpop.f32.mrb[36].mxu0 }
 0x270   : > { %16886 = vst [vmem:[#allocation23_spill] sm:$0xff] %v15197_v59  ;;  %v15203_v57 = vpop.f32.mrb[37].mxu0  ;;  %v16897_v59 = vcombine.low %v16895_v55, %v16896_v28  ;;  %v15279_v2 = vrot.slane %v5132_v40, 5 }
 0x271   : > { %16888 = vst [vmem:[#allocation58_spill] sm:$0xff] %v15203_v57  ;;  %v15205_v52 = vpop.f32.mrb[38].mxu0 }
 0x272   : > { %16889 = vst [vmem:[#allocation59_spill] sm:$0xff] %v15205_v52  ;;  %v15207_v51 = vpop.f32.mrb[39].mxu0  ;;  %v508_v52 = vsel %vm13607_vm6, 0, %v507_v26 }
 0x273   : > { %16890 = vst [vmem:[#allocation60_spill] sm:$0xff] %v15207_v51  ;;  %509 = vst [vmem:[#allocation2 + $0xd4] sm:$0x1] %v508_v52  ;;  %v13330_v52 = vld [vmem:[%s16707_s3 + $0xe8] sm:$0xff]  }
 0x275   : > { %12419 = vmatmul.mubr.msk.bf16.gmra.mrb[4].mxu1 %vm2017_vm11, %v16893_v53  ;;  %v16902_v53 = vld [vmem:[#allocation28_spill] sm:$0xff] }
 0x276   : > { %12422 = vmatprep.mubr.msk.bf16.mxu1 %vm2017_vm11, %v16897_v59 }
 0x277   : > { %v15213_v29 = vpop.f32.mrb[40].mxu0 }
 0x278   : > { %16894 = vst [vmem:[#allocation24_spill] sm:$0xff] %v15213_v29  ;;  %v15219_v35 = vpop.f32.mrb[41].mxu0  ;;  %v16904_v29 = vcombine.low %v16902_v53, %v16903_v10 }
 0x279   : > { %16898 = vst [vmem:[#allocation25_spill] sm:$0xff] %v15219_v35  ;;  %v15223_v57 = vpop.f32.mrb[42].mxu0 }
 0x27a   : > { %16900 = vst [vmem:[#allocation26_spill] sm:$0xff] %v15223_v57  ;;  %v15225_v51 = vpop.f32.mrb[43].mxu0  ;;  %v13326_v57 = vld [vmem:[#allocation2 + $0x24] sm:$0xff]  }
 0x27b   : > { %16901 = vst [vmem:[#allocation27_spill] sm:$0xff] %v15225_v51  ;;  %v13327_v51 = vld [vmem:[#allocation2 + $0x30] sm:$0xff]  }
 0x27d   : > { %12423 = vmatmul.mubr.msk.bf16.gmra.mrb[8].mxu1 %vm2017_vm11, %v16904_v29 }
 0x27e   : > { %12434 = vmatprep.mubr.msk.bf16.mxu1 %vm2017_vm11, %v13324_v12  ;;  %v13335_v12 = vld [vmem:[%s16707_s3 + $0xf0] sm:$0xff]  }
 0x27f   : > { %v15231_v55 = vpop.f32.mrb[44].mxu0 }
 0x280   : > { %16905 = vst [vmem:[#allocation28_spill] sm:$0xff] %v15231_v55  ;;  %v15234_v59 = vpop.f32.mrb[45].mxu0  ;;  %v13337_v55 = vld [vmem:[#allocation2 + $0x90] sm:$0xff]  }
 0x281   : > { %16906 = vst [vmem:[#allocation29_spill] sm:$0xff] %v15234_v59  ;;  %v15236_v28 = vpop.f32.mrb[46].mxu0  ;;  %v13336_v59 = vld [vmem:[#allocation2 + $0x84] sm:$0xff]  }
 0x282   : > { %16907 = vst [vmem:[#allocation61_spill] sm:$0xff] %v15236_v28  ;;  %v15238_v26 = vpop.f32.mrb[47].mxu0  ;;  %v13328_v28 = vld [vmem:[#allocation2 + $0x3c] sm:$0xff]  }
 0x283   : > { %16908 = vst [vmem:[#allocation62_spill] sm:$0xff] %v15238_v26 }
 0x285   : > { %12435 = vmatmul.mubr.msk.bf16.vlgmr.msra.gmra.mrb[12].mxu1 %vm2017_vm11, %v13326_v57  ;;  %v13329_v57 = vld [vmem:[#allocation2 + $0x48] sm:$0xff]  }
 0x286   : > { %12467 = vmatpush3.bf16.msra.mxu1 %v15045_v1  ;;  %12438 = vmatprep.mubr.msk.bf16.mxu1 %vm2017_vm11, %v13327_v51  ;;  %v13340_v1 = vld [vmem:[%s16707_s3 + $0xf8] sm:$0xff]   ;;  %v15265_v51 = vld [vmem:[%s16707_s3 + $0x100] sm:$0xff]  }
 0x287   : > { %v15244_v53 = vpop.f32.mrb[48].mxu0  ;;  %12468 = vmatprep.subr.bf16.mxu1 %v13330_v52 }
 0x288   : > { %16909 = vst [vmem:[#allocation63_spill] sm:$0xff] %v15244_v53  ;;  %v15248_v29 = vpop.f32.mrb[49].mxu0 }
 0x289   : > { %16910 = vst [vmem:[#allocation64_spill] sm:$0xff] %v15248_v29  ;;  %v15253_v10 = vpop.f32.mrb[50].mxu0  ;;  %v5112_v29 = vshrl.u32 %v14859_v13, 16 }
 0x28a   : > { %16911 = vst [vmem:[#allocation65_spill] sm:$0xff] %v15253_v10  ;;  %v15255_v26 = vpop.f32.mrb[51].mxu0  ;;  %12469 = vmatpush3.bf16.msra.mxu1 %v13330_v52  ;;  %v13331_v52 = vld [vmem:[#allocation2 + $0x54] sm:$0xff]   ;;  %v13333_v10 = vld [vmem:[#allocation2 + $0x6c] sm:$0xff]  }
 0x28b   : > { %16912 = vst [vmem:[#allocation66_spill] sm:$0xff] %v15255_v26  ;;  %12470 = vmatprep.subr.bf16.mxu1 %v13335_v12  ;;  %v13332_v26 = vld [vmem:[#allocation2 + $0x60] sm:$0xff]   ;;  %v5114_v32 = vrot.slane %v5112_v29, 4 }
 0x28d   : > { %12439 = vmatmul.mubr.msk.bf16.gmra.mrb[16].mxu1 %vm2017_vm11, %v13328_v28  ;;  %v13334_v28 = vld [vmem:[#allocation2 + $0x78] sm:$0xff]  }
 0x28e   : > { %12442 = vmatprep.mubr.msk.bf16.mxu1 %vm2017_vm11, %v13329_v57  ;;  %12471 = vmatpush3.bf16.msra.mxu1 %v13335_v12  ;;  %v5050_v12 = vld [vmem:[#allocation2 + $0x18] sm:$0xf]  ;;  %v5108_v57 = vshll.u32 %v14859_v13, 16  ;;  %v5136_v13 = vshrl.u32 %v14867_v50, 16  ;;  %v5160_v50 = vshrl.u32 %v14865_v21, 16 }
 0x28f   : > { %12472 = vmatprep.subr.bf16.mxu1 %v13340_v1  ;;  %v5102_v53 = vshll.u32 %v5050_v12, 16 }
 0x290   : > { %v5110_v35 = vrot.slane %v5108_v57, 5  ;;  %v13338_v57 = vld [vmem:[#allocation2 + $0x9c] sm:$0xff]  }
 0x292   : > { %12473 = vmatpush3.bf16.msra.mxu1 %v13340_v1  ;;  %v5099_v1 = vshrl.u32 %v5050_v12, 16 }
 0x293   : > { %12506 = vmatprep.subr.bf16.mxu1 %v15265_v51 }
 0x295   : > { %12443 = vmatmul.mubr.msk.bf16.gmra.mrb[20].mxu1 %vm2017_vm11, %v13331_v52  ;;  %v5053_v52 = vld [vmem:[#allocation2 + $0x24] sm:$0xf] }
 0x296   : > { %12446 = vmatprep.mubr.msk.bf16.mxu1 %vm2017_vm11, %v13332_v26  ;;  %v5101_v26 = vrot.slane %v5099_v1, 4  ;;  %v5123_v41 = vshrl.u32 %v5053_v52, 16  ;;  %v5126_v36 = vshll.u32 %v5053_v52, 16  ;;  %v5156_v1 = vshll.u32 %v14865_v21, 16 }
 0x298   : > { %v5125_v29 = vrot.slane %v5123_v41, 4  ;;  %v5142_v41 = vshll.u32 %v14870_v27, 16 }
 0x29a   : > { %v5144_v33 = vrot.slane %v5142_v41, 5 }
 0x29d   : > { %12447 = vmatmul.mubr.msk.bf16.gmra.mrb[24].mxu1 %vm2017_vm11, %v13333_v10  ;;  %v5104_v10 = vrot.slane %v5102_v53, 5  ;;  %v5150_v53 = vshll.u32 %v5056_v23, 16 }
 0x29e   : > { %12450 = vmatprep.mubr.msk.bf16.mxu1 %vm2017_vm11, %v13334_v28  ;;  %v5115_v28 = vor.u32 %v5114_v32, %v5110_v35  ;;  %v5138_v32 = vrot.slane %v5136_v13, 4 }
 0x29f   : > { %v5105_v12 = vor.u32 %v5104_v10, %v5101_v26  ;;  %v5059_v26 = vld [vmem:[#allocation2 + $0x3c] sm:$0xf]  ;;  %v5152_v13 = vrot.slane %v5150_v53, 5  ;;  %v5204_v53 = vshll.u32 %v14881_v11, 16 }
 0x2a0   : > { %v5116_v37 = vrot.slane %v5115_v28, 4  ;;  %v5139_v28 = vor.u32 %v5138_v32, %v15279_v2  ;;  %v5174_v27 = vshll.u32 %v5059_v26, 16 }
 0x2a1   : > { %v5106_v52 = vrot.slane %v5105_v12, 4  ;;  %v13341_v12 = vld [vmem:[#allocation2 + $0xb4] sm:$0xff]   ;;  %v15311_v44 = vrot.slane %v5204_v53, 5 }
 0x2a3   : > { %v5111_v21 = vsel %vm13672_vm10, %v5106_v52, %v5110_v35 }
 0x2a5   : > { %12451 = vmatmul.mubr.msk.bf16.gmra.mrb[28].mxu1 %vm2017_vm11, %v13336_v59  ;;  %v5128_v59 = vrot.slane %v5126_v36, 5  ;;  %v5121_v36 = vsel %vm13672_vm10, %v5116_v37, %v5120_v25  ;;  %v5166_v37 = vshll.u32 %v14875_v4, 16  ;;  %v5208_v4 = vshrl.u32 %v14881_v11, 16  ;;  %v5819_v25 = vld [vmem:[#allocation2 + $0xcc] sm:$0xe] }
 0x2a6   : > { %12454 = vmatprep.mubr.msk.bf16.mxu1 %vm2017_vm11, %v13337_v55  ;;  %v5147_v55 = vshrl.u32 %v5056_v23, 16  ;;  %v15289_v23 = vrot.slane %v5156_v1, 5  ;;  %v11189_v34 = vcombine.low %v5111_v21, %v5121_v36  ;;  %v15299_v1 = vld [vmem:[#allocation2 + $0xd0] sm:$0xf]  ;;  %v5065_v36 = vld [vmem:[#allocation2 + $0x54] sm:$0xf] }
 0x2a7   : > { %v5129_v40 = vor.u32 %v5128_v59, %v5125_v29  ;;  %v5180_v29 = vshll.u32 %v14884_v54, 16  ;;  %v5184_v59 = vshrl.u32 %v14884_v54, 16  ;;  %v5975_v54 = vrot.slane %v15299_v1, 5 }
 0x2a8   : > { %v5149_v10 = vrot.slane %v5147_v55, 4  ;;  %v5140_v55 = vrot.slane %v5139_v28, 4  ;;  %v11240_v28 = vrot.slane %v5819_v25, 9  ;;  %v5195_v21 = vshrl.u32 %v5062_v19, 16 }
 0x2a9   : > { %v5130_v56 = vrot.slane %v5129_v40, 4  ;;  %v5228_v40 = vshll.u32 %v14906_v20, 16  ;;  %v5198_v11 = vshll.u32 %v5062_v19, 16  ;;  %v5219_v5 = vshrl.u32 %v5065_v36, 16 }
 0x2aa   : > { %v5153_v32 = vor.u32 %v5152_v13, %v5149_v10  ;;  %v5232_v10 = vshrl.u32 %v14906_v20, 16  ;;  %v15309_v13 = vrot.slane %v5180_v29, 5  ;;  %v15315_v15 = vsel %vm14184_vm1, %v11240_v28, %v5975_v54 }
 0x2ab   : > { %v5222_v43 = vshll.u32 %v5065_v36, 16  ;;  %v5168_v29 = vrot.slane %v5166_v37, 5  ;;  %v5145_v53 = vsel %vm13672_vm10, %v5140_v55, %v5144_v33  ;;  %v5068_v36 = vld [vmem:[#allocation2 + $0x60] sm:$0xf]  ;;  %v5200_v28 = vrot.slane %v5198_v11, 5 }
 0x2ac   : > { %v5234_v25 = vrot.slane %v5232_v10, 4  ;;  %v5197_v10 = vrot.slane %v5195_v21, 4 }
 0x2ad   : > { %12455 = vmatmul.mubr.msk.bf16.gmra.mrb[0].mxu1 %vm2017_vm11, %v13338_v57  ;;  %v5162_v57 = vrot.slane %v5160_v50, 4  ;;  %v15301_v50 = vld [vmem:[#allocation2 + $0xd4] sm:$0x1]  ;;  %v5224_v33 = vrot.slane %v5222_v43, 5  ;;  %v5238_v43 = vshll.u32 %v14927_v45, 16 }
 0x2ae   : > { %12458 = vmatprep.mubr.msk.bf16.mxu1 %vm2017_vm11, %v13339_v3  ;;  %v5171_v3 = vshrl.u32 %v5059_v26, 16  ;;  %v5978_v41 = vrot.slane %v15301_v50, 5  ;;  %v5176_v26 = vrot.slane %v5174_v27, 5  ;;  %v5210_v27 = vrot.slane %v5208_v4, 4 }
 0x2af   : > { %v5163_v35 = vor.u32 %v5162_v57, %v15289_v23  ;;  %v5186_v57 = vrot.slane %v5184_v59, 4  ;;  %v15321_v59 = vrot.slane %v5228_v40, 5  ;;  %v5154_v4 = vrot.slane %v5153_v32, 4 }
 0x2b0   : > { %v5173_v52 = vrot.slane %v5171_v3, 4  ;;  %v13343_v3 = vld [vmem:[#allocation2 + $0xcc] sm:$0xff]   ;;  %v5243_v32 = vshrl.u32 %v5068_v36, 16 }
 0x2b1   : > { %v5187_v40 = vor.u32 %v5186_v57, %v15309_v13  ;;  %v5071_v57 = vld [vmem:[#allocation2 + $0x6c] sm:$0xf] }
 0x2b3   : > { %v5188_v11 = vrot.slane %v5187_v40, 4  ;;  %v5276_v40 = vshll.u32 %v14942_v63, 16 }
 0x2b5   : > { %12459 = vmatmul.mubr.msk.bf16.gmra.mrb[4].mxu1 %vm2017_vm11, %v13341_v12  ;;  %v5164_v12 = vrot.slane %v5163_v35, 4  ;;  %v5135_v35 = vsel %vm13672_vm10, %v5130_v56, %v15279_v2  ;;  %v5211_v56 = vor.u32 %v5210_v27, %v15311_v44  ;;  %v5221_v2 = vrot.slane %v5219_v5, 4 }
 0x2b6   : > { %12462 = vmatprep.mubr.msk.bf16.mxu1 %vm2017_vm11, %v13342_v14  ;;  %v5977_v14 = vrot.slane %v5975_v54, 4  ;;  %v5190_v54 = vshll.u32 %v14897_v60, 16  ;;  %v11190_v55 = vcombine.low %v5135_v35, %v5145_v53  ;;  %v5235_v60 = vor.u32 %v5234_v25, %v15321_v59 }
 0x2b7   : > { %v5169_v37 = vsel %vm13672_vm10, %v5164_v12, %v5168_v29  ;;  %v5201_v27 = vor.u32 %v5200_v28, %v5197_v10  ;;  %v5212_v29 = vrot.slane %v5211_v56, 4  ;;  %v5225_v25 = vor.u32 %v5224_v33, %v5221_v2  ;;  %v5074_v28 = vld [vmem:[#allocation2 + $0x78] sm:$0xf] }
 0x2b8   : > { %v15319_v20 = vsel %vm14184_vm1, %v5977_v14, %v5978_v41  ;;  %v5177_v41 = vor.u32 %v5176_v26, %v5173_v52  ;;  %v5246_v14 = vshll.u32 %v5068_v36, 16  ;;  %v5214_v52 = vshll.u32 %v14904_v49, 16 }
 0x2b9   : > { %v11264_v19 = vcombine.low %v15315_v15, %v15319_v20  ;;  %v5252_v26 = vshll.u32 %v14917_v24, 16  ;;  %v5192_v5 = vrot.slane %v5190_v54, 5  ;;  %v5236_v35 = vrot.slane %v5235_v60, 4  ;;  %v524_v20 = vld [vmem:[#allocation3 + $0x18] sm:$0x1] }
 0x2ba   : > { %v5178_v12 = vrot.slane %v5177_v41, 4  ;;  %v5245_v49 = vrot.slane %v5243_v32, 4  ;;  %v5248_v53 = vrot.slane %v5246_v14, 5  ;;  %v5216_v36 = vrot.slane %v5214_v52, 5 }
 0x2bb   : > { %v5270_v41 = vshll.u32 %v5071_v57, 16  ;;  %v5240_v54 = vrot.slane %v5238_v43, 5  ;;  %v5280_v10 = vshrl.u32 %v14942_v63, 16  ;;  %v5193_v56 = vsel %vm13672_vm10, %v5188_v11, %v5192_v5 }
 0x2bc   : > { %v5183_v45 = vsel %vm13672_vm10, %v5178_v12, %v15309_v13  ;;  %v5202_v2 = vrot.slane %v5201_v27, 4  ;;  %v5217_v33 = vsel %vm13672_vm10, %v5212_v29, %v5216_v36  ;;  %v5249_v60 = vor.u32 %v5248_v53, %v5245_v49  ;;  %v5080_v36 = vld [vmem:[#allocation2 + $0x90] sm:$0xf] }
 0x2bd   : > { %12463 = vmatmul.mubr.msk.bf16.gmra.mrb[8].mxu1 %vm2017_vm11, %v13343_v3  ;;  %v5159_v3 = vsel %vm13672_vm10, %v5154_v4, %v15289_v23  ;;  %v13345_v23 = vld [vmem:[%s16707_s3 + $0x108] sm:$0xff]   ;;  %v5267_v4 = vshrl.u32 %v5071_v57, 16  ;;  %v5241_v13 = vsel %vm13672_vm10, %v5236_v35, %v5240_v54  ;;  %v5262_v63 = vshll.u32 %v14929_v38, 16  ;;  %v5077_v35 = vld [vmem:[#allocation2 + $0x84] sm:$0xf] }
 0x2be   : > { %12474 = vmatprep.mubr.msk.bf16.mxu1 %vm2017_vm11, %v11189_v34  ;;  %v5256_v34 = vshrl.u32 %v14917_v24, 16  ;;  %v11191_v21 = vcombine.low %v5159_v3, %v5169_v37  ;;  %v15348_v24 = vrot.slane %v5252_v26, 5  ;;  %v5272_v3 = vrot.slane %v5270_v41, 5 }
 0x2bf   : > { %v5269_v32 = vrot.slane %v5267_v4, 4  ;;  %v5291_v52 = vshrl.u32 %v5074_v28, 16  ;;  %v5294_v26 = vshll.u32 %v5074_v28, 16  ;;  %v5282_v57 = vrot.slane %v5280_v10, 4 }
 0x2c0   : > { %v5258_v37 = vrot.slane %v5256_v34, 4  ;;  %v15369_v34 = vrot.slane %v5276_v40, 5  ;;  %v5304_v12 = vshrl.u32 %v14953_v42, 16  ;;  %v11192_v5 = vcombine.low %v5183_v45, %v5193_v56 }
 0x2c1   : > { %v5207_v38 = vsel %vm13672_vm10, %v5202_v2, %v15311_v44  ;;  %v5250_v29 = vrot.slane %v5249_v60, 4  ;;  %v5273_v49 = vor.u32 %v5272_v3, %v5269_v32  ;;  %v5286_v53 = vshll.u32 %v14951_v18, 16 }
 0x2c2   : > { %v5259_v14 = vor.u32 %v5258_v37, %v15348_v24  ;;  %v11193_v11 = vcombine.low %v5207_v38, %v5217_v33  ;;  %v5293_v4 = vrot.slane %v5291_v52, 4  ;;  %v5296_v44 = vrot.slane %v5294_v26, 5 }
 0x2c3   : > { %v5306_v41 = vrot.slane %v5304_v12, 4  ;;  %v5315_v45 = vshrl.u32 %v5077_v35, 16  ;;  %v5318_v54 = vshll.u32 %v5077_v35, 16  ;;  %v5324_v40 = vshll.u32 %v14981_v17, 16  ;;  %v5083_v12 = vld [vmem:[#allocation2 + $0x9c] sm:$0xf] }
 0x2c4   : > { %v5328_v10 = vshrl.u32 %v14981_v17, 16  ;;  %v5339_v18 = vshrl.u32 %v5080_v36, 16  ;;  %v5342_v28 = vshll.u32 %v5080_v36, 16  ;;  %v5348_v56 = vshll.u32 %v14983_v30, 16 }
 0x2c5   : > { %12475 = vmatmul.mubr.msk.bf16.vlgmr.msra.gmra.mrb[12].mxu1 %vm2017_vm11, %v11190_v55  ;;  %v5226_v55 = vrot.slane %v5225_v25, 4  ;;  %v5264_v25 = vrot.slane %v5262_v63, 5  ;;  %v5352_v2 = vshrl.u32 %v14983_v30, 16  ;;  %v5255_v33 = vsel %vm13672_vm10, %v5250_v29, %v15348_v24 }
 0x2c6   : > { %12507 = vmatpush3.bf16.msra.mxu1 %v15265_v51  ;;  %12478 = vmatprep.mubr.msk.bf16.mxu1 %vm2017_vm11, %v11191_v21  ;;  %v13346_v51 = vld [vmem:[%s16707_s3 + $0x110] sm:$0xff]   ;;  %v5300_v21 = vshll.u32 %v14953_v42, 16  ;;  %v13347_v42 = vld [vmem:[%s16707_s3 + $0x118] sm:$0xff]   ;;  %v5297_v60 = vor.u32 %v5296_v44, %v5293_v4  ;;  %v5320_v3 = vrot.slane %v5318_v54, 5  ;;  %v15399_v52 = vrot.slane %v5324_v40, 5 }
 0x2c7   : > { %12508 = vmatprep.subr.bf16.mxu1 %v13345_v23  ;;  %v5231_v43 = vsel %vm13672_vm10, %v5226_v55, %v15321_v59  ;;  %v5260_v59 = vrot.slane %v5259_v14, 4  ;;  %v5274_v55 = vrot.slane %v5273_v49, 4  ;;  %v5317_v14 = vrot.slane %v5315_v45, 4 }
 0x2c8   : > { %v11194_v27 = vcombine.low %v5231_v43, %v5241_v13  ;;  %v15385_v37 = vrot.slane %v5300_v21, 5  ;;  %v5288_v13 = vrot.slane %v5286_v53, 5  ;;  %v5330_v30 = vrot.slane %v5328_v10, 4 }
 0x2c9   : > { %v5265_v63 = vsel %vm13672_vm10, %v5260_v59, %v5264_v25  ;;  %v5341_v26 = vrot.slane %v5339_v18, 4  ;;  %v15401_v24 = vrot.slane %v5348_v56, 5  ;;  %v5354_v21 = vrot.slane %v5352_v2, 4 }
 0x2ca   : > { %12509 = vmatpush3.bf16.msra.mxu1 %v13345_v23  ;;  %v5283_v23 = vor.u32 %v5282_v57, %v15369_v34  ;;  %v5307_v17 = vor.u32 %v5306_v41, %v15385_v37  ;;  %v5344_v57 = vrot.slane %v5342_v28, 5  ;;  %v5298_v38 = vrot.slane %v5297_v60, 4 }
 0x2cb   : > { %12510 = vmatprep.subr.bf16.mxu1 %v13346_v51  ;;  %v5321_v29 = vor.u32 %v5320_v3, %v5317_v14  ;;  %v5331_v25 = vor.u32 %v5330_v30, %v15399_v52  ;;  %v5363_v35 = vshrl.u32 %v5083_v12, 16  ;;  %v5334_v53 = vshll.u32 %v15002_v6, 16 }
 0x2cc   : > { %v5284_v32 = vrot.slane %v5283_v23, 4  ;;  %v5345_v4 = vor.u32 %v5344_v57, %v5341_v26  ;;  %v5372_v36 = vshll.u32 %v15018_v39, 16  ;;  %v5376_v59 = vshrl.u32 %v15018_v39, 16  ;;  %v5086_v23 = vld [vmem:[#allocation2 + $0xa8] sm:$0xf] }
 0x2cd   : > { %12479 = vmatmul.mubr.msk.bf16.gmra.mrb[16].mxu1 %vm2017_vm11, %v11192_v5  ;;  %v11195_v5 = vcombine.low %v5255_v33, %v5265_v63  ;;  %v5358_v45 = vshll.u32 %v15004_v58, 16  ;;  %v5396_v6 = vshll.u32 %v15030_v46, 16  ;;  %v5400_v54 = vshrl.u32 %v15030_v46, 16  ;;  %v5089_v46 = vld [vmem:[#allocation2 + $0xb4] sm:$0xf] }
 0x2ce   : > { %12482 = vmatprep.mubr.msk.bf16.mxu1 %vm2017_vm11, %v11193_v11  ;;  %12511 = vmatpush3.bf16.msra.mxu1 %v13346_v51  ;;  %v5310_v51 = vshll.u32 %v14969_v47, 16  ;;  %v5279_v47 = vsel %vm13672_vm10, %v5274_v55, %v15369_v34  ;;  %v5289_v43 = vsel %vm13672_vm10, %v5284_v32, %v5288_v13  ;;  %v5308_v11 = vrot.slane %v5307_v17, 4 }
 0x2cf   : > { %12512 = vmatprep.subr.bf16.mxu1 %v13347_v42  ;;  %v11196_v44 = vcombine.low %v5279_v47, %v5289_v43  ;;  %v5303_v34 = vsel %vm13672_vm10, %v5298_v38, %v15385_v37  ;;  %v5322_v40 = vrot.slane %v5321_v29, 4  ;;  %v5332_v10 = vrot.slane %v5331_v25, 4  ;;  %v5092_v47 = vld [vmem:[#allocation2 + $0xc0] sm:$0xf] }
 0x2d0   : > { %v5312_v49 = vrot.slane %v5310_v51, 5  ;;  %v5365_v18 = vrot.slane %v5363_v35, 4  ;;  %v5346_v56 = vrot.slane %v5345_v4, 4  ;;  %v5387_v2 = vshrl.u32 %v5086_v23, 16 }
 0x2d1   : > { %v5390_v33 = vshll.u32 %v5086_v23, 16  ;;  %v5336_v39 = vrot.slane %v5334_v53, 5  ;;  %v15423_v13 = vrot.slane %v5372_v36, 5  ;;  %v5378_v60 = vrot.slane %v5376_v59, 4 }
 0x2d2   : > { %12513 = vmatpush3.bf16.msra.mxu1 %v13347_v42  ;;  %v5366_v42 = vshll.u32 %v5083_v12, 16  ;;  %v5313_v41 = vsel %vm13672_vm10, %v5308_v11, %v5312_v49  ;;  %v5360_v58 = vrot.slane %v5358_v45, 5  ;;  %v15426_v63 = vrot.slane %v5396_v6, 5 }
 0x2d3   : > { %v11197_v55 = vcombine.low %v5303_v34, %v5313_v41  ;;  %v5402_v32 = vrot.slane %v5400_v54, 4  ;;  %v5327_v17 = vsel %vm13672_vm10, %v5322_v40, %v15399_v52  ;;  %v5337_v51 = vsel %vm13672_vm10, %v5332_v10, %v5336_v39 }
 0x2d4   : > { %v5368_v28 = vrot.slane %v5366_v42, 5  ;;  %v5382_v3 = vshll.u32 %v15055_v62, 16  ;;  %v5351_v30 = vsel %vm13672_vm10, %v5346_v56, %v15401_v24  ;;  %v5389_v57 = vrot.slane %v5387_v2, 4 }
 0x2d5   : > { %12483 = vmatmul.mubr.msk.bf16.gmra.mrb[20].mxu1 %vm2017_vm11, %v11194_v27  ;;  %v5355_v27 = vor.u32 %v5354_v21, %v15401_v24  ;;  %v5392_v21 = vrot.slane %v5390_v33, 5  ;;  %v5379_v12 = vor.u32 %v5378_v60, %v15423_v13  ;;  %v5420_v52 = vshll.u32 %v15069_v7, 16 }
 0x2d6   : > { %12486 = vmatprep.mubr.msk.bf16.mxu1 %vm2017_vm11, %v11195_v5  ;;  %v5369_v14 = vor.u32 %v5368_v28, %v5365_v18  ;;  %v5411_v5 = vshrl.u32 %v5089_v46, 16  ;;  %v5424_v38 = vshrl.u32 %v15069_v7, 16  ;;  %v5403_v43 = vor.u32 %v5402_v32, %v15426_v63 }
 0x2d7   : > { %v5356_v37 = vrot.slane %v5355_v27, 4  ;;  %v5414_v62 = vshll.u32 %v5089_v46, 16  ;;  %v5444_v11 = vshll.u32 %v15078_v16, 16  ;;  %v5448_v24 = vshrl.u32 %v15078_v16, 16 }
 0x2d8   : > { %v11198_v29 = vcombine.low %v5327_v17, %v5337_v51  ;;  %v5370_v35 = vrot.slane %v5369_v14, 4  ;;  %v5384_v42 = vrot.slane %v5382_v3, 5  ;;  %v5393_v49 = vor.u32 %v5392_v21, %v5389_v57 }
 0x2d9   : > { %v5361_v26 = vsel %vm13672_vm10, %v5356_v37, %v5360_v58  ;;  %v5406_v53 = vshll.u32 %v15067_v61, 16  ;;  %v5435_v4 = vshrl.u32 %v5092_v47, 16  ;;  %v5438_v27 = vshll.u32 %v5092_v47, 16 }
 0x2da   : > { %v11199_v25 = vcombine.low %v5351_v30, %v5361_v26  ;;  %v5380_v34 = vrot.slane %v5379_v12, 4  ;;  %v5413_v7 = vrot.slane %v5411_v5, 4  ;;  %v5422_v36 = vrot.slane %v5420_v52, 5 }
 0x2db   : > { %v5426_v59 = vrot.slane %v5424_v38, 4  ;;  %v5404_v23 = vrot.slane %v5403_v43, 4  ;;  %v5416_v41 = vrot.slane %v5414_v62, 5  ;;  %v5446_v45 = vrot.slane %v5444_v11, 5 }
 0x2dc   : > { %v5450_v16 = vrot.slane %v5448_v24, 4  ;;  %v5468_v40 = vshll.u32 %v15299_v1, 16  ;;  %v5472_v61 = vshrl.u32 %v15299_v1, 16  ;;  %v5394_v10 = vrot.slane %v5393_v49, 4 }
 0x2dd   : > { %12487 = vmatmul.mubr.msk.bf16.gmra.mrb[24].mxu1 %vm2017_vm11, %v11196_v44  ;;  %v5095_v44 = vld [vmem:[#allocation2 + $0xcc] sm:$0xf]  ;;  %v5408_v18 = vrot.slane %v5406_v53, 5  ;;  %v5437_v28 = vrot.slane %v5435_v4, 4  ;;  %v5440_v56 = vrot.slane %v5438_v27, 5  ;;  %v5375_v37 = vsel %vm13672_vm10, %v5370_v35, %v15423_v13  ;;  %v16914_v4 = vld [vmem:[#allocation30_spill] sm:$0xff] }
 0x2de   : > { %12490 = vmatprep.mubr.msk.bf16.mxu1 %vm2017_vm11, %v11197_v55  ;;  %v5459_v6 = vshrl.u32 %v5095_v44, 16  ;;  %v5462_v54 = vshll.u32 %v5095_v44, 16  ;;  %v5385_v2 = vsel %vm13672_vm10, %v5380_v34, %v5384_v42  ;;  %v5427_v33 = vor.u32 %v5426_v59, %v5422_v36  ;;  %v16915_v27 = vld [vmem:[#allocation31_spill] sm:$0xff]  ;;  %v16917_v34 = vld [vmem:[#allocation32_spill] sm:$0xff]  ;;  %v16920_v59 = vld [vmem:[#allocation34_spill] sm:$0xff] }
 0x2df   : > { %v5409_v55 = vsel %vm13672_vm10, %v5404_v23, %v5408_v18  ;;  %v5417_v39 = vor.u32 %v5416_v41, %v5413_v7  ;;  %v5430_v60 = vshll.u32 %v15088_v9, 16  ;;  %v5451_v58 = vor.u32 %v5450_v16, %v5446_v45  ;;  %v16918_v7 = vld [vmem:[#allocation33_spill] sm:$0xff]  ;;  %v16921_v23 = vld [vmem:[#allocation36_spill] sm:$0xff] }
 0x2e0   : > { %v5461_v1 = vrot.slane %v5459_v6, 4  ;;  %v5464_v32 = vrot.slane %v5462_v54, 5  ;;  %v5470_v46 = vrot.slane %v5468_v40, 5  ;;  %v5474_v17 = vrot.slane %v5472_v61, 4  ;;  %v16924_v16 = vld [vmem:[#allocation37_spill] sm:$0xff]  ;;  %v16927_v6 = vld [vmem:[#allocation39_spill] sm:$0xff] }
 0x2e1   : > { %v11200_v51 = vcombine.low %v5375_v37, %v5385_v2  ;;  %v5399_v13 = vsel %vm13672_vm10, %v5394_v10, %v15426_v63  ;;  %v5441_v14 = vor.u32 %v5440_v56, %v5437_v28  ;;  %v5454_v3 = vshll.u32 %v15106_v8, 16  ;;  %v16929_v40 = vld [vmem:[#allocation40_spill] sm:$0xff]  ;;  %v16930_v61 = vld [vmem:[#allocation41_spill] sm:$0xff]  ;;  %v16933_v28 = vld [vmem:[#allocation43_spill] sm:$0xff] }
 0x2e2   : > { %v11201_v30 = vcombine.low %v5399_v13, %v5409_v55  ;;  %v5428_v26 = vrot.slane %v5427_v33, 4  ;;  %v5432_v57 = vrot.slane %v5430_v60, 5  ;;  %v5452_v21 = vrot.slane %v5451_v58, 4  ;;  %v16932_v18 = vld [vmem:[#allocation9_spill] sm:$0xff]  ;;  %v16935_v37 = vld [vmem:[#allocation8_spill] sm:$0xff]  ;;  %v16938_v55 = vld [vmem:[#allocation46_spill] sm:$0xff] }
 0x2e3   : > { %v5418_v9 = vrot.slane %v5417_v39, 4  ;;  %v5465_v12 = vor.u32 %v5464_v32, %v5461_v1  ;;  %v5475_v5 = vor.u32 %v5474_v17, %v5470_v46  ;;  %v5478_v52 = vshll.u32 %v15301_v50, 16  ;;  %v16936_v2 = vld [vmem:[#allocation45_spill] sm:$0xff]  ;;  %v16939_v39 = vld [vmem:[#allocation47_spill] sm:$0xff]  ;;  %v16941_v58 = vld [vmem:[#allocation48_spill] sm:$0xff] }
 0x2e4   : > { %v5442_v38 = vrot.slane %v5441_v14, 4  ;;  %v5456_v47 = vrot.slane %v5454_v3, 5  ;;  %v5433_v63 = vsel %vm13672_vm10, %v5428_v26, %v5432_v57  ;;  %v16913_v53 = vcombine.low %v14888_v48, %v14892_v0  ;;  %v16926_v0 = vld [vmem:[#allocation38_spill] sm:$0xff]  ;;  %v16942_v1 = vld [vmem:[#allocation49_spill] sm:$0xff]  ;;  %v16947_v13 = vld [vmem:[#allocation12_spill] sm:$0xff] }
 0x2e5   : > { %12491 = vmatmul.mubr.msk.bf16.gmra.mrb[28].mxu1 %vm2017_vm11, %v11198_v29  ;;  %v5423_v43 = vsel %vm13672_vm10, %v5418_v9, %v5422_v36  ;;  %v5466_v62 = vrot.slane %v5465_v12, 4  ;;  %v5476_v11 = vrot.slane %v5475_v5, 4  ;;  %v5480_v24 = vrot.slane %v5478_v52, 5  ;;  %v16945_v17 = vld [vmem:[#allocation13_spill] sm:$0xff]  ;;  %v16948_v14 = vld [vmem:[#allocation52_spill] sm:$0xff]  ;;  %v16951_v26 = vld [vmem:[#allocation55_spill] sm:$0xff] }
 0x2e6   : > { %12494 = vmatprep.mubr.msk.bf16.mxu1 %vm2017_vm11, %v11199_v25  ;;  %v5457_v8 = vsel %vm13672_vm10, %v5452_v21, %v5456_v47  ;;  %v11202_v29 = vcombine.low %v5423_v43, %v5433_v63  ;;  %v5447_v25 = vsel %vm13672_vm10, %v5442_v38, %v5446_v45  ;;  %v16916_v44 = vcombine.low %v16914_v4, %v16915_v27  ;;  %v16923_v45 = vld [vmem:[#allocation35_spill] sm:$0xff]  ;;  %v16953_v21 = vld [vmem:[#allocation56_spill] sm:$0xff]  ;;  %v16954_v9 = vld [vmem:[#allocation57_spill] sm:$0xff] }
 0x2e7   : > { %v11203_v35 = vcombine.low %v5447_v25, %v5457_v8  ;;  %v5471_v50 = vsel %vm13672_vm10, %v5466_v62, %v5470_v46  ;;  %v5481_v42 = vsel %vm13672_vm10, %v5476_v11, %v5480_v24  ;;  %v16919_v36 = vcombine.low %v16917_v34, %v16918_v7  ;;  %v16944_v46 = vld [vmem:[#allocation11_spill] sm:$0xff]  ;;  %v521_v43 = vld [vmem:[#allocation3 + $0x10] sm:$0x1]  ;;  %v551_v11 = vld [vmem:[#allocation3 + $0x14] sm:$0x1] }
 0x2e8   : > { %v11204_v49 = vcombine.low %v5471_v50, %v5481_v42  ;;  %v16922_v41 = vcombine.low %v16920_v59, %v16921_v23  ;;  %v16925_v48 = vcombine.low %v16923_v45, %v16924_v16  ;;  %v16928_v54 = vcombine.low %v16926_v0, %v16927_v6  ;;  %v518_v5 = vld [vmem:[#allocation3 + $0x8] sm:$0x1]  ;;  %v548_v47 = vld [vmem:[#allocation3 + $0xc] sm:$0x1]  ;;  %v554_v24 = vld [vmem:[#allocation3 + $0x1c] sm:$0x1] }
 0x2e9   : > { %v16931_v10 = vcombine.low %v16929_v40, %v16930_v61  ;;  %v16934_v56 = vcombine.low %v16932_v18, %v16933_v28  ;;  %v16937_v33 = vcombine.low %v16935_v37, %v16936_v2  ;;  %v16940_v60 = vcombine.low %v16938_v55, %v16939_v39  ;;  %v527_v25 = vld [vmem:[#allocation3 + $0x20] sm:$0x1]  ;;  %v557_v50 = vld [vmem:[#allocation3 + $0x24] sm:$0x1]  ;;  %v560_v4 = vld [vmem:[#allocation3 + $0x2c] sm:$0x1] }
 0x2ea   : > { %v16943_v32 = vcombine.low %v16941_v58, %v16942_v1  ;;  %v16949_v3 = vcombine.low %v16947_v13, %v16948_v14  ;;  %v16955_v12 = vcombine.low %v16953_v21, %v16954_v9  ;;  %v519_v38 = vsel %vm13557_vm4, 0, %v518_v5  ;;  %v563_v7 = vld [vmem:[#allocation3 + $0x34] sm:$0x1]  ;;  %v13348_v59 = vld [vmem:[%s16709_s5 + $0x20] sm:$0xff]   ;;  %v536_v23 = vld [vmem:[#allocation3 + $0x38] sm:$0x1] }
 0x2eb   : > { %520 = vst [vmem:[#allocation3 + $0x8] sm:$0x1] %v519_v38  ;;  %v549_v8 = vsel %vm13607_vm6, 0, %v548_v47  ;;  %v522_v62 = vsel %vm13557_vm4, 0, %v521_v43  ;;  %v552_v15 = vsel %vm13607_vm6, 0, %v551_v11  ;;  %v558_v42 = vsel %vm13607_vm6, 0, %v557_v50  ;;  %12546 = vmatprep.subr.bf16.mxu0 %v13348_v59 }
 0x2ec   : > { %550 = vst [vmem:[#allocation3 + $0xc] sm:$0x1] %v549_v8  ;;  %523 = vst [vmem:[#allocation3 + $0x10] sm:$0x1] %v522_v62  ;;  %v561_v27 = vsel %vm13607_vm6, 0, %v560_v4  ;;  %12547 = vmatpush3.bf16.msra.mxu0 %v13348_v59  ;;  %v13349_v40 = vld [vmem:[%s16709_s5 + $0x28] sm:$0xff]  }
 0x2ed   : > { %12495 = vmatmul.mubr.msk.bf16.gmra.mrb[0].mxu1 %vm2017_vm11, %v11200_v51  ;;  %v16946_v51 = vcombine.low %v16944_v46, %v16945_v17  ;;  %553 = vst [vmem:[#allocation3 + $0x14] sm:$0x1] %v552_v15  ;;  %559 = vst [vmem:[#allocation3 + $0x24] sm:$0x1] %v558_v42  ;;  %v515_v45 = vld [vmem:[#allocation3] sm:$0x1]  ;;  %12548 = vmatprep.subr.bf16.mxu0 %v13349_v40 }
 0x2ee   : > { %12498 = vmatprep.mubr.msk.bf16.mxu1 %vm2017_vm11, %v11201_v30  ;;  %v16950_v30 = vld [vmem:[#allocation53_spill] sm:$0xff]  ;;  %562 = vst [vmem:[#allocation3 + $0x2c] sm:$0x1] %v561_v27  ;;  %v516_v16 = vsel %vm13557_vm4, 0, %v515_v45  ;;  %v539_v61 = vld [vmem:[#allocation3 + $0x40] sm:$0x1] }
 0x2ef   : > { %v16952_v57 = vcombine.low %v16950_v30, %v16951_v26  ;;  %v566_v0 = vld [vmem:[#allocation3 + $0x3c] sm:$0x1]  ;;  %517 = vst [vmem:[#allocation3] sm:$0x1] %v516_v16  ;;  %v569_v28 = vld [vmem:[#allocation3 + $0x44] sm:$0x1] }
 0x2f0   : > { %12549 = vmatpush3.bf16.msra.mxu0 %v13349_v40  ;;  %v13350_v18 = vld [vmem:[%s16709_s5 + $0x30] sm:$0xff]   ;;  %v13351_v37 = vld [vmem:[%s16709_s5 + $0x38] sm:$0xff]   ;;  %v13352_v2 = vld [vmem:[%s16709_s5] sm:$0xff]  }
 0x2f1   : > { %12550 = vmatprep.subr.bf16.mxu0 %v13350_v18  ;;  %v15599_v55 = vld [vmem:[%s16708_s4] ss:$0 sm:$0xff]  ;;  %v16959_v1 = vld [vmem:[#allocation20_spill] sm:$0xff]  ;;  %v16960_v13 = vld [vmem:[#allocation21_spill] sm:$0xff] }
 0x2f2   : > { %v16958_v39 = vld [vmem:[#allocation19_spill] sm:$0xff]  ;;  %v16961_v26 = vld [vmem:[#allocation22_spill] sm:$0xff]  ;;  %v16965_v59 = vld [vmem:[#allocation60_spill] sm:$0xff] }
 0x2f3   : > { %v16962_v15 = vld [vmem:[#allocation23_spill] sm:$0xff]  ;;  %v16963_v50 = vld [vmem:[#allocation58_spill] sm:$0xff]  ;;  %v13372_v63 = vld [vmem:[%s16709_s5 + $0x88] sm:$0xff]  }
 0x2f4   : > { %12551 = vmatpush3.bf16.msra.mxu0 %v13350_v18  ;;  %v16964_v4 = vld [vmem:[#allocation59_spill] sm:$0xff] }
 0x2f5   : > { %12499 = vmatmul.mubr.msk.bf16.gmra.mrb[4].mxu1 %vm2017_vm11, %v11202_v29  ;;  %v555_v29 = vsel %vm13607_vm6, 0, %v554_v24  ;;  %12552 = vmatprep.subr.bf16.mxu0 %v13351_v37  ;;  %v6513_v16 = vld [vmem:[#allocation3 + $0x8] sm:$0x2] }
 0x2f6   : > { %12502 = vmatprep.mubr.msk.bf16.mxu1 %vm2017_vm11, %v11203_v35  ;;  %556 = vst [vmem:[#allocation3 + $0x1c] sm:$0x1] %v555_v29  ;;  %v528_v35 = vsel %vm13557_vm4, 0, %v527_v25  ;;  %v6900_v17 = vld [vmem:[#allocation3] sm:$0xf] }
 0x2f7   : > { %529 = vst [vmem:[#allocation3 + $0x20] sm:$0x1] %v528_v35  ;;  %v6928_v5 = vshll.u32 %v6900_v17, 16 }
 0x2f8   : > { %12553 = vmatpush3.bf16.msra.mxu0 %v13351_v37  ;;  %v6614_v37 = vld [vmem:[#allocation3 + $0x8] sm:$0x4] }
 0x2f9   : > { %12562 = vmatprep.subr.bf16.mxu0 %v13352_v2  ;;  %v6930_v29 = vrot.slane %v6928_v5, 5 }
 0x2fd   : > { %12503 = vmatmul.mubr.msk.bf16.gmra.mrb[8].mxu1 %vm2017_vm11, %v11204_v49  ;;  %v530_v49 = vld [vmem:[#allocation3 + $0x28] sm:$0x1] }
 0x2fe   : > { %12514 = vmatprep.mubr.msk.bf16.mxu1 %vm2017_vm11, %v16913_v53  ;;  %v531_v53 = vsel %vm13557_vm4, 0, %v530_v49 }
 0x2ff   : > { %532 = vst [vmem:[#allocation3 + $0x28] sm:$0x1] %v531_v53 }
 0x305   : > { %12515 = vmatmul.mubr.msk.bf16.vlgmr.msra.gmra.mrb[12].mxu1 %vm2017_vm11, %v16916_v44  ;;  %v533_v44 = vld [vmem:[#allocation3 + $0x30] sm:$0x1] }
 0x306   : > { %12518 = vmatprep.mubr.msk.bf16.mxu1 %vm2017_vm11, %v16919_v36  ;;  %v534_v34 = vsel %vm13557_vm4, 0, %v533_v44  ;;  %v564_v36 = vsel %vm13607_vm6, 0, %v563_v7 }
 0x307   : > { %535 = vst [vmem:[#allocation3 + $0x30] sm:$0x1] %v534_v34  ;;  %565 = vst [vmem:[#allocation3 + $0x34] sm:$0x1] %v564_v36 }
 0x30d   : > { %12519 = vmatmul.mubr.msk.bf16.gmra.mrb[16].mxu1 %vm2017_vm11, %v16922_v41  ;;  %v537_v41 = vsel %vm13557_vm4, 0, %v536_v23 }
 0x30e   : > { %12522 = vmatprep.mubr.msk.bf16.mxu1 %vm2017_vm11, %v16925_v48  ;;  %538 = vst [vmem:[#allocation3 + $0x38] sm:$0x1] %v537_v41  ;;  %v545_v48 = vld [vmem:[#allocation3 + $0x4] sm:$0x1] }
 0x30f   : > { %v546_v6 = vsel %vm13607_vm6, 0, %v545_v48 }
 0x310   : > { %547 = vst [vmem:[#allocation3 + $0x4] sm:$0x1] %v546_v6 }
 0x315   : > { %12523 = vmatmul.mubr.msk.bf16.gmra.mrb[20].mxu1 %vm2017_vm11, %v16928_v54  ;;  %v567_v54 = vsel %vm13607_vm6, 0, %v566_v0 }
 0x316   : > { %12526 = vmatprep.mubr.msk.bf16.mxu1 %vm2017_vm11, %v16931_v10  ;;  %568 = vst [vmem:[#allocation3 + $0x3c] sm:$0x1] %v567_v54  ;;  %v540_v10 = vsel %vm13557_vm4, 0, %v539_v61  ;;  %v6486_v61 = vld [vmem:[#allocation3 + $0x8] sm:$0x1] }
 0x317   : > { %541 = vst [vmem:[#allocation3 + $0x40] sm:$0x1] %v540_v10  ;;  %v6916_v41 = vld [vmem:[#allocation3 + $0x4] sm:$0x1] }
 0x318   : > { %v6934_v54 = vshll.u32 %v6916_v41, 16 }
 0x31d   : > { %12527 = vmatmul.mubr.msk.bf16.gmra.mrb[24].mxu1 %vm2017_vm11, %v16934_v56  ;;  %v570_v56 = vsel %vm13607_vm6, 0, %v569_v28 }
 0x31e   : > { %12530 = vmatprep.mubr.msk.bf16.mxu1 %vm2017_vm11, %v16937_v33  ;;  %571 = vst [vmem:[#allocation3 + $0x44] sm:$0x1] %v570_v56  ;;  %v13353_v56 = vld [vmem:[%s16709_s5 + $0x8] sm:$0xff]  }
 0x325   : > { %12531 = vmatmul.mubr.msk.bf16.gmra.mrb[28].mxu1 %vm2017_vm11, %v16940_v60 }
 0x326   : > { %12534 = vmatprep.mubr.msk.bf16.mxu1 %vm2017_vm11, %v16943_v32 }
 0x32d   : > { %12535 = vmatmul.mubr.msk.bf16.gmra.mrb[0].mxu1 %vm2017_vm11, %v16946_v51 }
 0x32e   : > { %12538 = vmatprep.mubr.msk.bf16.mxu1 %vm2017_vm11, %v16949_v3 }
 0x335   : > { %12539 = vmatmul.mubr.msk.bf16.gmra.mrb[4].mxu1 %vm2017_vm11, %v16952_v57 }
 0x336   : > { %12542 = vmatprep.mubr.msk.bf16.mxu1 %vm2017_vm11, %v16955_v12  ;;  %v6925_v12 = vshrl.u32 %v6900_v17, 16 }
 0x338   : > { %v6927_v24 = vrot.slane %v6925_v12, 4  ;;  %v15645_v12 = vrot.slane %v6934_v54, 5 }
 0x33a   : > { %v6931_v6 = vor.u32 %v6930_v29, %v6927_v24 }
 0x33d   : > { %12543 = vmatmul.mubr.msk.bf16.gmra.mrb[8].mxu1 %vm2017_vm11, %v11264_v19  ;;  %v525_v19 = vsel %vm13557_vm4, 0, %v524_v20 }
 0x33e   : > { %526 = vst [vmem:[#allocation3 + $0x18] sm:$0x1] %v525_v19 }
 0x3d8   : > { %v12516_v33 = vpop.f32.mrb[12].mxu1 }
 0x3d9   : > { %v12858_v60 = vadd.f32 %v12516_v33, %v16958_v39  ;;  %v6143_v58 = vpop.f32.mrb[13].mxu1 }
 0x3da   : > { %v12859_v32 = vadd.f32 %v6143_v58, %v16959_v1  ;;  %v12517_v46 = vpop.f32.mrb[14].mxu1 }
 0x3db   : > { %v6311_v51 = vadd.f32 %v12858_v60, %v15599_v55  ;;  %v12860_v14 = vadd.f32 %v12517_v46, %v16960_v13  ;;  %v6146_v3 = vpop.f32.mrb[15].mxu1 }
 0x3dc   : > { %v6309_v30 = vadd.f32 %v12859_v32, %v15599_v55  ;;  %v12861_v57 = vadd.f32 %v6146_v3, %v16961_v26  ;;  %v6786_v32 = vld [vmem:[#allocation3 + $0x8] sm:$0x8] }
 0x3dd   : > { %v6343_v21 = vmax.f32 %v6311_v51, 0.0  ;;  %v6312_v9 = vadd.f32 %v12860_v14, %v15599_v55  ;;  %v16970_v51 = vld [vmem:[#allocation24_spill] sm:$0xff] }
 0x3de   : > { %v6341_v38 = vmax.f32 %v6309_v30, 0.0  ;;  %v6310_v47 = vadd.f32 %v12861_v57, %v15599_v55  ;;  %v6876_v57 = vld [vmem:[#allocation3 + $0xc] sm:$0x1] }
 0x3df   : > { %v6344_v8 = vmax.f32 %v6312_v9, 0.0  ;;  %v15643_v9 = vrot.slane %v6931_v6, 4 }
 0x3e0   : > { %v6373_v43 = vmax.f32 %v6341_v38, %v6343_v21  ;;  %v6342_v62 = vmax.f32 %v6310_v47, 0.0  ;;  %v12520_v11 = vpop.f32.mrb[16].mxu1 }
 0x3e1   : > { %v12862_v20 = vadd.f32 %v12520_v11, %v16962_v15  ;;  %v6159_v19 = vpop.f32.mrb[17].mxu1  ;;  %v16973_v15 = vld [vmem:[#allocation25_spill] sm:$0xff]  ;;  %v6937_v41 = vsel %vm13672_vm10, %v15643_v9, %v15645_v12 }
 0x3e2   : > { %v6397_v25 = vrot.slane %v6373_v43, 1  ;;  %v6374_v35 = vmax.f32 %v6342_v62, %v6344_v8  ;;  %v12863_v42 = vadd.f32 %v6159_v19, %v16963_v50  ;;  %v12521_v49 = vpop.f32.mrb[18].mxu1  ;;  %v6516_v50 = vld [vmem:[#allocation3 + $0x10] sm:$0x2] }
 0x3e3   : > { %v6315_v53 = vadd.f32 %v12862_v20, %v15599_v55  ;;  %v12864_v27 = vadd.f32 %v12521_v49, %v16964_v4  ;;  %v6162_v44 = vpop.f32.mrb[19].mxu1 }
 0x3e4   : > { %v6413_v34 = vmax.f32 %v6373_v43, %v6397_v25  ;;  %v6646_v7 = vrot.slane %v6374_v35, 1  ;;  %v6313_v36 = vadd.f32 %v12863_v42, %v15599_v55  ;;  %v12865_v23 = vadd.f32 %v6162_v44, %v16965_v59  ;;  %v6617_v59 = vld [vmem:[#allocation3 + $0x10] sm:$0x4] }
 0x3e5   : > { %v6347_v48 = vmax.f32 %v6315_v53, 0.0  ;;  %v6316_v0 = vadd.f32 %v12864_v27, %v15599_v55  ;;  %v16976_v53 = vld [vmem:[#allocation26_spill] sm:$0xff]  ;;  %v16977_v27 = vld [vmem:[#allocation27_spill] sm:$0xff] }
 0x3e6   : > { %v6421_v40 = vpack.c.bf16 %v6413_v34, %v6413_v34  ;;  %v6662_v10 = vmax.f32 %v6374_v35, %v6646_v7  ;;  %v6345_v18 = vmax.f32 %v6313_v36, 0.0  ;;  %v6314_v28 = vadd.f32 %v12865_v23, %v15599_v55  ;;  %v6489_v36 = vld [vmem:[#allocation3 + $0x10] sm:$0x1]  ;;  %v13356_v35 = vld [vmem:[%s16709_s5 + $0x18] sm:$0xff]  }
 0x3e7   : > { %v6348_v2 = vmax.f32 %v6316_v0, 0.0 }
 0x3e8   : > { %v6454_v33 = vshll.u32 %v6421_v40, 16  ;;  %v6514_v39 = vsel %vm15616_vm9, %v6421_v40, %v6513_v16  ;;  %v11302_v60 = vrot.slane %v6421_v40, 9  ;;  %v15630_v58 = vpack.c.bf16 %v6662_v10, %v6662_v10  ;;  %v12524_v1 = vpop.f32.mrb[20].mxu1 }
 0x3e9   : > { %6515 = vst [vmem:[#allocation3 + $0x8] sm:$0x2] %v6514_v39  ;;  %v6375_v46 = vmax.f32 %v6345_v18, %v6347_v48  ;;  %v6346_v17 = vmax.f32 %v6314_v28, 0.0  ;;  %v12866_v13 = vadd.f32 %v12524_v1, %v16970_v51  ;;  %v6175_v14 = vpop.f32.mrb[21].mxu1 }
 0x3ea   : > { %v6487_v3 = vsel %vm13607_vm6, %v6454_v33, %v6486_v61  ;;  %v6615_v30 = vsel %vm15624_vm14, %v11302_v60, %v6614_v37  ;;  %v12525_v21 = vpop.f32.mrb[22].mxu1  ;;  %v6768_v5 = vrot.slane %v15630_v58, 6  ;;  %v11318_v38 = vrot.slane %v15630_v58, 11 }
 0x3eb   : > { %6488 = vst [vmem:[#allocation3 + $0x8] sm:$0x1] %v6487_v3  ;;  %6616 = vst [vmem:[#allocation3 + $0x8] sm:$0x4] %v6615_v30  ;;  %v6398_v47 = vrot.slane %v6375_v46, 1  ;;  %v6376_v8 = vmax.f32 %v6346_v17, %v6348_v2  ;;  %v6178_v43 = vpop.f32.mrb[23].mxu1  ;;  %v6319_v11 = vadd.f32 %v12866_v13, %v15599_v55  ;;  %v12867_v20 = vadd.f32 %v6175_v14, %v16973_v15 }
 0x3ec   : > { %v6703_v62 = vshll.u32 %v15630_v58, 16  ;;  %v6787_v19 = vsel %vm15639_vm3, %v6768_v5, %v6786_v32  ;;  %v6877_v24 = vsel %vm13557_vm4, %v11318_v38, %v6876_v57  ;;  %v12868_v4 = vadd.f32 %v12525_v21, %v16976_v53  ;;  %v6789_v3 = vld [vmem:[#allocation3 + $0x10] sm:$0x8]  ;;  %v6879_v38 = vld [vmem:[#allocation3 + $0x14] sm:$0x1]  ;;  %v16983_v15 = vld [vmem:[#allocation29_spill] sm:$0xff] }
 0x3ed   : > { %v6414_v29 = vmax.f32 %v6375_v46, %v6398_v47  ;;  %v6647_v25 = vrot.slane %v6376_v8, 1  ;;  %6788 = vst [vmem:[#allocation3 + $0x8] sm:$0x8] %v6787_v19  ;;  %6878 = vst [vmem:[#allocation3 + $0xc] sm:$0x1] %v6877_v24  ;;  %v6351_v42 = vmax.f32 %v6319_v11, 0.0  ;;  %v6317_v49 = vadd.f32 %v12867_v20, %v15599_v55 }
 0x3ee   : > { %v12869_v44 = vadd.f32 %v6178_v43, %v16977_v27  ;;  %v11294_v34 = vrot.slane %v6454_v33, 9  ;;  %v6705_v48 = vrot.slane %v6703_v62, 6  ;;  %v6320_v54 = vadd.f32 %v12868_v4, %v15599_v55  ;;  %v16984_v19 = vld [vmem:[#allocation61_spill] sm:$0xff] }
 0x3ef   : > { %v6422_v7 = vpack.c.bf16 %v6414_v29, %v6414_v29  ;;  %v6663_v23 = vmax.f32 %v6376_v8, %v6647_v25  ;;  %v6349_v6 = vmax.f32 %v6317_v49, 0.0  ;;  %v6810_v17 = vrot.slane %v6703_v62, 7  ;;  %v16982_v62 = vld [vmem:[#allocation28_spill] sm:$0xff] }
 0x3f0   : > { %v6563_v16 = vld [vmem:[#allocation3 + $0x8] sm:$0x2]  ;;  %v6318_v40 = vadd.f32 %v12869_v44, %v15599_v55  ;;  %v12528_v61 = vpop.f32.mrb[24].mxu1  ;;  %v6352_v58 = vmax.f32 %v6320_v54, 0.0 }
 0x3f1   : > { %v6564_v10 = vsel %vm15658_vm7, %v11294_v34, %v6563_v16  ;;  %v6457_v18 = vshll.u32 %v6422_v7, 16  ;;  %v6517_v28 = vsel %vm15616_vm9, %v6422_v7, %v6516_v50  ;;  %v11303_v37 = vrot.slane %v6422_v7, 9  ;;  %v6191_v2 = vpop.f32.mrb[25].mxu1  ;;  %v6519_v34 = vld [vmem:[#allocation3 + $0x18] sm:$0x2] }
 0x3f2   : > { %6565 = vst [vmem:[#allocation3 + $0x8] sm:$0x2] %v6564_v10  ;;  %v6744_v33 = vld [vmem:[#allocation3 + $0x8] sm:$0x4]  ;;  %6518 = vst [vmem:[#allocation3 + $0x10] sm:$0x2] %v6517_v28  ;;  %v11782_v39 = vpack.c.bf16 %v6663_v23, %v6663_v23  ;;  %v6377_v60 = vmax.f32 %v6349_v6, %v6351_v42  ;;  %v12870_v11 = vadd.f32 %v12528_v61, %v16982_v62 }
 0x3f3   : > { %v6350_v1 = vmax.f32 %v6318_v40, 0.0  ;;  %v12529_v32 = vpop.f32.mrb[26].mxu1  ;;  %v6745_v46 = vsel %vm15671_vm2, %v6705_v48, %v6744_v33  ;;  %v6490_v13 = vsel %vm13607_vm6, %v6457_v18, %v6489_v36  ;;  %v6618_v14 = vsel %vm15624_vm14, %v11303_v37, %v6617_v59  ;;  %v6620_v7 = vld [vmem:[#allocation3 + $0x18] sm:$0x4]  ;;  %v16985_v23 = vld [vmem:[#allocation62_spill] sm:$0xff]  ;;  %v16986_v10 = vld [vmem:[#allocation63_spill] sm:$0xff] }
 0x3f4   : > { %v6194_v30 = vpop.f32.mrb[27].mxu1  ;;  %6746 = vst [vmem:[#allocation3 + $0x8] sm:$0x4] %v6745_v46  ;;  %6491 = vst [vmem:[#allocation3 + $0x10] sm:$0x1] %v6490_v13  ;;  %v6707_v57 = vshll.u32 %v11782_v39, 16  ;;  %v12871_v20 = vadd.f32 %v6191_v2, %v16983_v15  ;;  %v12872_v24 = vadd.f32 %v12529_v32, %v16984_v19  ;;  %v6323_v27 = vadd.f32 %v12870_v11, %v15599_v55 }
 0x3f5   : > { %6619 = vst [vmem:[#allocation3 + $0x10] sm:$0x4] %v6618_v14  ;;  %v6769_v21 = vrot.slane %v11782_v39, 6  ;;  %v11319_v5 = vrot.slane %v11782_v39, 11  ;;  %v6399_v47 = vrot.slane %v6377_v60, 1  ;;  %v6378_v43 = vmax.f32 %v6350_v1, %v6352_v58 }
 0x3f6   : > { %v6828_v8 = vld [vmem:[#allocation3 + $0x8] sm:$0x8]  ;;  %v11295_v25 = vrot.slane %v6457_v18, 9  ;;  %v6709_v50 = vrot.slane %v6707_v57, 6  ;;  %v6811_v44 = vrot.slane %v6707_v57, 7  ;;  %v6321_v36 = vadd.f32 %v12871_v20, %v15599_v55 }
 0x3f7   : > { %v6829_v29 = vsel %vm15685_vm5, %v6810_v17, %v6828_v8  ;;  %v6790_v42 = vsel %vm15639_vm3, %v6769_v21, %v6789_v3  ;;  %v6880_v49 = vsel %vm13557_vm4, %v11319_v5, %v6879_v38  ;;  %v6415_v53 = vmax.f32 %v6377_v60, %v6399_v47  ;;  %v15707_v37 = vld [vmem:[#allocation3 + $0xc] sm:$0x1]  ;;  %v6492_v33 = vld [vmem:[#allocation3 + $0x18] sm:$0x1]  ;;  %v6882_v62 = vld [vmem:[#allocation3 + $0x1c] sm:$0x1] }
 0x3f8   : > { %6830 = vst [vmem:[#allocation3 + $0x8] sm:$0x8] %v6829_v29  ;;  %6791 = vst [vmem:[#allocation3 + $0x10] sm:$0x8] %v6790_v42  ;;  %v6648_v4 = vrot.slane %v6378_v43, 1  ;;  %v6324_v59 = vadd.f32 %v12872_v24, %v15599_v55  ;;  %v12873_v16 = vadd.f32 %v6194_v30, %v16985_v23  ;;  %v12532_v48 = vpop.f32.mrb[28].mxu1 }
 0x3f9   : > { %6881 = vst [vmem:[#allocation3 + $0x14] sm:$0x1] %v6880_v49  ;;  %v6566_v6 = vld [vmem:[#allocation3 + $0x10] sm:$0x2]  ;;  %v6423_v54 = vpack.c.bf16 %v6415_v53, %v6415_v53  ;;  %v6355_v61 = vmax.f32 %v6323_v27, 0.0  ;;  %v12874_v18 = vadd.f32 %v12532_v48, %v16986_v10  ;;  %v6207_v28 = vpop.f32.mrb[29].mxu1 }
 0x3fa   : > { %v6664_v40 = vmax.f32 %v6378_v43, %v6648_v4  ;;  %v6567_v2 = vsel %vm15658_vm7, %v11295_v25, %v6566_v6  ;;  %v6353_v39 = vmax.f32 %v6321_v36, 0.0  ;;  %v6356_v60 = vmax.f32 %v6324_v59, 0.0  ;;  %v12533_v1 = vpop.f32.mrb[30].mxu1  ;;  %v6792_v43 = vld [vmem:[#allocation3 + $0x18] sm:$0x8]  ;;  %v16987_v59 = vld [vmem:[#allocation64_spill] sm:$0xff] }
 0x3fb   : > { %v6322_v58 = vadd.f32 %v12873_v16, %v15599_v55  ;;  %6568 = vst [vmem:[#allocation3 + $0x10] sm:$0x2] %v6567_v2  ;;  %v6460_v46 = vshll.u32 %v6423_v54, 16  ;;  %v6520_v17 = vsel %vm15616_vm9, %v6423_v54, %v6519_v34  ;;  %v11304_v13 = vrot.slane %v6423_v54, 9  ;;  %v6210_v3 = vpop.f32.mrb[31].mxu1  ;;  %v16989_v48 = vld [vmem:[#allocation66_spill] sm:$0xff] }
 0x3fc   : > { %v6747_v32 = vld [vmem:[#allocation3 + $0x10] sm:$0x4]  ;;  %v11783_v14 = vpack.c.bf16 %v6664_v40, %v6664_v40  ;;  %6521 = vst [vmem:[#allocation3 + $0x18] sm:$0x2] %v6520_v17  ;;  %v6379_v57 = vmax.f32 %v6353_v39, %v6355_v61  ;;  %v6948_v5 = vshll.u32 %v15707_v37, 16  ;;  %v15722_v11 = vadd.f32 %v12874_v18, %v15599_v55  ;;  %v16990_v54 = vld [vmem:[#allocation42_spill] sm:$0xff] }
 0x3fd   : > { %v6748_v30 = vsel %vm15671_vm2, %v6709_v50, %v6747_v32  ;;  %v6354_v21 = vmax.f32 %v6322_v58, 0.0  ;;  %v6493_v38 = vsel %vm13607_vm6, %v6460_v46, %v6492_v33  ;;  %v6621_v47 = vsel %vm15624_vm14, %v11304_v13, %v6620_v7  ;;  %v6522_v36 = vld [vmem:[#allocation3 + $0x20] sm:$0x2]  ;;  %v6495_v18 = vld [vmem:[#allocation3 + $0x20] sm:$0x1] }
 0x3fe   : > { %6749 = vst [vmem:[#allocation3 + $0x10] sm:$0x4] %v6748_v30  ;;  %v6711_v8 = vshll.u32 %v11783_v14, 16  ;;  %6494 = vst [vmem:[#allocation3 + $0x18] sm:$0x1] %v6493_v38  ;;  %v6770_v20 = vrot.slane %v11783_v14, 6  ;;  %v12875_v23 = vadd.f32 %v6207_v28, %v16987_v59  ;;  %v12877_v6 = vadd.f32 %v6210_v3, %v16989_v48 }
 0x3ff   : > { %v6831_v15 = vld [vmem:[#allocation3 + $0x10] sm:$0x8]  ;;  %6622 = vst [vmem:[#allocation3 + $0x18] sm:$0x4] %v6621_v47  ;;  %v11320_v19 = vrot.slane %v11783_v14, 11  ;;  %v6400_v24 = vrot.slane %v6379_v57, 1  ;;  %v6380_v29 = vmax.f32 %v6354_v21, %v6356_v60 }
 0x400   : > { %v6832_v25 = vsel %vm15685_vm5, %v6811_v44, %v6831_v15  ;;  %v11296_v50 = vrot.slane %v6460_v46, 9  ;;  %v6713_v42 = vrot.slane %v6711_v8, 6  ;;  %v15726_v49 = vrot.slane %v6711_v8, 7  ;;  %v12536_v7 = vpop.f32.mrb[0].mxu1  ;;  %v16988_v44 = vld [vmem:[#allocation65_spill] sm:$0xff]  ;;  %v16991_v60 = vld [vmem:[#allocation7_spill] sm:$0xff] }
 0x401   : > { %6833 = vst [vmem:[#allocation3 + $0x10] sm:$0x8] %v6832_v25  ;;  %v6793_v53 = vsel %vm15639_vm3, %v6770_v20, %v6792_v43  ;;  %v6883_v4 = vsel %vm13557_vm4, %v11320_v19, %v6882_v62  ;;  %v6416_v27 = vmax.f32 %v6379_v57, %v6400_v24  ;;  %v6649_v34 = vrot.slane %v6380_v29, 1  ;;  %v6223_v61 = vpop.f32.mrb[1].mxu1  ;;  %v6623_v2 = vld [vmem:[#allocation3 + $0x20] sm:$0x4] }
 0x402   : > { %6794 = vst [vmem:[#allocation3 + $0x18] sm:$0x8] %v6793_v53  ;;  %6884 = vst [vmem:[#allocation3 + $0x1c] sm:$0x1] %v6883_v4  ;;  %v12876_v16 = vadd.f32 %v12533_v1, %v16988_v44  ;;  %v12878_v40 = vadd.f32 %v12536_v7, %v16990_v54  ;;  %v6359_v39 = vmax.f32 %v15722_v11, 0.0  ;;  %v12879_v58 = vadd.f32 %v6223_v61, %v16991_v60  ;;  %v12537_v32 = vpop.f32.mrb[2].mxu1 }
 0x403   : > { %v6424_v10 = vpack.c.bf16 %v6416_v27, %v6416_v27  ;;  %v6665_v33 = vmax.f32 %v6380_v29, %v6649_v34  ;;  %v6569_v46 = vld [vmem:[#allocation3 + $0x18] sm:$0x2]  ;;  %v6325_v17 = vadd.f32 %v12875_v23, %v15599_v55  ;;  %v6326_v1 = vadd.f32 %v12877_v6, %v15599_v55  ;;  %v6226_v14 = vpop.f32.mrb[3].mxu1  ;;  %v15742_v3 = vld [vmem:[#allocation3 + $0x8] sm:$0xf]  ;;  %v16992_v59 = vld [vmem:[#allocation10_spill] sm:$0xff] }
 0x404   : > { %v6328_v28 = vadd.f32 %v12876_v16, %v15599_v55  ;;  %v6331_v13 = vadd.f32 %v12878_v40, %v15599_v55  ;;  %v6570_v30 = vsel %vm15658_vm7, %v11296_v50, %v6569_v46  ;;  %v6795_v24 = vld [vmem:[#allocation3 + $0x20] sm:$0x8]  ;;  %v6939_v29 = vshrl.u32 %v15742_v3, 16  ;;  %v6885_v4 = vld [vmem:[#allocation3 + $0x24] sm:$0x1]  ;;  %v16995_v46 = vld [vmem:[#allocation51_spill] sm:$0xff] }
 0x405   : > { %v6463_v57 = vshll.u32 %v6424_v10, 16  ;;  %v6523_v21 = vsel %vm15616_vm9, %v6424_v10, %v6522_v36  ;;  %v11305_v38 = vrot.slane %v6424_v10, 9  ;;  %6571 = vst [vmem:[#allocation3 + $0x18] sm:$0x2] %v6570_v30  ;;  %v11784_v8 = vpack.c.bf16 %v6665_v33, %v6665_v33 }
 0x406   : > { %v6750_v47 = vld [vmem:[#allocation3 + $0x18] sm:$0x4]  ;;  %6524 = vst [vmem:[#allocation3 + $0x20] sm:$0x2] %v6523_v21  ;;  %v6357_v43 = vmax.f32 %v6325_v17, 0.0  ;;  %v6360_v62 = vmax.f32 %v6328_v28, 0.0  ;;  %v6329_v36 = vadd.f32 %v12879_v58, %v15599_v55  ;;  %v12880_v23 = vadd.f32 %v12537_v32, %v16992_v59 }
 0x407   : > { %v6358_v11 = vmax.f32 %v6326_v1, 0.0  ;;  %v6751_v15 = vsel %vm15671_vm2, %v6713_v42, %v6750_v47  ;;  %v6496_v20 = vsel %vm13607_vm6, %v6463_v57, %v6495_v18  ;;  %v6624_v19 = vsel %vm15624_vm14, %v11305_v38, %v6623_v2  ;;  %v16994_v58 = vld [vmem:[#allocation50_spill] sm:$0xff]  ;;  %v6525_v47 = vld [vmem:[#allocation3 + $0x28] sm:$0x2]  ;;  %v6888_v59 = vld [vmem:[#allocation3 + $0x2c] sm:$0x1] }
 0x408   : > { %6752 = vst [vmem:[#allocation3 + $0x18] sm:$0x4] %v6751_v15  ;;  %6497 = vst [vmem:[#allocation3 + $0x20] sm:$0x1] %v6496_v20  ;;  %v6715_v25 = vshll.u32 %v11784_v8, 16  ;;  %v6771_v50 = vrot.slane %v11784_v8, 6  ;;  %v6381_v27 = vmax.f32 %v6357_v43, %v6359_v39  ;;  %v6332_v39 = vadd.f32 %v12880_v23, %v15599_v55 }
 0x409   : > { %6625 = vst [vmem:[#allocation3 + $0x20] sm:$0x4] %v6624_v19  ;;  %v11321_v53 = vrot.slane %v11784_v8, 11  ;;  %v6834_v34 = vld [vmem:[#allocation3 + $0x18] sm:$0x8]  ;;  %v6382_v7 = vmax.f32 %v6358_v11, %v6360_v62  ;;  %v6363_v42 = vmax.f32 %v6331_v13, 0.0 }
 0x40a   : > { %v12540_v44 = vpop.f32.mrb[4].mxu1  ;;  %v6835_v16 = vsel %vm15685_vm5, %v15726_v49, %v6834_v34  ;;  %v11297_v48 = vrot.slane %v6463_v57, 9  ;;  %v6717_v6 = vrot.slane %v6715_v25, 6  ;;  %v6796_v54 = vsel %vm15639_vm3, %v6771_v50, %v6795_v24  ;;  %v16993_v49 = vld [vmem:[#allocation44_spill] sm:$0xff]  ;;  %v6626_v15 = vld [vmem:[#allocation3 + $0x28] sm:$0x4] }
 0x40b   : > { %v6239_v40 = vpop.f32.mrb[5].mxu1  ;;  %6836 = vst [vmem:[#allocation3 + $0x18] sm:$0x8] %v6835_v16  ;;  %6797 = vst [vmem:[#allocation3 + $0x20] sm:$0x8] %v6796_v54  ;;  %v6886_v61 = vsel %vm13557_vm4, %v11321_v53, %v6885_v4  ;;  %v6401_v10 = vrot.slane %v6381_v27, 1  ;;  %v12881_v60 = vadd.f32 %v6226_v14, %v16993_v49  ;;  %v12882_v32 = vadd.f32 %v12540_v44, %v16994_v58 }
 0x40c   : > { %v6650_v18 = vrot.slane %v6382_v7, 1  ;;  %v6361_v2 = vmax.f32 %v6329_v36, 0.0  ;;  %v15764_v33 = vpop.f32.mrb[6].mxu1  ;;  %6887 = vst [vmem:[#allocation3 + $0x24] sm:$0x1] %v6886_v61  ;;  %v12883_v17 = vadd.f32 %v6239_v40, %v16995_v46  ;;  %v6813_v13 = vrot.slane %v6715_v25, 7 }
 0x40d   : > { %v6242_v28 = vpop.f32.mrb[7].mxu1  ;;  %v6572_v1 = vld [vmem:[#allocation3 + $0x20] sm:$0x2]  ;;  %v6417_v30 = vmax.f32 %v6381_v27, %v6401_v10  ;;  %v6364_v8 = vmax.f32 %v6332_v39, 0.0  ;;  %v6330_v43 = vadd.f32 %v12881_v60, %v15599_v55  ;;  %v15773_v62 = vrot.slane %v6939_v29, 4 }
 0x40e   : > { %v6666_v57 = vmax.f32 %v6382_v7, %v6650_v18  ;;  %v6383_v21 = vmax.f32 %v6361_v2, %v6363_v42  ;;  %v6573_v38 = vsel %vm15658_vm7, %v11297_v48, %v6572_v1  ;;  %v6335_v24 = vadd.f32 %v12882_v32, %v15599_v55  ;;  %v6498_v50 = vld [vmem:[#allocation3 + $0x28] sm:$0x1]  ;;  %v6798_v53 = vld [vmem:[#allocation3 + $0x28] sm:$0x8]  ;;  %v6528_v46 = vld [vmem:[#allocation3 + $0x30] sm:$0x2] }
 0x40f   : > { %6574 = vst [vmem:[#allocation3 + $0x20] sm:$0x2] %v6573_v38  ;;  %v6425_v11 = vpack.c.bf16 %v6417_v30, %v6417_v30  ;;  %v6362_v4 = vmax.f32 %v6330_v43, 0.0  ;;  %v6333_v27 = vadd.f32 %v12883_v17, %v15599_v55  ;;  %v6942_v34 = vshll.u32 %v15742_v3, 16  ;;  %v6501_v38 = vld [vmem:[#allocation3 + $0x30] sm:$0x1] }
 0x410   : > { %v6753_v14 = vld [vmem:[#allocation3 + $0x20] sm:$0x4]  ;;  %v11785_v20 = vpack.c.bf16 %v6666_v57, %v6666_v57  ;;  %v6402_v19 = vrot.slane %v6383_v21, 1  ;;  %v12544_v23 = vpop.f32.mrb[8].mxu1  ;;  %v6367_v2 = vmax.f32 %v6335_v24, 0.0 }
 0x411   : > { %v6754_v25 = vsel %vm15671_vm2, %v6717_v6, %v6753_v14  ;;  %v6466_v29 = vshll.u32 %v6425_v11, 16  ;;  %v6526_v7 = vsel %vm15616_vm9, %v6425_v11, %v6525_v47  ;;  %v11306_v42 = vrot.slane %v6425_v11, 9  ;;  %v15782_v40 = vpop.f32.mrb[9].mxu1  ;;  %v6629_v47 = vld [vmem:[#allocation3 + $0x30] sm:$0x4]  ;;  %v16997_v14 = vld [vmem:[#allocation54_spill] sm:$0xff] }
 0x412   : > { %6755 = vst [vmem:[#allocation3 + $0x20] sm:$0x4] %v6754_v25  ;;  %v6719_v36 = vshll.u32 %v11785_v20, 16  ;;  %v6837_v44 = vld [vmem:[#allocation3 + $0x20] sm:$0x8]  ;;  %v6772_v16 = vrot.slane %v11785_v20, 6  ;;  %v6418_v6 = vmax.f32 %v6383_v21, %v6402_v19  ;;  %v6384_v54 = vmax.f32 %v6362_v4, %v6364_v8 }
 0x413   : > { %6527 = vst [vmem:[#allocation3 + $0x28] sm:$0x2] %v6526_v7  ;;  %v11322_v48 = vrot.slane %v11785_v20, 11  ;;  %v6838_v61 = vsel %vm15685_vm5, %v6813_v13, %v6837_v44  ;;  %v6499_v10 = vsel %vm13607_vm6, %v6466_v29, %v6498_v50  ;;  %v6627_v18 = vsel %vm15624_vm14, %v11306_v42, %v6626_v15  ;;  %v15790_v39 = vpop.f32.mrb[10].mxu1  ;;  %v16996_v8 = vld [vmem:[#allocation14_spill] sm:$0xff]  ;;  %v16998_v15 = vld [vmem:[#allocation15_spill] sm:$0xff] }
 0x414   : > { %6839 = vst [vmem:[#allocation3 + $0x20] sm:$0x8] %v6838_v61  ;;  %6500 = vst [vmem:[#allocation3 + $0x28] sm:$0x1] %v6499_v10  ;;  %v11298_v49 = vrot.slane %v6466_v29, 9  ;;  %v6721_v60 = vrot.slane %v6719_v36, 6  ;;  %v6799_v58 = vsel %vm15639_vm3, %v6772_v16, %v6798_v53  ;;  %v6426_v1 = vpack.c.bf16 %v6418_v6, %v6418_v6 }
 0x415   : > { %6628 = vst [vmem:[#allocation3 + $0x28] sm:$0x4] %v6627_v18  ;;  %v6889_v32 = vsel %vm13557_vm4, %v11322_v48, %v6888_v59  ;;  %v15796_v17 = vpop.f32.mrb[11].mxu1  ;;  %6800 = vst [vmem:[#allocation3 + $0x28] sm:$0x8] %v6799_v58  ;;  %v6651_v13 = vrot.slane %v6384_v54, 1  ;;  %v12884_v43 = vadd.f32 %v15764_v33, %v16996_v8  ;;  %v12885_v11 = vadd.f32 %v6242_v28, %v16997_v14 }
 0x416   : > { %6890 = vst [vmem:[#allocation3 + $0x2c] sm:$0x1] %v6889_v32  ;;  %v6365_v30 = vmax.f32 %v6333_v27, 0.0  ;;  %v6944_v57 = vrot.slane %v6942_v34, 5  ;;  %v6814_v21 = vrot.slane %v6719_v36, 7  ;;  %v12886_v20 = vadd.f32 %v12544_v23, %v16998_v15 }
 0x417   : > { %v6469_v19 = vshll.u32 %v6426_v1, 16  ;;  %v6529_v24 = vsel %vm15616_vm9, %v6426_v1, %v6528_v46  ;;  %v11307_v25 = vrot.slane %v6426_v1, 9  ;;  %v6667_v50 = vmax.f32 %v6384_v54, %v6651_v13  ;;  %v6801_v42 = vld [vmem:[#allocation3 + $0x30] sm:$0x8]  ;;  %v6891_v59 = vld [vmem:[#allocation3 + $0x34] sm:$0x1] }
 0x418   : > { %6530 = vst [vmem:[#allocation3 + $0x30] sm:$0x2] %v6529_v24  ;;  %v6385_v53 = vmax.f32 %v6365_v30, %v6367_v2  ;;  %v6945_v4 = vor.u32 %v6944_v57, %v15773_v62  ;;  %v6336_v27 = vadd.f32 %v12884_v43, %v15599_v55  ;;  %v6334_v34 = vadd.f32 %v12885_v11, %v15599_v55  ;;  %v6531_v30 = vld [vmem:[#allocation3 + $0x38] sm:$0x2]  ;;  %v6504_v43 = vld [vmem:[#allocation3 + $0x38] sm:$0x1] }
 0x419   : > { %v6502_v33 = vsel %vm13607_vm6, %v6469_v19, %v6501_v38  ;;  %v6630_v28 = vsel %vm15624_vm14, %v11307_v25, %v6629_v47  ;;  %v15811_v7 = vpack.c.bf16 %v6667_v50, %v6667_v50  ;;  %v6950_v36 = vrot.slane %v6948_v5, 5  ;;  %v6632_v38 = vld [vmem:[#allocation3 + $0x38] sm:$0x4]  ;;  %v17001_v24 = vld [vmem:[#allocation18_spill] sm:$0xff] }
 0x41a   : > { %v6575_v29 = vld [vmem:[#allocation3 + $0x28] sm:$0x2]  ;;  %6503 = vst [vmem:[#allocation3 + $0x30] sm:$0x1] %v6502_v33  ;;  %6631 = vst [vmem:[#allocation3 + $0x30] sm:$0x4] %v6630_v28  ;;  %v6339_v58 = vadd.f32 %v12886_v20, %v15599_v55  ;;  %v12889_v25 = vadd.f32 %v15796_v17, %v17001_v24 }
 0x41b   : > { %v6576_v62 = vsel %vm15658_vm7, %v11298_v49, %v6575_v29  ;;  %v6403_v23 = vrot.slane %v6385_v53, 1  ;;  %v6946_v44 = vrot.slane %v6945_v4, 4  ;;  %v6368_v16 = vmax.f32 %v6336_v27, 0.0  ;;  %v16999_v11 = vld [vmem:[#allocation17_spill] sm:$0xff]  ;;  %v17000_v20 = vld [vmem:[#allocation16_spill] sm:$0xff] }
 0x41c   : > { %6577 = vst [vmem:[#allocation3 + $0x28] sm:$0x2] %v6576_v62  ;;  %v6756_v48 = vld [vmem:[#allocation3 + $0x28] sm:$0x4]  ;;  %v6723_v6 = vshll.u32 %v15811_v7, 16  ;;  %v6773_v54 = vrot.slane %v15811_v7, 6  ;;  %v12887_v15 = vadd.f32 %v15782_v40, %v16999_v11  ;;  %v6338_v27 = vadd.f32 %v12889_v25, %v15599_v55 }
 0x41d   : > { %v11323_v61 = vrot.slane %v15811_v7, 11  ;;  %v6366_v10 = vmax.f32 %v6334_v34, 0.0  ;;  %v6757_v5 = vsel %vm15671_vm2, %v6721_v60, %v6756_v48  ;;  %v6840_v18 = vld [vmem:[#allocation3 + $0x28] sm:$0x8]  ;;  %v6419_v2 = vmax.f32 %v6385_v53, %v6403_v23  ;;  %v15852_v34 = vld [vmem:[#allocation3 + $0x18] sm:$0xf] }
 0x41e   : > { %v6951_v49 = vsel %vm13672_vm10, %v6946_v44, %v6950_v36  ;;  %6758 = vst [vmem:[#allocation3 + $0x28] sm:$0x4] %v6757_v5  ;;  %v6841_v32 = vsel %vm15685_vm5, %v6814_v21, %v6840_v18  ;;  %v11299_v46 = vrot.slane %v6469_v19, 9  ;;  %v6725_v1 = vrot.slane %v6723_v6, 6  ;;  %v15863_v18 = vld [vmem:[#allocation3 + $0x14] sm:$0x1] }
 0x41f   : > { %v6802_v13 = vsel %vm15639_vm3, %v6773_v54, %v6801_v42  ;;  %6842 = vst [vmem:[#allocation3 + $0x28] sm:$0x8] %v6841_v32  ;;  %v6892_v60 = vsel %vm13557_vm4, %v11323_v61, %v6891_v59  ;;  %v6427_v57 = vpack.c.bf16 %v6419_v2, %v6419_v2  ;;  %v11334_v47 = vcombine.low %v6937_v41, %v6951_v49  ;;  %v6578_v8 = vld [vmem:[#allocation3 + $0x30] sm:$0x2]  ;;  %v6894_v61 = vld [vmem:[#allocation3 + $0x3c] sm:$0x1] }
 0x420   : > { %6803 = vst [vmem:[#allocation3 + $0x30] sm:$0x8] %v6802_v13  ;;  %v6386_v21 = vmax.f32 %v6366_v10, %v6368_v16  ;;  %6893 = vst [vmem:[#allocation3 + $0x34] sm:$0x1] %v6892_v60  ;;  %v6371_v14 = vmax.f32 %v6339_v58, 0.0  ;;  %v12888_v19 = vadd.f32 %v15790_v39, %v17000_v20  ;;  %v6579_v50 = vsel %vm15658_vm7, %v11299_v46, %v6578_v8 }
 0x421   : > { %v6472_v53 = vshll.u32 %v6427_v57, 16  ;;  %v6532_v9 = vsel %vm15616_vm9, %v6427_v57, %v6531_v30  ;;  %v11308_v12 = vrot.slane %v6427_v57, 9  ;;  %12554 = vmatprep.mubr.msk.bf16.mxu0 %vm2017_vm11, %v11334_v47  ;;  %v15847_v41 = vld [vmem:[#allocation3 + $0x10] sm:$0xf]  ;;  %6580 = vst [vmem:[#allocation3 + $0x30] sm:$0x2] %v6579_v50  ;;  %v6337_v39 = vadd.f32 %v12887_v15, %v15599_v55 }
 0x422   : > { %v6759_v40 = vld [vmem:[#allocation3 + $0x30] sm:$0x4]  ;;  %6533 = vst [vmem:[#allocation3 + $0x38] sm:$0x2] %v6532_v9  ;;  %v6652_v4 = vrot.slane %v6386_v21, 1  ;;  %v6340_v17 = vadd.f32 %v12888_v19, %v15599_v55  ;;  %v6370_v62 = vmax.f32 %v6338_v27, 0.0 }
 0x423   : > { %v6760_v29 = vsel %vm15671_vm2, %v6725_v1, %v6759_v40  ;;  %v6505_v33 = vsel %vm13607_vm6, %v6472_v53, %v6504_v43  ;;  %v6633_v28 = vsel %vm15624_vm14, %v11308_v12, %v6632_v38  ;;  %v6369_v42 = vmax.f32 %v6337_v39, 0.0  ;;  %v6804_v55 = vld [vmem:[#allocation3 + $0x38] sm:$0x8]  ;;  %v15868_v58 = vld [vmem:[#allocation3 + $0x1c] sm:$0x1] }
 0x424   : > { %6761 = vst [vmem:[#allocation3 + $0x30] sm:$0x4] %v6760_v29  ;;  %6506 = vst [vmem:[#allocation3 + $0x38] sm:$0x1] %v6505_v33  ;;  %v6668_v7 = vmax.f32 %v6386_v21, %v6652_v4  ;;  %v6372_v36 = vmax.f32 %v6340_v17, 0.0  ;;  %v6815_v59 = vrot.slane %v6723_v6, 7 }
 0x425   : > { %6634 = vst [vmem:[#allocation3 + $0x38] sm:$0x4] %v6633_v28  ;;  %v6953_v23 = vshrl.u32 %v15847_v41, 16  ;;  %v6956_v44 = vshll.u32 %v15847_v41, 16  ;;  %v6967_v16 = vshrl.u32 %v15852_v34, 16  ;;  %v6387_v10 = vmax.f32 %v6369_v42, %v6371_v14 }
 0x426   : > { %v11787_v54 = vpack.c.bf16 %v6668_v7, %v6668_v7  ;;  %v6388_v5 = vmax.f32 %v6370_v62, %v6372_v36  ;;  %v6970_v2 = vshll.u32 %v15852_v34, 16  ;;  %v11300_v6 = vrot.slane %v6472_v53, 9  ;;  %v15870_v57 = vld [vmem:[#allocation3 + $0x20] sm:$0xf] }
 0x427   : > { %v6843_v48 = vld [vmem:[#allocation3 + $0x30] sm:$0x8]  ;;  %v6955_v32 = vrot.slane %v6953_v23, 4  ;;  %v6958_v46 = vrot.slane %v6956_v44, 5  ;;  %v6404_v60 = vrot.slane %v6387_v10, 1  ;;  %v6969_v8 = vrot.slane %v6967_v16, 4 }
 0x428   : > { %v6844_v49 = vsel %vm15685_vm5, %v6815_v59, %v6843_v48  ;;  %v6727_v1 = vshll.u32 %v11787_v54, 16  ;;  %v6774_v13 = vrot.slane %v11787_v54, 6  ;;  %v11324_v30 = vrot.slane %v11787_v54, 11  ;;  %v6534_v9 = vld [vmem:[#allocation3 + $0x40] sm:$0x2] }
 0x429   : > { %6845 = vst [vmem:[#allocation3 + $0x30] sm:$0x8] %v6844_v49  ;;  %v6581_v38 = vld [vmem:[#allocation3 + $0x38] sm:$0x2]  ;;  %v6653_v47 = vrot.slane %v6388_v5, 1  ;;  %v6959_v21 = vor.u32 %v6958_v46, %v6955_v32  ;;  %v6972_v43 = vrot.slane %v6970_v2, 5  ;;  %v6420_v25 = vmax.f32 %v6387_v10, %v6404_v60 }
 0x42a   : > { %v6582_v14 = vsel %vm15658_vm7, %v11300_v6, %v6581_v38  ;;  %v6729_v11 = vrot.slane %v6727_v1, 6  ;;  %v6805_v15 = vsel %vm15639_vm3, %v6774_v13, %v6804_v55  ;;  %v6962_v20 = vshll.u32 %v15863_v18, 16  ;;  %v6635_v17 = vld [vmem:[#allocation3 + $0x40] sm:$0x4]  ;;  %v6807_v29 = vld [vmem:[#allocation3 + $0x40] sm:$0x8] }
 0x42b   : > { %6583 = vst [vmem:[#allocation3 + $0x38] sm:$0x2] %v6582_v14  ;;  %6806 = vst [vmem:[#allocation3 + $0x38] sm:$0x8] %v6805_v15  ;;  %v6895_v24 = vsel %vm13557_vm4, %v11324_v30, %v6894_v61  ;;  %v6669_v50 = vmax.f32 %v6388_v5, %v6653_v47  ;;  %v6973_v12 = vor.u32 %v6972_v43, %v6969_v8  ;;  %v6976_v40 = vshll.u32 %v15868_v58, 16 }
 0x42c   : > { %v6762_v19 = vld [vmem:[#allocation3 + $0x38] sm:$0x4]  ;;  %6896 = vst [vmem:[#allocation3 + $0x3c] sm:$0x1] %v6895_v24  ;;  %v6981_v4 = vshrl.u32 %v15870_v57, 16  ;;  %v6428_v39 = vpack.c.bf16 %v6420_v25, %v6420_v25  ;;  %v6960_v33 = vrot.slane %v6959_v21, 4 }
 0x42d   : > { %v6763_v53 = vsel %vm15671_vm2, %v6729_v11, %v6762_v19  ;;  %v11788_v27 = vpack.c.bf16 %v6669_v50, %v6669_v50  ;;  %v6984_v28 = vshll.u32 %v15870_v57, 16  ;;  %v6507_v7 = vld [vmem:[#allocation3 + $0x40] sm:$0x1]  ;;  %v6964_v42 = vrot.slane %v6962_v20, 5  ;;  %v6897_v44 = vld [vmem:[#allocation3 + $0x44] sm:$0x1] }
 0x42e   : > { %6764 = vst [vmem:[#allocation3 + $0x38] sm:$0x4] %v6763_v53  ;;  %v6974_v36 = vrot.slane %v6973_v12, 4  ;;  %v6978_v62 = vrot.slane %v6976_v40, 5  ;;  %v6475_v59 = vshll.u32 %v6428_v39, 16  ;;  %v6535_v55 = vsel %vm15616_vm9, %v6428_v39, %v6534_v9  ;;  %v13464_v19 = vld [vmem:[%s16709_s5] sm:$0xff]  }
 0x42f   : > { %v11309_v23 = vrot.slane %v6428_v39, 9  ;;  %v6983_v16 = vrot.slane %v6981_v4, 4  ;;  %6536 = vst [vmem:[#allocation3 + $0x40] sm:$0x2] %v6535_v55  ;;  %v6775_v48 = vrot.slane %v11788_v27, 6  ;;  %v11325_v54 = vrot.slane %v11788_v27, 11 }
 0x430   : > { %v6979_v61 = vsel %vm13672_vm10, %v6974_v36, %v6978_v62  ;;  %v15888_v10 = vld [vmem:[#allocation3 + $0x28] sm:$0xf]  ;;  %v6986_v5 = vrot.slane %v6984_v28, 5  ;;  %v6816_v2 = vrot.slane %v6727_v1, 7  ;;  %v6508_v49 = vsel %vm13607_vm6, %v6475_v59, %v6507_v7  ;;  %v15896_v32 = vld [vmem:[#allocation3 + $0x30] sm:$0xf] }
 0x431   : > { %v6636_v45 = vsel %vm15624_vm14, %v11309_v23, %v6635_v17  ;;  %v6965_v6 = vsel %vm13672_vm10, %v6960_v33, %v6964_v42  ;;  %6509 = vst [vmem:[#allocation3 + $0x40] sm:$0x1] %v6508_v49  ;;  %v6808_v13 = vsel %vm15639_vm3, %v6775_v48, %v6807_v29  ;;  %v6898_v1 = vsel %vm13557_vm4, %v11325_v54, %v6897_v44  ;;  %v15902_v60 = vld [vmem:[#allocation3 + $0x24] sm:$0x1]  ;;  %v15909_v21 = vld [vmem:[#allocation3 + $0x2c] sm:$0x1] }
 0x432   : > { %v6846_v46 = vld [vmem:[#allocation3 + $0x38] sm:$0x8]  ;;  %6637 = vst [vmem:[#allocation3 + $0x40] sm:$0x4] %v6636_v45  ;;  %v11335_v30 = vcombine.low %v6965_v6, %v6979_v61  ;;  %v6731_v47 = vshll.u32 %v11788_v27, 16  ;;  %v6987_v26 = vor.u32 %v6986_v5, %v6983_v16  ;;  %v6995_v8 = vshrl.u32 %v15888_v10, 16 }
 0x433   : > { %v6847_v38 = vsel %vm15685_vm5, %v6816_v2, %v6846_v46  ;;  %6809 = vst [vmem:[#allocation3 + $0x40] sm:$0x8] %v6808_v13  ;;  %6899 = vst [vmem:[#allocation3 + $0x44] sm:$0x1] %v6898_v1  ;;  %v6998_v43 = vshll.u32 %v15888_v10, 16  ;;  %v7009_v14 = vshrl.u32 %v15896_v32, 16 }
 0x434   : > { %6848 = vst [vmem:[#allocation3 + $0x38] sm:$0x8] %v6847_v38  ;;  %12555 = vmatmul.mubr.msk.bf16.vlgmr.msra.gmra.mrb[64].mxu0 %vm2017_vm11, %v11335_v30  ;;  %v7012_v11 = vshll.u32 %v15896_v32, 16  ;;  %v6990_v15 = vshll.u32 %v15902_v60, 16  ;;  %v6997_v20 = vrot.slane %v6995_v8, 4  ;;  %v11301_v24 = vrot.slane %v6475_v59, 9 }
 0x435   : > { %12563 = vmatpush3.bf16.msra.mxu0 %v13464_v19  ;;  %v7000_v25 = vrot.slane %v6998_v43, 5  ;;  %v7004_v50 = vshll.u32 %v15909_v21, 16  ;;  %v13354_v53 = vld [vmem:[%s16709_s5 + $0x10] sm:$0xff]   ;;  %v6733_v12 = vrot.slane %v6731_v47, 6  ;;  %v6988_v40 = vrot.slane %v6987_v26, 4  ;;  %v13357_v6 = vld [vmem:[%s16709_s5 + $0x40] sm:$0xff]  }
 0x436   : > { %12564 = vmatprep.subr.bf16.mxu0 %v13353_v56  ;;  %v6584_v9 = vld [vmem:[#allocation3 + $0x40] sm:$0x2]  ;;  %v7011_v17 = vrot.slane %v7009_v14, 4  ;;  %v7014_v27 = vrot.slane %v7012_v11, 5  ;;  %v6817_v33 = vrot.slane %v6731_v47, 7  ;;  %v6992_v28 = vrot.slane %v6990_v15, 5 }
 0x437   : > { %v6585_v4 = vsel %vm15658_vm7, %v11301_v24, %v6584_v9  ;;  %v7001_v39 = vor.u32 %v7000_v25, %v6997_v20  ;;  %v7006_v62 = vrot.slane %v7004_v50, 5  ;;  %v15935_v44 = vld [vmem:[#allocation3 + $0x34] sm:$0x1]  ;;  %v15937_v0 = vld [vmem:[#allocation3 + $0x3c] sm:$0x1]  ;;  %v11347_v15 = vcombine.low %v15847_v41, %v15852_v34 }
 0x438   : > { %6586 = vst [vmem:[#allocation3 + $0x40] sm:$0x2] %v6585_v4  ;;  %v6993_v55 = vsel %vm13672_vm10, %v6988_v40, %v6992_v28  ;;  %v7015_v48 = vor.u32 %v7014_v27, %v7011_v17  ;;  %v7018_v51 = vshll.u32 %v15935_v44, 16  ;;  %v7032_v45 = vshll.u32 %v15937_v0, 16  ;;  %v13465_v8 = vld [vmem:[#allocation3] sm:$0xf] }
 0x439   : > { %v6765_v29 = vld [vmem:[#allocation3 + $0x40] sm:$0x4]  ;;  %12565 = vmatpush3.bf16.msra.mxu0 %v13353_v56  ;;  %v7002_v36 = vrot.slane %v7001_v39, 4  ;;  %v11346_v43 = vcombine.low %v13465_v8, %v15742_v3  ;;  %v7280_v11 = vld [vmem:[#allocation3 + $0x8] sm:$0xe]  ;;  %v13360_v20 = vld [vmem:[%s16709_s5 + $0x48] sm:$0xff]   ;;  %v11348_v19 = vcombine.low %v15870_v57, %v15888_v10 }
 0x43a   : > { %v6766_v7 = vsel %vm15671_vm2, %v6733_v12, %v6765_v29  ;;  %v6849_v42 = vld [vmem:[#allocation3 + $0x40] sm:$0x8]  ;;  %12566 = vmatprep.subr.bf16.mxu0 %v13354_v53  ;;  %v7016_v46 = vrot.slane %v7015_v48, 4  ;;  %v7020_v1 = vrot.slane %v7018_v51, 5  ;;  %v7034_v56 = vrot.slane %v7032_v45, 5  ;;  %v13361_v41 = vld [vmem:[%s16709_s5 + $0x50] sm:$0xff]  }
 0x43b   : > { %6767 = vst [vmem:[#allocation3 + $0x40] sm:$0x4] %v6766_v7  ;;  %v6850_v59 = vsel %vm15685_vm5, %v6817_v33, %v6849_v42  ;;  %v6907_v23 = vld [vmem:[#allocation3 + $0x38] sm:$0xf]  ;;  %v7007_v16 = vsel %vm13672_vm10, %v7002_v36, %v7006_v62  ;;  %v7279_v14 = vld [vmem:[#allocation3] sm:$0xe] }
 0x43c   : > { %6851 = vst [vmem:[#allocation3 + $0x40] sm:$0x8] %v6850_v59  ;;  %v7023_v54 = vshrl.u32 %v6907_v23, 16  ;;  %v7026_v61 = vshll.u32 %v6907_v23, 16  ;;  %v11336_v5 = vcombine.low %v6993_v55, %v7007_v16  ;;  %v7021_v38 = vsel %vm13672_vm10, %v7016_v46, %v7020_v1  ;;  %v13466_v3 = vld [vmem:[#allocation3 + $0x4] sm:$0x1] }
 0x43d   : > { %12567 = vmatpush3.bf16.msra.mxu0 %v13354_v53  ;;  %v11358_v24 = vrot.slane %v7279_v14, 9  ;;  %v7305_v25 = vrot.slane %v13466_v3, 5  ;;  %v11359_v50 = vrot.slane %v7280_v11, 9  ;;  %v7309_v34 = vrot.slane %v15707_v37, 5  ;;  %v7282_v10 = vld [vmem:[#allocation3 + $0x18] sm:$0xe] }
 0x43e   : > { %v7025_v2 = vrot.slane %v7023_v54, 4  ;;  %v7028_v49 = vrot.slane %v7026_v61, 5  ;;  %12568 = vmatprep.subr.bf16.mxu0 %v13356_v35  ;;  %12558 = vmatprep.mubr.msk.bf16.mxu0 %vm2017_vm11, %v11336_v5  ;;  %v7284_v9 = vld [vmem:[#allocation3 + $0x28] sm:$0xe]  ;;  %v11349_v12 = vcombine.low %v15896_v32, %v6907_v23  ;;  %v13363_v40 = vld [vmem:[%s16709_s5 + $0x58] sm:$0xff]   ;;  %v11361_v17 = vrot.slane %v7282_v10, 9 }
 0x43f   : > { %v7306_v53 = vsel %vm14184_vm1, %v11358_v24, %v7305_v25  ;;  %v7310_v57 = vsel %vm14184_vm1, %v11359_v50, %v7309_v34  ;;  %v7281_v4 = vld [vmem:[#allocation3 + $0x10] sm:$0xe]  ;;  %v7283_v37 = vld [vmem:[#allocation3 + $0x20] sm:$0xe]  ;;  %v11363_v27 = vrot.slane %v7284_v9, 9  ;;  %v7317_v33 = vrot.slane %v15868_v58, 5 }
 0x440   : > { %v7029_v13 = vor.u32 %v7028_v49, %v7025_v2  ;;  %v11374_v39 = vcombine.low %v7306_v53, %v7310_v57  ;;  %v11360_v29 = vrot.slane %v7281_v4, 9  ;;  %v13364_v32 = vld [vmem:[%s16709_s5 + $0x60] sm:$0xff]   ;;  %v11362_v28 = vrot.slane %v7283_v37, 9  ;;  %v7286_v58 = vld [vmem:[#allocation3 + $0x38] sm:$0xe] }
 0x441   : > { %12569 = vmatpush3.bf16.msra.mxu0 %v13356_v35  ;;  %v7325_v7 = vrot.slane %v15909_v21, 5  ;;  %v7313_v42 = vrot.slane %v15863_v18, 5  ;;  %v7318_v36 = vsel %vm14184_vm1, %v11361_v17, %v7317_v33  ;;  %v542_v62 = vld [vmem:[#allocation3 + $0x48] sm:$0x1]  ;;  %v7321_v35 = vrot.slane %v15902_v60, 5  ;;  %v13365_v18 = vld [vmem:[%s16709_s5 + $0x68] sm:$0xff]  }
 0x442   : > { %v7030_v30 = vrot.slane %v7029_v13, 4  ;;  %12578 = vmatprep.subr.bf16.mxu0 %v13357_v6  ;;  %v7285_v16 = vld [vmem:[#allocation3 + $0x30] sm:$0xe]  ;;  %v543_v60 = vsel %vm13557_vm4, 0, %v542_v62  ;;  %v11365_v54 = vrot.slane %v7286_v58, 9  ;;  %v7333_v5 = vrot.slane %v15937_v0, 5 }
 0x443   : > { %v7326_v59 = vsel %vm14184_vm1, %v11363_v27, %v7325_v7  ;;  %v7314_v55 = vsel %vm14184_vm1, %v11360_v29, %v7313_v42  ;;  %v7322_v21 = vsel %vm14184_vm1, %v11362_v28, %v7321_v35  ;;  %544 = vst [vmem:[#allocation3 + $0x48] sm:$0x1] %v543_v60  ;;  %v11364_v61 = vrot.slane %v7285_v16, 9  ;;  %v7613_v51 = vld [vmem:[#allocation3 + $0x10] sm:$0xf]  ;;  %v13366_v2 = vld [vmem:[%s16709_s5 + $0x70] sm:$0xff]  }
 0x444   : > { %v7035_v47 = vsel %vm13672_vm10, %v7030_v30, %v7034_v56  ;;  %v11375_v23 = vcombine.low %v7314_v55, %v7318_v36  ;;  %v11376_v48 = vcombine.low %v7322_v21, %v7326_v59  ;;  %v7329_v49 = vrot.slane %v15935_v44, 5  ;;  %v13368_v30 = vld [vmem:[%s16709_s5 + $0x78] sm:$0xff]   ;;  %v7621_v14 = vld [vmem:[#allocation3 + $0x30] sm:$0xf]  ;;  %v13369_v11 = vld [vmem:[%s16709_s5 + $0x80] sm:$0xff]  }
 0x445   : > { %v11337_v26 = vcombine.low %v7021_v38, %v7035_v47  ;;  %v7334_v45 = vsel %vm14184_vm1, %v11365_v54, %v7333_v5  ;;  %v7642_v46 = vshrl.u32 %v7613_v51, 16  ;;  %v7645_v13 = vshll.u32 %v7613_v51, 16  ;;  %v13367_v38 = vld [vmem:[#allocation3 + $0x8] ss:$8 sps:$4 sm:$0xff]   ;;  %v572_v47 = vld [vmem:[#allocation3 + $0x4c] sm:$0x1] }
 0x446   : > { %v7330_v1 = vsel %vm14184_vm1, %v11364_v61, %v7329_v49  ;;  %v573_v24 = vsel %vm13607_vm6, 0, %v572_v47  ;;  %v16022_v3 = vld [vmem:[#allocation3 + $0x14] sm:$0x1]  ;;  %v7698_v53 = vshrl.u32 %v7621_v14, 16  ;;  %v7701_v57 = vshll.u32 %v7621_v14, 16  ;;  %v13373_v62 = vld [vmem:[%s16709_s5 + $0x90] sm:$0xff]  }
 0x447   : > { %12559 = vmatmul.mubr.msk.bf16.gmra.mrb[68].mxu0 %vm2017_vm11, %v11337_v26  ;;  %v11377_v0 = vcombine.low %v7330_v1, %v7334_v45  ;;  %v7644_v26 = vrot.slane %v7642_v46, 4  ;;  %v7647_v8 = vrot.slane %v7645_v13, 5  ;;  %574 = vst [vmem:[#allocation3 + $0x4c] sm:$0x1] %v573_v24  ;;  %v16024_v10 = vld [vmem:[#allocation3 + $0xc] sm:$0x1] }
 0x448   : > { %12570 = vmatprep.mubr.msk.bf16.mxu0 %vm2017_vm11, %v11346_v43  ;;  %v7617_v43 = vld [vmem:[#allocation3 + $0x20] sm:$0xf]  ;;  %v13371_v27 = vld [vmem:[#allocation3 + $0x28] ss:$8 sps:$4 sm:$0xff]   ;;  %v7700_v7 = vrot.slane %v7698_v53, 4  ;;  %v7703_v42 = vrot.slane %v7701_v57, 5 }
 0x449   : > { %v7670_v25 = vshrl.u32 %v7617_v43, 16  ;;  %v7673_v50 = vshll.u32 %v7617_v43, 16  ;;  %v7648_v34 = vor.u32 %v7647_v8, %v7644_v26  ;;  %v7625_v36 = vld [vmem:[#allocation3 + $0x40] sm:$0xf]  ;;  %v16036_v35 = vld [vmem:[#allocation3 + $0x24] sm:$0x1] }
 0x44a   : > { %v7623_v16 = vld [vmem:[#allocation3 + $0x38] sm:$0xf]  ;;  %v16038_v60 = vld [vmem:[#allocation3 + $0x1c] sm:$0x1]  ;;  %v16040_v54 = vld [vmem:[#allocation3 + $0x34] sm:$0x1]  ;;  %v7704_v49 = vor.u32 %v7703_v42, %v7700_v7 }
 0x44b   : > { %v7672_v29 = vrot.slane %v7670_v25, 4  ;;  %v7675_v33 = vrot.slane %v7673_v50, 5  ;;  %v7649_v28 = vrot.slane %v7648_v34, 4  ;;  %v7726_v61 = vshrl.u32 %v7625_v36, 16  ;;  %v16045_v13 = vld [vmem:[#allocation3 + $0x2c] sm:$0x1] }
 0x44c   : > { %v7729_v5 = vshll.u32 %v7625_v36, 16  ;;  %v7679_v46 = vshll.u32 %v16036_v35, 16  ;;  %v7712_v1 = vshrl.u32 %v7623_v16, 16  ;;  %v7707_v26 = vshll.u32 %v16040_v54, 16  ;;  %v16060_v57 = vld [vmem:[#allocation3 + $0x44] sm:$0x1] }
 0x44d   : > { %v7728_v14 = vrot.slane %v7726_v61, 4  ;;  %v7895_v61 = vrot.slane %v16024_v10, 5 }
 0x44e   : > { %v7681_v24 = vrot.slane %v7679_v46, 5  ;;  %v7714_v25 = vrot.slane %v7712_v1, 4  ;;  %v7709_v53 = vrot.slane %v7707_v26, 5  ;;  %v13379_v46 = vld [vmem:[%s16709_s5 + $0xb8] sm:$0xff]   ;;  %v7871_v1 = vld [vmem:[#allocation3 + $0x18] sm:$0xe] }
 0x44f   : > { %12571 = vmatmul.mubr.msk.bf16.vlgmr.msra.gmra.mrb[64].mxu0 %vm2017_vm11, %v11347_v15 }
 0x450   : > { %12579 = vmatpush3.bf16.msra.mxu0 %v13357_v6  ;;  %12574 = vmatprep.mubr.msk.bf16.mxu0 %vm2017_vm11, %v11348_v19  ;;  %v16006_v6 = vld [vmem:[#allocation3 + $0x8] sm:$0xf]  ;;  %v7615_v19 = vld [vmem:[#allocation3 + $0x18] sm:$0xf] }
 0x451   : > { %12580 = vmatprep.subr.bf16.mxu0 %v13360_v20  ;;  %v7628_v56 = vshrl.u32 %v16006_v6, 16  ;;  %v7631_v44 = vshll.u32 %v16006_v6, 16  ;;  %v7656_v9 = vshrl.u32 %v7615_v19, 16 }
 0x453   : > { %v7630_v15 = vrot.slane %v7628_v56, 4  ;;  %v7658_v59 = vrot.slane %v7656_v9, 4 }
 0x454   : > { %12581 = vmatpush3.bf16.msra.mxu0 %v13360_v20  ;;  %v7633_v20 = vrot.slane %v7631_v44, 5  ;;  %v13375_v44 = vld [vmem:[%s16709_s5 + $0x98] sm:$0xff]  }
 0x455   : > { %12582 = vmatprep.subr.bf16.mxu0 %v13361_v41 }
 0x456   : > { %v7634_v4 = vor.u32 %v7633_v20, %v7630_v15  ;;  %v7693_v15 = vshll.u32 %v16045_v13, 16  ;;  %v7705_v20 = vrot.slane %v7704_v49, 4  ;;  %v7874_v49 = vld [vmem:[#allocation3 + $0x30] sm:$0xe] }
 0x457   : > { %12575 = vmatmul.mubr.msk.bf16.gmra.mrb[68].mxu0 %vm2017_vm11, %v11349_v12  ;;  %v7659_v12 = vshll.u32 %v7615_v19, 16 }
 0x458   : > { %12583 = vmatpush3.bf16.msra.mxu0 %v13361_v41  ;;  %12586 = vmatprep.mubr.msk.bf16.mxu0 %vm2017_vm11, %v11374_v39  ;;  %v7619_v41 = vld [vmem:[#allocation3 + $0x28] sm:$0xf]  ;;  %v7651_v39 = vshll.u32 %v16022_v3, 16  ;;  %v7635_v55 = vrot.slane %v7634_v4, 4  ;;  %v7710_v4 = vsel %vm13672_vm10, %v7705_v20, %v7709_v53  ;;  %v7876_v20 = vld [vmem:[#allocation3 + $0x40] sm:$0xe] }
 0x459   : > { %12584 = vmatprep.subr.bf16.mxu0 %v13363_v40  ;;  %v7684_v17 = vshrl.u32 %v7619_v41, 16  ;;  %v7687_v37 = vshll.u32 %v7619_v41, 16  ;;  %v7661_v58 = vrot.slane %v7659_v12, 5  ;;  %v13376_v41 = vld [vmem:[%s16709_s5 + $0xa0] sm:$0xff]  }
 0x45b   : > { %v7686_v21 = vrot.slane %v7684_v17, 4  ;;  %v7662_v45 = vor.u32 %v7661_v58, %v7658_v59 }
 0x45c   : > { %12585 = vmatpush3.bf16.msra.mxu0 %v13363_v40  ;;  %v13370_v40 = vld [vmem:[#allocation3 + $0x18] ss:$8 sps:$4 sm:$0xff]  }
 0x45d   : > { %12594 = vmatprep.subr.bf16.mxu0 %v13364_v32  ;;  %v7663_v19 = vrot.slane %v7662_v45, 4 }
 0x45f   : > { %12587 = vmatmul.mubr.msk.bf16.vlgmr.msra.gmra.mrb[64].mxu0 %vm2017_vm11, %v11375_v23  ;;  %v7653_v23 = vrot.slane %v7651_v39, 5  ;;  %v16066_v39 = vld [vmem:[#allocation3 + $0x3c] sm:$0x1] }
 0x460   : > { %12595 = vmatpush3.bf16.msra.mxu0 %v13364_v32  ;;  %12590 = vmatprep.mubr.msk.bf16.mxu0 %vm2017_vm11, %v11376_v48  ;;  %v7637_v32 = vshll.u32 %v16024_v10, 16  ;;  %v7676_v48 = vor.u32 %v7675_v33, %v7672_v29  ;;  %v7870_v29 = vld [vmem:[#allocation3 + $0x10] sm:$0xe]  ;;  %v7721_v42 = vshll.u32 %v16066_v39, 16 }
 0x461   : > { %12596 = vmatprep.subr.bf16.mxu0 %v13365_v18  ;;  %v11427_v59 = vrot.slane %v7870_v29, 9 }
 0x462   : > { %v7639_v51 = vrot.slane %v7637_v32, 5  ;;  %v7677_v43 = vrot.slane %v7676_v48, 4 }
 0x464   : > { %12597 = vmatpush3.bf16.msra.mxu0 %v13365_v18  ;;  %v7689_v18 = vrot.slane %v7687_v37, 5  ;;  %v7640_v56 = vsel %vm13672_vm10, %v7635_v55, %v7639_v51  ;;  %v7682_v12 = vsel %vm13672_vm10, %v7677_v43, %v7681_v24  ;;  %v7872_v51 = vld [vmem:[#allocation3 + $0x20] sm:$0xe]  ;;  %v7903_v43 = vrot.slane %v16038_v60, 5 }
 0x465   : > { %12598 = vmatprep.subr.bf16.mxu0 %v13366_v2 }
 0x466   : > { %v7690_v47 = vor.u32 %v7689_v18, %v7686_v21  ;;  %v7899_v18 = vrot.slane %v16022_v3, 5 }
 0x467   : > { %12591 = vmatmul.mubr.msk.bf16.gmra.mrb[68].mxu0 %vm2017_vm11, %v11377_v0  ;;  %v7715_v0 = vshll.u32 %v7623_v16, 16  ;;  %v7723_v16 = vrot.slane %v7721_v42, 5  ;;  %v16133_v42 = vld [vmem:[#allocation3 + $0x1c] sm:$0x1] }
 0x468   : > { %12599 = vmatpush3.bf16.msra.mxu0 %v13366_v2  ;;  %12602 = vmatprep.mubr.msk.bf16.mxu0 %vm2017_vm11, %v13367_v38  ;;  %v7654_v2 = vsel %vm13672_vm10, %v7649_v28, %v7653_v23  ;;  %v7665_v38 = vshll.u32 %v16038_v60, 16  ;;  %v7691_v34 = vrot.slane %v7690_v47, 4  ;;  %v13377_v28 = vld [vmem:[%s16709_s5 + $0xa8] sm:$0xff]   ;;  %v13378_v23 = vld [vmem:[%s16709_s5 + $0xb0] sm:$0xff]   ;;  %v13380_v47 = vld [vmem:[%s16709_s5 + $0xc0] sm:$0xff]  }
 0x469   : > { %12600 = vmatprep.subr.bf16.mxu0 %v13368_v30  ;;  %v11414_v8 = vcombine.low %v7640_v56, %v7654_v2  ;;  %v7717_v50 = vrot.slane %v7715_v0, 5  ;;  %v11429_v0 = vrot.slane %v7872_v51, 9  ;;  %v11431_v56 = vrot.slane %v7874_v49, 9  ;;  %v13381_v60 = vld [vmem:[%s16709_s5 + $0xc8] sm:$0xff]  }
 0x46a   : > { %v7667_v9 = vrot.slane %v7665_v38, 5  ;;  %v7907_v38 = vrot.slane %v16036_v35, 5 }
 0x46b   : > { %v7718_v37 = vor.u32 %v7717_v50, %v7714_v25  ;;  %v8204_v25 = vld [vmem:[#allocation3 + $0x18] sm:$0xf]  ;;  %v11433_v50 = vrot.slane %v7876_v20, 9 }
 0x46c   : > { %12601 = vmatpush3.bf16.msra.mxu0 %v13368_v30  ;;  %v13374_v30 = vld [vmem:[#allocation3 + $0x38] ss:$8 sps:$4 sm:$0xff]   ;;  %v7668_v17 = vsel %vm13672_vm10, %v7663_v19, %v7667_v9  ;;  %v8233_v53 = vshrl.u32 %v8204_v25, 16  ;;  %v8236_v9 = vshll.u32 %v8204_v25, 16 }
 0x46d   : > { %12610 = vmatprep.subr.bf16.mxu0 %v13369_v11  ;;  %v11415_v33 = vcombine.low %v7668_v17, %v7682_v12  ;;  %v7719_v58 = vrot.slane %v7718_v37, 4  ;;  %v7875_v19 = vld [vmem:[#allocation3 + $0x38] sm:$0xe] }
 0x46e   : > { %v13382_v12 = vld [vmem:[%s16709_s5 + $0xd0] sm:$0xff]   ;;  %v8238_v29 = vrot.slane %v8236_v9, 5 }
 0x46f   : > { %12603 = vmatmul.mubr.msk.bf16.vlgmr.msra.gmra.mrb[64].mxu0 %vm2017_vm11, %v13370_v40  ;;  %v7724_v2 = vsel %vm13672_vm10, %v7719_v58, %v7723_v16  ;;  %v8212_v58 = vld [vmem:[#allocation3 + $0x38] sm:$0xf]  ;;  %v8210_v16 = vld [vmem:[#allocation3 + $0x30] sm:$0xf] }
 0x470   : > { %12611 = vmatpush3.bf16.msra.mxu0 %v13369_v11  ;;  %12606 = vmatprep.mubr.msk.bf16.mxu0 %vm2017_vm11, %v13371_v27  ;;  %v7731_v11 = vrot.slane %v7729_v5, 5  ;;  %v7735_v27 = vshll.u32 %v16060_v57, 16  ;;  %v7900_v5 = vsel %vm14184_vm1, %v11427_v59, %v7899_v18  ;;  %v8292_v51 = vshll.u32 %v8212_v58, 16 }
 0x471   : > { %12612 = vmatprep.subr.bf16.mxu0 %v13372_v63 }
 0x472   : > { %v7732_v40 = vor.u32 %v7731_v11, %v7728_v14  ;;  %v7737_v55 = vrot.slane %v7735_v27, 5  ;;  %v7908_v14 = vsel %vm14184_vm1, %v11429_v0, %v7907_v38  ;;  %v7911_v11 = vrot.slane %v16045_v13, 5  ;;  %v8214_v38 = vld [vmem:[#allocation3 + $0x40] sm:$0xf] }
 0x474   : > { %12613 = vmatpush3.bf16.msra.mxu0 %v13372_v63  ;;  %v7695_v63 = vrot.slane %v7693_v15, 5  ;;  %v7733_v36 = vrot.slane %v7732_v40, 4  ;;  %v7919_v40 = vrot.slane %v16066_v39, 5  ;;  %v8208_v39 = vld [vmem:[#allocation3 + $0x28] sm:$0xf] }
 0x475   : > { %12614 = vmatprep.subr.bf16.mxu0 %v13373_v62  ;;  %v8264_v18 = vshll.u32 %v8208_v39, 16 }
 0x476   : > { %v7696_v32 = vsel %vm13672_vm10, %v7691_v34, %v7695_v63  ;;  %v7738_v48 = vsel %vm13672_vm10, %v7733_v36, %v7737_v55  ;;  %v7923_v34 = vrot.slane %v16060_v57, 5  ;;  %v8202_v63 = vld [vmem:[#allocation3 + $0x10] sm:$0xf]  ;;  %v8235_v57 = vrot.slane %v8233_v53, 4  ;;  %v13385_v55 = vld [vmem:[%s16709_s5 + $0xe0] sm:$0xff]  }
 0x477   : > { %12607 = vmatmul.mubr.msk.bf16.gmra.mrb[68].mxu0 %vm2017_vm11, %v13374_v30  ;;  %v11416_v7 = vcombine.low %v7696_v32, %v7710_v4  ;;  %v11417_v45 = vcombine.low %v7724_v2, %v7738_v48  ;;  %v7873_v30 = vld [vmem:[#allocation3 + $0x28] sm:$0xe]  ;;  %v8219_v37 = vshrl.u32 %v8202_v63, 16  ;;  %v8222_v27 = vshll.u32 %v8202_v63, 16  ;;  %v13384_v32 = vld [vmem:[%s16709_s5 + $0xd8] sm:$0xff]   ;;  %v13388_v2 = vld [vmem:[%s16709_s5 + $0xe8] sm:$0xff]  }
 0x478   : > { %12615 = vmatpush3.bf16.msra.mxu0 %v13373_v62  ;;  %12618 = vmatprep.mubr.msk.bf16.mxu0 %vm2017_vm11, %v11414_v8  ;;  %v7869_v62 = vld [vmem:[#allocation3 + $0x8] sm:$0xe]  ;;  %v11430_v26 = vrot.slane %v7873_v30, 9  ;;  %v7915_v8 = vrot.slane %v16040_v54, 5  ;;  %v7924_v4 = vsel %vm14184_vm1, %v11433_v50, %v7923_v34  ;;  %v8239_v59 = vor.u32 %v8238_v29, %v8235_v57  ;;  %v16154_v50 = vld [vmem:[#allocation3 + $0x3c] sm:$0x1] }
 0x479   : > { %12616 = vmatprep.subr.bf16.mxu0 %v13375_v44  ;;  %v11426_v21 = vrot.slane %v7869_v62, 9  ;;  %v8221_v36 = vrot.slane %v8219_v37, 4  ;;  %v8224_v62 = vrot.slane %v8222_v27, 5  ;;  %v8266_v0 = vrot.slane %v8264_v18, 5  ;;  %v16160_v37 = vld [vmem:[#allocation3 + $0x34] sm:$0x1] }
 0x47a   : > { %v7916_v15 = vsel %vm14184_vm1, %v11431_v56, %v7915_v8  ;;  %v7912_v54 = vsel %vm14184_vm1, %v11430_v26, %v7911_v11  ;;  %v8275_v30 = vshrl.u32 %v8210_v16, 16  ;;  %v8278_v56 = vshll.u32 %v8210_v16, 16  ;;  %v13390_v27 = vld [vmem:[#allocation3 + $0x40] ss:$8 sps:$4 sm:$0xff]   ;;  %v16169_v18 = vld [vmem:[#allocation3 + $0x44] sm:$0x1] }
 0x47b   : > { %v7896_v3 = vsel %vm14184_vm1, %v11426_v21, %v7895_v61  ;;  %v11444_v13 = vcombine.low %v7912_v54, %v7916_v15  ;;  %v8261_v21 = vshrl.u32 %v8208_v39, 16  ;;  %v8242_v61 = vshll.u32 %v16133_v42, 16  ;;  %v16152_v54 = vld [vmem:[#allocation3 + $0x2c] sm:$0x1]  ;;  %v13391_v29 = vld [vmem:[%s16709_s5 + $0xf8] sm:$0xff]  }
 0x47c   : > { %12617 = vmatpush3.bf16.msra.mxu0 %v13375_v44  ;;  %v11442_v10 = vcombine.low %v7896_v3, %v7900_v5  ;;  %v11428_v44 = vrot.slane %v7871_v1, 9  ;;  %v8289_v5 = vshrl.u32 %v8212_v58, 16  ;;  %v8225_v49 = vor.u32 %v8224_v62, %v8221_v36  ;;  %v13386_v1 = vld [vmem:[#allocation3 + $0x20] ss:$8 sps:$4 sm:$0xff]  }
 0x47d   : > { %12626 = vmatprep.subr.bf16.mxu0 %v13376_v41  ;;  %v8294_v8 = vrot.slane %v8292_v51, 5  ;;  %v8277_v25 = vrot.slane %v8275_v30, 4  ;;  %v8306_v34 = vshll.u32 %v8214_v38, 16  ;;  %v8284_v58 = vshll.u32 %v16160_v37, 16  ;;  %v13392_v16 = vld [vmem:[%s16709_s5 + $0x100] sm:$0xff]  }
 0x47e   : > { %v7904_v35 = vsel %vm14184_vm1, %v11428_v44, %v7903_v43  ;;  %v13387_v44 = vld [vmem:[#allocation3 + $0x30] ss:$8 sps:$4 sm:$0xff]   ;;  %v8291_v26 = vrot.slane %v8289_v5, 4  ;;  %v8216_v43 = vld [vmem:[#allocation3 + $0x48] sm:$0xf]  ;;  %v8226_v11 = vrot.slane %v8225_v49, 4 }
 0x47f   : > { %12619 = vmatmul.mubr.msk.bf16.vlgmr.msra.gmra.mrb[64].mxu0 %vm2017_vm11, %v11415_v33  ;;  %v11443_v24 = vcombine.low %v7904_v35, %v7908_v14  ;;  %v13389_v14 = vld [vmem:[%s16709_s5 + $0xf0] sm:$0xff]   ;;  %v8317_v53 = vshrl.u32 %v8216_v43, 16  ;;  %v8320_v9 = vshll.u32 %v8216_v43, 16  ;;  %v8308_v36 = vrot.slane %v8306_v34, 5  ;;  %v16174_v51 = vld [vmem:[#allocation3 + $0x4c] sm:$0x1] }
 0x480   : > { %12627 = vmatpush3.bf16.msra.mxu0 %v13376_v41  ;;  %12622 = vmatprep.mubr.msk.bf16.mxu0 %vm2017_vm11, %v11416_v7  ;;  %v11432_v41 = vrot.slane %v7875_v19, 9  ;;  %v16130_v7 = vld [vmem:[#allocation3 + $0x14] sm:$0x1]  ;;  %v8461_v30 = vld [vmem:[#allocation3 + $0x18] sm:$0xe] }
 0x481   : > { %12628 = vmatprep.subr.bf16.mxu0 %v13377_v28  ;;  %v8228_v48 = vshll.u32 %v16130_v7, 16  ;;  %v8319_v62 = vrot.slane %v8317_v53, 4  ;;  %v8463_v34 = vld [vmem:[#allocation3 + $0x28] sm:$0xe]  ;;  %v8465_v53 = vld [vmem:[#allocation3 + $0x38] sm:$0xe] }
 0x482   : > { %v7920_v17 = vsel %vm14184_vm1, %v11432_v41, %v7919_v40  ;;  %v8303_v41 = vshrl.u32 %v8214_v38, 16  ;;  %v13393_v38 = vld [vmem:[%s16709_s5 + $0x108] sm:$0xff]  }
 0x483   : > { %v11445_v33 = vcombine.low %v7920_v17, %v7924_v4  ;;  %v8230_v15 = vrot.slane %v8228_v48, 5  ;;  %v8270_v17 = vshll.u32 %v16152_v54, 16 }
 0x484   : > { %12629 = vmatpush3.bf16.msra.mxu0 %v13377_v28  ;;  %v13383_v28 = vld [vmem:[#allocation3 + $0x10] ss:$8 sps:$4 sm:$0xff]   ;;  %v8305_v39 = vrot.slane %v8303_v41, 4 }
 0x485   : > { %12630 = vmatprep.subr.bf16.mxu0 %v13378_v23  ;;  %v8231_v40 = vsel %vm13672_vm10, %v8226_v11, %v8230_v15  ;;  %v11495_v11 = vrot.slane %v8461_v30, 9 }
 0x486   : > { %v8309_v49 = vor.u32 %v8308_v36, %v8305_v39  ;;  %v8502_v39 = vrot.slane %v16160_v37, 5  ;;  %v8510_v37 = vrot.slane %v16169_v18, 5 }
 0x487   : > { %12623 = vmatmul.mubr.msk.bf16.gmra.mrb[68].mxu0 %vm2017_vm11, %v11417_v45  ;;  %v8240_v45 = vrot.slane %v8239_v59, 4  ;;  %v8322_v59 = vrot.slane %v8320_v9, 5 }
 0x488   : > { %12631 = vmatpush3.bf16.msra.mxu0 %v13378_v23  ;;  %12634 = vmatprep.mubr.msk.bf16.mxu0 %vm2017_vm11, %v11442_v10  ;;  %v8206_v23 = vld [vmem:[#allocation3 + $0x20] sm:$0xf]  ;;  %v8263_v10 = vrot.slane %v8261_v21, 4  ;;  %v8272_v21 = vrot.slane %v8270_v17, 5  ;;  %v8464_v17 = vld [vmem:[#allocation3 + $0x30] sm:$0xe] }
 0x489   : > { %12632 = vmatprep.subr.bf16.mxu0 %v13379_v46  ;;  %v8247_v3 = vshrl.u32 %v8206_v23, 16 }
 0x48b   : > { %v8249_v20 = vrot.slane %v8247_v3, 4  ;;  %v8326_v3 = vshll.u32 %v16174_v51, 16 }
 0x48c   : > { %12633 = vmatpush3.bf16.msra.mxu0 %v13379_v46  ;;  %v8250_v46 = vshll.u32 %v8206_v23, 16 }
 0x48d   : > { %12642 = vmatprep.subr.bf16.mxu0 %v13380_v47  ;;  %v8328_v43 = vrot.slane %v8326_v3, 5 }
 0x48e   : > { %v8252_v35 = vrot.slane %v8250_v46, 5  ;;  %v8286_v46 = vrot.slane %v8284_v58, 5 }
 0x48f   : > { %12635 = vmatmul.mubr.msk.bf16.vlgmr.msra.gmra.mrb[64].mxu0 %vm2017_vm11, %v11443_v24  ;;  %v16150_v24 = vld [vmem:[#allocation3 + $0x24] sm:$0x1] }
 0x490   : > { %12643 = vmatpush3.bf16.msra.mxu0 %v13380_v47  ;;  %12638 = vmatprep.mubr.msk.bf16.mxu0 %vm2017_vm11, %v11444_v13  ;;  %v8244_v47 = vrot.slane %v8242_v61, 5  ;;  %v8280_v13 = vrot.slane %v8278_v56, 5  ;;  %v8253_v63 = vor.u32 %v8252_v35, %v8249_v20  ;;  %v8256_v4 = vshll.u32 %v16150_v24, 16  ;;  %v13394_v20 = vld [vmem:[%s16709_s5 + $0x110] sm:$0xff]  }
 0x491   : > { %12644 = vmatprep.subr.bf16.mxu0 %v13381_v60 }
 0x492   : > { %v8245_v19 = vsel %vm13672_vm10, %v8240_v45, %v8244_v47  ;;  %v8254_v23 = vrot.slane %v8253_v63, 4  ;;  %v8258_v48 = vrot.slane %v8256_v4, 5  ;;  %v8323_v45 = vor.u32 %v8322_v59, %v8319_v62  ;;  %v8466_v62 = vld [vmem:[#allocation3 + $0x40] sm:$0xe]  ;;  %v8467_v59 = vld [vmem:[#allocation3 + $0x48] sm:$0xe] }
 0x493   : > { %v11482_v57 = vcombine.low %v8231_v40, %v8245_v19  ;;  %v8490_v19 = vrot.slane %v16133_v42, 5  ;;  %v13395_v42 = vld [vmem:[%s16709_s5 + $0x118] sm:$0xff]   ;;  %v11497_v4 = vrot.slane %v8463_v34, 9 }
 0x494   : > { %12645 = vmatpush3.bf16.msra.mxu0 %v13381_v60  ;;  %v8267_v60 = vor.u32 %v8266_v0, %v8263_v10  ;;  %v8259_v10 = vsel %vm13672_vm10, %v8254_v23, %v8258_v48  ;;  %v8312_v0 = vshll.u32 %v16169_v18, 16  ;;  %v8462_v40 = vld [vmem:[#allocation3 + $0x20] sm:$0xe]  ;;  %v11501_v23 = vrot.slane %v8467_v59, 9  ;;  %v13398_v18 = vld [vmem:[%s16711_s7 + $0x30] sm:$0xff]  }
 0x495   : > { %12646 = vmatprep.subr.bf16.mxu0 %v13382_v12  ;;  %v8491_v41 = vsel %vm14184_vm1, %v11495_v11, %v8490_v19 }
 0x496   : > { %v8314_v15 = vrot.slane %v8312_v0, 5 }
 0x497   : > { %12639 = vmatmul.mubr.msk.bf16.gmra.mrb[68].mxu0 %vm2017_vm11, %v11445_v33  ;;  %v8268_v33 = vrot.slane %v8267_v60, 4 }
 0x498   : > { %12647 = vmatpush3.bf16.msra.mxu0 %v13382_v12  ;;  %12650 = vmatprep.mubr.msk.bf16.mxu0 %vm2017_vm11, %v13383_v28  ;;  %v8295_v12 = vor.u32 %v8294_v8, %v8291_v26  ;;  %v8298_v28 = vshll.u32 %v16154_v50, 16  ;;  %v8310_v26 = vrot.slane %v8309_v49, 4  ;;  %v8324_v8 = vrot.slane %v8323_v45, 4  ;;  %v16245_v49 = vld [vmem:[%s16711_s7] sm:$0xff]  }
 0x499   : > { %12648 = vmatprep.subr.bf16.mxu0 %v13384_v32  ;;  %v16251_v45 = vld [vmem:[%s16710_s6] ss:$0 sm:$0xff] }
 0x49a   : > { %v8300_v5 = vrot.slane %v8298_v28, 5  ;;  %v8315_v60 = vsel %vm13672_vm10, %v8310_v26, %v8314_v15  ;;  %v16261_v15 = vld [vmem:[#allocation3 + $0x4] sm:$0x1] }
 0x49b   : > { %v8854_v19 = vshll.u32 %v16261_v15, 16 }
 0x49c   : > { %12649 = vmatpush3.bf16.msra.mxu0 %v13384_v32  ;;  %v8281_v32 = vor.u32 %v8280_v13, %v8277_v25  ;;  %v8329_v25 = vsel %vm13672_vm10, %v8324_v8, %v8328_v43  ;;  %v8486_v13 = vrot.slane %v16130_v7, 5  ;;  %v11499_v7 = vrot.slane %v8465_v53, 9 }
 0x49d   : > { %12658 = vmatprep.subr.bf16.mxu0 %v13385_v55  ;;  %v11485_v9 = vcombine.low %v8315_v60, %v8329_v25 }
 0x49e   : > { %v8282_v61 = vrot.slane %v8281_v32, 4  ;;  %v8494_v32 = vrot.slane %v16150_v24, 5  ;;  %v11500_v24 = vrot.slane %v8466_v62, 9 }
 0x49f   : > { %12651 = vmatmul.mubr.msk.bf16.vlgmr.msra.gmra.mrb[64].mxu0 %vm2017_vm11, %v13386_v1 }
 0x4a0   : > { %12659 = vmatpush3.bf16.msra.mxu0 %v13385_v55  ;;  %12654 = vmatprep.mubr.msk.bf16.mxu0 %vm2017_vm11, %v13387_v44  ;;  %v8296_v55 = vrot.slane %v8295_v12, 4  ;;  %v8287_v44 = vsel %vm13672_vm10, %v8282_v61, %v8286_v46  ;;  %v16253_v46 = vld [vmem:[#allocation3] sm:$0xf] }
 0x4a1   : > { %12660 = vmatprep.subr.bf16.mxu0 %v13388_v2  ;;  %v8848_v26 = vshll.u32 %v16253_v46, 16 }
 0x4a2   : > { %v8301_v1 = vsel %vm13672_vm10, %v8296_v55, %v8300_v5  ;;  %v13396_v5 = vld [vmem:[%s16711_s7 + $0x20] sm:$0xff]  }
 0x4a3   : > { %v11484_v47 = vcombine.low %v8287_v44, %v8301_v1 }
 0x4a4   : > { %12661 = vmatpush3.bf16.msra.mxu0 %v13388_v2  ;;  %v8273_v2 = vsel %vm13672_vm10, %v8268_v33, %v8272_v21  ;;  %v8506_v33 = vrot.slane %v16154_v50, 5  ;;  %v8514_v21 = vrot.slane %v16174_v51, 5  ;;  %v13397_v51 = vld [vmem:[%s16711_s7 + $0x28] sm:$0xff]  }
 0x4a5   : > { %12662 = vmatprep.subr.bf16.mxu0 %v13389_v14  ;;  %v11483_v56 = vcombine.low %v8259_v10, %v8273_v2  ;;  %v13399_v2 = vld [vmem:[%s16711_s7 + $0x38] sm:$0xff]  }
 0x4a6   : > { %v8507_v36 = vsel %vm14184_vm1, %v11499_v7, %v8506_v33  ;;  %v8515_v48 = vsel %vm14184_vm1, %v11501_v23, %v8514_v21 }
 0x4a7   : > { %12655 = vmatmul.mubr.msk.bf16.gmra.mrb[68].mxu0 %vm2017_vm11, %v13390_v27  ;;  %v11496_v27 = vrot.slane %v8462_v40, 9 }
 0x4a8   : > { %12663 = vmatpush3.bf16.msra.mxu0 %v13389_v14  ;;  %12666 = vmatprep.mubr.msk.bf16.mxu0 %vm2017_vm11, %v11482_v57  ;;  %v8460_v14 = vld [vmem:[#allocation3 + $0x10] sm:$0xe]  ;;  %v8498_v57 = vrot.slane %v16152_v54, 5 }
 0x4a9   : > { %12664 = vmatprep.subr.bf16.mxu0 %v13391_v29  ;;  %v11494_v35 = vrot.slane %v8460_v14, 9  ;;  %v8495_v54 = vsel %vm14184_vm1, %v11496_v27, %v8494_v32 }
 0x4aa   : > { %v8499_v28 = vsel %vm14184_vm1, %v11497_v4, %v8498_v57 }
 0x4ab   : > { %v8487_v12 = vsel %vm14184_vm1, %v11494_v35, %v8486_v13  ;;  %v11511_v58 = vcombine.low %v8495_v54, %v8499_v28 }
 0x4ac   : > { %12665 = vmatpush3.bf16.msra.mxu0 %v13391_v29  ;;  %v11510_v63 = vcombine.low %v8487_v12, %v8491_v41  ;;  %v11498_v29 = vrot.slane %v8464_v17, 9  ;;  %v16266_v41 = vrot.slane %v8848_v26, 5 }
 0x4ad   : > { %12674 = vmatprep.subr.bf16.mxu0 %v13392_v16 }
 0x4ae   : > { %v8503_v50 = vsel %vm14184_vm1, %v11498_v29, %v8502_v39 }
 0x4af   : > { %12667 = vmatmul.mubr.msk.bf16.vlgmr.msra.gmra.mrb[64].mxu0 %vm2017_vm11, %v11483_v56  ;;  %v11512_v55 = vcombine.low %v8503_v50, %v8507_v36  ;;  %v8787_v36 = vld [vmem:[#allocation3 + $0x1c] sm:$0x1] }
 0x4b0   : > { %12675 = vmatpush3.bf16.msra.mxu0 %v13392_v16  ;;  %12670 = vmatprep.mubr.msk.bf16.mxu0 %vm2017_vm11, %v11484_v47  ;;  %v8511_v16 = vsel %vm14184_vm1, %v11500_v24, %v8510_v37  ;;  %v8845_v47 = vshrl.u32 %v16253_v46, 16 }
 0x4b1   : > { %12676 = vmatprep.subr.bf16.mxu0 %v13393_v38  ;;  %v11513_v61 = vcombine.low %v8511_v16, %v8515_v48  ;;  %v8775_v48 = vld [vmem:[#allocation3 + $0xc] sm:$0x1] }
 0x4b2   : > { %v16264_v13 = vrot.slane %v8845_v47, 4 }
 0x4b4   : > { %12677 = vmatpush3.bf16.msra.mxu0 %v13393_v38 }
 0x4b5   : > { %12678 = vmatprep.subr.bf16.mxu0 %v13394_v20 }
 0x4b7   : > { %12671 = vmatmul.mubr.msk.bf16.gmra.mrb[68].mxu0 %vm2017_vm11, %v11485_v9 }
 0x4b8   : > { %12679 = vmatpush3.bf16.msra.mxu0 %v13394_v20  ;;  %12682 = vmatprep.mubr.msk.bf16.mxu0 %vm2017_vm11, %v11510_v63 }
 0x4b9   : > { %12680 = vmatprep.subr.bf16.mxu0 %v13395_v42 }
 0x4bc   : > { %12681 = vmatpush3.bf16.msra.mxu0 %v13395_v42 }
 0x4bd   : > { %12690 = vmatprep.subr.bf16.mxu0 %v13396_v5 }
 0x4bf   : > { %12683 = vmatmul.mubr.msk.bf16.vlgmr.msra.gmra.mrb[64].mxu0 %vm2017_vm11, %v11511_v58  ;;  %v8784_v58 = vld [vmem:[#allocation3 + $0x18] sm:$0xf] }
 0x4c0   : > { %12686 = vmatprep.mubr.msk.bf16.mxu0 %vm2017_vm11, %v11512_v55  ;;  %12691 = vmatpush3.bf16.msra.mxu0 %v13396_v5 }
 0x4c1   : > { %12692 = vmatprep.subr.bf16.mxu0 %v13397_v51 }
 0x4c4   : > { %12693 = vmatpush3.bf16.msra.mxu0 %v13397_v51 }
 0x4c5   : > { %12694 = vmatprep.subr.bf16.mxu0 %v13398_v18 }
 0x4c7   : > { %12687 = vmatmul.mubr.msk.bf16.gmra.mrb[68].mxu0 %vm2017_vm11, %v11513_v61 }
 0x4c8   : > { %12695 = vmatpush3.bf16.msra.mxu0 %v13398_v18 }
 0x4c9   : > { %12696 = vmatprep.subr.bf16.mxu0 %v13399_v2 }
 0x4cc   : > { %12697 = vmatpush3.bf16.msra.mxu0 %v13399_v2  ;;  %v8790_v2 = vld [vmem:[#allocation3 + $0x20] sm:$0xf] }
 0x4cd   : > { %12706 = vmatprep.subr.bf16.mxu0 %v16245_v49 }
 0x592   : > { %v12684_v3 = vpop.f32.mrb[64].mxu0 }
 0x593   : > { %v8655_v1 = vadd.f32 %v12684_v3, %v16251_v45  ;;  %v8607_v10 = vpop.f32.mrb[65].mxu0  ;;  %v8793_v3 = vld [vmem:[#allocation3 + $0x24] sm:$0x1] }
 0x594   : > { %v8653_v0 = vadd.f32 %v16251_v45, %v8607_v10  ;;  %v12685_v30 = vpop.f32.mrb[66].mxu0 }
 0x595   : > { %v8663_v56 = vmax.f32 %v8655_v1, 0.0  ;;  %v8656_v44 = vadd.f32 %v12685_v30, %v16251_v45  ;;  %v8610_v38 = vpop.f32.mrb[67].mxu0 }
 0x596   : > { %v8661_v8 = vmax.f32 %v8653_v0, 0.0  ;;  %v8654_v43 = vadd.f32 %v16251_v45, %v8610_v38 }
 0x597   : > { %v11791_v14 = vpack.c.bf16 %v8663_v56, %v8663_v56  ;;  %v8664_v11 = vmax.f32 %v8656_v44, 0.0  ;;  %v8778_v56 = vld [vmem:[#allocation3 + $0x10] sm:$0xf]  ;;  %v8781_v44 = vld [vmem:[#allocation3 + $0x14] sm:$0x1] }
 0x598   : > { %v11789_v20 = vpack.c.bf16 %v8661_v8, %v8661_v8  ;;  %v8662_v35 = vmax.f32 %v8654_v43, 0.0 }
 0x599   : > { %v8710_v60 = vshrl.u32 %v11791_v14, 16  ;;  %v11792_v25 = vpack.c.bf16 %v8664_v11, %v8664_v11  ;;  %v8713_v34 = vshll.u32 %v11791_v14, 16 }
 0x59a   : > { %v8694_v53 = vshrl.u32 %v11789_v20, 16  ;;  %v8697_v9 = vshll.u32 %v11789_v20, 16  ;;  %v11790_v12 = vpack.c.bf16 %v8662_v35, %v8662_v35  ;;  %v12688_v42 = vpop.f32.mrb[68].mxu0 }
 0x59b   : > { %v8712_v40 = vrot.slane %v8710_v60, 7  ;;  %v8718_v63 = vshrl.u32 %v11792_v25, 16  ;;  %v8721_v4 = vshll.u32 %v11792_v25, 16  ;;  %v8659_v17 = vadd.f32 %v12688_v42, %v16251_v45  ;;  %v8623_v7 = vpop.f32.mrb[69].mxu0  ;;  %v8799_v42 = vld [vmem:[#allocation3 + $0x2c] sm:$0x1] }
 0x59c   : > { %v8696_v27 = vrot.slane %v8694_v53, 7  ;;  %v8702_v57 = vshrl.u32 %v11790_v12, 16  ;;  %v8705_v29 = vshll.u32 %v11790_v12, 16  ;;  %v8657_v33 = vadd.f32 %v16251_v45, %v8623_v7  ;;  %v12689_v32 = vpop.f32.mrb[70].mxu0  ;;  %v8796_v12 = vld [vmem:[#allocation3 + $0x28] sm:$0xf] }
 0x59d   : > { %v8715_v28 = vor.u32 %v8713_v34, %v8712_v40  ;;  %v8716_v39 = vrot.slane %v8712_v40, 4  ;;  %v8720_v62 = vrot.slane %v8718_v63, 7  ;;  %v8667_v59 = vmax.f32 %v8659_v17, 0.0  ;;  %v8626_v54 = vpop.f32.mrb[71].mxu0 }
 0x59e   : > { %v8699_v50 = vor.u32 %v8697_v9, %v8696_v27  ;;  %v8700_v55 = vrot.slane %v8696_v27, 4  ;;  %v8704_v24 = vrot.slane %v8702_v57, 7  ;;  %v8665_v23 = vmax.f32 %v8657_v33, 0.0  ;;  %v8811_v9 = vld [vmem:[#allocation3 + $0x3c] sm:$0x1] }
 0x59f   : > { %v8785_v37 = vsel %vm13751_vm13, %v8715_v28, %v8784_v58  ;;  %v8788_v16 = vsel %vm13557_vm4, %v8716_v39, %v8787_v36  ;;  %v8723_v61 = vor.u32 %v8721_v4, %v8720_v62  ;;  %v8724_v5 = vrot.slane %v8720_v62, 4  ;;  %v8808_v27 = vld [vmem:[#allocation3 + $0x38] sm:$0xf] }
 0x5a0   : > { %8789 = vst [vmem:[#allocation3 + $0x1c] sm:$0x1] %v8788_v16  ;;  %8786 = vst [vmem:[#allocation3 + $0x18] sm:$0xf] %v8785_v37  ;;  %v8773_v51 = vsel %vm13751_vm13, %v8699_v50, %v16006_v6  ;;  %v8776_v18 = vsel %vm13557_vm4, %v8700_v55, %v8775_v48  ;;  %v8707_v1 = vor.u32 %v8705_v29, %v8704_v24  ;;  %v8708_v10 = vrot.slane %v8704_v24, 4 }
 0x5a1   : > { %8777 = vst [vmem:[#allocation3 + $0xc] sm:$0x1] %v8776_v18  ;;  %8774 = vst [vmem:[#allocation3 + $0x8] sm:$0xf] %v8773_v51  ;;  %v8791_v0 = vsel %vm13751_vm13, %v8723_v61, %v8790_v2  ;;  %v8794_v30 = vsel %vm13557_vm4, %v8724_v5, %v8793_v3  ;;  %v11795_v38 = vpack.c.bf16 %v8667_v59, %v8667_v59  ;;  %v8817_v37 = vld [vmem:[#allocation3 + $0x44] sm:$0x1] }
 0x5a2   : > { %v11793_v47 = vpack.c.bf16 %v8665_v23, %v8665_v23  ;;  %8795 = vst [vmem:[#allocation3 + $0x24] sm:$0x1] %v8794_v30  ;;  %8792 = vst [vmem:[#allocation3 + $0x20] sm:$0xf] %v8791_v0  ;;  %v8779_v6 = vsel %vm13751_vm13, %v8707_v1, %v8778_v56  ;;  %v8782_v26 = vsel %vm13557_vm4, %v8708_v10, %v8781_v44  ;;  %v8802_v16 = vld [vmem:[#allocation3 + $0x30] sm:$0xf] }
 0x5a3   : > { %v8660_v8 = vadd.f32 %v12689_v32, %v16251_v45  ;;  %v8658_v43 = vadd.f32 %v16251_v45, %v8626_v54  ;;  %8783 = vst [vmem:[#allocation3 + $0x14] sm:$0x1] %v8782_v26  ;;  %8780 = vst [vmem:[#allocation3 + $0x10] sm:$0xf] %v8779_v6  ;;  %v8742_v14 = vshrl.u32 %v11795_v38, 16  ;;  %v8745_v25 = vshll.u32 %v11795_v38, 16 }
 0x5a4   : > { %v8726_v11 = vshrl.u32 %v11793_v47, 16  ;;  %v8729_v53 = vshll.u32 %v11793_v47, 16  ;;  %v8851_v4 = vor.u32 %v16266_v41, %v16264_v13  ;;  %v16293_v45 = vrot.slane %v8854_v19, 5  ;;  %v8805_v48 = vld [vmem:[#allocation3 + $0x34] sm:$0x1] }
 0x5a5   : > { %v8668_v20 = vmax.f32 %v8660_v8, 0.0  ;;  %v8666_v35 = vmax.f32 %v8658_v43, 0.0  ;;  %v8744_v60 = vrot.slane %v8742_v14, 7  ;;  %v8814_v1 = vld [vmem:[#allocation3 + $0x40] sm:$0xf] }
 0x5a6   : > { %v8728_v34 = vrot.slane %v8726_v11, 7  ;;  %v8852_v61 = vrot.slane %v8851_v4, 4 }
 0x5a7   : > { %v11796_v40 = vpack.c.bf16 %v8668_v20, %v8668_v20  ;;  %v11794_v63 = vpack.c.bf16 %v8666_v35, %v8666_v35  ;;  %v8747_v17 = vor.u32 %v8745_v25, %v8744_v60  ;;  %v8748_v7 = vrot.slane %v8744_v60, 4  ;;  %v16295_v33 = vld [vmem:[#allocation3 + $0x18] sm:$0xf]  ;;  %v16329_v11 = vld [vmem:[#allocation3 + $0x1c] sm:$0x1] }
 0x5a8   : > { %v8731_v57 = vor.u32 %v8729_v53, %v8728_v34  ;;  %v8732_v29 = vrot.slane %v8728_v34, 4  ;;  %v16297_v62 = vld [vmem:[#allocation3 + $0x8] sm:$0xf]  ;;  %v16307_v54 = vld [vmem:[#allocation3 + $0xc] sm:$0x1]  ;;  %v8887_v18 = vshrl.u32 %v16295_v33, 16  ;;  %v8857_v20 = vsel %vm13672_vm10, %v8852_v61, %v16293_v45 }
 0x5a9   : > { %v8750_v32 = vshrl.u32 %v11796_v40, 16  ;;  %v8753_v28 = vshll.u32 %v11796_v40, 16  ;;  %v8734_v39 = vshrl.u32 %v11794_v63, 16  ;;  %v8737_v36 = vshll.u32 %v11794_v63, 16  ;;  %v16319_v6 = vld [vmem:[#allocation3 + $0x20] sm:$0xf] }
 0x5aa   : > { %v8809_v13 = vsel %vm13751_vm13, %v8747_v17, %v8808_v27  ;;  %v8812_v19 = vsel %vm13557_vm4, %v8748_v7, %v8811_v9  ;;  %v8797_v41 = vsel %vm13751_vm13, %v8731_v57, %v8796_v12  ;;  %v8800_v59 = vsel %vm13557_vm4, %v8732_v29, %v8799_v42  ;;  %v16311_v23 = vld [vmem:[#allocation3 + $0x10] sm:$0xf]  ;;  %v16316_v30 = vld [vmem:[#allocation3 + $0x14] sm:$0x1]  ;;  %v16335_v34 = vld [vmem:[#allocation3 + $0x24] sm:$0x1] }
 0x5ab   : > { %8813 = vst [vmem:[#allocation3 + $0x3c] sm:$0x1] %v8812_v19  ;;  %8810 = vst [vmem:[#allocation3 + $0x38] sm:$0xf] %v8809_v13  ;;  %v8752_v58 = vrot.slane %v8750_v32, 7  ;;  %v8736_v50 = vrot.slane %v8734_v39, 7 }
 0x5ac   : > { %8801 = vst [vmem:[#allocation3 + $0x2c] sm:$0x1] %v8800_v59  ;;  %8798 = vst [vmem:[#allocation3 + $0x28] sm:$0xf] %v8797_v41  ;;  %v8859_v55 = vshrl.u32 %v16297_v62, 16  ;;  %v8862_v24 = vshll.u32 %v16297_v62, 16 }
 0x5ad   : > { %v8873_v5 = vshrl.u32 %v16311_v23, 16  ;;  %v8876_v51 = vshll.u32 %v16311_v23, 16  ;;  %v8755_v2 = vor.u32 %v8753_v28, %v8752_v58  ;;  %v8756_v3 = vrot.slane %v8752_v58, 4 }
 0x5ae   : > { %v8739_v10 = vor.u32 %v8737_v36, %v8736_v50  ;;  %v8740_v0 = vrot.slane %v8736_v50, 4  ;;  %v8861_v56 = vrot.slane %v8859_v55, 4  ;;  %v8864_v44 = vrot.slane %v8862_v24, 5 }
 0x5af   : > { %v8868_v38 = vshll.u32 %v16307_v54, 16  ;;  %v8875_v47 = vrot.slane %v8873_v5, 4  ;;  %v8815_v26 = vsel %vm13751_vm13, %v8755_v2, %v8814_v1  ;;  %v8818_v8 = vsel %vm13557_vm4, %v8756_v3, %v8817_v37 }
 0x5b0   : > { %v8803_v43 = vsel %vm13751_vm13, %v8739_v10, %v8802_v16  ;;  %v8806_v14 = vsel %vm13557_vm4, %v8740_v0, %v8805_v48  ;;  %8819 = vst [vmem:[#allocation3 + $0x44] sm:$0x1] %v8818_v8  ;;  %8816 = vst [vmem:[#allocation3 + $0x40] sm:$0xf] %v8815_v26  ;;  %v8865_v35 = vor.u32 %v8864_v44, %v8861_v56  ;;  %v8878_v60 = vrot.slane %v8876_v51, 5 }
 0x5b1   : > { %8807 = vst [vmem:[#allocation3 + $0x34] sm:$0x1] %v8806_v14  ;;  %8804 = vst [vmem:[#allocation3 + $0x30] sm:$0xf] %v8803_v43  ;;  %v8882_v25 = vshll.u32 %v16316_v30, 16  ;;  %v8889_v21 = vrot.slane %v8887_v18, 4 }
 0x5b2   : > { %v8890_v52 = vshll.u32 %v16295_v33, 16  ;;  %v8901_v53 = vshrl.u32 %v16319_v6, 16  ;;  %v8904_v9 = vshll.u32 %v16319_v6, 16  ;;  %v8866_v12 = vrot.slane %v8865_v35, 4  ;;  %v16349_v36 = vld [vmem:[#allocation3 + $0x38] sm:$0xf] }
 0x5b3   : > { %v8870_v42 = vrot.slane %v8868_v38, 5  ;;  %v8879_v40 = vor.u32 %v8878_v60, %v8875_v47  ;;  %v8896_v63 = vshll.u32 %v16329_v11, 16  ;;  %v16341_v4 = vld [vmem:[#allocation3 + $0x28] sm:$0xf]  ;;  %v8884_v45 = vrot.slane %v8882_v25, 5  ;;  %v13401_v47 = vld [vmem:[%s16711_s7 + $0x8] sm:$0xff]  }
 0x5b4   : > { %v8892_v17 = vrot.slane %v8890_v52, 5  ;;  %v16343_v7 = vld [vmem:[#allocation3 + $0x2c] sm:$0x1]  ;;  %v8903_v27 = vrot.slane %v8901_v53, 4  ;;  %v8906_v57 = vrot.slane %v8904_v9, 5  ;;  %v8910_v28 = vshll.u32 %v16335_v34, 16 }
 0x5b5   : > { %v8871_v29 = vsel %vm13672_vm10, %v8866_v12, %v8870_v42  ;;  %v8880_v32 = vrot.slane %v8879_v40, 4  ;;  %v8915_v39 = vshrl.u32 %v16341_v4, 16  ;;  %v8918_v59 = vshll.u32 %v16341_v4, 16  ;;  %v16354_v24 = vld [vmem:[#allocation3 + $0x3c] sm:$0x1] }
 0x5b6   : > { %v11539_v13 = vcombine.low %v8857_v20, %v8871_v29  ;;  %v8893_v19 = vor.u32 %v8892_v17, %v8889_v21  ;;  %v8907_v41 = vor.u32 %v8906_v57, %v8903_v27  ;;  %v8898_v50 = vrot.slane %v8896_v63, 5  ;;  %v13402_v12 = vld [vmem:[%s16711_s7 + $0x10] sm:$0xff]   ;;  %v13404_v57 = vld [vmem:[%s16711_s7 + $0x18] sm:$0xff]  }
 0x5b7   : > { %v8885_v58 = vsel %vm13672_vm10, %v8880_v32, %v8884_v45  ;;  %v8917_v55 = vrot.slane %v8915_v39, 4  ;;  %v8920_v16 = vrot.slane %v8918_v59, 5  ;;  %v8924_v48 = vshll.u32 %v16343_v7, 16  ;;  %v13405_v32 = vld [vmem:[%s16711_s7 + $0x40] sm:$0xff]  }
 0x5b8   : > { %12698 = vmatprep.mubr.msk.bf16.mxu0 %vm2017_vm11, %v11539_v13  ;;  %v8894_v37 = vrot.slane %v8893_v19, 4  ;;  %v16358_v61 = vld [vmem:[#allocation3 + $0x30] sm:$0xf]  ;;  %v8943_v5 = vshrl.u32 %v16349_v36, 16  ;;  %v8912_v51 = vrot.slane %v8910_v28, 5  ;;  %v8946_v1 = vshll.u32 %v16349_v36, 16 }
 0x5b9   : > { %v16361_v18 = vld [vmem:[#allocation3 + $0x34] sm:$0x1]  ;;  %v8929_v2 = vshrl.u32 %v16358_v61, 16  ;;  %v8932_v3 = vshll.u32 %v16358_v61, 16  ;;  %v8908_v0 = vrot.slane %v8907_v41, 4  ;;  %v8921_v56 = vor.u32 %v8920_v16, %v8917_v55 }
 0x5ba   : > { %v8899_v10 = vsel %vm13672_vm10, %v8894_v37, %v8898_v50  ;;  %v8938_v44 = vshll.u32 %v16361_v18, 16  ;;  %v8945_v43 = vrot.slane %v8943_v5, 4  ;;  %v8926_v20 = vrot.slane %v8924_v48, 5  ;;  %v9199_v28 = vld [vmem:[#allocation3] sm:$0xe] }
 0x5bb   : > { %v11540_v38 = vcombine.low %v8885_v58, %v8899_v10  ;;  %v8931_v26 = vrot.slane %v8929_v2, 4  ;;  %v8934_v8 = vrot.slane %v8932_v3, 5  ;;  %v8922_v14 = vrot.slane %v8921_v56, 4  ;;  %v9200_v39 = vld [vmem:[#allocation3 + $0x8] sm:$0xe]  ;;  %v13411_v50 = vld [vmem:[%s16711_s7 + $0x58] sm:$0xff]  }
 0x5bc   : > { %v8948_v35 = vrot.slane %v8946_v1, 5  ;;  %v8952_v60 = vshll.u32 %v16354_v24, 16  ;;  %v8913_v21 = vsel %vm13672_vm10, %v8908_v0, %v8912_v51  ;;  %v8940_v40 = vrot.slane %v8938_v44, 5  ;;  %v9202_v55 = vld [vmem:[#allocation3 + $0x18] sm:$0xe] }
 0x5bd   : > { %12699 = vmatmul.mubr.msk.bf16.vlgmr.msra.gmra.mrb[72].mxu0 %vm2017_vm11, %v11540_v38  ;;  %v8935_v25 = vor.u32 %v8934_v8, %v8931_v26  ;;  %v8927_v52 = vsel %vm13672_vm10, %v8922_v14, %v8926_v20  ;;  %v11551_v29 = vcombine.low %v16253_v46, %v16297_v62  ;;  %v11552_v13 = vcombine.low %v16311_v23, %v16295_v33  ;;  %v13408_v46 = vld [vmem:[%s16711_s7 + $0x48] sm:$0xff]   ;;  %v13409_v33 = vld [vmem:[%s16711_s7 + $0x50] sm:$0xff]   ;;  %v9203_v5 = vld [vmem:[#allocation3 + $0x20] sm:$0xe] }
 0x5be   : > { %12707 = vmatpush3.bf16.msra.mxu0 %v16245_v49  ;;  %v8949_v53 = vor.u32 %v8948_v35, %v8945_v43  ;;  %v11541_v9 = vcombine.low %v8913_v21, %v8927_v52  ;;  %v8954_v45 = vrot.slane %v8952_v60, 5  ;;  %v11553_v62 = vcombine.low %v16319_v6, %v16341_v4  ;;  %v9201_v4 = vld [vmem:[#allocation3 + $0x10] sm:$0xe]  ;;  %v9206_v38 = vld [vmem:[#allocation3 + $0x38] sm:$0xe] }
 0x5bf   : > { %12708 = vmatprep.subr.bf16.mxu0 %v13401_v47  ;;  %v8936_v42 = vrot.slane %v8935_v25, 4  ;;  %v11563_v19 = vrot.slane %v9199_v28, 9  ;;  %v9225_v41 = vrot.slane %v16261_v15, 5  ;;  %v11564_v59 = vrot.slane %v9200_v39, 9  ;;  %v9204_v15 = vld [vmem:[#allocation3 + $0x28] sm:$0xe] }
 0x5c0   : > { %v8950_v63 = vrot.slane %v8949_v53, 4  ;;  %12702 = vmatprep.mubr.msk.bf16.mxu0 %vm2017_vm11, %v11541_v9  ;;  %v9229_v58 = vrot.slane %v16307_v54, 5  ;;  %v11554_v54 = vcombine.low %v16358_v61, %v16349_v36  ;;  %v11565_v16 = vrot.slane %v9201_v4, 9  ;;  %v13412_v61 = vld [vmem:[%s16711_s7 + $0x60] sm:$0xff]   ;;  %v9205_v0 = vld [vmem:[#allocation3 + $0x30] sm:$0xe] }
 0x5c1   : > { %v8941_v49 = vsel %vm13672_vm10, %v8936_v42, %v8940_v40  ;;  %v9226_v23 = vsel %vm14184_vm1, %v11563_v19, %v9225_v41  ;;  %v9233_v48 = vrot.slane %v16316_v30, 5  ;;  %v11568_v51 = vrot.slane %v9204_v15, 9  ;;  %v9533_v20 = vld [vmem:[#allocation3 + $0x10] sm:$0xf]  ;;  %v13414_v35 = vld [vmem:[%s16711_s7 + $0x70] sm:$0xff]  }
 0x5c2   : > { %12709 = vmatpush3.bf16.msra.mxu0 %v13401_v47  ;;  %v8955_v17 = vsel %vm13672_vm10, %v8950_v63, %v8954_v45  ;;  %v9230_v6 = vsel %vm14184_vm1, %v11564_v59, %v9229_v58  ;;  %v9245_v2 = vrot.slane %v16343_v7, 5  ;;  %v11566_v3 = vrot.slane %v9202_v55, 9  ;;  %v9531_v25 = vld [vmem:[#allocation3 + $0x8] sm:$0xf]  ;;  %v9537_v45 = vld [vmem:[#allocation3 + $0x20] sm:$0xf] }
 0x5c3   : > { %12710 = vmatprep.subr.bf16.mxu0 %v13402_v12  ;;  %v11542_v27 = vcombine.low %v8941_v49, %v8955_v17  ;;  %v11579_v37 = vcombine.low %v9226_v23, %v9230_v6  ;;  %v9237_v36 = vrot.slane %v16329_v11, 5  ;;  %v11567_v1 = vrot.slane %v9203_v5, 9  ;;  %v13415_v42 = vld [vmem:[#allocation3 + $0x8] ss:$8 sps:$4 sm:$0xff]   ;;  %v16461_v41 = vld [vmem:[#allocation3 + $0xc] sm:$0x1] }
 0x5c4   : > { %v9241_v30 = vrot.slane %v16335_v34, 5  ;;  %v9234_v10 = vsel %vm14184_vm1, %v11565_v16, %v9233_v48  ;;  %v9246_v7 = vsel %vm14184_vm1, %v11568_v51, %v9245_v2  ;;  %v13413_v34 = vld [vmem:[%s16711_s7 + $0x68] sm:$0xff]   ;;  %v11569_v26 = vrot.slane %v9205_v0, 9  ;;  %v13417_v17 = vld [vmem:[%s16711_s7 + $0x80] sm:$0xff]   ;;  %v9545_v2 = vld [vmem:[#allocation3 + $0x40] sm:$0xf] }
 0x5c5   : > { %12703 = vmatmul.mubr.msk.bf16.gmra.mrb[76].mxu0 %vm2017_vm11, %v11542_v27  ;;  %v9238_v56 = vsel %vm14184_vm1, %v11566_v3, %v9237_v36  ;;  %v9249_v8 = vrot.slane %v16361_v18, 5  ;;  %v11570_v43 = vrot.slane %v9206_v38, 9  ;;  %v9253_v14 = vrot.slane %v16354_v24, 5  ;;  %v13416_v24 = vld [vmem:[%s16711_s7 + $0x78] sm:$0xff]   ;;  %v9541_v49 = vld [vmem:[#allocation3 + $0x30] sm:$0xf] }
 0x5c6   : > { %12711 = vmatpush3.bf16.msra.mxu0 %v13402_v12  ;;  %12714 = vmatprep.mubr.msk.bf16.mxu0 %vm2017_vm11, %v11551_v29  ;;  %v11580_v11 = vcombine.low %v9234_v10, %v9238_v56  ;;  %v9242_v44 = vsel %vm14184_vm1, %v11567_v1, %v9241_v30  ;;  %v9562_v21 = vshrl.u32 %v9533_v20, 16  ;;  %v9565_v18 = vshll.u32 %v9533_v20, 16  ;;  %v9535_v29 = vld [vmem:[#allocation3 + $0x18] sm:$0xf]  ;;  %v13420_v23 = vld [vmem:[%s16711_s7 + $0x88] sm:$0xff]  }
 0x5c7   : > { %12712 = vmatprep.subr.bf16.mxu0 %v13404_v57  ;;  %v11581_v47 = vcombine.low %v9242_v44, %v9246_v7  ;;  %v9250_v60 = vsel %vm14184_vm1, %v11569_v26, %v9249_v8  ;;  %v9254_v52 = vsel %vm14184_vm1, %v11570_v43, %v9253_v14  ;;  %v9548_v9 = vshrl.u32 %v9531_v25, 16  ;;  %v13421_v3 = vld [vmem:[%s16711_s7 + $0x90] sm:$0xff]   ;;  %v16473_v36 = vld [vmem:[#allocation3 + $0x24] sm:$0x1] }
 0x5c8   : > { %v11582_v53 = vcombine.low %v9250_v60, %v9254_v52  ;;  %v9551_v12 = vshll.u32 %v9531_v25, 16  ;;  %v9564_v40 = vrot.slane %v9562_v21, 4  ;;  %v9567_v63 = vrot.slane %v9565_v18, 5  ;;  %v9543_v56 = vld [vmem:[#allocation3 + $0x38] sm:$0xf]  ;;  %v13423_v52 = vld [vmem:[%s16711_s7 + $0x98] sm:$0xff]  }
 0x5c9   : > { %v9550_v27 = vrot.slane %v9548_v9, 4  ;;  %v9590_v28 = vshrl.u32 %v9537_v45, 16  ;;  %v9593_v39 = vshll.u32 %v9537_v45, 16  ;;  %v9621_v19 = vshll.u32 %v9541_v49, 16  ;;  %v13422_v21 = vld [vmem:[#allocation3 + $0x38] ss:$8 sps:$4 sm:$0xff]  }
 0x5ca   : > { %12713 = vmatpush3.bf16.msra.mxu0 %v13404_v57  ;;  %v9553_v57 = vrot.slane %v9551_v12, 5  ;;  %v9576_v59 = vshrl.u32 %v9535_v29, 16  ;;  %v9579_v58 = vshll.u32 %v9535_v29, 16  ;;  %v9557_v16 = vshll.u32 %v16461_v41, 16 }
 0x5cb   : > { %12722 = vmatprep.subr.bf16.mxu0 %v13405_v32  ;;  %v9592_v55 = vrot.slane %v9590_v28, 4  ;;  %v9623_v51 = vrot.slane %v9621_v19, 5  ;;  %v9646_v38 = vshrl.u32 %v9545_v2, 16  ;;  %v9599_v20 = vshll.u32 %v16473_v36, 16  ;;  %v13424_v28 = vld [vmem:[%s16711_s7 + $0xa0] sm:$0xff]  }
 0x5cc   : > { %v9554_v6 = vor.u32 %v9553_v57, %v9550_v27  ;;  %v9581_v1 = vrot.slane %v9579_v58, 5  ;;  %v9559_v26 = vrot.slane %v9557_v16, 5  ;;  %v9632_v60 = vshrl.u32 %v9543_v56, 16 }
 0x5cd   : > { %12715 = vmatmul.mubr.msk.bf16.vlgmr.msra.gmra.mrb[72].mxu0 %vm2017_vm11, %v11552_v13  ;;  %v9539_v13 = vld [vmem:[#allocation3 + $0x28] sm:$0xf]  ;;  %v9635_v25 = vshll.u32 %v9543_v56, 16  ;;  %v9601_v27 = vrot.slane %v9599_v20, 5  ;;  %vm10708_vm4 = vcmask 97280  }
 0x5ce   : > { %12723 = vmatpush3.bf16.msra.mxu0 %v13405_v32  ;;  %12718 = vmatprep.mubr.msk.bf16.mxu0 %vm2017_vm11, %v11553_v62  ;;  %v16459_v32 = vld [vmem:[#allocation3 + $0x14] sm:$0x1]  ;;  %v9618_v62 = vshrl.u32 %v9541_v49, 16  ;;  %v9604_v15 = vshrl.u32 %v9539_v13, 16  ;;  %v9555_v30 = vrot.slane %v9554_v6, 4  ;;  %v9634_v57 = vrot.slane %v9632_v60, 4 }
 0x5cf   : > { %12724 = vmatprep.subr.bf16.mxu0 %v13408_v46  ;;  %v9571_v4 = vshll.u32 %v16459_v32, 16  ;;  %v9637_v29 = vrot.slane %v9635_v25, 5  ;;  %v9827_v60 = vrot.slane %v16473_v36, 5  ;;  %v9793_v25 = vld [vmem:[#allocation3 + $0x28] sm:$0xe] }
 0x5d0   : > { %v9620_v5 = vrot.slane %v9618_v62, 4  ;;  %v9606_v7 = vrot.slane %v9604_v15, 4  ;;  %v9560_v18 = vsel %vm13672_vm10, %v9555_v30, %v9559_v26  ;;  %v13426_v30 = vld [vmem:[%s16711_s7 + $0xb0] sm:$0xff]  }
 0x5d1   : > { %v9573_v10 = vrot.slane %v9571_v4, 5  ;;  %v9638_v4 = vor.u32 %v9637_v29, %v9634_v57 }
 0x5d2   : > { %12725 = vmatpush3.bf16.msra.mxu0 %v13408_v46  ;;  %v9568_v46 = vor.u32 %v9567_v63, %v9564_v40  ;;  %v9624_v43 = vor.u32 %v9623_v51, %v9620_v5  ;;  %v9648_v40 = vrot.slane %v9646_v38, 4  ;;  %v9789_v51 = vld [vmem:[#allocation3 + $0x8] sm:$0xe] }
 0x5d3   : > { %12726 = vmatprep.subr.bf16.mxu0 %v13409_v33 }
 0x5d4   : > { %v9569_v48 = vrot.slane %v9568_v46, 4  ;;  %v9625_v49 = vrot.slane %v9624_v43, 4  ;;  %v16497_v46 = vld [vmem:[#allocation3 + $0x44] sm:$0x1]  ;;  %v9791_v43 = vld [vmem:[#allocation3 + $0x18] sm:$0xe] }
 0x5d5   : > { %12719 = vmatmul.mubr.msk.bf16.gmra.mrb[76].mxu0 %vm2017_vm11, %v11554_v54  ;;  %v9607_v54 = vshll.u32 %v9539_v13, 16  ;;  %v9655_v15 = vshll.u32 %v16497_v46, 16  ;;  %v9843_v57 = vrot.slane %v16497_v46, 5 }
 0x5d6   : > { %12727 = vmatpush3.bf16.msra.mxu0 %v13409_v33  ;;  %12730 = vmatprep.mubr.msk.bf16.mxu0 %vm2017_vm11, %v11579_v37  ;;  %v13418_v33 = vld [vmem:[#allocation3 + $0x18] ss:$8 sps:$4 sm:$0xff]   ;;  %v9595_v37 = vrot.slane %v9593_v39, 5  ;;  %v9574_v8 = vsel %vm13672_vm10, %v9569_v48, %v9573_v10  ;;  %v11631_v10 = vrot.slane %v9789_v51, 9  ;;  %v10129_v51 = vld [vmem:[#allocation3 + $0x30] sm:$0xf] }
 0x5d7   : > { %12728 = vmatprep.subr.bf16.mxu0 %v13411_v50  ;;  %v9609_v0 = vrot.slane %v9607_v54, 5  ;;  %v11619_v12 = vcombine.low %v9560_v18, %v9574_v8  ;;  %v9790_v54 = vld [vmem:[#allocation3 + $0x10] sm:$0xe] }
 0x5d8   : > { %v9596_v44 = vor.u32 %v9595_v37, %v9592_v55  ;;  %v13425_v37 = vld [vmem:[%s16711_s7 + $0xa8] sm:$0xff]  }
 0x5da   : > { %12729 = vmatpush3.bf16.msra.mxu0 %v13411_v50  ;;  %v13419_v50 = vld [vmem:[#allocation3 + $0x28] ss:$8 sps:$4 sm:$0xff]  }
 0x5db   : > { %12738 = vmatprep.subr.bf16.mxu0 %v13412_v61 }
 0x5dd   : > { %12731 = vmatmul.mubr.msk.bf16.vlgmr.msra.gmra.mrb[72].mxu0 %vm2017_vm11, %v11580_v11  ;;  %v16475_v11 = vld [vmem:[#allocation3 + $0x1c] sm:$0x1] }
 0x5de   : > { %12739 = vmatpush3.bf16.msra.mxu0 %v13412_v61  ;;  %12734 = vmatprep.mubr.msk.bf16.mxu0 %vm2017_vm11, %v11581_v47  ;;  %v9578_v61 = vrot.slane %v9576_v59, 4  ;;  %v9649_v47 = vshll.u32 %v9545_v2, 16  ;;  %v11632_v2 = vrot.slane %v9790_v54, 9  ;;  %v13431_v54 = vld [vmem:[#allocation3 + $0x10] ss:$8 sps:$4 sm:$0xff]  }
 0x5df   : > { %12740 = vmatprep.subr.bf16.mxu0 %v13413_v34 }
 0x5e0   : > { %v9582_v14 = vor.u32 %v9581_v1, %v9578_v61  ;;  %v9651_v63 = vrot.slane %v9649_v47, 5  ;;  %v9639_v61 = vrot.slane %v9638_v4, 4  ;;  %v9657_v1 = vrot.slane %v9655_v15, 5  ;;  %v9794_v47 = vld [vmem:[#allocation3 + $0x30] sm:$0xe]  ;;  %v13432_v15 = vld [vmem:[%s16711_s7 + $0xd8] sm:$0xff]  }
 0x5e2   : > { %12741 = vmatpush3.bf16.msra.mxu0 %v13413_v34  ;;  %v16477_v34 = vld [vmem:[#allocation3 + $0x34] sm:$0x1]  ;;  %v9652_v59 = vor.u32 %v9651_v63, %v9648_v40 }
 0x5e3   : > { %12742 = vmatprep.subr.bf16.mxu0 %v13414_v35  ;;  %v9627_v9 = vshll.u32 %v16477_v34, 16  ;;  %v9835_v18 = vrot.slane %v16477_v34, 5 }
 0x5e4   : > { %v9653_v5 = vrot.slane %v9652_v59, 4 }
 0x5e5   : > { %12735 = vmatmul.mubr.msk.bf16.gmra.mrb[76].mxu0 %vm2017_vm11, %v11582_v53  ;;  %v9585_v53 = vshll.u32 %v16475_v11, 16  ;;  %v9629_v13 = vrot.slane %v9627_v9, 5  ;;  %v11635_v9 = vrot.slane %v9793_v25, 9  ;;  %v10133_v25 = vld [vmem:[#allocation3 + $0x40] sm:$0xf] }
 0x5e6   : > { %12743 = vmatpush3.bf16.msra.mxu0 %v13414_v35  ;;  %12746 = vmatprep.mubr.msk.bf16.mxu0 %vm2017_vm11, %v13415_v42  ;;  %v16482_v35 = vld [vmem:[#allocation3 + $0x2c] sm:$0x1]  ;;  %v9597_v42 = vrot.slane %v9596_v44, 4  ;;  %v9658_v56 = vsel %vm13672_vm10, %v9653_v5, %v9657_v1  ;;  %v9792_v44 = vld [vmem:[#allocation3 + $0x20] sm:$0xe] }
 0x5e7   : > { %12744 = vmatprep.subr.bf16.mxu0 %v13416_v24  ;;  %v9613_v45 = vshll.u32 %v16482_v35, 16  ;;  %v9587_v62 = vrot.slane %v9585_v53, 5  ;;  %v11634_v20 = vrot.slane %v9792_v44, 9  ;;  %v9823_v53 = vrot.slane %v16475_v11, 5  ;;  %v9795_v11 = vld [vmem:[#allocation3 + $0x38] sm:$0xe] }
 0x5e8   : > { %v9602_v19 = vsel %vm13672_vm10, %v9597_v42, %v9601_v27  ;;  %v9831_v36 = vrot.slane %v16482_v35, 5  ;;  %v9796_v42 = vld [vmem:[#allocation3 + $0x40] sm:$0xe]  ;;  %v13429_v35 = vld [vmem:[%s16711_s7 + $0xc8] sm:$0xff]   ;;  %v11637_v29 = vrot.slane %v9795_v11, 9 }
 0x5e9   : > { %v9615_v58 = vrot.slane %v9613_v45, 5  ;;  %v11638_v27 = vrot.slane %v9796_v42, 9  ;;  %v16589_v11 = vld [vmem:[#allocation3 + $0x2c] sm:$0x1] }
 0x5ea   : > { %12745 = vmatpush3.bf16.msra.mxu0 %v13416_v24  ;;  %v9610_v24 = vor.u32 %v9609_v0, %v9606_v7  ;;  %v9815_v7 = vrot.slane %v16461_v41, 5  ;;  %v13427_v41 = vld [vmem:[%s16711_s7 + $0xb8] sm:$0xff]   ;;  %v9832_v45 = vsel %vm14184_vm1, %v11635_v9, %v9831_v36  ;;  %v10417_v22 = vrot.slane %v16589_v11, 5 }
 0x5eb   : > { %12754 = vmatprep.subr.bf16.mxu0 %v13417_v17  ;;  %v9844_v59 = vsel %vm14184_vm1, %v11638_v27, %v9843_v57  ;;  %v10225_v27 = vshll.u32 %v10133_v25, 16 }
 0x5ec   : > { %v9611_v39 = vrot.slane %v9610_v24, 4  ;;  %v9816_v8 = vsel %vm14184_vm1, %v11631_v10, %v9815_v7  ;;  %v13428_v24 = vld [vmem:[%s16711_s7 + $0xc0] sm:$0xff]  }
 0x5ed   : > { %12747 = vmatmul.mubr.msk.bf16.vlgmr.msra.gmra.mrb[72].mxu0 %vm2017_vm11, %v13418_v33  ;;  %v9630_v33 = vsel %vm13672_vm10, %v9625_v49, %v9629_v13  ;;  %v10121_v49 = vld [vmem:[#allocation3 + $0x10] sm:$0xf] }
 0x5ee   : > { %12755 = vmatpush3.bf16.msra.mxu0 %v13417_v17  ;;  %12750 = vmatprep.mubr.msk.bf16.mxu0 %vm2017_vm11, %v13419_v50  ;;  %v9583_v17 = vrot.slane %v9582_v14, 4  ;;  %v9616_v55 = vsel %vm13672_vm10, %v9611_v39, %v9615_v58  ;;  %v10138_v39 = vshrl.u32 %v10121_v49, 16  ;;  %v10141_v13 = vshll.u32 %v10121_v49, 16  ;;  %v16591_v49 = vld [vmem:[#allocation3 + $0x34] sm:$0x1] }
 0x5ef   : > { %12756 = vmatprep.subr.bf16.mxu0 %v13420_v23  ;;  %v11621_v16 = vcombine.low %v9616_v55, %v9630_v33  ;;  %v16567_v55 = vld [vmem:[#allocation3 + $0x14] sm:$0x1] }
 0x5f0   : > { %v9588_v6 = vsel %vm13672_vm10, %v9583_v17, %v9587_v62  ;;  %v13430_v62 = vld [vmem:[%s16711_s7 + $0xd0] sm:$0xff]   ;;  %v10140_v58 = vrot.slane %v10138_v39, 4  ;;  %v10143_v33 = vrot.slane %v10141_v13, 5  ;;  %v10147_v10 = vshll.u32 %v16567_v55, 16 }
 0x5f1   : > { %v11620_v50 = vcombine.low %v9588_v6, %v9602_v19  ;;  %v10123_v19 = vld [vmem:[#allocation3 + $0x18] sm:$0xf] }
 0x5f2   : > { %12757 = vmatpush3.bf16.msra.mxu0 %v13420_v23  ;;  %v16503_v23 = vld [vmem:[#allocation3 + $0x3c] sm:$0x1]  ;;  %v10155_v6 = vshll.u32 %v10123_v19, 16 }
 0x5f3   : > { %12758 = vmatprep.subr.bf16.mxu0 %v13421_v3  ;;  %v9641_v48 = vshll.u32 %v16503_v23, 16 }
 0x5f4   : > { %v10157_v5 = vrot.slane %v10155_v6, 5  ;;  %v10203_v6 = vshll.u32 %v16591_v49, 16 }
 0x5f5   : > { %12751 = vmatmul.mubr.msk.bf16.gmra.mrb[76].mxu0 %vm2017_vm11, %v13422_v21  ;;  %v9643_v0 = vrot.slane %v9641_v48, 5  ;;  %v11636_v21 = vrot.slane %v9794_v47, 9 }
 0x5f6   : > { %12759 = vmatpush3.bf16.msra.mxu0 %v13421_v3  ;;  %12762 = vmatprep.mubr.msk.bf16.mxu0 %vm2017_vm11, %v11619_v12  ;;  %v9819_v3 = vrot.slane %v16459_v32, 5  ;;  %v9828_v12 = vsel %vm14184_vm1, %v11634_v20, %v9827_v60  ;;  %v13435_v60 = vld [vmem:[#allocation3 + $0x30] ss:$8 sps:$4 sm:$0xff]  }
 0x5f7   : > { %12760 = vmatprep.subr.bf16.mxu0 %v13423_v52  ;;  %v9644_v38 = vsel %vm13672_vm10, %v9639_v61, %v9643_v0  ;;  %v9836_v34 = vsel %vm14184_vm1, %v11636_v21, %v9835_v18  ;;  %v10194_v0 = vshrl.u32 %v10129_v51, 16  ;;  %v10149_v21 = vrot.slane %v10147_v10, 5 }
 0x5f8   : > { %v9820_v32 = vsel %vm14184_vm1, %v11632_v2, %v9819_v3  ;;  %v11622_v26 = vcombine.low %v9644_v38, %v9658_v56  ;;  %v11649_v17 = vcombine.low %v9832_v45, %v9836_v34  ;;  %v13433_v2 = vld [vmem:[%s16711_s7 + $0xe0] sm:$0xff]   ;;  %v10125_v3 = vld [vmem:[#allocation3 + $0x20] sm:$0xf]  ;;  %v10197_v56 = vshll.u32 %v10129_v51, 16 }
 0x5f9   : > { %v11647_v14 = vcombine.low %v9816_v8, %v9820_v32  ;;  %v13436_v32 = vld [vmem:[%s16711_s7 + $0xe8] sm:$0xff]   ;;  %v10166_v47 = vshrl.u32 %v10125_v3, 16  ;;  %v13434_v8 = vld [vmem:[#allocation3 + $0x20] ss:$8 sps:$4 sm:$0xff]   ;;  %v10196_v18 = vrot.slane %v10194_v0, 4 }
 0x5fa   : > { %12761 = vmatpush3.bf16.msra.mxu0 %v13423_v52  ;;  %v11633_v52 = vrot.slane %v9791_v43, 9 }
 0x5fb   : > { %12770 = vmatprep.subr.bf16.mxu0 %v13424_v28 }
 0x5fc   : > { %v9824_v40 = vsel %vm14184_vm1, %v11633_v52, %v9823_v53  ;;  %v10199_v52 = vrot.slane %v10197_v56, 5  ;;  %v10135_v53 = vld [vmem:[#allocation3 + $0x48] sm:$0xf] }
 0x5fd   : > { %12763 = vmatmul.mubr.msk.bf16.vlgmr.msra.gmra.mrb[72].mxu0 %vm2017_vm11, %v11620_v50  ;;  %v11648_v63 = vcombine.low %v9824_v40, %v9828_v12  ;;  %v10127_v50 = vld [vmem:[#allocation3 + $0x28] sm:$0xf]  ;;  %v10168_v12 = vrot.slane %v10166_v47, 4  ;;  %v16587_v40 = vld [vmem:[#allocation3 + $0x24] sm:$0x1]  ;;  %v10236_v57 = vshrl.u32 %v10135_v53, 16 }
 0x5fe   : > { %12771 = vmatpush3.bf16.msra.mxu0 %v13424_v28  ;;  %12766 = vmatprep.mubr.msk.bf16.mxu0 %vm2017_vm11, %v11621_v16  ;;  %v9839_v28 = vrot.slane %v16503_v23, 5  ;;  %v10152_v23 = vshrl.u32 %v10123_v19, 16  ;;  %v10144_v16 = vor.u32 %v10143_v33, %v10140_v58  ;;  %v10180_v61 = vshrl.u32 %v10127_v50, 16  ;;  %v13439_v33 = vld [vmem:[%s16711_s7 + $0xf8] sm:$0xff]  }
 0x5ff   : > { %12772 = vmatprep.subr.bf16.mxu0 %v13425_v37  ;;  %v10183_v1 = vshll.u32 %v10127_v50, 16  ;;  %v10189_v19 = vshll.u32 %v16589_v11, 16  ;;  %v10238_v50 = vrot.slane %v10236_v57, 4  ;;  %v10381_v57 = vld [vmem:[#allocation3 + $0x20] sm:$0xe]  ;;  %v13444_v11 = vld [vmem:[%s16713_s9] sm:$0xff]  }
 0x600   : > { %v9840_v46 = vsel %vm14184_vm1, %v11637_v29, %v9839_v28  ;;  %v10154_v48 = vrot.slane %v10152_v23, 4  ;;  %v10145_v44 = vrot.slane %v10144_v16, 4  ;;  %v10239_v29 = vshll.u32 %v10135_v53, 16 }
 0x601   : > { %v11650_v4 = vcombine.low %v9840_v46, %v9844_v59  ;;  %v10185_v43 = vrot.slane %v10183_v1, 5  ;;  %v10200_v28 = vor.u32 %v10199_v52, %v10196_v18  ;;  %v16597_v59 = vld [vmem:[#allocation3 + $0x3c] sm:$0x1]  ;;  %v13438_v46 = vld [vmem:[#allocation3 + $0x40] ss:$8 sps:$4 sm:$0xff]  }
 0x602   : > { %12773 = vmatpush3.bf16.msra.mxu0 %v13425_v37  ;;  %v16570_v37 = vld [vmem:[#allocation3 + $0x1c] sm:$0x1]  ;;  %v10158_v38 = vor.u32 %v10157_v5, %v10154_v48  ;;  %v10150_v42 = vsel %vm13672_vm10, %v10145_v44, %v10149_v21  ;;  %v10241_v16 = vrot.slane %v10239_v29, 5  ;;  %v10217_v5 = vshll.u32 %v16597_v59, 16  ;;  %v10380_v52 = vld [vmem:[#allocation3 + $0x18] sm:$0xe] }
 0x603   : > { %12774 = vmatprep.subr.bf16.mxu0 %v13426_v30  ;;  %v10161_v7 = vshll.u32 %v16570_v37, 16  ;;  %v10201_v48 = vrot.slane %v10200_v28, 4 }
 0x604   : > { %v10159_v9 = vrot.slane %v10158_v38, 4  ;;  %v10219_v47 = vrot.slane %v10217_v5, 5 }
 0x605   : > { %12767 = vmatmul.mubr.msk.bf16.gmra.mrb[76].mxu0 %vm2017_vm11, %v11622_v26  ;;  %v10169_v26 = vshll.u32 %v10125_v3, 16  ;;  %v10163_v36 = vrot.slane %v10161_v7, 5  ;;  %v16606_v3 = vld [vmem:[#allocation3 + $0x44] sm:$0x1]  ;;  %v16611_v7 = vld [vmem:[#allocation3 + $0x4c] sm:$0x1] }
 0x606   : > { %12775 = vmatpush3.bf16.msra.mxu0 %v13426_v30  ;;  %12778 = vmatprep.mubr.msk.bf16.mxu0 %vm2017_vm11, %v11647_v14  ;;  %v10131_v30 = vld [vmem:[#allocation3 + $0x38] sm:$0xf]  ;;  %v10245_v44 = vshll.u32 %v16611_v7, 16 }
 0x607   : > { %12776 = vmatprep.subr.bf16.mxu0 %v13427_v41  ;;  %v10208_v14 = vshrl.u32 %v10131_v30, 16  ;;  %v10211_v20 = vshll.u32 %v10131_v30, 16  ;;  %v10171_v34 = vrot.slane %v10169_v26, 5  ;;  %v10164_v39 = vsel %vm13672_vm10, %v10159_v9, %v10163_v36  ;;  %v13442_v36 = vld [vmem:[%s16711_s7 + $0x110] sm:$0xff]  }
 0x608   : > { %v11687_v58 = vcombine.low %v10150_v42, %v10164_v39  ;;  %v10205_v30 = vrot.slane %v10203_v6, 5  ;;  %v10247_v18 = vrot.slane %v10245_v44, 5  ;;  %v10384_v39 = vld [vmem:[#allocation3 + $0x38] sm:$0xe]  ;;  %v10385_v6 = vld [vmem:[#allocation3 + $0x40] sm:$0xe] }
 0x609   : > { %v10210_v45 = vrot.slane %v10208_v14, 4  ;;  %v10172_v13 = vor.u32 %v10171_v34, %v10168_v12  ;;  %v11700_v12 = vrot.slane %v10380_v52, 9  ;;  %v10409_v34 = vrot.slane %v16570_v37, 5  ;;  %v13443_v37 = vld [vmem:[%s16711_s7 + $0x118] sm:$0xff]  }
 0x60a   : > { %12777 = vmatpush3.bf16.msra.mxu0 %v13427_v41  ;;  %v10182_v41 = vrot.slane %v10180_v61, 4  ;;  %v13440_v61 = vld [vmem:[%s16711_s7 + $0x100] sm:$0xff]   ;;  %v10206_v38 = vsel %vm13672_vm10, %v10201_v48, %v10205_v30  ;;  %v10429_v48 = vrot.slane %v16606_v3, 5  ;;  %v13447_v30 = vld [vmem:[%s16713_s9 + $0x18] sm:$0xff]  }
 0x60b   : > { %12786 = vmatprep.subr.bf16.mxu0 %v13428_v24  ;;  %v10173_v51 = vrot.slane %v10172_v13, 4 }
 0x60d   : > { %12779 = vmatmul.mubr.msk.bf16.vlgmr.msra.gmra.mrb[72].mxu0 %vm2017_vm11, %v11648_v63  ;;  %v10186_v63 = vor.u32 %v10185_v43, %v10182_v41  ;;  %v10379_v41 = vld [vmem:[#allocation3 + $0x10] sm:$0xe] }
 0x60e   : > { %12787 = vmatpush3.bf16.msra.mxu0 %v13428_v24  ;;  %12782 = vmatprep.mubr.msk.bf16.mxu0 %vm2017_vm11, %v11649_v17  ;;  %v13437_v24 = vld [vmem:[%s16711_s7 + $0xf0] sm:$0xff]   ;;  %v10222_v17 = vshrl.u32 %v10133_v25, 16  ;;  %v11699_v53 = vrot.slane %v10379_v41, 9 }
 0x60f   : > { %12788 = vmatprep.subr.bf16.mxu0 %v13429_v35  ;;  %v10187_v23 = vrot.slane %v10186_v63, 4 }
 0x612   : > { %12789 = vmatpush3.bf16.msra.mxu0 %v13429_v35  ;;  %v10213_v35 = vrot.slane %v10211_v20, 5  ;;  %v13441_v20 = vld [vmem:[%s16711_s7 + $0x108] sm:$0xff]  }
 0x613   : > { %12790 = vmatprep.subr.bf16.mxu0 %v13430_v62 }
 0x615   : > { %12783 = vmatmul.mubr.msk.bf16.gmra.mrb[76].mxu0 %vm2017_vm11, %v11650_v4  ;;  %v10214_v4 = vor.u32 %v10213_v35, %v10210_v45  ;;  %v10382_v45 = vld [vmem:[#allocation3 + $0x28] sm:$0xe]  ;;  %v10383_v35 = vld [vmem:[#allocation3 + $0x30] sm:$0xe] }
 0x616   : > { %12791 = vmatpush3.bf16.msra.mxu0 %v13430_v62  ;;  %12794 = vmatprep.mubr.msk.bf16.mxu0 %vm2017_vm11, %v13431_v54  ;;  %v10175_v62 = vshll.u32 %v16587_v40, 16  ;;  %v10227_v54 = vrot.slane %v10225_v27, 5  ;;  %v10410_v27 = vsel %vm14184_vm1, %v11700_v12, %v10409_v34  ;;  %v11702_v28 = vrot.slane %v10382_v45, 9  ;;  %v11728_v45 = vld [vmem:[%s16714_s10] ss:$0 sm:$0xff] }
 0x617   : > { %12792 = vmatprep.subr.bf16.mxu0 %v13432_v15  ;;  %v10215_v10 = vrot.slane %v10214_v4, 4  ;;  %v11703_v13 = vrot.slane %v10383_v35, 9  ;;  %v10386_v4 = vld [vmem:[#allocation3 + $0x48] sm:$0xe] }
 0x618   : > { %v10177_v1 = vrot.slane %v10175_v62, 5  ;;  %v10421_v62 = vrot.slane %v16591_v49, 5  ;;  %v11706_v5 = vrot.slane %v10386_v4, 9 }
 0x619   : > { %v10220_v14 = vsel %vm13672_vm10, %v10215_v10, %v10219_v47 }
 0x61a   : > { %12793 = vmatpush3.bf16.msra.mxu0 %v13432_v15  ;;  %v10224_v15 = vrot.slane %v10222_v17, 4  ;;  %v10178_v26 = vsel %vm13672_vm10, %v10173_v51, %v10177_v1  ;;  %v10422_v49 = vsel %vm14184_vm1, %v11703_v13, %v10421_v62  ;;  %v10433_v51 = vrot.slane %v16611_v7, 5 }
 0x61b   : > { %12802 = vmatprep.subr.bf16.mxu0 %v13433_v2 }
 0x61c   : > { %v10228_v56 = vor.u32 %v10227_v54, %v10224_v15  ;;  %v11705_v54 = vrot.slane %v10385_v6, 9 }
 0x61d   : > { %12795 = vmatmul.mubr.msk.bf16.vlgmr.msra.gmra.mrb[72].mxu0 %vm2017_vm11, %v13434_v8  ;;  %v10231_v8 = vshll.u32 %v16606_v3, 16  ;;  %v13446_v3 = vld [vmem:[%s16713_s9 + $0x10] sm:$0xff]  }
 0x61e   : > { %12803 = vmatpush3.bf16.msra.mxu0 %v13433_v2  ;;  %12798 = vmatprep.mubr.msk.bf16.mxu0 %vm2017_vm11, %v13435_v60  ;;  %v10191_v2 = vrot.slane %v10189_v19, 5  ;;  %v11689_v60 = vcombine.low %v10206_v38, %v10220_v14  ;;  %v10229_v25 = vrot.slane %v10228_v56, 4  ;;  %v11701_v19 = vrot.slane %v10381_v57, 9 }
 0x61f   : > { %12804 = vmatprep.subr.bf16.mxu0 %v13436_v32  ;;  %v10233_v9 = vrot.slane %v10231_v8, 5 }
 0x620   : > { %v10192_v0 = vsel %vm13672_vm10, %v10187_v23, %v10191_v2  ;;  %v10418_v23 = vsel %vm14184_vm1, %v11702_v28, %v10417_v22  ;;  %v10430_v2 = vsel %vm14184_vm1, %v11705_v54, %v10429_v48 }
 0x621   : > { %v11688_v43 = vcombine.low %v10178_v26, %v10192_v0  ;;  %v10234_v42 = vsel %vm13672_vm10, %v10229_v25, %v10233_v9 }
 0x622   : > { %12805 = vmatpush3.bf16.msra.mxu0 %v13436_v32  ;;  %v10242_v32 = vor.u32 %v10241_v16, %v10238_v50  ;;  %v13445_v50 = vld [vmem:[%s16713_s9 + $0x8] sm:$0xff]  }
 0x623   : > { %12806 = vmatprep.subr.bf16.mxu0 %v13437_v24 }
 0x624   : > { %v10243_v21 = vrot.slane %v10242_v32, 4 }
 0x625   : > { %12799 = vmatmul.mubr.msk.bf16.gmra.mrb[76].mxu0 %vm2017_vm11, %v13438_v46  ;;  %v10413_v46 = vrot.slane %v16587_v40, 5 }
 0x626   : > { %12807 = vmatpush3.bf16.msra.mxu0 %v13437_v24  ;;  %12810 = vmatprep.mubr.msk.bf16.mxu0 %vm2017_vm11, %v11687_v58  ;;  %v10405_v24 = vrot.slane %v16567_v55, 5  ;;  %v10248_v63 = vsel %vm13672_vm10, %v10243_v21, %v10247_v18  ;;  %v11704_v58 = vrot.slane %v10384_v39, 9 }
 0x627   : > { %12808 = vmatprep.subr.bf16.mxu0 %v13439_v33  ;;  %v11690_v17 = vcombine.low %v10234_v42, %v10248_v63  ;;  %v10414_v40 = vsel %vm14184_vm1, %v11701_v19, %v10413_v46 }
 0x628   : > { %v10406_v55 = vsel %vm14184_vm1, %v11699_v53, %v10405_v24  ;;  %v11716_v15 = vcombine.low %v10414_v40, %v10418_v23 }
 0x629   : > { %v11715_v29 = vcombine.low %v10406_v55, %v10410_v27 }
 0x62a   : > { %12809 = vmatpush3.bf16.msra.mxu0 %v13439_v33  ;;  %v10425_v33 = vrot.slane %v16597_v59, 5 }
 0x62b   : > { %12818 = vmatprep.subr.bf16.mxu0 %v13440_v61 }
 0x62c   : > { %v10426_v59 = vsel %vm14184_vm1, %v11704_v58, %v10425_v33 }
 0x62d   : > { %12811 = vmatmul.mubr.msk.bf16.vlgmr.msra.gmra.mrb[72].mxu0 %vm2017_vm11, %v11688_v43  ;;  %v11717_v16 = vcombine.low %v10422_v49, %v10426_v59 }
 0x62e   : > { %12819 = vmatpush3.bf16.msra.mxu0 %v13440_v61  ;;  %12814 = vmatprep.mubr.msk.bf16.mxu0 %vm2017_vm11, %v11689_v60  ;;  %v10434_v61 = vsel %vm14184_vm1, %v11706_v5, %v10433_v51 }
 0x62f   : > { %12820 = vmatprep.subr.bf16.mxu0 %v13441_v20  ;;  %v11718_v1 = vcombine.low %v10430_v2, %v10434_v61 }
 0x632   : > { %12821 = vmatpush3.bf16.msra.mxu0 %v13441_v20 }
 0x633   : > { %12822 = vmatprep.subr.bf16.mxu0 %v13442_v36 }
 0x635   : > { %12815 = vmatmul.mubr.msk.bf16.gmra.mrb[76].mxu0 %vm2017_vm11, %v11690_v17 }
 0x636   : > { %12823 = vmatpush3.bf16.msra.mxu0 %v13442_v36  ;;  %12826 = vmatprep.mubr.msk.bf16.mxu0 %vm2017_vm11, %v11715_v29 }
 0x637   : > { %12824 = vmatprep.subr.bf16.mxu0 %v13443_v37 }
 0x63a   : > { %12825 = vmatpush3.bf16.msra.mxu0 %v13443_v37 }
 0x63b   : > { %12834 = vmatprep.subr.bf16.mxu0 %v13444_v11 }
 0x63d   : > { %12827 = vmatmul.mubr.msk.bf16.vlgmr.msra.gmra.mrb[72].mxu0 %vm2017_vm11, %v11716_v15 }
 0x63e   : > { %12830 = vmatprep.mubr.msk.bf16.mxu0 %vm2017_vm11, %v11717_v16  ;;  %12835 = vmatpush3.bf16.msra.mxu0 %v13444_v11 }
 0x63f   : > { %12836 = vmatprep.subr.bf16.mxu0 %v13445_v50 }
 0x642   : > { %12837 = vmatpush3.bf16.msra.mxu0 %v13445_v50 }
 0x643   : > { %12838 = vmatprep.subr.bf16.mxu0 %v13446_v3 }
 0x645   : > { %12831 = vmatmul.mubr.msk.bf16.gmra.mrb[76].mxu0 %vm2017_vm11, %v11718_v1 }
 0x646   : > { %12839 = vmatpush3.bf16.msra.mxu0 %v13446_v3 }
 0x647   : > { %12840 = vmatprep.subr.bf16.mxu0 %v13447_v30 }
 0x64a   : > { %12841 = vmatpush3.bf16.msra.mxu0 %v13447_v30 }
 0x710   : > { %v12828_v10 = vpop.f32.mrb[72].mxu0 }
 0x711   : > { %v10574_v7 = vadd.f32 %v12828_v10, %v11727_v31  ;;  %v10526_v0 = vpop.f32.mrb[73].mxu0 }
 0x712   : > { %v10572_v56 = vadd.f32 %v11727_v31, %v10526_v0  ;;  %v12829_v32 = vpop.f32.mrb[74].mxu0 }
 0x713   : > { %v10575_v44 = vadd.f32 %v12829_v32, %v11727_v31  ;;  %v10529_v38 = vpop.f32.mrb[75].mxu0  ;;  %v10582_v26 = vmax.f32 %v10574_v7, 0.0 }
 0x714   : > { %v10573_v47 = vadd.f32 %v11727_v31, %v10529_v38  ;;  %v10580_v41 = vmax.f32 %v10572_v56, 0.0 }
 0x715   : > { %v10583_v8 = vmax.f32 %v10575_v44, 0.0 }
 0x716   : > { %v10581_v43 = vmax.f32 %v10573_v47, 0.0 }
 0x717   : > { %v10589_v14 = vpack.c.bf16 %v10583_v8, %v10582_v26 }
 0x718   : > { %v10588_v20 = vpack.c.bf16 %v10581_v43, %v10580_v41  ;;  %v12832_v60 = vpop.f32.mrb[76].mxu0 }
 0x719   : > { %v10578_v25 = vadd.f32 %v12832_v60, %v11727_v31  ;;  %v10542_v21 = vpop.f32.mrb[77].mxu0 }
 0x71a   : > { %v10576_v18 = vadd.f32 %v11727_v31, %v10542_v21  ;;  %v12833_v52 = vpop.f32.mrb[78].mxu0  ;;  %12842 = vmatprep.mubr.msk.bf16.mxu0 %vm2017_vm11, %v10588_v20 }
 0x71b   : > { %v10579_v53 = vadd.f32 %v12833_v52, %v11727_v31  ;;  %v10545_v24 = vpop.f32.mrb[79].mxu0  ;;  %12843 = vmatmul.mubr.msk.bf16.vlgmr.msra.gmra.mrb[80].mxu0 %vm2017_vm11, %v10589_v14  ;;  %v10586_v36 = vmax.f32 %v10578_v25, 0.0 }
 0x71c   : > { %v10577_v9 = vadd.f32 %v11727_v31, %v10545_v24  ;;  %v10584_v34 = vmax.f32 %v10576_v18, 0.0 }
 0x71d   : > { %v10587_v12 = vmax.f32 %v10579_v53, 0.0 }
 0x71e   : > { %v10585_v42 = vmax.f32 %v10577_v9, 0.0 }
 0x71f   : > { %v10591_v63 = vpack.c.bf16 %v10587_v12, %v10586_v36 }
 0x720   : > { %v10590_v55 = vpack.c.bf16 %v10585_v42, %v10584_v34 }
 0x722   : > { %12846 = vmatprep.mubr.msk.bf16.mxu0 %vm2017_vm11, %v10590_v55 }
 0x723   : > { %12847 = vmatmul.mubr.msk.bf16.gmra.mrb[84].mxu0 %vm2017_vm11, %v10591_v63 }
 0x7ee   : > { %v12844_v35 = vpop.f32.mrb[80].mxu0 }
 0x7ef   : > { %v10686_v17 = vadd.f32 %v12844_v35, %v11728_v45  ;;  %v10677_v27 = vpop.f32.mrb[81].mxu0 }
 0x7f0   : > { %v10678_v37 = vadd.f32 %v11728_v45, %v10677_v27  ;;  %v12845_v57 = vpop.f32.mrb[82].mxu0 }
 0x7f1   : > { %10711 = vst.msk [vmem:[%s386_s15 + $0x10] sm:$0xff] %vm10708_vm4, %v10686_v17  ;;  %v10689_v29 = vadd.f32 %v12845_v57, %v11728_v45  ;;  %v10680_v28 = vpop.f32.mrb[83].mxu0 }
 0x7f2   : > { %10709 = vst.msk [vmem:[%s386_s15] sm:$0xff] %vm10708_vm4, %v10678_v37  ;;  %v10681_v22 = vadd.f32 %v11728_v45, %v10680_v28 }
 0x7f3   : > { %10712 = vst.msk [vmem:[%s386_s15 + $0x18] sm:$0xff] %vm10708_vm4, %v10689_v29 }
 0x7f4   : > { %10710 = vst.msk [vmem:[%s386_s15 + $0x8] sm:$0xff] %vm10708_vm4, %v10681_v22 }
 0x7f6   : > { %v12848_v39 = vpop.f32.mrb[84].mxu0 }
 0x7f7   : > { %v10702_v13 = vadd.f32 %v12848_v39, %v11728_v45  ;;  %v10693_v62 = vpop.f32.mrb[85].mxu0 }
 0x7f8   : > { %v10694_v19 = vadd.f32 %v11728_v45, %v10693_v62  ;;  %v12849_v46 = vpop.f32.mrb[86].mxu0 }
 0x7f9   : > { %10715 = vst.msk [vmem:[%s386_s15 + $0x30] sm:$0xff] %vm10708_vm4, %v10702_v13  ;;  %v10705_v58 = vadd.f32 %v12849_v46, %v11728_v45  ;;  %v10696_v33 = vpop.f32.mrb[87].mxu0 }
 0x7fa   : > { %10713 = vst.msk [vmem:[%s386_s15 + $0x20] sm:$0xff] %vm10708_vm4, %v10694_v19  ;;  %v10697_v11 = vadd.f32 %v11728_v45, %v10696_v33 }
 0x7fb   : > { %10716 = vst.msk [vmem:[%s386_s15 + $0x38] sm:$0xff] %vm10708_vm4, %v10705_v58 }
 0x7fc   : > { %10714 = vst.msk [vmem:[%s386_s15 + $0x28] sm:$0xff] %vm10708_vm4, %v10697_v11 }
 0x7fd PF: > { %s21_s17 = sadd.s32 1, %s13473_s17  }
 0x7fe   : > { %p18_p4 = scmp.ge.s32.totalorder %s21_s17, 4  }
 0x800   :  { %20 = sbr.rel (!%p18_p4) target bundleno = 1 (0x1), region = 124 }

</bundles_post_ra>
